<compile_context>
chip_gen: v7x
topology: tpu7x:2x2x1
jax: 0.10.0
libtpu: 0.0.40
codegen_flags: <defaults>
</compile_context>

<pallas_src>
import functools
import math

import jax
import jax.numpy as jnp
from jax.experimental import pallas as pl
from jax.experimental.pallas import tpu as pltpu


def _layernorm(h, gamma, beta, eps=1e-5):
    # h: (M, D) f32; gamma/beta: (1, D) broadcast.  Biased variance == PyTorch.
    mu = jnp.mean(h, axis=-1, keepdims=True)
    var = jnp.mean((h - mu) * (h - mu), axis=-1, keepdims=True)
    return (h - mu) * jax.lax.rsqrt(var + eps) * gamma + beta


def _softmax(s):
    # s: (..., S); numerically-stable softmax over last dim.  The reciprocal
    # lowers to the EUP slot and co-issues with MXU/VPU work.
    m = jnp.max(s, axis=-1, keepdims=True)
    e = jnp.exp(s - m)
    return e * pl.reciprocal(jnp.sum(e, axis=-1, keepdims=True), approx=True)


def encoder_layer_kernel(
    x_ref,
    ln1_g_ref, ln1_b_ref,
    wqkv_ref, bqkv_ref, wo_ref, bo_ref,
    ln2_g_ref, ln2_b_ref,
    w1_ref, b1_ref, w2_ref, b2_ref,
    out_ref,
    attn_ref,                                          # VMEM scratch (M, D) bf16
    *, num_heads: int,
):
    xb = x_ref[...]                                    # (TB, S, D) f32
    TB, S, D = xb.shape
    M = TB * S
    dh = D // num_heads
    scale = 1.0 / math.sqrt(dh)

    x = xb.reshape(M, D)                               # fuse batch*seq -> matmul M dim

    # ---- sub-block 1: pre-norm multi-head self-attention + residual --------
    h = _layernorm(x, ln1_g_ref[...], ln1_b_ref[...])
    qkv = jnp.dot(h.astype(jnp.bfloat16), wqkv_ref[...],
                  preferred_element_type=jnp.float32) + bqkv_ref[...]   # (M, 3D)

    # fold 1/sqrt(dh) into Q once instead of scaling every (S,S) score matrix
    q = (qkv[:, :D] * scale).reshape(TB, S, D).astype(jnp.bfloat16)
    k = qkv[:, D:2 * D].reshape(TB, S, D).astype(jnp.bfloat16)
    v = qkv[:, 2 * D:].reshape(TB, S, D).astype(jnp.bfloat16)

    # Per-head scores/softmax/value (rank-3 einsums, contracting last dims ->
    # no explicit K transpose); each head's output lands in its lane slice of
    # the bf16 scratch slab so the output projection is a single K=D matmul.
    # TODO(synk): for long sequences (S >= ~512) replace the materialized
    # (S, S) scores with a flash-style K/V tile loop (online softmax).
    # TODO(synk): fuse the head loop into one 'bqhd,bkhd->bhqk' einsum pair
    # once Mosaic dot_general with two batch dims is verified on this version.
    for hd in range(num_heads):                        # static unroll, num_heads small
        lo = hd * dh
        qh = q[:, :, lo:lo + dh]
        kh = k[:, :, lo:lo + dh]
        vh = v[:, :, lo:lo + dh]
        s = jnp.einsum('bqd,bkd->bqk', qh, kh,
                       preferred_element_type=jnp.float32)            # (TB, S, S)
        p = _softmax(s).astype(jnp.bfloat16)
        oh = jnp.einsum('bqk,bkd->bqd', p, vh,
                        preferred_element_type=jnp.float32)           # (TB, S, dh)
        attn_ref[:, lo:lo + dh] = oh.reshape(M, dh).astype(jnp.bfloat16)

    # Single (M, D) x (D, D) output projection — one weight push, full-depth K.
    att = jnp.dot(attn_ref[...], wo_ref[...], preferred_element_type=jnp.float32)
    x1 = x + att + bo_ref[...]

    # ---- sub-block 2: pre-norm MLP + residual -------------------------------
    h2 = _layernorm(x1, ln2_g_ref[...], ln2_b_ref[...])
    m1 = jnp.dot(h2.astype(jnp.bfloat16), w1_ref[...],
                 preferred_element_type=jnp.float32) + b1_ref[...]
    m1 = jnp.maximum(m1, 0.0)                          # ReLU
    # TODO(synk): dropout is identity here (eval semantics); training-mode
    # dropout would use pltpu.prng_random_bits + mask.
    m2 = jnp.dot(m1.astype(jnp.bfloat16), w2_ref[...],
                 preferred_element_type=jnp.float32) + b2_ref[...]

    out_ref[...] = (x1 + m2).reshape(TB, S, D)


def _replicated_spec(shape):
    # Whole-array block, constant index_map (fetched once, reused across all
    # grid steps), SINGLE-buffered: double-buffering a constant-index weight
    # block wastes VMEM for zero bandwidth benefit (critical on v7x's 64 MiB).
    idx_map = lambda b: tuple(0 for _ in shape)
    try:
        return pl.BlockSpec(shape, idx_map, pipeline_mode=pl.Buffered(1))
    except Exception:                                  # older Pallas: no pipeline_mode
        return pl.BlockSpec(shape, idx_map)


def _batch_tile(B, S, target_rows=256):
    # Smallest divisor TB of B with TB*S >= target_rows (feeds the 256-wide
    # v6e/v7x MXU a healthy M dimension), capped at B//2 so the batch grid has
    # at least 2 steps and "parallel" can shard across both v7x TensorCores.
    max_tb = B // 2 if B >= 2 else B
    best = 1
    for tb in range(1, max_tb + 1):
        if B % tb == 0:
            best = tb
            if tb * S >= target_rows:
                return tb
    return best


def _vmem_limit_bytes():
    # ~75% of the chip's VMEM (v5e/v6e: 128 MiB -> 96 MiB, v7x: 64 MiB -> 48 MiB).
    # Fallback stays at 48 MiB so we never request v7x's entire physical VMEM.
    try:
        return int(pltpu.get_tpu_info().vmem_capacity_bytes) * 3 // 4
    except Exception:
        return 48 * 1024 * 1024


def encoder_layer(x, params, *, num_heads):
    """One EncoderLayer forward.  x: (B, S, D) f32, params: packed dict.

    Weights are expected pre-transposed ([in, out]) vs nn.Linear's [out, in].
    """
    B, S, D = x.shape
    F = params["w1"].shape[1]
    assert D % num_heads == 0, "emb_dim must be divisible by num_heads"
    # TODO(synk): for S % 8 != 0 (e.g. ViT's S=197) pad S on the host with an
    # attention mask, or keep LayerNorm/matmuls on the (TB,S,D) view to avoid
    # a per-step relayout copy from the in-kernel (TB,S,D)->(TB*S,D) reshape.
    assert S % 8 == 0, "S must be a multiple of 8 (f32 sublane alignment)"
    TB = _batch_tile(B, S)

    ordered = [
        ("ln1_g", (1, D)), ("ln1_b", (1, D)),
        ("wqkv", (D, 3 * D)), ("bqkv", (1, 3 * D)),
        ("wo", (D, D)), ("bo", (1, D)),
        ("ln2_g", (1, D)), ("ln2_b", (1, D)),
        ("w1", (D, F)), ("b1", (1, F)),
        ("w2", (F, D)), ("b2", (1, D)),
    ]
    in_specs = [pl.BlockSpec((TB, S, D), lambda b: (b, 0, 0))]
    args = [x]
    for name, shp in ordered:
        in_specs.append(_replicated_spec(shp))
        args.append(params[name].reshape(shp))

    kernel = functools.partial(encoder_layer_kernel, num_heads=num_heads)
    return pl.pallas_call(
        kernel,
        out_shape=jax.ShapeDtypeStruct((B, S, D), jnp.float32),
        grid_spec=pltpu.PrefetchScalarGridSpec(
            num_scalar_prefetch=0,
            grid=(B // TB,),
            in_specs=in_specs,
            out_specs=pl.BlockSpec((TB, S, D), lambda b: (b, 0, 0)),
            scratch_shapes=[pltpu.VMEM((TB * S, D), jnp.bfloat16)],
        ),
        # Update the activation in place: no fresh HBM buffer per layer.
        input_output_aliases={0: 0},
        compiler_params=pltpu.CompilerParams(
            dimension_semantics=("parallel",),
            vmem_limit_bytes=_vmem_limit_bytes(),
        ),
    )(*args)


def vit_encoder(x, layer_params, *, num_heads):
    """ViTEncoder forward: sequentially apply encoder layers."""
    # TODO(synk): hide the per-layer weight prologue by prefetching layer L+1's
    # weights during layer L via a cross-pallas_call DMA future (semaphore +
    # VMEM-ref outputs, has_side_effects=True).
    for p in layer_params:
        x = encoder_layer(x, p, num_heads=num_heads)
    return x


def init_layer_params(key, emb_dim, ff_scale):
    """PyTorch-style init; weights stored [in, out] and packed for the kernel."""
    D, F = emb_dim, ff_scale * emb_dim
    ks = jax.random.split(key, 6)

    def lin(k, fan_in, fan_out):
        bound = 1.0 / math.sqrt(fan_in)
        kw, kb = jax.random.split(k)
        w = jax.random.uniform(kw, (fan_in, fan_out), jnp.float32, -bound, bound)
        b = jax.random.uniform(kb, (fan_out,), jnp.float32, -bound, bound)
        return w, b

    wq, bq = lin(ks[0], D, D)
    wk, bk = lin(ks[1], D, D)
    wv, bv = lin(ks[2], D, D)
    wo, bo = lin(ks[3], D, D)
    w1, b1 = lin(ks[4], D, F)
    w2, b2 = lin(ks[5], F, D)

    # Packed params: fused QKV weight/bias; matmul weights in bf16 (f32 accum
    # in-kernel); LayerNorm params and biases stay f32.
    return {
        "ln1_g": jnp.ones((D,), jnp.float32), "ln1_b": jnp.zeros((D,), jnp.float32),
        "wqkv": jnp.concatenate([wq, wk, wv], axis=1).astype(jnp.bfloat16),
        "bqkv": jnp.concatenate([bq, bk, bv], axis=0),
        "wo": wo.astype(jnp.bfloat16), "bo": bo,
        "ln2_g": jnp.ones((D,), jnp.float32), "ln2_b": jnp.zeros((D,), jnp.float32),
        "w1": w1.astype(jnp.bfloat16), "b1": b1,
        "w2": w2.astype(jnp.bfloat16), "b2": b2,
    }


if __name__ == "__main__":
    config = {
        "ENCODER_LAYERS": 2,
        "HIDDEN_LAYER_SCALE": 4,
        "DROP_OUT": 0.0,
        "NUM_HEADS": 4,
    }
    # Small but lane-aligned shapes: D, 3D and F are multiples of 128; the
    # batch tiling gives M = TB*S = 128 rows per grid step and a 2-step grid.
    B, S, D = 8, 32, 128

    key = jax.random.PRNGKey(0)
    kx, kp = jax.random.split(key)
    x = jax.random.normal(kx, (B, S, D), jnp.float32)

    layer_keys = jax.random.split(kp, config["ENCODER_LAYERS"])
    layer_params = [
        init_layer_params(k, D, config["HIDDEN_LAYER_SCALE"]) for k in layer_keys
    ]

    # Donate the activation so the first layer's input/output alias does not
    # force a defensive copy of the (B, S, D) stream.
    @functools.partial(jax.jit, donate_argnums=0)
    def forward(tokens, params):
        return vit_encoder(tokens, params, num_heads=config["NUM_HEADS"])

    out = jax.block_until_ready(forward(x, layer_params))
    assert out.shape == (B, S, D) and out.dtype == jnp.float32
    assert bool(jnp.all(jnp.isfinite(out)))
    print("KERNEL_OK")
</pallas_src>

<mosaic_0001>
module attributes {stable_mosaic.version = 11 : i64} {
  func.func @encoder_layer_kernel(%arg0: i32, %arg1: memref<4x32x128xf32, #tpu.memory_space<vmem>>, %arg2: memref<1x128xf32, #tpu.memory_space<vmem>>, %arg3: memref<1x128xf32, #tpu.memory_space<vmem>>, %arg4: memref<128x384xbf16, #tpu.memory_space<vmem>>, %arg5: memref<1x384xf32, #tpu.memory_space<vmem>>, %arg6: memref<128x128xbf16, #tpu.memory_space<vmem>>, %arg7: memref<1x128xf32, #tpu.memory_space<vmem>>, %arg8: memref<1x128xf32, #tpu.memory_space<vmem>>, %arg9: memref<1x128xf32, #tpu.memory_space<vmem>>, %arg10: memref<128x512xbf16, #tpu.memory_space<vmem>>, %arg11: memref<1x512xf32, #tpu.memory_space<vmem>>, %arg12: memref<512x128xbf16, #tpu.memory_space<vmem>>, %arg13: memref<1x128xf32, #tpu.memory_space<vmem>>, %arg14: memref<4x32x128xf32, #tpu.memory_space<vmem>>, %arg15: memref<128x128xbf16, #tpu.memory_space<vmem>>) attributes {dimension_semantics = [#tpu.dimension_semantics<parallel>], iteration_bounds = array<i64: 2>, scalar_prefetch = 0 : i64, scratch_operands = 1 : i64, tpu.core_type = #tpu.core_type<tc>, window_params = [{transform_indices = @transform_0, window_bounds = array<i64: 4, 32, 128>}, {pipeline_mode = #tpu.pipeline_mode<synchronous>, transform_indices = @transform_1, window_bounds = array<i64: 1, 128>}, {pipeline_mode = #tpu.pipeline_mode<synchronous>, transform_indices = @transform_2, window_bounds = array<i64: 1, 128>}, {pipeline_mode = #tpu.pipeline_mode<synchronous>, transform_indices = @transform_3, window_bounds = array<i64: 128, 384>}, {pipeline_mode = #tpu.pipeline_mode<synchronous>, transform_indices = @transform_4, window_bounds = array<i64: 1, 384>}, {pipeline_mode = #tpu.pipeline_mode<synchronous>, transform_indices = @transform_5, window_bounds = array<i64: 128, 128>}, {pipeline_mode = #tpu.pipeline_mode<synchronous>, transform_indices = @transform_6, window_bounds = array<i64: 1, 128>}, {pipeline_mode = #tpu.pipeline_mode<synchronous>, transform_indices = @transform_7, window_bounds = array<i64: 1, 128>}, {pipeline_mode = #tpu.pipeline_mode<synchronous>, transform_indices = @transform_8, window_bounds = array<i64: 1, 128>}, {pipeline_mode = #tpu.pipeline_mode<synchronous>, transform_indices = @transform_9, window_bounds = array<i64: 128, 512>}, {pipeline_mode = #tpu.pipeline_mode<synchronous>, transform_indices = @transform_10, window_bounds = array<i64: 1, 512>}, {pipeline_mode = #tpu.pipeline_mode<synchronous>, transform_indices = @transform_11, window_bounds = array<i64: 512, 128>}, {pipeline_mode = #tpu.pipeline_mode<synchronous>, transform_indices = @transform_12, window_bounds = array<i64: 1, 128>}, {transform_indices = @transform_13, window_bounds = array<i64: 4, 32, 128>}]} {
    %c0 = arith.constant 0 : index
    %c0_0 = arith.constant 0 : index
    %c0_1 = arith.constant 0 : index
    %0 = vector.load %arg1[%c0, %c0_0, %c0_1] : memref<4x32x128xf32, #tpu.memory_space<vmem>>, vector<4x32x128xf32>
    %1 = vector.shape_cast %0 : vector<4x32x128xf32> to vector<128x128xf32>
    %c0_2 = arith.constant 0 : index
    %c0_3 = arith.constant 0 : index
    %2 = vector.load %arg2[%c0_2, %c0_3] : memref<1x128xf32, #tpu.memory_space<vmem>>, vector<1x128xf32>
    %c0_4 = arith.constant 0 : index
    %c0_5 = arith.constant 0 : index
    %3 = vector.load %arg3[%c0_4, %c0_5] : memref<1x128xf32, #tpu.memory_space<vmem>>, vector<1x128xf32>
    %cst = arith.constant dense<0.000000e+00> : vector<128xf32>
    %4 = vector.multi_reduction <add>, %1, %cst [1] : vector<128x128xf32> to vector<128xf32>
    %5 = vector.shape_cast %4 : vector<128xf32> to vector<128x1xf32>
    %cst_6 = arith.constant 1.280000e+02 : f32
    %6 = vector.broadcast %cst_6 : f32 to vector<128x1xf32>
    %7 = arith.divf %5, %6 : vector<128x1xf32>
    %8 = vector.broadcast %7 : vector<128x1xf32> to vector<128x128xf32>
    %9 = arith.subf %1, %8 : vector<128x128xf32>
    %10 = vector.broadcast %7 : vector<128x1xf32> to vector<128x128xf32>
    %11 = arith.subf %1, %10 : vector<128x128xf32>
    %12 = arith.mulf %9, %11 : vector<128x128xf32>
    %cst_7 = arith.constant dense<0.000000e+00> : vector<128xf32>
    %13 = vector.multi_reduction <add>, %12, %cst_7 [1] : vector<128x128xf32> to vector<128xf32>
    %14 = vector.shape_cast %13 : vector<128xf32> to vector<128x1xf32>
    %cst_8 = arith.constant 1.280000e+02 : f32
    %15 = vector.broadcast %cst_8 : f32 to vector<128x1xf32>
    %16 = arith.divf %14, %15 : vector<128x1xf32>
    %17 = vector.broadcast %7 : vector<128x1xf32> to vector<128x128xf32>
    %18 = arith.subf %1, %17 : vector<128x128xf32>
    %cst_9 = arith.constant 9.99999974E-6 : f32
    %19 = vector.broadcast %cst_9 : f32 to vector<128x1xf32>
    %20 = arith.addf %16, %19 : vector<128x1xf32>
    %21 = math.rsqrt %20 : vector<128x1xf32>
    %22 = vector.broadcast %21 : vector<128x1xf32> to vector<128x128xf32>
    %23 = arith.mulf %18, %22 : vector<128x128xf32>
    %24 = vector.broadcast %2 : vector<1x128xf32> to vector<128x128xf32>
    %25 = arith.mulf %23, %24 : vector<128x128xf32>
    %26 = vector.broadcast %3 : vector<1x128xf32> to vector<128x128xf32>
    %27 = arith.addf %25, %26 : vector<128x128xf32>
    %28 = arith.truncf %27 : vector<128x128xf32> to vector<128x128xbf16>
    %c0_10 = arith.constant 0 : index
    %c0_11 = arith.constant 0 : index
    %29 = vector.load %arg4[%c0_10, %c0_11] : memref<128x384xbf16, #tpu.memory_space<vmem>>, vector<128x384xbf16>
    %cst_12 = arith.constant dense<0.000000e+00> : vector<128x384xf32>
    %30 = tpu.matmul %28, %29, %cst_12 {dimension_numbers = #tpu.dot_dimension_numbers<[1], [0], [0], [1], [0, 0, 1, 1], [], []>} : vector<128x128xbf16>, vector<128x384xbf16>, vector<128x384xf32> -> vector<128x384xf32>
    %c0_13 = arith.constant 0 : index
    %c0_14 = arith.constant 0 : index
    %31 = vector.load %arg5[%c0_13, %c0_14] : memref<1x384xf32, #tpu.memory_space<vmem>>, vector<1x384xf32>
    %32 = vector.broadcast %31 : vector<1x384xf32> to vector<128x384xf32>
    %33 = arith.addf %30, %32 : vector<128x384xf32>
    %34 = vector.extract_strided_slice %33 {offsets = [0, 0], sizes = [128, 128], strides = [1, 1]} : vector<128x384xf32> to vector<128x128xf32>
    %cst_15 = arith.constant 0.176776692 : f32
    %35 = vector.broadcast %cst_15 : f32 to vector<128x128xf32>
    %36 = arith.mulf %34, %35 : vector<128x128xf32>
    %37 = vector.shape_cast %36 : vector<128x128xf32> to vector<4x32x128xf32>
    %38 = arith.truncf %37 : vector<4x32x128xf32> to vector<4x32x128xbf16>
    %39 = vector.extract_strided_slice %33 {offsets = [0, 128], sizes = [128, 128], strides = [1, 1]} : vector<128x384xf32> to vector<128x128xf32>
    %40 = vector.shape_cast %39 : vector<128x128xf32> to vector<4x32x128xf32>
    %41 = arith.truncf %40 : vector<4x32x128xf32> to vector<4x32x128xbf16>
    %42 = vector.extract_strided_slice %33 {offsets = [0, 256], sizes = [128, 128], strides = [1, 1]} : vector<128x384xf32> to vector<128x128xf32>
    %43 = vector.shape_cast %42 : vector<128x128xf32> to vector<4x32x128xf32>
    %44 = arith.truncf %43 : vector<4x32x128xf32> to vector<4x32x128xbf16>
    %45 = vector.extract_strided_slice %38 {offsets = [0, 0, 0], sizes = [4, 32, 32], strides = [1, 1, 1]} : vector<4x32x128xbf16> to vector<4x32x32xbf16>
    %46 = vector.extract_strided_slice %41 {offsets = [0, 0, 0], sizes = [4, 32, 32], strides = [1, 1, 1]} : vector<4x32x128xbf16> to vector<4x32x32xbf16>
    %47 = vector.extract_strided_slice %44 {offsets = [0, 0, 0], sizes = [4, 32, 32], strides = [1, 1, 1]} : vector<4x32x128xbf16> to vector<4x32x32xbf16>
    "tpu.trace_start"() <{level = 10 : i32, message = "bqd,bkd->bqk"}> : () -> ()
    %cst_16 = arith.constant dense<0.000000e+00> : vector<4x32x32xf32>
    %48 = tpu.matmul %45, %46, %cst_16 {dimension_numbers = #tpu.dot_dimension_numbers<[2], [2], [1], [1], [0, 0, 0, 1, 1, 1], [0], [0]>} : vector<4x32x32xbf16>, vector<4x32x32xbf16>, vector<4x32x32xf32> -> vector<4x32x32xf32>
    "tpu.trace_stop"() : () -> ()
    %cst_17 = arith.constant dense<0xFF800000> : vector<4x32xf32>
    %49 = vector.multi_reduction <maximumf>, %48, %cst_17 [2] : vector<4x32x32xf32> to vector<4x32xf32>
    %50 = vector.shape_cast %49 : vector<4x32xf32> to vector<4x32x1xf32>
    %51 = vector.broadcast %50 : vector<4x32x1xf32> to vector<4x32x32xf32>
    %52 = arith.subf %48, %51 : vector<4x32x32xf32>
    %53 = math.exp %52 : vector<4x32x32xf32>
    %cst_18 = arith.constant dense<0.000000e+00> : vector<4x32xf32>
    %54 = vector.multi_reduction <add>, %53, %cst_18 [2] : vector<4x32x32xf32> to vector<4x32xf32>
    %55 = vector.shape_cast %54 : vector<4x32xf32> to vector<4x32x1xf32>
    %56 = tpu.reciprocal %55 {approx = true} : vector<4x32x1xf32> -> vector<4x32x1xf32>
    %57 = vector.broadcast %56 : vector<4x32x1xf32> to vector<4x32x32xf32>
    %58 = arith.mulf %53, %57 : vector<4x32x32xf32>
    %59 = arith.truncf %58 : vector<4x32x32xf32> to vector<4x32x32xbf16>
    "tpu.trace_start"() <{level = 10 : i32, message = "bqk,bkd->bqd"}> : () -> ()
    %cst_19 = arith.constant dense<0.000000e+00> : vector<4x32x32xf32>
    %60 = tpu.matmul %59, %47, %cst_19 {dimension_numbers = #tpu.dot_dimension_numbers<[2], [1], [1], [2], [0, 0, 0, 1, 1, 2], [0], [0]>} : vector<4x32x32xbf16>, vector<4x32x32xbf16>, vector<4x32x32xf32> -> vector<4x32x32xf32>
    "tpu.trace_stop"() : () -> ()
    %61 = vector.shape_cast %60 : vector<4x32x32xf32> to vector<128x32xf32>
    %62 = arith.truncf %61 : vector<128x32xf32> to vector<128x32xbf16>
    %c0_20 = arith.constant 0 : index
    %c0_21 = arith.constant 0 : index
    %63 = vector.load %arg15[%c0_20, %c0_21] : memref<128x128xbf16, #tpu.memory_space<vmem>>, vector<128x32xbf16>
    tpu.vector_store %arg15[%c0_20, %c0_21], %62 {strides = array<i32>} : memref<128x128xbf16, #tpu.memory_space<vmem>>, vector<128x32xbf16>,
    %64 = vector.extract_strided_slice %38 {offsets = [0, 0, 32], sizes = [4, 32, 32], strides = [1, 1, 1]} : vector<4x32x128xbf16> to vector<4x32x32xbf16>
    %65 = vector.extract_strided_slice %41 {offsets = [0, 0, 32], sizes = [4, 32, 32], strides = [1, 1, 1]} : vector<4x32x128xbf16> to vector<4x32x32xbf16>
    %66 = vector.extract_strided_slice %44 {offsets = [0, 0, 32], sizes = [4, 32, 32], strides = [1, 1, 1]} : vector<4x32x128xbf16> to vector<4x32x32xbf16>
    "tpu.trace_start"() <{level = 10 : i32, message = "bqd,bkd->bqk"}> : () -> ()
    %cst_22 = arith.constant dense<0.000000e+00> : vector<4x32x32xf32>
    %67 = tpu.matmul %64, %65, %cst_22 {dimension_numbers = #tpu.dot_dimension_numbers<[2], [2], [1], [1], [0, 0, 0, 1, 1, 1], [0], [0]>} : vector<4x32x32xbf16>, vector<4x32x32xbf16>, vector<4x32x32xf32> -> vector<4x32x32xf32>
    "tpu.trace_stop"() : () -> ()
    %cst_23 = arith.constant dense<0xFF800000> : vector<4x32xf32>
    %68 = vector.multi_reduction <maximumf>, %67, %cst_23 [2] : vector<4x32x32xf32> to vector<4x32xf32>
    %69 = vector.shape_cast %68 : vector<4x32xf32> to vector<4x32x1xf32>
    %70 = vector.broadcast %69 : vector<4x32x1xf32> to vector<4x32x32xf32>
    %71 = arith.subf %67, %70 : vector<4x32x32xf32>
    %72 = math.exp %71 : vector<4x32x32xf32>
    %cst_24 = arith.constant dense<0.000000e+00> : vector<4x32xf32>
    %73 = vector.multi_reduction <add>, %72, %cst_24 [2] : vector<4x32x32xf32> to vector<4x32xf32>
    %74 = vector.shape_cast %73 : vector<4x32xf32> to vector<4x32x1xf32>
    %75 = tpu.reciprocal %74 {approx = true} : vector<4x32x1xf32> -> vector<4x32x1xf32>
    %76 = vector.broadcast %75 : vector<4x32x1xf32> to vector<4x32x32xf32>
    %77 = arith.mulf %72, %76 : vector<4x32x32xf32>
    %78 = arith.truncf %77 : vector<4x32x32xf32> to vector<4x32x32xbf16>
    "tpu.trace_start"() <{level = 10 : i32, message = "bqk,bkd->bqd"}> : () -> ()
    %cst_25 = arith.constant dense<0.000000e+00> : vector<4x32x32xf32>
    %79 = tpu.matmul %78, %66, %cst_25 {dimension_numbers = #tpu.dot_dimension_numbers<[2], [1], [1], [2], [0, 0, 0, 1, 1, 2], [0], [0]>} : vector<4x32x32xbf16>, vector<4x32x32xbf16>, vector<4x32x32xf32> -> vector<4x32x32xf32>
    "tpu.trace_stop"() : () -> ()
    %80 = vector.shape_cast %79 : vector<4x32x32xf32> to vector<128x32xf32>
    %81 = arith.truncf %80 : vector<128x32xf32> to vector<128x32xbf16>
    %c0_26 = arith.constant 0 : index
    %c32 = arith.constant 32 : index
    %82 = vector.load %arg15[%c0_26, %c32] : memref<128x128xbf16, #tpu.memory_space<vmem>>, vector<128x32xbf16>
    tpu.vector_store %arg15[%c0_26, %c32], %81 {strides = array<i32>} : memref<128x128xbf16, #tpu.memory_space<vmem>>, vector<128x32xbf16>,
    %83 = vector.extract_strided_slice %38 {offsets = [0, 0, 64], sizes = [4, 32, 32], strides = [1, 1, 1]} : vector<4x32x128xbf16> to vector<4x32x32xbf16>
    %84 = vector.extract_strided_slice %41 {offsets = [0, 0, 64], sizes = [4, 32, 32], strides = [1, 1, 1]} : vector<4x32x128xbf16> to vector<4x32x32xbf16>
    %85 = vector.extract_strided_slice %44 {offsets = [0, 0, 64], sizes = [4, 32, 32], strides = [1, 1, 1]} : vector<4x32x128xbf16> to vector<4x32x32xbf16>
    "tpu.trace_start"() <{level = 10 : i32, message = "bqd,bkd->bqk"}> : () -> ()
    %cst_27 = arith.constant dense<0.000000e+00> : vector<4x32x32xf32>
    %86 = tpu.matmul %83, %84, %cst_27 {dimension_numbers = #tpu.dot_dimension_numbers<[2], [2], [1], [1], [0, 0, 0, 1, 1, 1], [0], [0]>} : vector<4x32x32xbf16>, vector<4x32x32xbf16>, vector<4x32x32xf32> -> vector<4x32x32xf32>
    "tpu.trace_stop"() : () -> ()
    %cst_28 = arith.constant dense<0xFF800000> : vector<4x32xf32>
    %87 = vector.multi_reduction <maximumf>, %86, %cst_28 [2] : vector<4x32x32xf32> to vector<4x32xf32>
    %88 = vector.shape_cast %87 : vector<4x32xf32> to vector<4x32x1xf32>
    %89 = vector.broadcast %88 : vector<4x32x1xf32> to vector<4x32x32xf32>
    %90 = arith.subf %86, %89 : vector<4x32x32xf32>
    %91 = math.exp %90 : vector<4x32x32xf32>
    %cst_29 = arith.constant dense<0.000000e+00> : vector<4x32xf32>
    %92 = vector.multi_reduction <add>, %91, %cst_29 [2] : vector<4x32x32xf32> to vector<4x32xf32>
    %93 = vector.shape_cast %92 : vector<4x32xf32> to vector<4x32x1xf32>
    %94 = tpu.reciprocal %93 {approx = true} : vector<4x32x1xf32> -> vector<4x32x1xf32>
    %95 = vector.broadcast %94 : vector<4x32x1xf32> to vector<4x32x32xf32>
    %96 = arith.mulf %91, %95 : vector<4x32x32xf32>
    %97 = arith.truncf %96 : vector<4x32x32xf32> to vector<4x32x32xbf16>
    "tpu.trace_start"() <{level = 10 : i32, message = "bqk,bkd->bqd"}> : () -> ()
    %cst_30 = arith.constant dense<0.000000e+00> : vector<4x32x32xf32>
    %98 = tpu.matmul %97, %85, %cst_30 {dimension_numbers = #tpu.dot_dimension_numbers<[2], [1], [1], [2], [0, 0, 0, 1, 1, 2], [0], [0]>} : vector<4x32x32xbf16>, vector<4x32x32xbf16>, vector<4x32x32xf32> -> vector<4x32x32xf32>
    "tpu.trace_stop"() : () -> ()
    %99 = vector.shape_cast %98 : vector<4x32x32xf32> to vector<128x32xf32>
    %100 = arith.truncf %99 : vector<128x32xf32> to vector<128x32xbf16>
    %c0_31 = arith.constant 0 : index
    %c64 = arith.constant 64 : index
    %101 = vector.load %arg15[%c0_31, %c64] : memref<128x128xbf16, #tpu.memory_space<vmem>>, vector<128x32xbf16>
    tpu.vector_store %arg15[%c0_31, %c64], %100 {strides = array<i32>} : memref<128x128xbf16, #tpu.memory_space<vmem>>, vector<128x32xbf16>,
    %102 = vector.extract_strided_slice %38 {offsets = [0, 0, 96], sizes = [4, 32, 32], strides = [1, 1, 1]} : vector<4x32x128xbf16> to vector<4x32x32xbf16>
    %103 = vector.extract_strided_slice %41 {offsets = [0, 0, 96], sizes = [4, 32, 32], strides = [1, 1, 1]} : vector<4x32x128xbf16> to vector<4x32x32xbf16>
    %104 = vector.extract_strided_slice %44 {offsets = [0, 0, 96], sizes = [4, 32, 32], strides = [1, 1, 1]} : vector<4x32x128xbf16> to vector<4x32x32xbf16>
    "tpu.trace_start"() <{level = 10 : i32, message = "bqd,bkd->bqk"}> : () -> ()
    %cst_32 = arith.constant dense<0.000000e+00> : vector<4x32x32xf32>
    %105 = tpu.matmul %102, %103, %cst_32 {dimension_numbers = #tpu.dot_dimension_numbers<[2], [2], [1], [1], [0, 0, 0, 1, 1, 1], [0], [0]>} : vector<4x32x32xbf16>, vector<4x32x32xbf16>, vector<4x32x32xf32> -> vector<4x32x32xf32>
    "tpu.trace_stop"() : () -> ()
    %cst_33 = arith.constant dense<0xFF800000> : vector<4x32xf32>
    %106 = vector.multi_reduction <maximumf>, %105, %cst_33 [2] : vector<4x32x32xf32> to vector<4x32xf32>
    %107 = vector.shape_cast %106 : vector<4x32xf32> to vector<4x32x1xf32>
    %108 = vector.broadcast %107 : vector<4x32x1xf32> to vector<4x32x32xf32>
    %109 = arith.subf %105, %108 : vector<4x32x32xf32>
    %110 = math.exp %109 : vector<4x32x32xf32>
    %cst_34 = arith.constant dense<0.000000e+00> : vector<4x32xf32>
    %111 = vector.multi_reduction <add>, %110, %cst_34 [2] : vector<4x32x32xf32> to vector<4x32xf32>
    %112 = vector.shape_cast %111 : vector<4x32xf32> to vector<4x32x1xf32>
    %113 = tpu.reciprocal %112 {approx = true} : vector<4x32x1xf32> -> vector<4x32x1xf32>
    %114 = vector.broadcast %113 : vector<4x32x1xf32> to vector<4x32x32xf32>
    %115 = arith.mulf %110, %114 : vector<4x32x32xf32>
    %116 = arith.truncf %115 : vector<4x32x32xf32> to vector<4x32x32xbf16>
    "tpu.trace_start"() <{level = 10 : i32, message = "bqk,bkd->bqd"}> : () -> ()
    %cst_35 = arith.constant dense<0.000000e+00> : vector<4x32x32xf32>
    %117 = tpu.matmul %116, %104, %cst_35 {dimension_numbers = #tpu.dot_dimension_numbers<[2], [1], [1], [2], [0, 0, 0, 1, 1, 2], [0], [0]>} : vector<4x32x32xbf16>, vector<4x32x32xbf16>, vector<4x32x32xf32> -> vector<4x32x32xf32>
    "tpu.trace_stop"() : () -> ()
    %118 = vector.shape_cast %117 : vector<4x32x32xf32> to vector<128x32xf32>
    %119 = arith.truncf %118 : vector<128x32xf32> to vector<128x32xbf16>
    %c0_36 = arith.constant 0 : index
    %c96 = arith.constant 96 : index
    %120 = vector.load %arg15[%c0_36, %c96] : memref<128x128xbf16, #tpu.memory_space<vmem>>, vector<128x32xbf16>
    tpu.vector_store %arg15[%c0_36, %c96], %119 {strides = array<i32>} : memref<128x128xbf16, #tpu.memory_space<vmem>>, vector<128x32xbf16>,
    %c0_37 = arith.constant 0 : index
    %c0_38 = arith.constant 0 : index
    %121 = vector.load %arg15[%c0_37, %c0_38] : memref<128x128xbf16, #tpu.memory_space<vmem>>, vector<128x128xbf16>
    %c0_39 = arith.constant 0 : index
    %c0_40 = arith.constant 0 : index
    %122 = vector.load %arg6[%c0_39, %c0_40] : memref<128x128xbf16, #tpu.memory_space<vmem>>, vector<128x128xbf16>
    %cst_41 = arith.constant dense<0.000000e+00> : vector<128x128xf32>
    %123 = tpu.matmul %121, %122, %cst_41 {dimension_numbers = #tpu.dot_dimension_numbers<[1], [0], [0], [1], [0, 0, 1, 1], [], []>} : vector<128x128xbf16>, vector<128x128xbf16>, vector<128x128xf32> -> vector<128x128xf32>
    %124 = arith.addf %1, %123 : vector<128x128xf32>
    %c0_42 = arith.constant 0 : index
    %c0_43 = arith.constant 0 : index
    %125 = vector.load %arg7[%c0_42, %c0_43] : memref<1x128xf32, #tpu.memory_space<vmem>>, vector<1x128xf32>
    %126 = vector.broadcast %125 : vector<1x128xf32> to vector<128x128xf32>
    %127 = arith.addf %124, %126 : vector<128x128xf32>
    %c0_44 = arith.constant 0 : index
    %c0_45 = arith.constant 0 : index
    %128 = vector.load %arg8[%c0_44, %c0_45] : memref<1x128xf32, #tpu.memory_space<vmem>>, vector<1x128xf32>
    %c0_46 = arith.constant 0 : index
    %c0_47 = arith.constant 0 : index
    %129 = vector.load %arg9[%c0_46, %c0_47] : memref<1x128xf32, #tpu.memory_space<vmem>>, vector<1x128xf32>
    %cst_48 = arith.constant dense<0.000000e+00> : vector<128xf32>
    %130 = vector.multi_reduction <add>, %127, %cst_48 [1] : vector<128x128xf32> to vector<128xf32>
    %131 = vector.shape_cast %130 : vector<128xf32> to vector<128x1xf32>
    %cst_49 = arith.constant 1.280000e+02 : f32
    %132 = vector.broadcast %cst_49 : f32 to vector<128x1xf32>
    %133 = arith.divf %131, %132 : vector<128x1xf32>
    %134 = vector.broadcast %133 : vector<128x1xf32> to vector<128x128xf32>
    %135 = arith.subf %127, %134 : vector<128x128xf32>
    %136 = vector.broadcast %133 : vector<128x1xf32> to vector<128x128xf32>
    %137 = arith.subf %127, %136 : vector<128x128xf32>
    %138 = arith.mulf %135, %137 : vector<128x128xf32>
    %cst_50 = arith.constant dense<0.000000e+00> : vector<128xf32>
    %139 = vector.multi_reduction <add>, %138, %cst_50 [1] : vector<128x128xf32> to vector<128xf32>
    %140 = vector.shape_cast %139 : vector<128xf32> to vector<128x1xf32>
    %cst_51 = arith.constant 1.280000e+02 : f32
    %141 = vector.broadcast %cst_51 : f32 to vector<128x1xf32>
    %142 = arith.divf %140, %141 : vector<128x1xf32>
    %143 = vector.broadcast %133 : vector<128x1xf32> to vector<128x128xf32>
    %144 = arith.subf %127, %143 : vector<128x128xf32>
    %cst_52 = arith.constant 9.99999974E-6 : f32
    %145 = vector.broadcast %cst_52 : f32 to vector<128x1xf32>
    %146 = arith.addf %142, %145 : vector<128x1xf32>
    %147 = math.rsqrt %146 : vector<128x1xf32>
    %148 = vector.broadcast %147 : vector<128x1xf32> to vector<128x128xf32>
    %149 = arith.mulf %144, %148 : vector<128x128xf32>
    %150 = vector.broadcast %128 : vector<1x128xf32> to vector<128x128xf32>
    %151 = arith.mulf %149, %150 : vector<128x128xf32>
    %152 = vector.broadcast %129 : vector<1x128xf32> to vector<128x128xf32>
    %153 = arith.addf %151, %152 : vector<128x128xf32>
    %154 = arith.truncf %153 : vector<128x128xf32> to vector<128x128xbf16>
    %c0_53 = arith.constant 0 : index
    %c0_54 = arith.constant 0 : index
    %155 = vector.load %arg10[%c0_53, %c0_54] : memref<128x512xbf16, #tpu.memory_space<vmem>>, vector<128x512xbf16>
    %cst_55 = arith.constant dense<0.000000e+00> : vector<128x512xf32>
    %156 = tpu.matmul %154, %155, %cst_55 {dimension_numbers = #tpu.dot_dimension_numbers<[1], [0], [0], [1], [0, 0, 1, 1], [], []>} : vector<128x128xbf16>, vector<128x512xbf16>, vector<128x512xf32> -> vector<128x512xf32>
    %c0_56 = arith.constant 0 : index
    %c0_57 = arith.constant 0 : index
    %157 = vector.load %arg11[%c0_56, %c0_57] : memref<1x512xf32, #tpu.memory_space<vmem>>, vector<1x512xf32>
    %158 = vector.broadcast %157 : vector<1x512xf32> to vector<128x512xf32>
    %159 = arith.addf %156, %158 : vector<128x512xf32>
    %cst_58 = arith.constant 0.000000e+00 : f32
    %160 = vector.broadcast %cst_58 : f32 to vector<128x512xf32>
    %161 = arith.maximumf %159, %160 : vector<128x512xf32>
    %162 = arith.truncf %161 : vector<128x512xf32> to vector<128x512xbf16>
    %c0_59 = arith.constant 0 : index
    %c0_60 = arith.constant 0 : index
    %163 = vector.load %arg12[%c0_59, %c0_60] : memref<512x128xbf16, #tpu.memory_space<vmem>>, vector<512x128xbf16>
    %cst_61 = arith.constant dense<0.000000e+00> : vector<128x128xf32>
    %164 = tpu.matmul %162, %163, %cst_61 {dimension_numbers = #tpu.dot_dimension_numbers<[1], [0], [0], [1], [0, 0, 1, 1], [], []>} : vector<128x512xbf16>, vector<512x128xbf16>, vector<128x128xf32> -> vector<128x128xf32>
    %c0_62 = arith.constant 0 : index
    %c0_63 = arith.constant 0 : index
    %165 = vector.load %arg13[%c0_62, %c0_63] : memref<1x128xf32, #tpu.memory_space<vmem>>, vector<1x128xf32>
    %166 = vector.broadcast %165 : vector<1x128xf32> to vector<128x128xf32>
    %167 = arith.addf %164, %166 : vector<128x128xf32>
    %168 = arith.addf %127, %167 : vector<128x128xf32>
    %169 = vector.shape_cast %168 : vector<128x128xf32> to vector<4x32x128xf32>
    %c0_64 = arith.constant 0 : index
    %c0_65 = arith.constant 0 : index
    %c0_66 = arith.constant 0 : index
    %170 = vector.load %arg14[%c0_64, %c0_65, %c0_66] : memref<4x32x128xf32, #tpu.memory_space<vmem>>, vector<4x32x128xf32>
    tpu.vector_store %arg14[%c0_64, %c0_65, %c0_66], %169 {strides = array<i32>} : memref<4x32x128xf32, #tpu.memory_space<vmem>>, vector<4x32x128xf32>,
    return
  }
  func.func @transform_0(%arg0: i32) -> (i32, i32, i32) {
    %c0_i32 = arith.constant 0 : i32
    %c0_i32_0 = arith.constant 0 : i32
    %c0_i32_1 = arith.constant 0 : i32
    return %arg0, %c0_i32, %c0_i32_0 : i32, i32, i32
  }
  func.func @transform_1(%arg0: i32) -> (i32, i32) {
    %c0_i32 = arith.constant 0 : i32
    %c0_i32_0 = arith.constant 0 : i32
    %c0_i32_1 = arith.constant 0 : i32
    return %c0_i32, %c0_i32_0 : i32, i32
  }
  func.func @transform_2(%arg0: i32) -> (i32, i32) {
    %c0_i32 = arith.constant 0 : i32
    %c0_i32_0 = arith.constant 0 : i32
    %c0_i32_1 = arith.constant 0 : i32
    return %c0_i32, %c0_i32_0 : i32, i32
  }
  func.func @transform_3(%arg0: i32) -> (i32, i32) {
    %c0_i32 = arith.constant 0 : i32
    %c0_i32_0 = arith.constant 0 : i32
    %c0_i32_1 = arith.constant 0 : i32
    return %c0_i32, %c0_i32_0 : i32, i32
  }
  func.func @transform_4(%arg0: i32) -> (i32, i32) {
    %c0_i32 = arith.constant 0 : i32
    %c0_i32_0 = arith.constant 0 : i32
    %c0_i32_1 = arith.constant 0 : i32
    return %c0_i32, %c0_i32_0 : i32, i32
  }
  func.func @transform_5(%arg0: i32) -> (i32, i32) {
    %c0_i32 = arith.constant 0 : i32
    %c0_i32_0 = arith.constant 0 : i32
    %c0_i32_1 = arith.constant 0 : i32
    return %c0_i32, %c0_i32_0 : i32, i32
  }
  func.func @transform_6(%arg0: i32) -> (i32, i32) {
    %c0_i32 = arith.constant 0 : i32
    %c0_i32_0 = arith.constant 0 : i32
    %c0_i32_1 = arith.constant 0 : i32
    return %c0_i32, %c0_i32_0 : i32, i32
  }
  func.func @transform_7(%arg0: i32) -> (i32, i32) {
    %c0_i32 = arith.constant 0 : i32
    %c0_i32_0 = arith.constant 0 : i32
    %c0_i32_1 = arith.constant 0 : i32
    return %c0_i32, %c0_i32_0 : i32, i32
  }
  func.func @transform_8(%arg0: i32) -> (i32, i32) {
    %c0_i32 = arith.constant 0 : i32
    %c0_i32_0 = arith.constant 0 : i32
    %c0_i32_1 = arith.constant 0 : i32
    return %c0_i32, %c0_i32_0 : i32, i32
  }
  func.func @transform_9(%arg0: i32) -> (i32, i32) {
    %c0_i32 = arith.constant 0 : i32
    %c0_i32_0 = arith.constant 0 : i32
    %c0_i32_1 = arith.constant 0 : i32
    return %c0_i32, %c0_i32_0 : i32, i32
  }
  func.func @transform_10(%arg0: i32) -> (i32, i32) {
    %c0_i32 = arith.constant 0 : i32
    %c0_i32_0 = arith.constant 0 : i32
    %c0_i32_1 = arith.constant 0 : i32
    return %c0_i32, %c0_i32_0 : i32, i32
  }
  func.func @transform_11(%arg0: i32) -> (i32, i32) {
    %c0_i32 = arith.constant 0 : i32
    %c0_i32_0 = arith.constant 0 : i32
    %c0_i32_1 = arith.constant 0 : i32
    return %c0_i32, %c0_i32_0 : i32, i32
  }
  func.func @transform_12(%arg0: i32) -> (i32, i32) {
    %c0_i32 = arith.constant 0 : i32
    %c0_i32_0 = arith.constant 0 : i32
    %c0_i32_1 = arith.constant 0 : i32
    return %c0_i32, %c0_i32_0 : i32, i32
  }
  func.func @transform_13(%arg0: i32) -> (i32, i32, i32) {
    %c0_i32 = arith.constant 0 : i32
    %c0_i32_0 = arith.constant 0 : i32
    %c0_i32_1 = arith.constant 0 : i32
    return %arg0, %c0_i32, %c0_i32_0 : i32, i32, i32
  }
}

module attributes {stable_mosaic.version = 11 : i64} {
  func.func @encoder_layer_kernel(%arg0: i32, %arg1: memref<4x32x128xf32, #tpu.memory_space<vmem>>, %arg2: memref<1x128xf32, #tpu.memory_space<vmem>>, %arg3: memref<1x128xf32, #tpu.memory_space<vmem>>, %arg4: memref<128x384xbf16, #tpu.memory_space<vmem>>, %arg5: memref<1x384xf32, #tpu.memory_space<vmem>>, %arg6: memref<128x128xbf16, #tpu.memory_space<vmem>>, %arg7: memref<1x128xf32, #tpu.memory_space<vmem>>, %arg8: memref<1x128xf32, #tpu.memory_space<vmem>>, %arg9: memref<1x128xf32, #tpu.memory_space<vmem>>, %arg10: memref<128x512xbf16, #tpu.memory_space<vmem>>, %arg11: memref<1x512xf32, #tpu.memory_space<vmem>>, %arg12: memref<512x128xbf16, #tpu.memory_space<vmem>>, %arg13: memref<1x128xf32, #tpu.memory_space<vmem>>, %arg14: memref<4x32x128xf32, #tpu.memory_space<vmem>>, %arg15: memref<128x128xbf16, #tpu.memory_space<vmem>>) attributes {dimension_semantics = [#tpu.dimension_semantics<parallel>], iteration_bounds = array<i64: 2>, scalar_prefetch = 0 : i64, scratch_operands = 1 : i64, tpu.core_type = #tpu.core_type<tc>, window_params = [{transform_indices = @transform_0, window_bounds = array<i64: 4, 32, 128>}, {pipeline_mode = #tpu.pipeline_mode<synchronous>, transform_indices = @transform_1, window_bounds = array<i64: 1, 128>}, {pipeline_mode = #tpu.pipeline_mode<synchronous>, transform_indices = @transform_2, window_bounds = array<i64: 1, 128>}, {pipeline_mode = #tpu.pipeline_mode<synchronous>, transform_indices = @transform_3, window_bounds = array<i64: 128, 384>}, {pipeline_mode = #tpu.pipeline_mode<synchronous>, transform_indices = @transform_4, window_bounds = array<i64: 1, 384>}, {pipeline_mode = #tpu.pipeline_mode<synchronous>, transform_indices = @transform_5, window_bounds = array<i64: 128, 128>}, {pipeline_mode = #tpu.pipeline_mode<synchronous>, transform_indices = @transform_6, window_bounds = array<i64: 1, 128>}, {pipeline_mode = #tpu.pipeline_mode<synchronous>, transform_indices = @transform_7, window_bounds = array<i64: 1, 128>}, {pipeline_mode = #tpu.pipeline_mode<synchronous>, transform_indices = @transform_8, window_bounds = array<i64: 1, 128>}, {pipeline_mode = #tpu.pipeline_mode<synchronous>, transform_indices = @transform_9, window_bounds = array<i64: 128, 512>}, {pipeline_mode = #tpu.pipeline_mode<synchronous>, transform_indices = @transform_10, window_bounds = array<i64: 1, 512>}, {pipeline_mode = #tpu.pipeline_mode<synchronous>, transform_indices = @transform_11, window_bounds = array<i64: 512, 128>}, {pipeline_mode = #tpu.pipeline_mode<synchronous>, transform_indices = @transform_12, window_bounds = array<i64: 1, 128>}, {transform_indices = @transform_13, window_bounds = array<i64: 4, 32, 128>}]} {
    %c0 = arith.constant 0 : index
    %c0_0 = arith.constant 0 : index
    %c0_1 = arith.constant 0 : index
    %0 = vector.load %arg1[%c0, %c0_0, %c0_1] : memref<4x32x128xf32, #tpu.memory_space<vmem>>, vector<4x32x128xf32>
    %1 = vector.shape_cast %0 : vector<4x32x128xf32> to vector<128x128xf32>
    %c0_2 = arith.constant 0 : index
    %c0_3 = arith.constant 0 : index
    %2 = vector.load %arg2[%c0_2, %c0_3] : memref<1x128xf32, #tpu.memory_space<vmem>>, vector<1x128xf32>
    %c0_4 = arith.constant 0 : index
    %c0_5 = arith.constant 0 : index
    %3 = vector.load %arg3[%c0_4, %c0_5] : memref<1x128xf32, #tpu.memory_space<vmem>>, vector<1x128xf32>
    %cst = arith.constant dense<0.000000e+00> : vector<128xf32>
    %4 = vector.multi_reduction <add>, %1, %cst [1] : vector<128x128xf32> to vector<128xf32>
    %5 = vector.shape_cast %4 : vector<128xf32> to vector<128x1xf32>
    %cst_6 = arith.constant 1.280000e+02 : f32
    %6 = vector.broadcast %cst_6 : f32 to vector<128x1xf32>
    %7 = arith.divf %5, %6 : vector<128x1xf32>
    %8 = vector.broadcast %7 : vector<128x1xf32> to vector<128x128xf32>
    %9 = arith.subf %1, %8 : vector<128x128xf32>
    %10 = vector.broadcast %7 : vector<128x1xf32> to vector<128x128xf32>
    %11 = arith.subf %1, %10 : vector<128x128xf32>
    %12 = arith.mulf %9, %11 : vector<128x128xf32>
    %cst_7 = arith.constant dense<0.000000e+00> : vector<128xf32>
    %13 = vector.multi_reduction <add>, %12, %cst_7 [1] : vector<128x128xf32> to vector<128xf32>
    %14 = vector.shape_cast %13 : vector<128xf32> to vector<128x1xf32>
    %cst_8 = arith.constant 1.280000e+02 : f32
    %15 = vector.broadcast %cst_8 : f32 to vector<128x1xf32>
    %16 = arith.divf %14, %15 : vector<128x1xf32>
    %17 = vector.broadcast %7 : vector<128x1xf32> to vector<128x128xf32>
    %18 = arith.subf %1, %17 : vector<128x128xf32>
    %cst_9 = arith.constant 9.99999974E-6 : f32
    %19 = vector.broadcast %cst_9 : f32 to vector<128x1xf32>
    %20 = arith.addf %16, %19 : vector<128x1xf32>
    %21 = math.rsqrt %20 : vector<128x1xf32>
    %22 = vector.broadcast %21 : vector<128x1xf32> to vector<128x128xf32>
    %23 = arith.mulf %18, %22 : vector<128x128xf32>
    %24 = vector.broadcast %2 : vector<1x128xf32> to vector<128x128xf32>
    %25 = arith.mulf %23, %24 : vector<128x128xf32>
    %26 = vector.broadcast %3 : vector<1x128xf32> to vector<128x128xf32>
    %27 = arith.addf %25, %26 : vector<128x128xf32>
    %28 = arith.truncf %27 : vector<128x128xf32> to vector<128x128xbf16>
    %c0_10 = arith.constant 0 : index
    %c0_11 = arith.constant 0 : index
    %29 = vector.load %arg4[%c0_10, %c0_11] : memref<128x384xbf16, #tpu.memory_space<vmem>>, vector<128x384xbf16>
    %cst_12 = arith.constant dense<0.000000e+00> : vector<128x384xf32>
    %30 = tpu.matmul %28, %29, %cst_12 {dimension_numbers = #tpu.dot_dimension_numbers<[1], [0], [0], [1], [0, 0, 1, 1], [], []>} : vector<128x128xbf16>, vector<128x384xbf16>, vector<128x384xf32> -> vector<128x384xf32>
    %c0_13 = arith.constant 0 : index
    %c0_14 = arith.constant 0 : index
    %31 = vector.load %arg5[%c0_13, %c0_14] : memref<1x384xf32, #tpu.memory_space<vmem>>, vector<1x384xf32>
    %32 = vector.broadcast %31 : vector<1x384xf32> to vector<128x384xf32>
    %33 = arith.addf %30, %32 : vector<128x384xf32>
    %34 = vector.extract_strided_slice %33 {offsets = [0, 0], sizes = [128, 128], strides = [1, 1]} : vector<128x384xf32> to vector<128x128xf32>
    %cst_15 = arith.constant 0.176776692 : f32
    %35 = vector.broadcast %cst_15 : f32 to vector<128x128xf32>
    %36 = arith.mulf %34, %35 : vector<128x128xf32>
    %37 = vector.shape_cast %36 : vector<128x128xf32> to vector<4x32x128xf32>
    %38 = arith.truncf %37 : vector<4x32x128xf32> to vector<4x32x128xbf16>
    %39 = vector.extract_strided_slice %33 {offsets = [0, 128], sizes = [128, 128], strides = [1, 1]} : vector<128x384xf32> to vector<128x128xf32>
    %40 = vector.shape_cast %39 : vector<128x128xf32> to vector<4x32x128xf32>
    %41 = arith.truncf %40 : vector<4x32x128xf32> to vector<4x32x128xbf16>
    %42 = vector.extract_strided_slice %33 {offsets = [0, 256], sizes = [128, 128], strides = [1, 1]} : vector<128x384xf32> to vector<128x128xf32>
    %43 = vector.shape_cast %42 : vector<128x128xf32> to vector<4x32x128xf32>
    %44 = arith.truncf %43 : vector<4x32x128xf32> to vector<4x32x128xbf16>
    %45 = vector.extract_strided_slice %38 {offsets = [0, 0, 0], sizes = [4, 32, 32], strides = [1, 1, 1]} : vector<4x32x128xbf16> to vector<4x32x32xbf16>
    %46 = vector.extract_strided_slice %41 {offsets = [0, 0, 0], sizes = [4, 32, 32], strides = [1, 1, 1]} : vector<4x32x128xbf16> to vector<4x32x32xbf16>
    %47 = vector.extract_strided_slice %44 {offsets = [0, 0, 0], sizes = [4, 32, 32], strides = [1, 1, 1]} : vector<4x32x128xbf16> to vector<4x32x32xbf16>
    "tpu.trace_start"() <{level = 10 : i32, message = "bqd,bkd->bqk"}> : () -> ()
    %cst_16 = arith.constant dense<0.000000e+00> : vector<4x32x32xf32>
    %48 = tpu.matmul %45, %46, %cst_16 {dimension_numbers = #tpu.dot_dimension_numbers<[2], [2], [1], [1], [0, 0, 0, 1, 1, 1], [0], [0]>} : vector<4x32x32xbf16>, vector<4x32x32xbf16>, vector<4x32x32xf32> -> vector<4x32x32xf32>
    "tpu.trace_stop"() : () -> ()
    %cst_17 = arith.constant dense<0xFF800000> : vector<4x32xf32>
    %49 = vector.multi_reduction <maximumf>, %48, %cst_17 [2] : vector<4x32x32xf32> to vector<4x32xf32>
    %50 = vector.shape_cast %49 : vector<4x32xf32> to vector<4x32x1xf32>
    %51 = vector.broadcast %50 : vector<4x32x1xf32> to vector<4x32x32xf32>
    %52 = arith.subf %48, %51 : vector<4x32x32xf32>
    %53 = math.exp %52 : vector<4x32x32xf32>
    %cst_18 = arith.constant dense<0.000000e+00> : vector<4x32xf32>
    %54 = vector.multi_reduction <add>, %53, %cst_18 [2] : vector<4x32x32xf32> to vector<4x32xf32>
    %55 = vector.shape_cast %54 : vector<4x32xf32> to vector<4x32x1xf32>
    %56 = tpu.reciprocal %55 {approx = true} : vector<4x32x1xf32> -> vector<4x32x1xf32>
    %57 = vector.broadcast %56 : vector<4x32x1xf32> to vector<4x32x32xf32>
    %58 = arith.mulf %53, %57 : vector<4x32x32xf32>
    %59 = arith.truncf %58 : vector<4x32x32xf32> to vector<4x32x32xbf16>
    "tpu.trace_start"() <{level = 10 : i32, message = "bqk,bkd->bqd"}> : () -> ()
    %cst_19 = arith.constant dense<0.000000e+00> : vector<4x32x32xf32>
    %60 = tpu.matmul %59, %47, %cst_19 {dimension_numbers = #tpu.dot_dimension_numbers<[2], [1], [1], [2], [0, 0, 0, 1, 1, 2], [0], [0]>} : vector<4x32x32xbf16>, vector<4x32x32xbf16>, vector<4x32x32xf32> -> vector<4x32x32xf32>
    "tpu.trace_stop"() : () -> ()
    %61 = vector.shape_cast %60 : vector<4x32x32xf32> to vector<128x32xf32>
    %62 = arith.truncf %61 : vector<128x32xf32> to vector<128x32xbf16>
    %c0_20 = arith.constant 0 : index
    %c0_21 = arith.constant 0 : index
    %63 = vector.load %arg15[%c0_20, %c0_21] : memref<128x128xbf16, #tpu.memory_space<vmem>>, vector<128x32xbf16>
    tpu.vector_store %arg15[%c0_20, %c0_21], %62 {strides = array<i32>} : memref<128x128xbf16, #tpu.memory_space<vmem>>, vector<128x32xbf16>,
    %64 = vector.extract_strided_slice %38 {offsets = [0, 0, 32], sizes = [4, 32, 32], strides = [1, 1, 1]} : vector<4x32x128xbf16> to vector<4x32x32xbf16>
    %65 = vector.extract_strided_slice %41 {offsets = [0, 0, 32], sizes = [4, 32, 32], strides = [1, 1, 1]} : vector<4x32x128xbf16> to vector<4x32x32xbf16>
    %66 = vector.extract_strided_slice %44 {offsets = [0, 0, 32], sizes = [4, 32, 32], strides = [1, 1, 1]} : vector<4x32x128xbf16> to vector<4x32x32xbf16>
    "tpu.trace_start"() <{level = 10 : i32, message = "bqd,bkd->bqk"}> : () -> ()
    %cst_22 = arith.constant dense<0.000000e+00> : vector<4x32x32xf32>
    %67 = tpu.matmul %64, %65, %cst_22 {dimension_numbers = #tpu.dot_dimension_numbers<[2], [2], [1], [1], [0, 0, 0, 1, 1, 1], [0], [0]>} : vector<4x32x32xbf16>, vector<4x32x32xbf16>, vector<4x32x32xf32> -> vector<4x32x32xf32>
    "tpu.trace_stop"() : () -> ()
    %cst_23 = arith.constant dense<0xFF800000> : vector<4x32xf32>
    %68 = vector.multi_reduction <maximumf>, %67, %cst_23 [2] : vector<4x32x32xf32> to vector<4x32xf32>
    %69 = vector.shape_cast %68 : vector<4x32xf32> to vector<4x32x1xf32>
    %70 = vector.broadcast %69 : vector<4x32x1xf32> to vector<4x32x32xf32>
    %71 = arith.subf %67, %70 : vector<4x32x32xf32>
    %72 = math.exp %71 : vector<4x32x32xf32>
    %cst_24 = arith.constant dense<0.000000e+00> : vector<4x32xf32>
    %73 = vector.multi_reduction <add>, %72, %cst_24 [2] : vector<4x32x32xf32> to vector<4x32xf32>
    %74 = vector.shape_cast %73 : vector<4x32xf32> to vector<4x32x1xf32>
    %75 = tpu.reciprocal %74 {approx = true} : vector<4x32x1xf32> -> vector<4x32x1xf32>
    %76 = vector.broadcast %75 : vector<4x32x1xf32> to vector<4x32x32xf32>
    %77 = arith.mulf %72, %76 : vector<4x32x32xf32>
    %78 = arith.truncf %77 : vector<4x32x32xf32> to vector<4x32x32xbf16>
    "tpu.trace_start"() <{level = 10 : i32, message = "bqk,bkd->bqd"}> : () -> ()
    %cst_25 = arith.constant dense<0.000000e+00> : vector<4x32x32xf32>
    %79 = tpu.matmul %78, %66, %cst_25 {dimension_numbers = #tpu.dot_dimension_numbers<[2], [1], [1], [2], [0, 0, 0, 1, 1, 2], [0], [0]>} : vector<4x32x32xbf16>, vector<4x32x32xbf16>, vector<4x32x32xf32> -> vector<4x32x32xf32>
    "tpu.trace_stop"() : () -> ()
    %80 = vector.shape_cast %79 : vector<4x32x32xf32> to vector<128x32xf32>
    %81 = arith.truncf %80 : vector<128x32xf32> to vector<128x32xbf16>
    %c0_26 = arith.constant 0 : index
    %c32 = arith.constant 32 : index
    %82 = vector.load %arg15[%c0_26, %c32] : memref<128x128xbf16, #tpu.memory_space<vmem>>, vector<128x32xbf16>
    tpu.vector_store %arg15[%c0_26, %c32], %81 {strides = array<i32>} : memref<128x128xbf16, #tpu.memory_space<vmem>>, vector<128x32xbf16>,
    %83 = vector.extract_strided_slice %38 {offsets = [0, 0, 64], sizes = [4, 32, 32], strides = [1, 1, 1]} : vector<4x32x128xbf16> to vector<4x32x32xbf16>
    %84 = vector.extract_strided_slice %41 {offsets = [0, 0, 64], sizes = [4, 32, 32], strides = [1, 1, 1]} : vector<4x32x128xbf16> to vector<4x32x32xbf16>
    %85 = vector.extract_strided_slice %44 {offsets = [0, 0, 64], sizes = [4, 32, 32], strides = [1, 1, 1]} : vector<4x32x128xbf16> to vector<4x32x32xbf16>
    "tpu.trace_start"() <{level = 10 : i32, message = "bqd,bkd->bqk"}> : () -> ()
    %cst_27 = arith.constant dense<0.000000e+00> : vector<4x32x32xf32>
    %86 = tpu.matmul %83, %84, %cst_27 {dimension_numbers = #tpu.dot_dimension_numbers<[2], [2], [1], [1], [0, 0, 0, 1, 1, 1], [0], [0]>} : vector<4x32x32xbf16>, vector<4x32x32xbf16>, vector<4x32x32xf32> -> vector<4x32x32xf32>
    "tpu.trace_stop"() : () -> ()
    %cst_28 = arith.constant dense<0xFF800000> : vector<4x32xf32>
    %87 = vector.multi_reduction <maximumf>, %86, %cst_28 [2] : vector<4x32x32xf32> to vector<4x32xf32>
    %88 = vector.shape_cast %87 : vector<4x32xf32> to vector<4x32x1xf32>
    %89 = vector.broadcast %88 : vector<4x32x1xf32> to vector<4x32x32xf32>
    %90 = arith.subf %86, %89 : vector<4x32x32xf32>
    %91 = math.exp %90 : vector<4x32x32xf32>
    %cst_29 = arith.constant dense<0.000000e+00> : vector<4x32xf32>
    %92 = vector.multi_reduction <add>, %91, %cst_29 [2] : vector<4x32x32xf32> to vector<4x32xf32>
    %93 = vector.shape_cast %92 : vector<4x32xf32> to vector<4x32x1xf32>
    %94 = tpu.reciprocal %93 {approx = true} : vector<4x32x1xf32> -> vector<4x32x1xf32>
    %95 = vector.broadcast %94 : vector<4x32x1xf32> to vector<4x32x32xf32>
    %96 = arith.mulf %91, %95 : vector<4x32x32xf32>
    %97 = arith.truncf %96 : vector<4x32x32xf32> to vector<4x32x32xbf16>
    "tpu.trace_start"() <{level = 10 : i32, message = "bqk,bkd->bqd"}> : () -> ()
    %cst_30 = arith.constant dense<0.000000e+00> : vector<4x32x32xf32>
    %98 = tpu.matmul %97, %85, %cst_30 {dimension_numbers = #tpu.dot_dimension_numbers<[2], [1], [1], [2], [0, 0, 0, 1, 1, 2], [0], [0]>} : vector<4x32x32xbf16>, vector<4x32x32xbf16>, vector<4x32x32xf32> -> vector<4x32x32xf32>
    "tpu.trace_stop"() : () -> ()
    %99 = vector.shape_cast %98 : vector<4x32x32xf32> to vector<128x32xf32>
    %100 = arith.truncf %99 : vector<128x32xf32> to vector<128x32xbf16>
    %c0_31 = arith.constant 0 : index
    %c64 = arith.constant 64 : index
    %101 = vector.load %arg15[%c0_31, %c64] : memref<128x128xbf16, #tpu.memory_space<vmem>>, vector<128x32xbf16>
    tpu.vector_store %arg15[%c0_31, %c64], %100 {strides = array<i32>} : memref<128x128xbf16, #tpu.memory_space<vmem>>, vector<128x32xbf16>,
    %102 = vector.extract_strided_slice %38 {offsets = [0, 0, 96], sizes = [4, 32, 32], strides = [1, 1, 1]} : vector<4x32x128xbf16> to vector<4x32x32xbf16>
    %103 = vector.extract_strided_slice %41 {offsets = [0, 0, 96], sizes = [4, 32, 32], strides = [1, 1, 1]} : vector<4x32x128xbf16> to vector<4x32x32xbf16>
    %104 = vector.extract_strided_slice %44 {offsets = [0, 0, 96], sizes = [4, 32, 32], strides = [1, 1, 1]} : vector<4x32x128xbf16> to vector<4x32x32xbf16>
    "tpu.trace_start"() <{level = 10 : i32, message = "bqd,bkd->bqk"}> : () -> ()
    %cst_32 = arith.constant dense<0.000000e+00> : vector<4x32x32xf32>
    %105 = tpu.matmul %102, %103, %cst_32 {dimension_numbers = #tpu.dot_dimension_numbers<[2], [2], [1], [1], [0, 0, 0, 1, 1, 1], [0], [0]>} : vector<4x32x32xbf16>, vector<4x32x32xbf16>, vector<4x32x32xf32> -> vector<4x32x32xf32>
    "tpu.trace_stop"() : () -> ()
    %cst_33 = arith.constant dense<0xFF800000> : vector<4x32xf32>
    %106 = vector.multi_reduction <maximumf>, %105, %cst_33 [2] : vector<4x32x32xf32> to vector<4x32xf32>
    %107 = vector.shape_cast %106 : vector<4x32xf32> to vector<4x32x1xf32>
    %108 = vector.broadcast %107 : vector<4x32x1xf32> to vector<4x32x32xf32>
    %109 = arith.subf %105, %108 : vector<4x32x32xf32>
    %110 = math.exp %109 : vector<4x32x32xf32>
    %cst_34 = arith.constant dense<0.000000e+00> : vector<4x32xf32>
    %111 = vector.multi_reduction <add>, %110, %cst_34 [2] : vector<4x32x32xf32> to vector<4x32xf32>
    %112 = vector.shape_cast %111 : vector<4x32xf32> to vector<4x32x1xf32>
    %113 = tpu.reciprocal %112 {approx = true} : vector<4x32x1xf32> -> vector<4x32x1xf32>
    %114 = vector.broadcast %113 : vector<4x32x1xf32> to vector<4x32x32xf32>
    %115 = arith.mulf %110, %114 : vector<4x32x32xf32>
    %116 = arith.truncf %115 : vector<4x32x32xf32> to vector<4x32x32xbf16>
    "tpu.trace_start"() <{level = 10 : i32, message = "bqk,bkd->bqd"}> : () -> ()
    %cst_35 = arith.constant dense<0.000000e+00> : vector<4x32x32xf32>
    %117 = tpu.matmul %116, %104, %cst_35 {dimension_numbers = #tpu.dot_dimension_numbers<[2], [1], [1], [2], [0, 0, 0, 1, 1, 2], [0], [0]>} : vector<4x32x32xbf16>, vector<4x32x32xbf16>, vector<4x32x32xf32> -> vector<4x32x32xf32>
    "tpu.trace_stop"() : () -> ()
    %118 = vector.shape_cast %117 : vector<4x32x32xf32> to vector<128x32xf32>
    %119 = arith.truncf %118 : vector<128x32xf32> to vector<128x32xbf16>
    %c0_36 = arith.constant 0 : index
    %c96 = arith.constant 96 : index
    %120 = vector.load %arg15[%c0_36, %c96] : memref<128x128xbf16, #tpu.memory_space<vmem>>, vector<128x32xbf16>
    tpu.vector_store %arg15[%c0_36, %c96], %119 {strides = array<i32>} : memref<128x128xbf16, #tpu.memory_space<vmem>>, vector<128x32xbf16>,
    %c0_37 = arith.constant 0 : index
    %c0_38 = arith.constant 0 : index
    %121 = vector.load %arg15[%c0_37, %c0_38] : memref<128x128xbf16, #tpu.memory_space<vmem>>, vector<128x128xbf16>
    %c0_39 = arith.constant 0 : index
    %c0_40 = arith.constant 0 : index
    %122 = vector.load %arg6[%c0_39, %c0_40] : memref<128x128xbf16, #tpu.memory_space<vmem>>, vector<128x128xbf16>
    %cst_41 = arith.constant dense<0.000000e+00> : vector<128x128xf32>
    %123 = tpu.matmul %121, %122, %cst_41 {dimension_numbers = #tpu.dot_dimension_numbers<[1], [0], [0], [1], [0, 0, 1, 1], [], []>} : vector<128x128xbf16>, vector<128x128xbf16>, vector<128x128xf32> -> vector<128x128xf32>
    %124 = arith.addf %1, %123 : vector<128x128xf32>
    %c0_42 = arith.constant 0 : index
    %c0_43 = arith.constant 0 : index
    %125 = vector.load %arg7[%c0_42, %c0_43] : memref<1x128xf32, #tpu.memory_space<vmem>>, vector<1x128xf32>
    %126 = vector.broadcast %125 : vector<1x128xf32> to vector<128x128xf32>
    %127 = arith.addf %124, %126 : vector<128x128xf32>
    %c0_44 = arith.constant 0 : index
    %c0_45 = arith.constant 0 : index
    %128 = vector.load %arg8[%c0_44, %c0_45] : memref<1x128xf32, #tpu.memory_space<vmem>>, vector<1x128xf32>
    %c0_46 = arith.constant 0 : index
    %c0_47 = arith.constant 0 : index
    %129 = vector.load %arg9[%c0_46, %c0_47] : memref<1x128xf32, #tpu.memory_space<vmem>>, vector<1x128xf32>
    %cst_48 = arith.constant dense<0.000000e+00> : vector<128xf32>
    %130 = vector.multi_reduction <add>, %127, %cst_48 [1] : vector<128x128xf32> to vector<128xf32>
    %131 = vector.shape_cast %130 : vector<128xf32> to vector<128x1xf32>
    %cst_49 = arith.constant 1.280000e+02 : f32
    %132 = vector.broadcast %cst_49 : f32 to vector<128x1xf32>
    %133 = arith.divf %131, %132 : vector<128x1xf32>
    %134 = vector.broadcast %133 : vector<128x1xf32> to vector<128x128xf32>
    %135 = arith.subf %127, %134 : vector<128x128xf32>
    %136 = vector.broadcast %133 : vector<128x1xf32> to vector<128x128xf32>
    %137 = arith.subf %127, %136 : vector<128x128xf32>
    %138 = arith.mulf %135, %137 : vector<128x128xf32>
    %cst_50 = arith.constant dense<0.000000e+00> : vector<128xf32>
    %139 = vector.multi_reduction <add>, %138, %cst_50 [1] : vector<128x128xf32> to vector<128xf32>
    %140 = vector.shape_cast %139 : vector<128xf32> to vector<128x1xf32>
    %cst_51 = arith.constant 1.280000e+02 : f32
    %141 = vector.broadcast %cst_51 : f32 to vector<128x1xf32>
    %142 = arith.divf %140, %141 : vector<128x1xf32>
    %143 = vector.broadcast %133 : vector<128x1xf32> to vector<128x128xf32>
    %144 = arith.subf %127, %143 : vector<128x128xf32>
    %cst_52 = arith.constant 9.99999974E-6 : f32
    %145 = vector.broadcast %cst_52 : f32 to vector<128x1xf32>
    %146 = arith.addf %142, %145 : vector<128x1xf32>
    %147 = math.rsqrt %146 : vector<128x1xf32>
    %148 = vector.broadcast %147 : vector<128x1xf32> to vector<128x128xf32>
    %149 = arith.mulf %144, %148 : vector<128x128xf32>
    %150 = vector.broadcast %128 : vector<1x128xf32> to vector<128x128xf32>
    %151 = arith.mulf %149, %150 : vector<128x128xf32>
    %152 = vector.broadcast %129 : vector<1x128xf32> to vector<128x128xf32>
    %153 = arith.addf %151, %152 : vector<128x128xf32>
    %154 = arith.truncf %153 : vector<128x128xf32> to vector<128x128xbf16>
    %c0_53 = arith.constant 0 : index
    %c0_54 = arith.constant 0 : index
    %155 = vector.load %arg10[%c0_53, %c0_54] : memref<128x512xbf16, #tpu.memory_space<vmem>>, vector<128x512xbf16>
    %cst_55 = arith.constant dense<0.000000e+00> : vector<128x512xf32>
    %156 = tpu.matmul %154, %155, %cst_55 {dimension_numbers = #tpu.dot_dimension_numbers<[1], [0], [0], [1], [0, 0, 1, 1], [], []>} : vector<128x128xbf16>, vector<128x512xbf16>, vector<128x512xf32> -> vector<128x512xf32>
    %c0_56 = arith.constant 0 : index
    %c0_57 = arith.constant 0 : index
    %157 = vector.load %arg11[%c0_56, %c0_57] : memref<1x512xf32, #tpu.memory_space<vmem>>, vector<1x512xf32>
    %158 = vector.broadcast %157 : vector<1x512xf32> to vector<128x512xf32>
    %159 = arith.addf %156, %158 : vector<128x512xf32>
    %cst_58 = arith.constant 0.000000e+00 : f32
    %160 = vector.broadcast %cst_58 : f32 to vector<128x512xf32>
    %161 = arith.maximumf %159, %160 : vector<128x512xf32>
    %162 = arith.truncf %161 : vector<128x512xf32> to vector<128x512xbf16>
    %c0_59 = arith.constant 0 : index
    %c0_60 = arith.constant 0 : index
    %163 = vector.load %arg12[%c0_59, %c0_60] : memref<512x128xbf16, #tpu.memory_space<vmem>>, vector<512x128xbf16>
    %cst_61 = arith.constant dense<0.000000e+00> : vector<128x128xf32>
    %164 = tpu.matmul %162, %163, %cst_61 {dimension_numbers = #tpu.dot_dimension_numbers<[1], [0], [0], [1], [0, 0, 1, 1], [], []>} : vector<128x512xbf16>, vector<512x128xbf16>, vector<128x128xf32> -> vector<128x128xf32>
    %c0_62 = arith.constant 0 : index
    %c0_63 = arith.constant 0 : index
    %165 = vector.load %arg13[%c0_62, %c0_63] : memref<1x128xf32, #tpu.memory_space<vmem>>, vector<1x128xf32>
    %166 = vector.broadcast %165 : vector<1x128xf32> to vector<128x128xf32>
    %167 = arith.addf %164, %166 : vector<128x128xf32>
    %168 = arith.addf %127, %167 : vector<128x128xf32>
    %169 = vector.shape_cast %168 : vector<128x128xf32> to vector<4x32x128xf32>
    %c0_64 = arith.constant 0 : index
    %c0_65 = arith.constant 0 : index
    %c0_66 = arith.constant 0 : index
    %170 = vector.load %arg14[%c0_64, %c0_65, %c0_66] : memref<4x32x128xf32, #tpu.memory_space<vmem>>, vector<4x32x128xf32>
    tpu.vector_store %arg14[%c0_64, %c0_65, %c0_66], %169 {strides = array<i32>} : memref<4x32x128xf32, #tpu.memory_space<vmem>>, vector<4x32x128xf32>,
    return
  }
  func.func @transform_0(%arg0: i32) -> (i32, i32, i32) {
    %c0_i32 = arith.constant 0 : i32
    %c0_i32_0 = arith.constant 0 : i32
    %c0_i32_1 = arith.constant 0 : i32
    return %arg0, %c0_i32, %c0_i32_0 : i32, i32, i32
  }
  func.func @transform_1(%arg0: i32) -> (i32, i32) {
    %c0_i32 = arith.constant 0 : i32
    %c0_i32_0 = arith.constant 0 : i32
    %c0_i32_1 = arith.constant 0 : i32
    return %c0_i32, %c0_i32_0 : i32, i32
  }
  func.func @transform_2(%arg0: i32) -> (i32, i32) {
    %c0_i32 = arith.constant 0 : i32
    %c0_i32_0 = arith.constant 0 : i32
    %c0_i32_1 = arith.constant 0 : i32
    return %c0_i32, %c0_i32_0 : i32, i32
  }
  func.func @transform_3(%arg0: i32) -> (i32, i32) {
    %c0_i32 = arith.constant 0 : i32
    %c0_i32_0 = arith.constant 0 : i32
    %c0_i32_1 = arith.constant 0 : i32
    return %c0_i32, %c0_i32_0 : i32, i32
  }
  func.func @transform_4(%arg0: i32) -> (i32, i32) {
    %c0_i32 = arith.constant 0 : i32
    %c0_i32_0 = arith.constant 0 : i32
    %c0_i32_1 = arith.constant 0 : i32
    return %c0_i32, %c0_i32_0 : i32, i32
  }
  func.func @transform_5(%arg0: i32) -> (i32, i32) {
    %c0_i32 = arith.constant 0 : i32
    %c0_i32_0 = arith.constant 0 : i32
    %c0_i32_1 = arith.constant 0 : i32
    return %c0_i32, %c0_i32_0 : i32, i32
  }
  func.func @transform_6(%arg0: i32) -> (i32, i32) {
    %c0_i32 = arith.constant 0 : i32
    %c0_i32_0 = arith.constant 0 : i32
    %c0_i32_1 = arith.constant 0 : i32
    return %c0_i32, %c0_i32_0 : i32, i32
  }
  func.func @transform_7(%arg0: i32) -> (i32, i32) {
    %c0_i32 = arith.constant 0 : i32
    %c0_i32_0 = arith.constant 0 : i32
    %c0_i32_1 = arith.constant 0 : i32
    return %c0_i32, %c0_i32_0 : i32, i32
  }
  func.func @transform_8(%arg0: i32) -> (i32, i32) {
    %c0_i32 = arith.constant 0 : i32
    %c0_i32_0 = arith.constant 0 : i32
    %c0_i32_1 = arith.constant 0 : i32
    return %c0_i32, %c0_i32_0 : i32, i32
  }
  func.func @transform_9(%arg0: i32) -> (i32, i32) {
    %c0_i32 = arith.constant 0 : i32
    %c0_i32_0 = arith.constant 0 : i32
    %c0_i32_1 = arith.constant 0 : i32
    return %c0_i32, %c0_i32_0 : i32, i32
  }
  func.func @transform_10(%arg0: i32) -> (i32, i32) {
    %c0_i32 = arith.constant 0 : i32
    %c0_i32_0 = arith.constant 0 : i32
    %c0_i32_1 = arith.constant 0 : i32
    return %c0_i32, %c0_i32_0 : i32, i32
  }
  func.func @transform_11(%arg0: i32) -> (i32, i32) {
    %c0_i32 = arith.constant 0 : i32
    %c0_i32_0 = arith.constant 0 : i32
    %c0_i32_1 = arith.constant 0 : i32
    return %c0_i32, %c0_i32_0 : i32, i32
  }
  func.func @transform_12(%arg0: i32) -> (i32, i32) {
    %c0_i32 = arith.constant 0 : i32
    %c0_i32_0 = arith.constant 0 : i32
    %c0_i32_1 = arith.constant 0 : i32
    return %c0_i32, %c0_i32_0 : i32, i32
  }
  func.func @transform_13(%arg0: i32) -> (i32, i32, i32) {
    %c0_i32 = arith.constant 0 : i32
    %c0_i32_0 = arith.constant 0 : i32
    %c0_i32_1 = arith.constant 0 : i32
    return %arg0, %c0_i32, %c0_i32_0 : i32, i32, i32
  }
}

</mosaic_0001>

<bundles_post_ra>
// kernel: forward.3
= control target key start
LH: loop header
LB: loop body
LE: loop exit
PB: predicated region body
PF: predicated region fallthrough
CT: control target
= control target key end

     0   :  { %18 = vsyncpa [#allocation4], 0  ;;  %s9466_s0 = inlined_call_operand.hbm [shape: f32[8,32,128], index: 0, kind: input, shape index: {}, may-alias: {0,13}]   ;;  %s9467_s1 = inlined_call_operand.vmem [shape: f32[1,128], index: 1, kind: input, shape index: {}]   ;;  %s9468_s2 = inlined_call_operand.vmem [shape: f32[1,128], index: 2, kind: input, shape index: {}]   ;;  %s9469_s3 = inlined_call_operand.vmem [shape: bf16[128,384], index: 3, kind: input, shape index: {}]   ;;  %s9470_s4 = inlined_call_operand.vmem [shape: f32[1,384], index: 4, kind: input, shape index: {}]   ;;  %s9471_s5 = inlined_call_operand.vmem [shape: bf16[128,128], index: 5, kind: input, shape index: {}]   ;;  %s9472_s6 = inlined_call_operand.vmem [shape: f32[1,128], index: 6, kind: input, shape index: {}]   ;;  %s9473_s7 = inlined_call_operand.vmem [shape: f32[1,128], index: 7, kind: input, shape index: {}]   ;;  %s9474_s8 = inlined_call_operand.vmem [shape: f32[1,128], index: 8, kind: input, shape index: {}]   ;;  %s9475_s9 = inlined_call_operand.vmem [shape: bf16[128,512], index: 9, kind: input, shape index: {}]   ;;  %s9476_s10 = inlined_call_operand.vmem [shape: f32[1,512], index: 10, kind: input, shape index: {}]   ;;  %s9477_s11 = inlined_call_operand.vmem [shape: bf16[512,128], index: 11, kind: input, shape index: {}]   ;;  %s9478_s12 = inlined_call_operand.vmem [shape: f32[1,128], index: 12, kind: input, shape index: {}]   ;;  %s9479_s13 = inlined_call_operand.hbm [shape: f32[8,32,128], index: 13, kind: output, shape index: {}, may-alias: {0,13}]  }
   0x1   :  { %20 = vsyncpa [#allocation4 + $0x1], 0 }
   0x2   :  { %21 = vsyncpa [#allocation5], 0 }
   0x3   :  { %23 = vsyncpa [#allocation5 + $0x1], 0  ;;  %s7150_s25 = smov 0   ;;  %s7152_s26 = smov 0  }
   0x4   :  { %s7154_s27 = smov 0   ;;  %s7156_s28 = smov 0  }
   0x5 LB: > { %9502 = sst [smem:[#allocation9_spill]] %s7056_s25  ;;  %s7171_s29 = sadd.s32 4294967295, %s7068_s28   ;;  %s7068_s28 = sphi %s7156_s28, %s9548_s28   ;;  %s7064_s27 = sphi %s7154_s27, %s9550_s27   ;;  %s7060_s26 = sphi %s7152_s26, %s9552_s26   ;;  %s7056_s25 = sphi %s7150_s25, %s9551_s25  }
   0x6   : > { %9503 = sst [smem:[#allocation10_spill]] %s7064_s27  ;;  %s5636_s30 = sadd.s32 4294967294, %s7068_s28  }
   0x7   : > { %s7175_s14 = sadd.s32 1, %s7068_s28   ;;  %s36_s15 = sadd.s32 1, %s7064_s27 }
   0x8   : > { %9504 = sst [smem:[#allocation11_spill]] %s7175_s14  ;;  %s33_s16 = ssub.s32 %s7068_s28, %s7175_s14 }
   0x9   : > { %p43_p0 = scmp.ne.s32.totalorder %s7064_s27, %s7060_s26  ;;  %p34_p1 = scmp.eq.s32.totalorder %s33_s16, 0 }
   0xa   : > { %p44_p2 = scmp.eq.s32.totalorder %s7068_s28, 0  ;;  %p49_p3 = scmp.ne.s32.totalorder %s7060_s26, %s7056_s25 }
   0xb   : > { %p50_p4 = scmp.eq.s32.totalorder %s7171_s29, 0  ;;  %p325_p7 = scmp.eq.s32.totalorder %s7171_s29, 1 }
   0xc   : > { %s7187_s17 = scalar_select %p34_p1, %s7064_s27, %s36_s15  }
   0xd   : > { %p7189_p5 = por %p44_p2, %p43_p0  ;;  %p7193_p6 = por %p50_p4, %p49_p3 }
   0xe   : > { %9505 = sst [smem:[#allocation12_spill]] %s7187_s17  ;;  %p331_p8 = scmp.eq.s32.totalorder %s5636_s30, 1 }
   0xf   : > { %p6474_p10 = scmp.lt.s32.totalorder %s7068_s28, 2  ;;  %p7200_p11 = por %p325_p7, %p43_p0 }
  0x10   : > { %p7204_p12 = por %p331_p8, %p49_p3  ;;  %s387_s22 = sand.u32 1, %s7064_s27  }
  0x11   : > { %s9508_s20 = scalar_select %p7200_p11, 1, 0 }
  0x12   : > { %s9509_s21 = scalar_select %p7204_p12, 1, 0 }
  0x13   : > { %s5819_s23 = sshll.u32 %s7068_s28, 11  ;;  %s5639_s24 = sshll.u32 %s387_s22, 7 }
  0x14   : > { %s7213_s17 = scalar_lea.hbm %s9466_s0, %s5819_s23  ;;  %s391_s30 = scalar_lea.vmem [#allocation3], %s5639_s24 }
  0x15   : > { %s399_s14 = sshll.u32 %s391_s30, 4  ;;  %p7217_p13 = pnand %p6474_p10, %p7189_p5  ;;  %s7221_s14 = int_to_ptr.vmem [resolvable:$true] %s399_s14 }
  0x16   : > { %s7223_s27 = scalar_lea.sflag [#allocation4], %s387_s22  ;;  %s6972_s15 = scalar_lea.hbm %s7213_s17, 2048 }
  0x17   : > { %p6973_p0 = scmp.ne.s32.totalorder %s7213_s17, %s6972_s15  ;;  %p6974_p1 = pneg %p7217_p13 }
  0x18   : > { %s6977_s24 = scalar_lea.hbm %s9466_s0, 4096  ;;  %p6978_p4 = scmp.lt.u32.totalorder %s7213_s17, %s9466_s0 }
  0x19   : > { %p6975_p2 = pnand %p6974_p1, %p6973_p0  ;;  %p6979_p5 = scmp.lt.u32.totalorder %s6977_s24, %s6972_s15 }
  0x1a   : > { %p6981_p8 = scmp.lt.u32.totalorder %s6972_s15, %s7213_s17 }
  0x1b   : > { %p6976_p3 = pneg %p6975_p2  ;;  %p6980_p7 = por %p6979_p5, %p6978_p4 }
  0x1d   : > { %p6982_p10 = por %p6981_p8, %p6980_p7 }
  0x1f   : > { %p6983_p9 = pnand %p6982_p10, %p6976_p3 }
  0x21   : > { %6986 = shalt.err (!%p6983_p9)
}
  0x22   : > { %s6987_s22 = scalar_lea.vmem %s7221_s14, 2048  ;;  %s7070_s23 = smov [#allocation3]  }
  0x23   : > { %p6988_p0 = scmp.ne.s32.totalorder %s7221_s14, %s6987_s22  ;;  %s6992_s18 = sshll.u32 %s7070_s23, 4  ;;  %s6993_s18 = int_to_ptr.vmem [resolvable:$false] %s6992_s18 }
  0x24   : > { %s6994_s16 = scalar_lea.vmem %s6993_s18, 4096  ;;  %p6995_p11 = scmp.lt.s32.totalorder %s7221_s14, %s6993_s18 }
  0x25   : > { %p6990_p2 = pnand %p6988_p0, %p6974_p1  ;;  %p6996_p4 = scmp.lt.s32.totalorder %s6994_s16, %s6987_s22 }
  0x27   : > { %p6991_p12 = pneg %p6990_p2  ;;  %p6997_p5 = por %p6996_p4, %p6995_p11 }
  0x29   : > { %p6998_p7 = pnand %p6997_p5, %p6991_p12 }
  0x2b   : > { %7001 = shalt.err (!%p6998_p7)
}
  0x2c   : > { %s7071_s15 = smov 128   ;;  %s7072_s24 = smov 8  }
  0x2d   : > { %6469 = dma.hbm_to_vmem [thread:$0]  (!%p7217_p13), %s7213_s17, 2048, %s7221_s14, %s7223_s27, %s7071_s15, %s7071_s15, %s7072_s24  }
  0x2e   : > { %p5643_p9 = scmp.ge.s32.totalorder %s7068_s28, 1  ;;  %p407_p1 = scmp.lt.s32.totalorder %s7068_s28, 3 }
  0x30   : > { %p408_p3 = pnand %p5643_p9, %p407_p1 }
  0x32   : > { %411 = sbr.rel (%p408_p3) target bundleno = 4432 (0x1150), region = 72 }
  0x39   : > { %s7254_s30 = sand.u32 1, %s7060_s26  }
  0x3a   : > { %s9485_s22 = sshll.u32 %s7254_s30, 7  ;;  %s414_s23 = scalar_lea.sflag [#allocation4], %s7254_s30 }
  0x3b   : > { %s7260_s18 = scalar_lea.vmem [#allocation3], %s9485_s22 }
  0x3c   : > { %7047 = dma.done.wait (%p7193_p6), %s414_s23, 2048  }
  0x3d   : > { %7049 = vsyncadd (%p7193_p6), %s414_s23, 4294965248  ;;  %v463_v0 = vld [vmem:[%s7260_s18] sm:$0xff]  ;;  %v465_v1 = vld [vmem:[%s7260_s18 + $0x10] sm:$0xff]  ;;  %vm1137_vm0 = vcmask 261120   ;;  %s7074_s24 = smov 96   ;;  %s9500_s23 = smov 64  }
  0x3e   : > { %481 = vadd.xlane.f32.xlu0 %v463_v0  ;;  %485 = vadd.xlane.f32.xlu1 %v465_v1  ;;  %v464_v2 = vld [vmem:[%s7260_s18 + $0x8] sm:$0xff]  ;;  %v466_v3 = vld [vmem:[%s7260_s18 + $0x18] sm:$0xff]  ;;  %v467_v4 = vld [vmem:[%s7260_s18 + $0x20] sm:$0xff]  ;;  %s7076_s25 = smov 32   ;;  %vm2570_vm1 = vcmask 523520   ;;  %vm3323_vm2 = vcmask 785920  }
  0x3f   : > { %v468_v5 = vld [vmem:[%s7260_s18 + $0x28] sm:$0xff]  ;;  %v7273_v6 = vld [vmem:[%s7260_s18 + $0x30] sm:$0xff]  ;;  %v7276_v7 = vld [vmem:[%s7260_s18 + $0x38] sm:$0xff]  ;;  %s9524_s27 = smov 64   ;;  %vm4076_vm3 = vcmask 1048320   ;;  %s9543_s19 = sshll.u32 %s7254_s30, 7 }
  0x40   : > { %v7279_v8 = vld [vmem:[%s7260_s18 + $0x40] sm:$0xff]  ;;  %v7282_v9 = vld [vmem:[%s7260_s18 + $0x48] sm:$0xff]  ;;  %v7287_v10 = vld [vmem:[%s7260_s18 + $0x50] sm:$0xff]  ;;  %s9368_s16 = scalar_lea.vmem [#allocation6], %s9543_s19  ;;  %s5549_s22 = scalar_lea.sflag [#allocation5], %s7254_s30 }
  0x41   : > { %v7290_v11 = vld [vmem:[%s7260_s18 + $0x58] sm:$0xff]  ;;  %v7295_v12 = vld [vmem:[%s7260_s18 + $0x60] sm:$0xff]  ;;  %v7298_v13 = vld [vmem:[%s7260_s18 + $0x68] sm:$0xff]  ;;  %s5563_s15 = sshll.u32 %s9368_s16, 4  ;;  %p9544_p11 = scmp.ne.s32.totalorder %s9508_s20, 0  ;;  %s9419_s15 = int_to_ptr.vmem [resolvable:$true] %s5563_s15 }
  0x42   : > { %483 = vadd.xlane.f32.xlu0 %v464_v2  ;;  %487 = vadd.xlane.f32.xlu1 %v466_v3  ;;  %v7303_v14 = vld [vmem:[%s7260_s18 + $0x70] sm:$0xff]  ;;  %v7306_v15 = vld [vmem:[%s7260_s18 + $0x78] sm:$0xff]  ;;  %v6518_v17 = vld [vmem:[%s9469_s3] ss:$12 sps:$4 sm:$0xff]  }
  0x43   : > { %v6516_v16 = vld [vmem:[%s9469_s3 + $0x4] ss:$12 sps:$4 sm:$0xff]   ;;  %v6519_v18 = vld [vmem:[%s9469_s3 + $0x1c] ss:$12 sps:$4 sm:$0xff]  }
  0x44   : > { %v6521_v19 = vld [vmem:[%s9469_s3 + $0x8] ss:$12 sps:$4 sm:$0xff]   ;;  %887 = vmatprep.subr.bf16.mxu0 %v6516_v16  ;;  %v6522_v58 = vld [vmem:[%s9469_s3 + $0x18] ss:$12 sps:$4 sm:$0xff]  }
  0x45   : > { %888 = vmatpush1.bf16.msra.mxu0 %v6518_v17  ;;  %6110 = vmatprep.subr.bf16.mxu1 %v6521_v19 }
  0x46   : > { %489 = vadd.xlane.f32.xlu0 %v467_v4  ;;  %491 = vadd.xlane.f32.xlu1 %v468_v5 }
  0x47   : > { %889 = vmatprep.subr.bf16.mxu0 %v6519_v18  ;;  %6111 = vmatpush3.bf16.msra.mxu1 %v6521_v19  ;;  %v6527_v18 = vld [vmem:[%s9469_s3 + $0x4c] ss:$12 sps:$4 sm:$0xff]  }
  0x48   : > { %v6529_v19 = vld [vmem:[%s9469_s3 + $0x38] ss:$12 sps:$4 sm:$0xff]  }
  0x49   : > { %890 = vmatpush1.bf16.msra.mxu0 %v6522_v58 }
  0x4a   : > { %493 = vadd.xlane.f32.xlu0 %v7273_v6  ;;  %495 = vadd.xlane.f32.xlu1 %v7276_v7 }
  0x4e   : > { %497 = vadd.xlane.f32.xlu0 %v7279_v8  ;;  %499 = vadd.xlane.f32.xlu1 %v7282_v9 }
  0x52   : > { %501 = vadd.xlane.f32.xlu0 %v7287_v10  ;;  %503 = vadd.xlane.f32.xlu1 %v7290_v11 }
  0x56   : > { %505 = vadd.xlane.f32.xlu0 %v7295_v12  ;;  %507 = vadd.xlane.f32.xlu1 %v7298_v13 }
  0x5a   : > { %509 = vadd.xlane.f32.xlu0 %v7303_v14  ;;  %511 = vadd.xlane.f32.xlu1 %v7306_v15 }
  0xcb   : > { %v482_v20 = vpop.xlane.xlu0 %481  ;;  %v486_v21 = vpop.xlane.xlu1 %485 }
  0xcc   : > { %v514_v22 = vmul.f32 0.0078125, %v482_v20  ;;  %v516_v23 = vmul.f32 0.0078125, %v486_v21 }
  0xce   : > { %v7324_v24 = vsub.f32 %v463_v0, %v514_v22  ;;  %v7326_v25 = vsub.f32 %v465_v1, %v516_v23  ;;  %v6523_v0 = vld [vmem:[%s9469_s3 + $0x34] ss:$12 sps:$4 sm:$0xff]  }
  0xcf   : > { %v484_v26 = vpop.xlane.xlu0 %483  ;;  %v488_v27 = vpop.xlane.xlu1 %487  ;;  %v6525_v1 = vld [vmem:[%s9469_s3 + $0x20] ss:$12 sps:$4 sm:$0xff]   ;;  %891 = vmatprep.subr.bf16.mxu0 %v6523_v0  ;;  %v6530_v22 = vld [vmem:[%s9469_s3 + $0x48] ss:$12 sps:$4 sm:$0xff]  }
  0xd0   : > { %v515_v28 = vmul.f32 0.0078125, %v484_v26  ;;  %v546_v29 = vmul.f32 %v7324_v24, %v7324_v24  ;;  %v517_v30 = vmul.f32 0.0078125, %v488_v27  ;;  %v548_v31 = vmul.f32 %v7326_v25, %v7326_v25  ;;  %6112 = vmatprep.subr.bf16.mxu1 %v6525_v1 }
  0xd1   : > { %6113 = vmatpush3.bf16.msra.mxu1 %v6525_v1 }
  0xd2   : > { %562 = vadd.xlane.f32.xlu0 %v546_v29  ;;  %v7332_v32 = vsub.f32 %v464_v2, %v515_v28  ;;  %v7334_v33 = vsub.f32 %v466_v3, %v517_v30  ;;  %6114 = vmatprep.subr.bf16.mxu1 %v6529_v19  ;;  %v6531_v29 = vld [vmem:[%s9469_s3 + $0x64] ss:$12 sps:$4 sm:$0xff]  }
  0xd3   : > { %v490_v34 = vpop.xlane.xlu0 %489  ;;  %v492_v35 = vpop.xlane.xlu1 %491  ;;  %v6533_v30 = vld [vmem:[%s9469_s3 + $0x50] ss:$12 sps:$4 sm:$0xff]  }
  0xd4   : > { %v518_v36 = vmul.f32 0.0078125, %v490_v34  ;;  %v547_v37 = vmul.f32 %v7332_v32, %v7332_v32  ;;  %v519_v38 = vmul.f32 0.0078125, %v492_v35  ;;  %v549_v39 = vmul.f32 %v7334_v33, %v7334_v33  ;;  %v6537_v35 = vld [vmem:[%s9469_s3 + $0x68] ss:$12 sps:$4 sm:$0xff]  }
  0xd5   : > { %6115 = vmatpush3.bf16.msra.mxu1 %v6529_v19 }
  0xd6   : > { %566 = vadd.xlane.f32.xlu0 %v548_v31  ;;  %564 = vadd.xlane.f32.xlu1 %v547_v37  ;;  %v7340_v40 = vsub.f32 %v467_v4, %v518_v36  ;;  %v7342_v41 = vsub.f32 %v468_v5, %v519_v38  ;;  %v6534_v31 = vld [vmem:[%s9469_s3 + $0x60] ss:$12 sps:$4 sm:$0xff]   ;;  %v6538_v36 = vld [vmem:[%s9469_s3 + $0x78] ss:$12 sps:$4 sm:$0xff]  }
  0xd7   : > { %v494_v42 = vpop.xlane.xlu0 %493  ;;  %v496_v43 = vpop.xlane.xlu1 %495  ;;  %6116 = vmatprep.subr.bf16.mxu1 %v6533_v30  ;;  %v6539_v37 = vld [vmem:[%s9469_s3 + $0x94] ss:$12 sps:$4 sm:$0xff]  }
  0xd8   : > { %v520_v44 = vmul.f32 0.0078125, %v494_v42  ;;  %v550_v45 = vmul.f32 %v7340_v40, %v7340_v40  ;;  %v521_v46 = vmul.f32 0.0078125, %v496_v43  ;;  %v551_v47 = vmul.f32 %v7342_v41, %v7342_v41  ;;  %v6541_v38 = vld [vmem:[%s9469_s3 + $0x80] ss:$12 sps:$4 sm:$0xff]   ;;  %v6545_v43 = vld [vmem:[%s9469_s3 + $0x98] ss:$12 sps:$4 sm:$0xff]  }
  0xd9   : > { %6117 = vmatpush3.bf16.msra.mxu1 %v6533_v30  ;;  %v6543_v42 = vld [vmem:[%s9469_s3 + $0xac] ss:$12 sps:$4 sm:$0xff]  }
  0xda   : > { %568 = vadd.xlane.f32.xlu1 %v549_v39  ;;  %570 = vadd.xlane.f32.xlu0 %v550_v45  ;;  %v7349_v48 = vsub.f32 %v7273_v6, %v520_v44  ;;  %v7352_v49 = vsub.f32 %v7276_v7, %v521_v46  ;;  %v6526_v7 = vld [vmem:[%s9469_s3 + $0x30] ss:$12 sps:$4 sm:$0xff]   ;;  %v6546_v44 = vld [vmem:[%s9469_s3 + $0xa8] ss:$12 sps:$4 sm:$0xff]   ;;  %v9489_v46 = vmov 0  }
  0xdb   : > { %v498_v50 = vpop.xlane.xlu0 %497  ;;  %v500_v51 = vpop.xlane.xlu1 %499  ;;  %892 = vmatpush1.bf16.msra.mxu0 %v6526_v7  ;;  %6118 = vmatprep.subr.bf16.mxu1 %v6537_v35  ;;  %v6542_v39 = vld [vmem:[%s9469_s3 + $0x90] ss:$12 sps:$4 sm:$0xff]  }
  0xdc   : > { %v522_v52 = vmul.f32 0.0078125, %v498_v50  ;;  %v552_v53 = vmul.f32 %v7349_v48, %v7349_v48  ;;  %v523_v54 = vmul.f32 0.0078125, %v500_v51  ;;  %v553_v55 = vmul.f32 %v7352_v49, %v7352_v49  ;;  %893 = vmatprep.subr.bf16.mxu0 %v6527_v18  ;;  %v6547_v45 = vld [vmem:[%s9469_s3 + $0xb0] ss:$12 sps:$4 sm:$0xff]   ;;  %919 = vmatprep.mubr.bf16.mxu0 %v9489_v46 }
  0xdd   : > { %6119 = vmatpush3.bf16.msra.mxu1 %v6537_v35 }
  0xde   : > { %572 = vadd.xlane.f32.xlu1 %v551_v47  ;;  %574 = vadd.xlane.f32.xlu0 %v552_v53  ;;  %v7359_v56 = vsub.f32 %v7279_v8, %v522_v52  ;;  %v7362_v57 = vsub.f32 %v7282_v9, %v523_v54 }
  0xdf   : > { %v502_v59 = vpop.xlane.xlu0 %501  ;;  %v504_v60 = vpop.xlane.xlu1 %503  ;;  %894 = vmatpush1.bf16.msra.mxu0 %v6530_v22  ;;  %6120 = vmatprep.subr.bf16.mxu1 %v6541_v38  ;;  %v7463_v22 = vld [vmem:[%s9467_s1] ss:$0 sm:$0xff] }
  0xe0   : > { %v524_v61 = vmul.f32 0.0078125, %v502_v59  ;;  %v554_v62 = vmul.f32 %v7359_v56, %v7359_v56  ;;  %v525_v63 = vmul.f32 0.0078125, %v504_v60  ;;  %v555_v2 = vmul.f32 %v7362_v57, %v7362_v57  ;;  %895 = vmatprep.subr.bf16.mxu0 %v6531_v29 }
  0xe1   : > { %6121 = vmatpush3.bf16.msra.mxu1 %v6541_v38 }
  0xe2   : > { %576 = vadd.xlane.f32.xlu1 %v553_v55  ;;  %578 = vadd.xlane.f32.xlu0 %v554_v62  ;;  %v7378_v3 = vsub.f32 %v7287_v10, %v524_v61  ;;  %v7381_v4 = vsub.f32 %v7290_v11, %v525_v63 }
  0xe3   : > { %v506_v5 = vpop.xlane.xlu0 %505  ;;  %v508_v6 = vpop.xlane.xlu1 %507  ;;  %896 = vmatpush1.bf16.msra.mxu0 %v6534_v31  ;;  %6122 = vmatprep.subr.bf16.mxu1 %v6545_v43 }
  0xe4   : > { %v526_v8 = vmul.f32 0.0078125, %v506_v5  ;;  %v556_v9 = vmul.f32 %v7378_v3, %v7378_v3  ;;  %v527_v16 = vmul.f32 0.0078125, %v508_v6  ;;  %v557_v10 = vmul.f32 %v7381_v4, %v7381_v4 }
  0xe5   : > { %6123 = vmatpush3.bf16.msra.mxu1 %v6545_v43 }
  0xe6   : > { %580 = vadd.xlane.f32.xlu1 %v555_v2  ;;  %582 = vadd.xlane.f32.xlu0 %v556_v9  ;;  %v7391_v11 = vsub.f32 %v7295_v12, %v526_v8  ;;  %v7394_v17 = vsub.f32 %v7298_v13, %v527_v16 }
  0xe7   : > { %v510_v20 = vpop.xlane.xlu0 %509  ;;  %v512_v21 = vpop.xlane.xlu1 %511  ;;  %6124 = vmatprep.subr.bf16.mxu1 %v6547_v45 }
  0xe8   : > { %v528_v23 = vmul.f32 0.0078125, %v510_v20  ;;  %v558_v12 = vmul.f32 %v7391_v11, %v7391_v11  ;;  %v529_v13 = vmul.f32 0.0078125, %v512_v21  ;;  %v559_v26 = vmul.f32 %v7394_v17, %v7394_v17 }
  0xe9   : > { %6125 = vmatpush3.bf16.msra.mxu1 %v6547_v45 }
  0xea   : > { %584 = vadd.xlane.f32.xlu1 %v557_v10  ;;  %586 = vadd.xlane.f32.xlu0 %v558_v12  ;;  %v7410_v27 = vsub.f32 %v7303_v14, %v528_v23  ;;  %v7413_v28 = vsub.f32 %v7306_v15, %v529_v13  ;;  %v6535_v15 = vld [vmem:[%s9469_s3 + $0x7c] ss:$12 sps:$4 sm:$0xff]  }
  0xeb   : > { %897 = vmatprep.subr.bf16.mxu0 %v6535_v15  ;;  %v7470_v15 = vld [vmem:[%s9468_s2] ss:$0 sm:$0xff] }
  0xec   : > { %v560_v34 = vmul.f32 %v7410_v27, %v7410_v27  ;;  %v561_v14 = vmul.f32 %v7413_v28, %v7413_v28  ;;  %898 = vmatpush1.bf16.msra.mxu0 %v6538_v36 }
  0xed   : > { %899 = vmatprep.subr.bf16.mxu0 %v6539_v37 }
  0xee   : > { %588 = vadd.xlane.f32.xlu1 %v559_v26  ;;  %590 = vadd.xlane.f32.xlu0 %v560_v34 }
  0xf0   : > { %900 = vmatpush1.bf16.msra.mxu0 %v6542_v39 }
  0xf1   : > { %901 = vmatprep.subr.bf16.mxu0 %v6543_v42 }
  0xf2   : > { %592 = vadd.xlane.f32.xlu1 %v561_v14 }
  0xf4   : > { %902 = vmatpush1.bf16.msra.mxu0 %v6546_v44 }
 0x15f   : > { %v563_v47 = vpop.xlane.xlu0 %562 }
 0x160   : > { %v594_v50 = vmul.f32 0.0078125, %v563_v47 }
 0x162   : > { %v610_v51 = vadd.f32 1e-05, %v594_v50 }
 0x163   : > { %v565_v52 = vpop.xlane.xlu1 %564  ;;  %v567_v53 = vpop.xlane.xlu0 %566 }
 0x164   : > { %6636 = vrsqrt.f32 %v610_v51  ;;  %v595_v54 = vmul.f32 0.0078125, %v565_v52  ;;  %v596_v55 = vmul.f32 0.0078125, %v567_v53 }
 0x166   : > { %v611_v58 = vadd.f32 1e-05, %v595_v54  ;;  %v612_v59 = vadd.f32 1e-05, %v596_v55 }
 0x167   : > { %v569_v60 = vpop.xlane.xlu1 %568  ;;  %v571_v61 = vpop.xlane.xlu0 %570 }
 0x168   : > { %6638 = vrsqrt.f32 %v611_v58  ;;  %v597_v62 = vmul.f32 0.0078125, %v569_v60  ;;  %v598_v63 = vmul.f32 0.0078125, %v571_v61 }
 0x169   : > { %6640 = vrsqrt.f32 %v612_v59 }
 0x16a   : > { %v613_v0 = vadd.f32 1e-05, %v597_v62  ;;  %v614_v1 = vadd.f32 1e-05, %v598_v63 }
 0x16b   : > { %v573_v2 = vpop.xlane.xlu1 %572  ;;  %v575_v5 = vpop.xlane.xlu0 %574 }
 0x16c   : > { %6642 = vrsqrt.f32 %v613_v0  ;;  %v599_v6 = vmul.f32 0.0078125, %v573_v2  ;;  %v600_v7 = vmul.f32 0.0078125, %v575_v5 }
 0x16d   : > { %6644 = vrsqrt.f32 %v614_v1 }
 0x16e   : > { %v6637_v8 = vpop.eup %6636  ;;  %v615_v9 = vadd.f32 1e-05, %v599_v6  ;;  %v616_v16 = vadd.f32 1e-05, %v600_v7 }
 0x16f   : > { %v577_v10 = vpop.xlane.xlu1 %576  ;;  %v579_v18 = vpop.xlane.xlu0 %578  ;;  %v642_v19 = vmul.f32 %v6637_v8, %v7324_v24 }
 0x170   : > { %6646 = vrsqrt.f32 %v615_v9  ;;  %v601_v20 = vmul.f32 0.0078125, %v577_v10  ;;  %v602_v21 = vmul.f32 0.0078125, %v579_v18 }
 0x171   : > { %6648 = vrsqrt.f32 %v616_v16  ;;  %v664_v34 = vmul.f32 %v7463_v22, %v642_v19 }
 0x172   : > { %v6639_v23 = vpop.eup %6638  ;;  %v617_v12 = vadd.f32 1e-05, %v601_v20  ;;  %v618_v13 = vadd.f32 1e-05, %v602_v21 }
 0x173   : > { %v6641_v26 = vpop.eup %6640  ;;  %v581_v29 = vpop.xlane.xlu1 %580  ;;  %v643_v31 = vmul.f32 %v6639_v23, %v7332_v32  ;;  %v686_v45 = vadd.f32 %v7470_v15, %v664_v34 }
 0x174   : > { %v583_v30 = vpop.xlane.xlu0 %582  ;;  %6650 = vrsqrt.f32 %v617_v12  ;;  %v603_v24 = vmul.f32 0.0078125, %v581_v29  ;;  %v644_v35 = vmul.f32 %v6641_v26, %v7326_v25 }
 0x175   : > { %v604_v14 = vmul.f32 0.0078125, %v583_v30  ;;  %6652 = vrsqrt.f32 %v618_v13  ;;  %v665_v36 = vmul.f32 %v7463_v22, %v643_v31 }
 0x176   : > { %v6643_v37 = vpop.eup %6642  ;;  %v619_v38 = vadd.f32 1e-05, %v603_v24  ;;  %v666_v32 = vmul.f32 %v7463_v22, %v644_v35 }
 0x177   : > { %v620_v39 = vadd.f32 1e-05, %v604_v14  ;;  %v6645_v42 = vpop.eup %6644  ;;  %v585_v43 = vpop.xlane.xlu1 %584  ;;  %v687_v47 = vadd.f32 %v7470_v15, %v665_v36  ;;  %v645_v50 = vmul.f32 %v6643_v37, %v7334_v33 }
 0x178   : > { %v587_v44 = vpop.xlane.xlu0 %586  ;;  %6654 = vrsqrt.f32 %v619_v38  ;;  %v605_v51 = vmul.f32 0.0078125, %v585_v43  ;;  %v646_v54 = vmul.f32 %v6645_v42, %v7340_v40  ;;  %v688_v60 = vadd.f32 %v7470_v15, %v666_v32 }
 0x179   : > { %v606_v25 = vmul.f32 0.0078125, %v587_v44  ;;  %6656 = vrsqrt.f32 %v620_v39  ;;  %v702_v52 = vpack.c.bf16 %v687_v47, %v686_v45  ;;  %v667_v53 = vmul.f32 %v7463_v22, %v645_v50 }
 0x17a   : > { %v6647_v55 = vpop.eup %6646  ;;  %v621_v58 = vadd.f32 1e-05, %v605_v51  ;;  %v668_v1 = vmul.f32 %v7463_v22, %v646_v54 }
 0x17b   : > { %v622_v59 = vadd.f32 1e-05, %v606_v25  ;;  %v6649_v61 = vpop.eup %6648  ;;  %v589_v62 = vpop.xlane.xlu1 %588  ;;  %920 = vmatmul.mubr.bf16.vlgmr.msra.gmra.mrb[0].mxu0 %v702_v52  ;;  %6126 = vmatprep.mubr.bf16.mxu1 %v702_v52  ;;  %v689_v33 = vadd.f32 %v7470_v15, %v667_v53  ;;  %v647_v0 = vmul.f32 %v6647_v55, %v7342_v41 }
 0x17c   : > { %v591_v63 = vpop.xlane.xlu0 %590  ;;  %6658 = vrsqrt.f32 %v621_v58  ;;  %v607_v2 = vmul.f32 0.0078125, %v589_v62  ;;  %929 = vmatprep.mubr.bf16.mxu0 %v9489_v46  ;;  %v648_v40 = vmul.f32 %v6649_v61, %v7349_v48  ;;  %v690_v19 = vadd.f32 %v7470_v15, %v668_v1 }
 0x17d   : > { %v608_v5 = vmul.f32 0.0078125, %v591_v63  ;;  %6660 = vrsqrt.f32 %v622_v59  ;;  %v703_v6 = vpack.c.bf16 %v689_v33, %v688_v60  ;;  %v669_v7 = vmul.f32 %v7463_v22, %v647_v0 }
 0x17e   : > { %v6651_v8 = vpop.eup %6650  ;;  %v623_v9 = vadd.f32 1e-05, %v607_v2  ;;  %v670_v10 = vmul.f32 %v7463_v22, %v648_v40 }
 0x17f   : > { %v624_v16 = vadd.f32 1e-05, %v608_v5  ;;  %v6653_v18 = vpop.eup %6652  ;;  %v593_v41 = vpop.xlane.xlu1 %592  ;;  %6127 = vmatmul.mubr.bf16.vlgmr.msra.gmra.mrb[0].mxu1 %v703_v6  ;;  %v691_v20 = vadd.f32 %v7470_v15, %v669_v7  ;;  %v649_v21 = vmul.f32 %v6651_v8, %v7352_v49 }
 0x180   : > { %6662 = vrsqrt.f32 %v623_v9  ;;  %v609_v48 = vmul.f32 0.0078125, %v593_v41  ;;  %v650_v23 = vmul.f32 %v6653_v18, %v7359_v56  ;;  %v692_v30 = vadd.f32 %v7470_v15, %v670_v10 }
 0x181   : > { %6664 = vrsqrt.f32 %v624_v16  ;;  %v704_v12 = vpack.c.bf16 %v691_v20, %v690_v19  ;;  %v671_v13 = vmul.f32 %v7463_v22, %v649_v21 }
 0x182   : > { %v6655_v26 = vpop.eup %6654  ;;  %v625_v29 = vadd.f32 1e-05, %v609_v48  ;;  %v672_v49 = vmul.f32 %v7463_v22, %v650_v23 }
 0x183   : > { %v6657_v31 = vpop.eup %6656  ;;  %930 = vmatmul.mubr.bf16.gmra.mrb[4].mxu0 %v703_v6  ;;  %6130 = vmatprep.mubr.bf16.mxu1 %v704_v12  ;;  %v693_v34 = vadd.f32 %v7470_v15, %v671_v13  ;;  %v651_v24 = vmul.f32 %v6655_v26, %v7362_v57 }
 0x184   : > { %6666 = vrsqrt.f32 %v625_v29  ;;  %939 = vmatprep.mubr.bf16.mxu0 %v9489_v46  ;;  %v652_v56 = vmul.f32 %v6657_v31, %v7378_v3  ;;  %v694_v39 = vadd.f32 %v7470_v15, %v672_v49 }
 0x185   : > { %v705_v14 = vpack.c.bf16 %v693_v34, %v692_v30  ;;  %v673_v35 = vmul.f32 %v7463_v22, %v651_v24 }
 0x186   : > { %v6659_v36 = vpop.eup %6658  ;;  %v674_v37 = vmul.f32 %v7463_v22, %v652_v56 }
 0x187   : > { %v6661_v38 = vpop.eup %6660  ;;  %6131 = vmatmul.mubr.bf16.gmra.mrb[4].mxu1 %v705_v14  ;;  %v695_v32 = vadd.f32 %v7470_v15, %v673_v35  ;;  %v653_v57 = vmul.f32 %v6659_v36, %v7381_v4 }
 0x188   : > { %v654_v42 = vmul.f32 %v6661_v38, %v7391_v11  ;;  %v696_v45 = vadd.f32 %v7470_v15, %v674_v37 }
 0x189   : > { %v706_v43 = vpack.c.bf16 %v695_v32, %v694_v39  ;;  %v675_v44 = vmul.f32 %v7463_v22, %v653_v57 }
 0x18a   : > { %v6663_v3 = vpop.eup %6662  ;;  %v676_v25 = vmul.f32 %v7463_v22, %v654_v42 }
 0x18b   : > { %v6665_v47 = vpop.eup %6664  ;;  %940 = vmatmul.mubr.bf16.gmra.mrb[8].mxu0 %v704_v12  ;;  %6134 = vmatprep.mubr.bf16.mxu1 %v706_v43  ;;  %v697_v50 = vadd.f32 %v7470_v15, %v675_v44  ;;  %v655_v51 = vmul.f32 %v6663_v3, %v7394_v17 }
 0x18c   : > { %949 = vmatprep.mubr.bf16.mxu0 %v9489_v46  ;;  %v656_v4 = vmul.f32 %v6665_v47, %v7410_v27  ;;  %v698_v54 = vadd.f32 %v7470_v15, %v676_v25 }
 0x18d   : > { %v707_v11 = vpack.c.bf16 %v697_v50, %v696_v45  ;;  %v677_v52 = vmul.f32 %v7463_v22, %v655_v51 }
 0x18e   : > { %v6667_v53 = vpop.eup %6666  ;;  %v678_v59 = vmul.f32 %v7463_v22, %v656_v4 }
 0x18f   : > { %6135 = vmatmul.mubr.bf16.gmra.mrb[8].mxu1 %v707_v11  ;;  %v699_v55 = vadd.f32 %v7470_v15, %v677_v52  ;;  %v657_v58 = vmul.f32 %v6667_v53, %v7413_v28  ;;  %v744_v28 = vlaneseq }
 0x190   : > { %v700_v27 = vadd.f32 %v7470_v15, %v678_v59 }
 0x191   : > { %v708_v17 = vpack.c.bf16 %v699_v55, %v698_v54  ;;  %v679_v60 = vmul.f32 %v7463_v22, %v657_v58  ;;  %v7524_v22 = vshrl.u32 %v744_v28, 7 }
 0x193   : > { %950 = vmatmul.mubr.bf16.gmra.mrb[12].mxu0 %v705_v14  ;;  %6138 = vmatprep.mubr.bf16.mxu1 %v708_v17  ;;  %v701_v61 = vadd.f32 %v7470_v15, %v679_v60  ;;  %9511 = vst [vmem:[#allocation13_spill] sm:$0xff] %v7524_v22  ;;  %v9488_v63 = vsub.s32 0, %v7524_v22  ;;  %v742_v15 = vld [vmem:[%s9470_s4] sm:$0x7]  ;;  %v9486_v33 = vsub.s32 1, %v7524_v22  ;;  %v9487_v1 = vsub.s32 2, %v7524_v22 }
 0x194   : > { %959 = vmatprep.mubr.bf16.mxu0 %v9489_v46 }
 0x195   : > { %v709_v62 = vpack.c.bf16 %v701_v61, %v700_v27  ;;  %v7533_v0 = vrot.slane %v742_v15, %v9488_v63  ;;  %v7538_v5 = vrot.slane %v742_v15, %v9486_v33  ;;  %v7544_v16 = vrot.slane %v742_v15, %v9487_v1 }
 0x197   : > { %6139 = vmatmul.mubr.bf16.gmra.mrb[12].mxu1 %v709_v62 }
 0x19b   : > { %960 = vmatmul.mubr.bf16.gmra.mrb[16].mxu0 %v706_v43 }
 0x19c   : > { %969 = vmatprep.mubr.bf16.mxu0 %v9489_v46 }
 0x1a3   : > { %970 = vmatmul.mubr.bf16.gmra.mrb[20].mxu0 %v707_v11 }
 0x1a4   : > { %979 = vmatprep.mubr.bf16.mxu0 %v9489_v46 }
 0x1ab   : > { %980 = vmatmul.mubr.bf16.gmra.mrb[24].mxu0 %v708_v17 }
 0x1ac   : > { %989 = vmatprep.mubr.bf16.mxu0 %v9489_v46 }
 0x1b3   : > { %990 = vmatmul.mubr.bf16.gmra.mrb[28].mxu0 %v709_v62 }
 0x24e   : > { %v921_v2 = vpop.f32.mrb[0].mxu0 }
 0x24f   : > { %v922_v40 = vadd.f32 %v921_v2, %v7533_v0  ;;  %v923_v6 = vpop.f32.mrb[1].mxu0 }
 0x250   : > { %v925_v7 = vpop.f32.mrb[2].mxu0  ;;  %v924_v10 = vadd.f32 %v923_v6, %v7538_v5 }
 0x251   : > { %v926_v8 = vadd.f32 %v925_v7, %v7533_v0  ;;  %v927_v9 = vpop.f32.mrb[3].mxu0  ;;  %v1097_v19 = vmul.f32 0.17677669, %v922_v40 }
 0x252   : > { %v928_v18 = vadd.f32 %v927_v9, %v7538_v5  ;;  %v6128_v41 = vpop.f32.mrb[0].mxu1 }
 0x253   : > { %v1098_v20 = vmul.f32 0.17677669, %v926_v8  ;;  %v1034_v21 = vpop.f32.mrb[1].mxu1  ;;  %v1043_v13 = vadd.f32 %v6128_v41, %v7544_v16 }
 0x254   : > { %v7548_v48 = vpack.c.bf16 %v928_v18, %v924_v10  ;;  %v6129_v23 = vpop.f32.mrb[2].mxu1  ;;  %v1035_v30 = vadd.f32 %v1034_v21, %v7544_v16 }
 0x255   : > { %v7550_v12 = vpack.c.bf16 %v1098_v20, %v1097_v19  ;;  %v1046_v26 = vadd.f32 %v6129_v23, %v7544_v16  ;;  %v1037_v29 = vpop.f32.mrb[3].mxu1 }
 0x256   : > { %v1038_v31 = vadd.f32 %v1037_v29, %v7544_v16  ;;  %v931_v34 = vpop.f32.mrb[4].mxu0  ;;  %6430 = vmatprep.subr.msk.bf16.mxu1 %vm1137_vm0, %v7548_v48  ;;  %v1145_v24 = vsel %vm1137_vm0, %v7548_v48, 0 }
 0x257   : > { %v7560_v49 = vpack.c.bf16 %v1046_v26, %v1043_v13  ;;  %v932_v56 = vadd.f32 %v931_v34, %v7533_v0  ;;  %v933_v14 = vpop.f32.mrb[5].mxu0  ;;  %6143 = vmatpush3.bf16.xpose.msra.mxu1 %v1145_v24  ;;  %6146 = vmatprep.mubr.msk.bf16.mxu1 %vm1137_vm0, %v7550_v12 }
 0x258   : > { %v7565_v35 = vpack.c.bf16 %v1038_v31, %v1035_v30  ;;  %v935_v36 = vpop.f32.mrb[6].mxu0  ;;  %v934_v39 = vadd.f32 %v933_v14, %v7538_v5 }
 0x259   : > { %v936_v37 = vadd.f32 %v935_v36, %v7533_v0  ;;  %v937_v38 = vpop.f32.mrb[7].mxu0  ;;  %v1099_v42 = vmul.f32 0.17677669, %v932_v56 }
 0x25a   : > { %v938_v32 = vadd.f32 %v937_v38, %v7538_v5  ;;  %v6132_v57 = vpop.f32.mrb[4].mxu1 }
 0x25b   : > { %v1100_v43 = vmul.f32 0.17677669, %v936_v37  ;;  %v1050_v44 = vpop.f32.mrb[5].mxu1  ;;  %v1059_v50 = vadd.f32 %v6132_v57, %v7544_v16 }
 0x25c   : > { %v7570_v3 = vpack.c.bf16 %v938_v32, %v934_v39  ;;  %v6133_v45 = vpop.f32.mrb[6].mxu1  ;;  %v1051_v4 = vadd.f32 %v1050_v44, %v7544_v16 }
 0x25d   : > { %v7572_v47 = vpack.c.bf16 %v1100_v43, %v1099_v42  ;;  %v1062_v51 = vadd.f32 %v6133_v45, %v7544_v16  ;;  %v1053_v25 = vpop.f32.mrb[7].mxu1 }
 0x25e   : > { %v1054_v11 = vadd.f32 %v1053_v25, %v7544_v16  ;;  %v941_v52 = vpop.f32.mrb[8].mxu0  ;;  %6431 = vmatprep.subr.msk.bf16.mxu1 %vm1137_vm0, %v7570_v3  ;;  %v1148_v53 = vsel %vm1137_vm0, %v7570_v3, 0 }
 0x25f   : > { %v7582_v54 = vpack.c.bf16 %v1062_v51, %v1059_v50  ;;  %v942_v55 = vadd.f32 %v941_v52, %v7533_v0  ;;  %v943_v58 = vpop.f32.mrb[9].mxu0  ;;  %6145 = vmatpush3.bf16.xpose.msra.mxu1 %v1148_v53 }
 0x260   : > { %v7585_v59 = vpack.c.bf16 %v1054_v11, %v1051_v4  ;;  %v945_v17 = vpop.f32.mrb[10].mxu0  ;;  %v944_v61 = vadd.f32 %v943_v58, %v7538_v5 }
 0x261   : > { %v946_v60 = vadd.f32 %v945_v17, %v7533_v0  ;;  %v947_v27 = vpop.f32.mrb[11].mxu0  ;;  %v1101_v15 = vmul.f32 0.17677669, %v942_v55 }
 0x262   : > { %v948_v62 = vadd.f32 %v947_v27, %v7538_v5  ;;  %v6136_v28 = vpop.f32.mrb[8].mxu1 }
 0x263   : > { %v1102_v2 = vmul.f32 0.17677669, %v946_v60  ;;  %v1075_v40 = vadd.f32 %v6136_v28, %v7544_v16  ;;  %v1066_v6 = vpop.f32.mrb[9].mxu1 }
 0x264   : > { %v7591_v7 = vpack.c.bf16 %v948_v62, %v944_v61  ;;  %v6137_v8 = vpop.f32.mrb[10].mxu1  ;;  %v1067_v41 = vadd.f32 %v1066_v6, %v7544_v16 }
 0x265   : > { %v7593_v9 = vpack.c.bf16 %v1102_v2, %v1101_v15  ;;  %v1078_v10 = vadd.f32 %v6137_v8, %v7544_v16  ;;  %v1069_v18 = vpop.f32.mrb[11].mxu1 }
 0x266   : > { %v1070_v19 = vadd.f32 %v1069_v18, %v7544_v16  ;;  %v951_v20 = vpop.f32.mrb[12].mxu0  ;;  %6147 = vmatmul.mubr.msk.bf16.vlgmr.msra.gmra.mrb[16].mxu1 %vm1137_vm0, %v7572_v47  ;;  %6432 = vmatprep.subr.msk.bf16.mxu1 %vm1137_vm0, %v7591_v7  ;;  %v1206_v21 = vsel %vm1137_vm0, %v7591_v7, 0 }
 0x267   : > { %v7604_v23 = vpack.c.bf16 %v1078_v10, %v1075_v40  ;;  %v952_v13 = vadd.f32 %v951_v20, %v7533_v0  ;;  %v953_v26 = vpop.f32.mrb[13].mxu0  ;;  %6151 = vmatpush3.bf16.xpose.msra.mxu1 %v1206_v21  ;;  %6154 = vmatprep.mubr.msk.bf16.mxu1 %vm1137_vm0, %v7593_v9 }
 0x268   : > { %v7609_v29 = vpack.c.bf16 %v1070_v19, %v1067_v41  ;;  %v955_v30 = vpop.f32.mrb[14].mxu0  ;;  %v954_v24 = vadd.f32 %v953_v26, %v7538_v5 }
 0x269   : > { %v956_v31 = vadd.f32 %v955_v30, %v7533_v0  ;;  %v957_v34 = vpop.f32.mrb[15].mxu0  ;;  %v1103_v36 = vmul.f32 0.17677669, %v952_v13 }
 0x26a   : > { %v958_v56 = vadd.f32 %v957_v34, %v7538_v5  ;;  %v6140_v14 = vpop.f32.mrb[12].mxu1 }
 0x26b   : > { %v1104_v37 = vmul.f32 0.17677669, %v956_v31  ;;  %v1091_v38 = vadd.f32 %v6140_v14, %v7544_v16  ;;  %v1082_v39 = vpop.f32.mrb[13].mxu1 }
 0x26c   : > { %v7615_v32 = vpack.c.bf16 %v958_v56, %v954_v24  ;;  %v6141_v57 = vpop.f32.mrb[14].mxu1  ;;  %v1083_v45 = vadd.f32 %v1082_v39, %v7544_v16 }
 0x26d   : > { %v7617_v42 = vpack.c.bf16 %v1104_v37, %v1103_v36  ;;  %v1094_v43 = vadd.f32 %v6141_v57, %v7544_v16  ;;  %v1085_v44 = vpop.f32.mrb[15].mxu1 }
 0x26e   : > { %v1086_v50 = vadd.f32 %v1085_v44, %v7544_v16  ;;  %v961_v51 = vpop.f32.mrb[16].mxu0  ;;  %6433 = vmatprep.subr.msk.bf16.mxu1 %vm1137_vm0, %v7615_v32  ;;  %v1209_v25 = vsel %vm1137_vm0, %v7615_v32, 0 }
 0x26f   : > { %v7626_v4 = vpack.c.bf16 %v1094_v43, %v1091_v38  ;;  %v962_v11 = vadd.f32 %v961_v51, %v7533_v0  ;;  %v963_v52 = vpop.f32.mrb[17].mxu0  ;;  %6153 = vmatpush3.bf16.xpose.msra.mxu1 %v1209_v25 }
 0x270   : > { %v7629_v53 = vpack.c.bf16 %v1086_v50, %v1083_v45  ;;  %v965_v55 = vpop.f32.mrb[18].mxu0  ;;  %v964_v16 = vadd.f32 %v963_v52, %v7538_v5 }
 0x271   : > { %v966_v58 = vadd.f32 %v965_v55, %v7533_v0  ;;  %v967_v17 = vpop.f32.mrb[19].mxu0  ;;  %v1105_v27 = vmul.f32 0.17677669, %v962_v11 }
 0x272   : > { %v968_v60 = vadd.f32 %v967_v17, %v7538_v5 }
 0x273   : > { %v1106_v61 = vmul.f32 0.17677669, %v966_v58 }
 0x274   : > { %v7634_v62 = vpack.c.bf16 %v968_v60, %v964_v16 }
 0x275   : > { %v7636_v28 = vpack.c.bf16 %v1106_v61, %v1105_v27 }
 0x276   : > { %v971_v15 = vpop.f32.mrb[20].mxu0  ;;  %6155 = vmatmul.mubr.msk.bf16.vlgmr.msra.gmra.mrb[20].mxu1 %vm1137_vm0, %v7617_v42  ;;  %6434 = vmatprep.subr.msk.bf16.mxu0 %vm1137_vm0, %v7634_v62  ;;  %v1267_v2 = vsel %vm1137_vm0, %v7634_v62, 0 }
 0x277   : > { %v972_v40 = vadd.f32 %v971_v15, %v7533_v0  ;;  %v973_v6 = vpop.f32.mrb[21].mxu0  ;;  %6159 = vmatpush3.bf16.xpose.msra.mxu0 %v1267_v2  ;;  %6162 = vmatprep.mubr.msk.bf16.mxu0 %vm1137_vm0, %v7636_v28 }
 0x278   : > { %v975_v8 = vpop.f32.mrb[22].mxu0  ;;  %v974_v41 = vadd.f32 %v973_v6, %v7538_v5 }
 0x279   : > { %v976_v10 = vadd.f32 %v975_v8, %v7533_v0  ;;  %v977_v18 = vpop.f32.mrb[23].mxu0  ;;  %v1107_v20 = vmul.f32 0.17677669, %v972_v40 }
 0x27a   : > { %v978_v19 = vadd.f32 %v977_v18, %v7538_v5 }
 0x27b   : > { %v1108_v21 = vmul.f32 0.17677669, %v976_v10 }
 0x27c   : > { %v7650_v13 = vpack.c.bf16 %v978_v19, %v974_v41 }
 0x27d   : > { %v7652_v26 = vpack.c.bf16 %v1108_v21, %v1107_v20 }
 0x27e   : > { %v981_v30 = vpop.f32.mrb[24].mxu0  ;;  %6435 = vmatprep.subr.msk.bf16.mxu0 %vm1137_vm0, %v7650_v13  ;;  %v1270_v31 = vsel %vm1137_vm0, %v7650_v13, 0 }
 0x27f   : > { %v982_v34 = vadd.f32 %v981_v30, %v7533_v0  ;;  %v983_v24 = vpop.f32.mrb[25].mxu0  ;;  %6161 = vmatpush3.bf16.xpose.msra.mxu0 %v1270_v31 }
 0x280   : > { %v985_v56 = vpop.f32.mrb[26].mxu0  ;;  %6174 = vmatprep.subr.bf16.mxu0 %v7565_v35  ;;  %v984_v37 = vadd.f32 %v983_v24, %v7538_v5 }
 0x281   : > { %v986_v14 = vadd.f32 %v985_v56, %v7533_v0  ;;  %v987_v36 = vpop.f32.mrb[27].mxu0  ;;  %v1109_v39 = vmul.f32 0.17677669, %v982_v34 }
 0x282   : > { %v988_v38 = vadd.f32 %v987_v36, %v7538_v5 }
 0x283   : > { %v1110_v57 = vmul.f32 0.17677669, %v986_v14 }
 0x284   : > { %v7663_v43 = vpack.c.bf16 %v988_v38, %v984_v37 }
 0x285   : > { %v7665_v44 = vpack.c.bf16 %v1110_v57, %v1109_v39 }
 0x286   : > { %v991_v45 = vpop.f32.mrb[28].mxu0  ;;  %6163 = vmatmul.mubr.msk.bf16.vlgmr.msra.gmra.mrb[32].mxu0 %vm1137_vm0, %v7652_v26  ;;  %6436 = vmatprep.subr.msk.bf16.mxu1 %vm1137_vm0, %v7663_v43  ;;  %v1328_v50 = vsel %vm1137_vm0, %v7663_v43, 0 }
 0x287   : > { %v992_v51 = vadd.f32 %v991_v45, %v7533_v0  ;;  %v993_v25 = vpop.f32.mrb[29].mxu0  ;;  %6167 = vmatpush3.bf16.xpose.msra.mxu1 %v1328_v50  ;;  %6170 = vmatprep.mubr.msk.bf16.mxu1 %vm1137_vm0, %v7665_v44 }
 0x288   : > { %6175 = vmatpush3.bf16.msra.mxu0 %v7565_v35  ;;  %v995_v11 = vpop.f32.mrb[30].mxu0  ;;  %v994_v58 = vadd.f32 %v993_v25, %v7538_v5 }
 0x289   : > { %v996_v52 = vadd.f32 %v995_v11, %v7533_v0  ;;  %6176 = vmatprep.subr.bf16.mxu0 %v7560_v49  ;;  %v997_v55 = vpop.f32.mrb[31].mxu0  ;;  %v1111_v16 = vmul.f32 0.17677669, %v992_v51 }
 0x28a   : > { %v998_v17 = vadd.f32 %v997_v55, %v7538_v5 }
 0x28b   : > { %v1112_v60 = vmul.f32 0.17677669, %v996_v52 }
 0x28c   : > { %v7681_v27 = vpack.c.bf16 %v998_v17, %v994_v58  ;;  %6177 = vmatpush3.bf16.msra.mxu0 %v7560_v49 }
 0x28d   : > { %v7684_v61 = vpack.c.bf16 %v1112_v60, %v1111_v16  ;;  %6190 = vmatprep.subr.bf16.mxu0 %v7609_v29 }
 0x28e   : > { %6437 = vmatprep.subr.msk.bf16.mxu1 %vm1137_vm0, %v7681_v27  ;;  %v1331_v0 = vsel %vm1137_vm0, %v7681_v27, 0 }
 0x28f   : > { %6169 = vmatpush3.bf16.xpose.msra.mxu1 %v1331_v0 }
 0x290   : > { %6182 = vmatprep.subr.bf16.mxu1 %v7585_v59 }
 0x296   : > { %6171 = vmatmul.mubr.msk.bf16.vlgmr.msra.gmra.mrb[24].mxu1 %vm1137_vm0, %v7684_v61 }
 0x297   : > { %6183 = vmatpush3.bf16.msra.mxu1 %v7585_v59 }
 0x298   : > { %6184 = vmatprep.subr.bf16.mxu1 %v7582_v54 }
 0x29b   : > { %6185 = vmatpush3.bf16.msra.mxu1 %v7582_v54 }
 0x29c   : > { %6198 = vmatprep.subr.bf16.mxu1 %v7629_v53 }
 0x339   : > { %v7698_v5 = vpop.f32.mrb[16].mxu1 }
 0x33a   : > { %v1184_v15 = vpop.f32.mrb[17].mxu1  ;;  %v1388_v25 = vsel %vm1137_vm0, %v7698_v5, -inf }
 0x33b   : > { %v7700_v2 = vpop.f32.mrb[18].mxu1  ;;  %v1382_v30 = vsel %vm1137_vm0, %v1184_v15, -inf }
 0x33c   : > { %v7702_v40 = vpop.f32.mrb[19].mxu1  ;;  %v1391_v11 = vsel %vm1137_vm0, %v7700_v2, -inf }
 0x33d   : > { %v1385_v31 = vsel %vm1137_vm0, %v7702_v40, -inf }
 0x349   : > { %v7704_v6 = vpop.f32.mrb[20].mxu1 }
 0x34a   : > { %v7706_v8 = vpop.f32.mrb[21].mxu1  ;;  %v1400_v20 = vsel %vm1137_vm0, %v7704_v6, -inf }
 0x34b   : > { %v7708_v10 = vpop.f32.mrb[22].mxu1  ;;  %v1394_v18 = vsel %vm1137_vm0, %v7706_v8, -inf }
 0x34c   : > { %1395 = vmax.xlane.f32.xlu0 %v1394_v18  ;;  %v7712_v41 = vpop.f32.mrb[23].mxu1  ;;  %v1403_v21 = vsel %vm1137_vm0, %v7708_v10, -inf }
 0x34d   : > { %v1397_v19 = vsel %vm1137_vm0, %v7712_v41, -inf }
 0x34e   : > { %1398 = vmax.xlane.f32.xlu1 %v1397_v19 }
 0x350   : > { %1401 = vmax.xlane.f32.xlu0 %v1400_v20 }
 0x352   : > { %1404 = vmax.xlane.f32.xlu1 %v1403_v21 }
 0x354   : > { %1383 = vmax.xlane.f32.xlu0 %v1382_v30 }
 0x356   : > { %1386 = vmax.xlane.f32.xlu1 %v1385_v31 }
 0x359   : > { %v7723_v34 = vpop.f32.mrb[32].mxu0 }
 0x35a   : > { %v7725_v24 = vpop.f32.mrb[33].mxu0  ;;  %v1412_v58 = vsel %vm1137_vm0, %v7723_v34, -inf }
 0x35b   : > { %v7727_v56 = vpop.f32.mrb[34].mxu0  ;;  %v1406_v52 = vsel %vm1137_vm0, %v7725_v24, -inf }
 0x35c   : > { %v7729_v14 = vpop.f32.mrb[35].mxu0  ;;  %v1415_v17 = vsel %vm1137_vm0, %v7727_v56, -inf }
 0x35d   : > { %v1409_v55 = vsel %vm1137_vm0, %v7729_v14, -inf }
 0x369   : > { %v7731_v36 = vpop.f32.mrb[24].mxu1 }
 0x36a   : > { %v7733_v37 = vpop.f32.mrb[25].mxu1  ;;  %v1424_v38 = vsel %vm1137_vm0, %v7731_v36, -inf }
 0x36b   : > { %1425 = vmax.xlane.f32.xlu0 %v1424_v38  ;;  %v7737_v39 = vpop.f32.mrb[26].mxu1  ;;  %v1418_v50 = vsel %vm1137_vm0, %v7733_v37, -inf }
 0x36c   : > { %v7739_v57 = vpop.f32.mrb[27].mxu1  ;;  %v1427_v45 = vsel %vm1137_vm0, %v7737_v39, -inf }
 0x36d   : > { %1428 = vmax.xlane.f32.xlu1 %v1427_v45  ;;  %v1421_v51 = vsel %vm1137_vm0, %v7739_v57, -inf }
 0x36f   : > { %1419 = vmax.xlane.f32.xlu0 %v1418_v50 }
 0x371   : > { %1422 = vmax.xlane.f32.xlu1 %v1421_v51 }
 0x373   : > { %1389 = vmax.xlane.f32.xlu0 %v1388_v25 }
 0x375   : > { %1392 = vmax.xlane.f32.xlu1 %v1391_v11 }
 0x377   : > { %1407 = vmax.xlane.f32.xlu0 %v1406_v52 }
 0x379   : > { %1410 = vmax.xlane.f32.xlu1 %v1409_v55 }
 0x37b   : > { %1413 = vmax.xlane.f32.xlu0 %v1412_v58 }
 0x37d   : > { %1416 = vmax.xlane.f32.xlu1 %v1415_v17 }
 0x3d9   : > { %v1396_v16 = vpop.xlane.xlu0 %1395 }
 0x3da   : > { %v1434_v46 = vsub.f32 %v7706_v8, %v1396_v16 }
 0x3db   : > { %v1399_v60 = vpop.xlane.xlu1 %1398 }
 0x3dd   : > { %v1402_v0 = vpop.xlane.xlu0 %1401 }
 0x3de   : > { %v1436_v55 = vsub.f32 %v7704_v6, %v1402_v0  ;;  %v1454_v0 = vmul.f32 1.442695, %v1434_v46 }
 0x3df   : > { %v1405_v18 = vpop.xlane.xlu1 %1404 }
 0x3e0   : > { %v1437_v1 = vsub.f32 %v7708_v10, %v1405_v18 }
 0x3e1   : > { %v1384_v19 = vpop.xlane.xlu0 %1383 }
 0x3e2   : > { %v1430_v38 = vsub.f32 %v1184_v15, %v1384_v19 }
 0x3e3   : > { %v1387_v20 = vpop.xlane.xlu1 %1386 }
 0x3e4   : > { %v1431_v51 = vsub.f32 %v7702_v40, %v1387_v20  ;;  %v1446_v11 = vmul.f32 1.442695, %v1430_v38  ;;  %v1458_v40 = vmul.f32 1.442695, %v1436_v55  ;;  %v1435_v20 = vsub.f32 %v7712_v41, %v1399_v60 }
 0x3e5   : > { %v1460_v38 = vmul.f32 1.442695, %v1437_v1 }
 0x3e6   : > { %v1448_v63 = vmul.f32 1.442695, %v1431_v51  ;;  %v1456_v10 = vmul.f32 1.442695, %v1435_v20 }
 0x3f8   : > { %v1426_v21 = vpop.xlane.xlu0 %1425 }
 0x3fa   : > { %v7759_v30 = vpop.xlane.xlu1 %1428 }
 0x3fc   : > { %v7761_v31 = vpop.xlane.xlu0 %1419 }
 0x3fe   : > { %v7763_v45 = vpop.xlane.xlu1 %1422 }
 0x400   : > { %v1390_v50 = vpop.xlane.xlu0 %1389 }
 0x401   : > { %v1432_v25 = vsub.f32 %v7698_v5, %v1390_v50 }
 0x402   : > { %v1393_v52 = vpop.xlane.xlu1 %1392 }
 0x403   : > { %v1450_v58 = vmul.f32 1.442695, %v1432_v25  ;;  %v1433_v17 = vsub.f32 %v7700_v2, %v1393_v52 }
 0x404   : > { %v1408_v33 = vpop.xlane.xlu0 %1407 }
 0x405   : > { %6668 = vpow2.f32 %v1450_v58  ;;  %v1452_v15 = vmul.f32 1.442695, %v1433_v17  ;;  %v1438_v8 = vsub.f32 %v7725_v24, %v1408_v33  ;;  %v1444_v33 = vsub.f32 %v7731_v36, %v1426_v21 }
 0x406   : > { %6670 = vpow2.f32 %v1446_v11  ;;  %v1411_v19 = vpop.xlane.xlu1 %1410  ;;  %v1442_v21 = vsub.f32 %v7733_v37, %v7761_v31 }
 0x407   : > { %6672 = vpow2.f32 %v1452_v15  ;;  %v1439_v46 = vsub.f32 %v7729_v14, %v1411_v19  ;;  %v1462_v24 = vmul.f32 1.442695, %v1438_v8  ;;  %v1445_v14 = vsub.f32 %v7737_v39, %v7759_v30 }
 0x408   : > { %v1414_v5 = vpop.xlane.xlu0 %1413  ;;  %6674 = vpow2.f32 %v1448_v63  ;;  %v1474_v36 = vmul.f32 1.442695, %v1444_v33  ;;  %v1443_v30 = vsub.f32 %v7739_v57, %v7763_v45  ;;  %v1470_v37 = vmul.f32 1.442695, %v1442_v21 }
 0x409   : > { %6676 = vpow2.f32 %v1458_v40  ;;  %v1440_v2 = vsub.f32 %v7723_v34, %v1414_v5  ;;  %v1464_v11 = vmul.f32 1.442695, %v1439_v46  ;;  %v1476_v39 = vmul.f32 1.442695, %v1445_v14 }
 0x40a   : > { %v1417_v6 = vpop.xlane.xlu1 %1416  ;;  %6678 = vpow2.f32 %v1460_v38  ;;  %v1472_v5 = vmul.f32 1.442695, %v1443_v30 }
 0x40b   : > { %v1441_v18 = vsub.f32 %v7727_v56, %v1417_v6  ;;  %6680 = vpow2.f32 %v1454_v0  ;;  %v1466_v16 = vmul.f32 1.442695, %v1440_v2 }
 0x40c   : > { %6682 = vpow2.f32 %v1456_v10 }
 0x40d   : > { %v1468_v41 = vmul.f32 1.442695, %v1441_v18  ;;  %6684 = vpow2.f32 %v1466_v16 }
 0x40f   : > { %v7774_v50 = vpop.eup %6668  ;;  %6686 = vpow2.f32 %v1468_v41 }
 0x410   : > { %v7777_v51 = vpop.eup %6670  ;;  %v1484_v63 = vsel %vm1137_vm0, %v7774_v50, 0.0  ;;  %6688 = vpow2.f32 %v1462_v24 }
 0x411   : > { %v7781_v1 = vpop.eup %6672  ;;  %1485 = vadd.xlane.f32.xlu0 %v1484_v63  ;;  %v1478_v60 = vsel %vm1137_vm0, %v7777_v51, 0.0  ;;  %6690 = vpow2.f32 %v1464_v11 }
 0x412   : > { %v1487_v34 = vsel %vm1137_vm0, %v7781_v1, 0.0  ;;  %v7786_v56 = vpop.eup %6674  ;;  %6692 = vpow2.f32 %v1474_v36 }
 0x413   : > { %1488 = vadd.xlane.f32.xlu1 %v1487_v34  ;;  %v7791_v25 = vpop.eup %6676  ;;  %v1481_v52 = vsel %vm1137_vm0, %v7786_v56, 0.0  ;;  %6694 = vpow2.f32 %v1476_v39 }
 0x414   : > { %v7797_v55 = vpop.eup %6678  ;;  %v1496_v58 = vsel %vm1137_vm0, %v7791_v25, 0.0  ;;  %6696 = vpow2.f32 %v1470_v37 }
 0x415   : > { %1479 = vadd.xlane.f32.xlu0 %v1478_v60  ;;  %v7803_v17 = vpop.eup %6680  ;;  %v1499_v15 = vsel %vm1137_vm0, %v7797_v55, 0.0  ;;  %6698 = vpow2.f32 %v1472_v5 }
 0x416   : > { %v7809_v19 = vpop.eup %6682  ;;  %v1490_v31 = vsel %vm1137_vm0, %v7803_v17, 0.0 }
 0x417   : > { %1482 = vadd.xlane.f32.xlu1 %v1481_v52  ;;  %v7813_v40 = vpop.eup %6684  ;;  %v1493_v57 = vsel %vm1137_vm0, %v7809_v19, 0.0 }
 0x418   : > { %v1508_v20 = vsel %vm1137_vm0, %v7813_v40, 0.0 }
 0x419   : > { %1497 = vadd.xlane.f32.xlu0 %v1496_v58  ;;  %v7817_v45 = vpop.eup %6686 }
 0x41a   : > { %v7821_v38 = vpop.eup %6688  ;;  %v1511_v6 = vsel %vm1137_vm0, %v7817_v45, 0.0 }
 0x41b   : > { %1500 = vadd.xlane.f32.xlu1 %v1499_v15  ;;  %v7825_v0 = vpop.eup %6690  ;;  %v1502_v2 = vsel %vm1137_vm0, %v7821_v38, 0.0 }
 0x41c   : > { %v7829_v10 = vpop.eup %6692  ;;  %v1505_v18 = vsel %vm1137_vm0, %v7825_v0, 0.0 }
 0x41d   : > { %1491 = vadd.xlane.f32.xlu0 %v1490_v31  ;;  %v7833_v8 = vpop.eup %6694  ;;  %v1520_v16 = vsel %vm1137_vm0, %v7829_v10, 0.0 }
 0x41e   : > { %v7837_v63 = vpop.eup %6696  ;;  %v1523_v46 = vsel %vm1137_vm0, %v7833_v8, 0.0 }
 0x41f   : > { %1494 = vadd.xlane.f32.xlu1 %v1493_v57  ;;  %v7841_v41 = vpop.eup %6698  ;;  %v1514_v34 = vsel %vm1137_vm0, %v7837_v63, 0.0 }
 0x420   : > { %v1517_v33 = vsel %vm1137_vm0, %v7841_v41, 0.0 }
 0x421   : > { %1509 = vadd.xlane.f32.xlu0 %v1508_v20 }
 0x423   : > { %1512 = vadd.xlane.f32.xlu1 %v1511_v6 }
 0x425   : > { %1503 = vadd.xlane.f32.xlu0 %v1502_v2 }
 0x427   : > { %1506 = vadd.xlane.f32.xlu1 %v1505_v18 }
 0x429   : > { %1521 = vadd.xlane.f32.xlu0 %v1520_v16 }
 0x42b   : > { %1524 = vadd.xlane.f32.xlu1 %v1523_v46 }
 0x42d   : > { %1515 = vadd.xlane.f32.xlu0 %v1514_v34 }
 0x42f   : > { %1518 = vadd.xlane.f32.xlu1 %v1517_v33 }
 0x440   : > { %1812 = vrot.lane.b32.xlu1 %v7570_v3, %s7074_s24 }
 0x443   : > { %1810 = vrot.lane.b32.xlu0 %v7548_v48, %s7074_s24 }
 0x444   : > { %1804 = vrot.lane.b32.xlu1 %v7550_v12, %s7074_s24 }
 0x447   : > { %1956 = vrot.lane.b32.xlu0 %v7634_v62, %s7074_s24 }
 0x448   : > { %1883 = vrot.lane.b32.xlu1 %v7591_v7, %s7074_s24 }
 0x44b   : > { %1885 = vrot.lane.b32.xlu0 %v7615_v32, %s7074_s24 }
 0x44c   : > { %1806 = vrot.lane.b32.xlu1 %v7572_v47, %s7074_s24 }
 0x44f   : > { %1950 = vrot.lane.b32.xlu0 %v7636_v28, %s7074_s24 }
 0x450   : > { %1958 = vrot.lane.b32.xlu1 %v7650_v13, %s7074_s24 }
 0x453   : > { %1952 = vrot.lane.b32.xlu0 %v7652_v26, %s7074_s24 }
 0x454   : > { %1877 = vrot.lane.b32.xlu1 %v7593_v9, %s7074_s24 }
 0x457   : > { %1879 = vrot.lane.b32.xlu0 %v7617_v42, %s7074_s24 }
 0x458   : > { %2029 = vrot.lane.b32.xlu1 %v7663_v43, %s7074_s24 }
 0x45b   : > { %2023 = vrot.lane.b32.xlu0 %v7665_v44, %s7074_s24 }
 0x45c   : > { %2031 = vrot.lane.b32.xlu1 %v7681_v27, %s7074_s24 }
 0x45f   : > { %2280 = vrot.lane.b32.xlu0 %v7565_v35, %s7074_s24 }
 0x460   : > { %2025 = vrot.lane.b32.xlu1 %v7684_v61, %s7074_s24 }
 0x463   : > { %2406 = vrot.lane.b32.xlu0 %v7609_v29, %s7074_s24 }
 0x464   : > { %2282 = vrot.lane.b32.xlu1 %v7560_v49, %s7074_s24 }
 0x467   : > { %2343 = vrot.lane.b32.xlu0 %v7585_v59, %s7074_s24 }
 0x468   : > { %2408 = vrot.lane.b32.xlu1 %v7604_v23, %s7074_s24 }
 0x46b   : > { %2583 = vrot.lane.b32.xlu0 %v7548_v48, %s9500_s23 }
 0x46c   : > { %2345 = vrot.lane.b32.xlu1 %v7582_v54, %s7074_s24 }
 0x470   : > { %2469 = vrot.lane.b32.xlu1 %v7629_v53, %s7074_s24 }
 0x49e   : > { %v1486_v24 = vpop.xlane.xlu0 %1485 }
 0x4a0   : > { %v1489_v60 = vpop.xlane.xlu1 %1488 }
 0x4a1   : > { %6700 = vrcp.f32 %v1489_v60 }
 0x4a2   : > { %v1480_v14 = vpop.xlane.xlu0 %1479 }
 0x4a3   : > { %6702 = vrcp.f32 %v1480_v14 }
 0x4a4   : > { %6704 = vrcp.f32 %v1486_v24  ;;  %v1483_v11 = vpop.xlane.xlu1 %1482 }
 0x4a5   : > { %6706 = vrcp.f32 %v1483_v11 }
 0x4a6   : > { %v1498_v52 = vpop.xlane.xlu0 %1497 }
 0x4a8   : > { %v1501_v36 = vpop.xlane.xlu1 %1500 }
 0x4a9   : > { %6708 = vrcp.f32 %v1501_v36 }
 0x4aa   : > { %v1492_v21 = vpop.xlane.xlu0 %1491 }
 0x4ab   : > { %6710 = vrcp.f32 %v1492_v21  ;;  %v6701_v58 = vpop.eup %6700 }
 0x4ac   : > { %6712 = vrcp.f32 %v1498_v52  ;;  %v1495_v39 = vpop.xlane.xlu1 %1494  ;;  %v1545_v5 = vmul.f32 %v6701_v58, %v7781_v1 }
 0x4ad   : > { %v6703_v30 = vpop.eup %6702  ;;  %6714 = vrcp.f32 %v1495_v39 }
 0x4ae   : > { %v6705_v15 = vpop.eup %6704  ;;  %v1510_v37 = vpop.xlane.xlu0 %1509  ;;  %v1542_v20 = vmul.f32 %v6703_v30, %v7777_v51 }
 0x4af   : > { %v6707_v31 = vpop.eup %6706  ;;  %v1544_v2 = vmul.f32 %v6705_v15, %v7774_v50 }
 0x4b0   : > { %v1513_v57 = vpop.xlane.xlu1 %1512  ;;  %v1543_v6 = vmul.f32 %v6707_v31, %v7786_v56 }
 0x4b1   : > { %6716 = vrcp.f32 %v1513_v57  ;;  %v1559_v46 = vpack.c.bf16 %v1545_v5, %v1544_v2 }
 0x4b2   : > { %v1504_v18 = vpop.xlane.xlu0 %1503  ;;  %v1558_v16 = vpack.c.bf16 %v1543_v6, %v1542_v20 }
 0x4b3   : > { %6718 = vrcp.f32 %v1504_v18  ;;  %v6709_v34 = vpop.eup %6708 }
 0x4b4   : > { %6720 = vrcp.f32 %v1510_v37  ;;  %6178 = vmatprep.mubr.msk.bf16.mxu0 %vm1137_vm0, %v1558_v16  ;;  %v1507_v33 = vpop.xlane.xlu1 %1506  ;;  %v1549_v50 = vmul.f32 %v6709_v34, %v7797_v55 }
 0x4b5   : > { %v6711_v24 = vpop.eup %6710  ;;  %6722 = vrcp.f32 %v1507_v33  ;;  %6179 = vmatmul.mubr.msk.bf16.vlgmr.msra.gmra.mrb[36].mxu0 %vm1137_vm0, %v1559_v46 }
 0x4b6   : > { %v6713_v1 = vpop.eup %6712  ;;  %6191 = vmatpush3.bf16.msra.mxu0 %v7609_v29  ;;  %v1522_v51 = vpop.xlane.xlu0 %1521  ;;  %v1546_v14 = vmul.f32 %v6711_v24, %v7803_v17 }
 0x4b7   : > { %v6715_v56 = vpop.eup %6714  ;;  %6192 = vmatprep.subr.bf16.mxu0 %v7604_v23  ;;  %v1548_v52 = vmul.f32 %v6713_v1, %v7791_v25 }
 0x4b8   : > { %v1525_v60 = vpop.xlane.xlu1 %1524  ;;  %v1547_v11 = vmul.f32 %v6715_v56, %v7809_v19 }
 0x4b9   : > { %6724 = vrcp.f32 %v1525_v60  ;;  %v1561_v58 = vpack.c.bf16 %v1549_v50, %v1548_v52 }
 0x4ba   : > { %6193 = vmatpush3.bf16.msra.mxu0 %v7604_v23  ;;  %v1516_v36 = vpop.xlane.xlu0 %1515  ;;  %v1560_v21 = vpack.c.bf16 %v1547_v11, %v1546_v14 }
 0x4bb   : > { %6726 = vrcp.f32 %v1516_v36  ;;  %v6717_v39 = vpop.eup %6716 }
 0x4bc   : > { %6728 = vrcp.f32 %v1522_v51  ;;  %6186 = vmatprep.mubr.msk.bf16.mxu1 %vm1137_vm0, %v1560_v21  ;;  %v1519_v55 = vpop.xlane.xlu1 %1518  ;;  %v1553_v15 = vmul.f32 %v6717_v39, %v7817_v45 }
 0x4bd   : > { %v6719_v30 = vpop.eup %6718  ;;  %6730 = vrcp.f32 %v1519_v55  ;;  %6187 = vmatmul.mubr.msk.bf16.vlgmr.msra.gmra.mrb[28].mxu1 %vm1137_vm0, %v1561_v58 }
 0x4be   : > { %v6721_v17 = vpop.eup %6720  ;;  %6199 = vmatpush3.bf16.msra.mxu1 %v7629_v53  ;;  %v1811_v25 = vpop.permute.xlu0 %1810  ;;  %v1550_v31 = vmul.f32 %v6719_v30, %v7821_v38 }
 0x4bf   : > { %v6723_v19 = vpop.eup %6722  ;;  %6200 = vmatprep.subr.bf16.mxu1 %v7626_v4  ;;  %v1552_v57 = vmul.f32 %v6721_v17, %v7813_v40  ;;  %v1821_v11 = vsel %vm1137_vm0, %v1811_v25, 0 }
 0x4c0   : > { %v1813_v37 = vpop.permute.xlu1 %1812  ;;  %v1551_v5 = vmul.f32 %v6723_v19, %v7825_v0 }
 0x4c1   : > { %v1563_v2 = vpack.c.bf16 %v1553_v15, %v1552_v57  ;;  %v1824_v36 = vsel %vm1137_vm0, %v1813_v37, 0 }
 0x4c2   : > { %6201 = vmatpush3.bf16.msra.mxu1 %v7626_v4  ;;  %v1957_v20 = vpop.permute.xlu0 %1956  ;;  %v1562_v6 = vpack.c.bf16 %v1551_v5, %v1550_v31 }
 0x4c3   : > { %6438 = vmatprep.subr.msk.bf16.mxu1 %vm1137_vm0, %v1811_v25  ;;  %6442 = vmatprep.subr.msk.bf16.mxu0 %vm1137_vm0, %v1957_v20  ;;  %v1967_v45 = vsel %vm1137_vm0, %v1957_v20, 0  ;;  %v6725_v18 = vpop.eup %6724 }
 0x4c4   : > { %6194 = vmatprep.mubr.msk.bf16.mxu0 %vm1137_vm0, %v1562_v6  ;;  %v1805_v16 = vpop.permute.xlu1 %1804  ;;  %v1557_v34 = vmul.f32 %v6725_v18, %v7833_v8 }
 0x4c5   : > { %v6727_v38 = vpop.eup %6726  ;;  %6195 = vmatmul.mubr.msk.bf16.vlgmr.msra.gmra.mrb[40].mxu0 %vm1137_vm0, %v1563_v2 }
 0x4c6   : > { %v6729_v0 = vpop.eup %6728  ;;  %6223 = vmatpush3.bf16.xpose.msra.mxu0 %v1967_v45  ;;  %v1886_v40 = vpop.permute.xlu0 %1885  ;;  %v1554_v24 = vmul.f32 %v6727_v38, %v7837_v63 }
 0x4c7   : > { %v6731_v46 = vpop.eup %6730  ;;  %v1556_v51 = vmul.f32 %v6729_v0, %v7829_v10  ;;  %v1897_v19 = vsel %vm1137_vm0, %v1886_v40, 0 }
 0x4c8   : > { %v1884_v33 = vpop.permute.xlu1 %1883  ;;  %v1555_v1 = vmul.f32 %v6731_v46, %v7841_v41 }
 0x4c9   : > { %v1565_v60 = vpack.c.bf16 %v1557_v34, %v1556_v51  ;;  %v1894_v30 = vsel %vm1137_vm0, %v1884_v33, 0 }
 0x4ca   : > { %v1951_v56 = vpop.permute.xlu0 %1950  ;;  %v1564_v50 = vpack.c.bf16 %v1555_v1, %v1554_v24 }
 0x4cb   : > { %6226 = vmatprep.mubr.msk.bf16.mxu0 %vm1137_vm0, %v1951_v56 }
 0x4cc   : > { %6202 = vmatprep.mubr.msk.bf16.mxu1 %vm1137_vm0, %v1564_v50  ;;  %v1807_v14 = vpop.permute.xlu1 %1806 }
 0x4cd   : > { %6203 = vmatmul.mubr.msk.bf16.vlgmr.msra.gmra.mrb[32].mxu1 %vm1137_vm0, %v1565_v60 }
 0x4ce   : > { %6207 = vmatpush3.bf16.xpose.msra.mxu1 %v1821_v11  ;;  %v1953_v8 = vpop.permute.xlu0 %1952  ;;  %6210 = vmatprep.mubr.msk.bf16.mxu1 %vm1137_vm0, %v1805_v16 }
 0x4cf   : > { %6439 = vmatprep.subr.msk.bf16.mxu1 %vm1137_vm0, %v1813_v37 }
 0x4d0   : > { %v1959_v63 = vpop.permute.xlu1 %1958 }
 0x4d1   : > { %6443 = vmatprep.subr.msk.bf16.mxu0 %vm1137_vm0, %v1959_v63  ;;  %v1970_v10 = vsel %vm1137_vm0, %v1959_v63, 0 }
 0x4d2   : > { %v1880_v41 = vpop.permute.xlu0 %1879  ;;  %6225 = vmatpush3.bf16.xpose.msra.mxu0 %v1970_v10 }
 0x4d4   : > { %v1878_v52 = vpop.permute.xlu1 %1877 }
 0x4d6   : > { %6209 = vmatpush3.bf16.xpose.msra.mxu1 %v1824_v36  ;;  %v2024_v21 = vpop.permute.xlu0 %2023 }
 0x4d7   : > { %6440 = vmatprep.subr.msk.bf16.mxu1 %vm1137_vm0, %v1884_v33 }
 0x4d8   : > { %v2030_v58 = vpop.permute.xlu1 %2029 }
 0x4d9   : > { %6227 = vmatmul.mubr.msk.bf16.vlgmr.msra.gmra.mrb[44].mxu0 %vm1137_vm0, %v1953_v8  ;;  %v2040_v37 = vsel %vm1137_vm0, %v2030_v58, 0 }
 0x4da   : > { %v2281_v39 = vpop.permute.xlu0 %2280 }
 0x4db   : > { %6238 = vmatprep.subr.bf16.mxu0 %v2281_v39 }
 0x4dc   : > { %6239 = vmatpush3.bf16.msra.mxu0 %v2281_v39  ;;  %v2032_v55 = vpop.permute.xlu1 %2031 }
 0x4dd   : > { %6211 = vmatmul.mubr.msk.bf16.vlgmr.msra.gmra.mrb[36].mxu1 %vm1137_vm0, %v1807_v14  ;;  %v2043_v31 = vsel %vm1137_vm0, %v2032_v55, 0 }
 0x4de   : > { %6215 = vmatpush3.bf16.xpose.msra.mxu1 %v1894_v30  ;;  %6218 = vmatprep.mubr.msk.bf16.mxu1 %vm1137_vm0, %v1878_v52  ;;  %v7942_v15 = vpop.permute.xlu0 %2406 }
 0x4df   : > { %6441 = vmatprep.subr.msk.bf16.mxu1 %vm1137_vm0, %v1886_v40 }
 0x4e0   : > { %v2026_v17 = vpop.permute.xlu1 %2025 }
 0x4e2   : > { %v2344_v5 = vpop.permute.xlu0 %2343 }
 0x4e4   : > { %v2283_v25 = vpop.permute.xlu1 %2282 }
 0x4e5   : > { %6240 = vmatprep.subr.bf16.mxu0 %v2283_v25 }
 0x4e6   : > { %6217 = vmatpush3.bf16.xpose.msra.mxu1 %v1897_v19  ;;  %6241 = vmatpush3.bf16.msra.mxu0 %v2283_v25 }
 0x4e7   : > { %6444 = vmatprep.subr.msk.bf16.mxu1 %vm1137_vm0, %v2030_v58  ;;  %6254 = vmatprep.subr.bf16.mxu0 %v7942_v15 }
 0x4e8   : > { %v7951_v57 = vpop.permute.xlu1 %2408 }
 0x4ec   : > { %v2346_v20 = vpop.permute.xlu1 %2345 }
 0x4ed   : > { %6219 = vmatmul.mubr.msk.bf16.vlgmr.msra.gmra.mrb[40].mxu1 %vm1137_vm0, %v1880_v41 }
 0x4ee   : > { %6231 = vmatpush3.bf16.xpose.msra.mxu1 %v2040_v37  ;;  %6234 = vmatprep.mubr.msk.bf16.mxu1 %vm1137_vm0, %v2024_v21 }
 0x4ef   : > { %6445 = vmatprep.subr.msk.bf16.mxu1 %vm1137_vm0, %v2032_v55 }
 0x4f0   : > { %v7954_v6 = vpop.permute.xlu1 %2469 }
 0x4f6   : > { %6233 = vmatpush3.bf16.xpose.msra.mxu1 %v2043_v31 }
 0x4f7   : > { %6246 = vmatprep.subr.bf16.mxu1 %v2344_v5 }
 0x4fd   : > { %6235 = vmatmul.mubr.msk.bf16.vlgmr.msra.gmra.mrb[44].mxu1 %vm1137_vm0, %v2026_v17 }
 0x4fe   : > { %6247 = vmatpush3.bf16.msra.mxu1 %v2344_v5 }
 0x4ff   : > { %6248 = vmatprep.subr.bf16.mxu1 %v2346_v20 }
 0x502   : > { %6249 = vmatpush3.bf16.msra.mxu1 %v2346_v20 }
 0x503   : > { %6262 = vmatprep.subr.bf16.mxu1 %v7954_v6 }
 0x588   : > { %v6180_v2 = vpop.f32.mrb[36].mxu0 }
 0x589   : > { %v1606_v45 = vpop.f32.mrb[37].mxu0 }
 0x58a   : > { %v6181_v18 = vpop.f32.mrb[38].mxu0 }
 0x58b   : > { %v1787_v16 = vpack.c.bf16 %v6181_v18, %v6180_v2  ;;  %v1609_v38 = vpop.f32.mrb[39].mxu0 }
 0x58c   : > { %v1786_v0 = vpack.c.bf16 %v1609_v38, %v1606_v45 }
 0x58d   : > { %1795 = vst.msk [vmem:[#allocation2 + $0x8] sm:$0xff] %vm1137_vm0, %v1787_v16 }
 0x58e   : > { %1794 = vst.msk [vmem:[#allocation2] sm:$0xff] %vm1137_vm0, %v1786_v0 }
 0x590   : > { %v6188_v40 = vpop.f32.mrb[28].mxu1 }
 0x591   : > { %v1661_v46 = vpop.f32.mrb[29].mxu1 }
 0x592   : > { %v6189_v34 = vpop.f32.mrb[30].mxu1 }
 0x593   : > { %v1789_v33 = vpack.c.bf16 %v6189_v34, %v6188_v40  ;;  %v1664_v24 = vpop.f32.mrb[31].mxu1 }
 0x594   : > { %v1788_v1 = vpack.c.bf16 %v1664_v24, %v1661_v46 }
 0x595   : > { %1797 = vst.msk [vmem:[#allocation2 + $0x18] sm:$0xff] %vm1137_vm0, %v1789_v33 }
 0x596   : > { %1796 = vst.msk [vmem:[#allocation2 + $0x10] sm:$0xff] %vm1137_vm0, %v1788_v1 }
 0x598   : > { %v6196_v51 = vpop.f32.mrb[40].mxu0 }
 0x599   : > { %v1716_v56 = vpop.f32.mrb[41].mxu0 }
 0x59a   : > { %v6197_v50 = vpop.f32.mrb[42].mxu0 }
 0x59b   : > { %v1791_v60 = vpack.c.bf16 %v6197_v50, %v6196_v51  ;;  %v1719_v14 = vpop.f32.mrb[43].mxu0 }
 0x59c   : > { %v1790_v11 = vpack.c.bf16 %v1719_v14, %v1716_v56 }
 0x59d   : > { %1799 = vst.msk [vmem:[#allocation2 + $0x28] sm:$0xff] %vm1137_vm0, %v1791_v60 }
 0x59e   : > { %1798 = vst.msk [vmem:[#allocation2 + $0x20] sm:$0xff] %vm1137_vm0, %v1790_v11 }
 0x5a0   : > { %v6204_v8 = vpop.f32.mrb[32].mxu1 }
 0x5a1   : > { %v1771_v63 = vpop.f32.mrb[33].mxu1 }
 0x5a2   : > { %v6205_v10 = vpop.f32.mrb[34].mxu1 }
 0x5a3   : > { %v1793_v41 = vpack.c.bf16 %v6205_v10, %v6204_v8  ;;  %v1774_v52 = vpop.f32.mrb[35].mxu1  ;;  %v8018_v10 = vpop.permute.xlu0 %2583 }
 0x5a4   : > { %v1792_v36 = vpack.c.bf16 %v1774_v52, %v1771_v63 }
 0x5a5   : > { %1801 = vst.msk [vmem:[#allocation2 + $0x38] sm:$0xff] %vm1137_vm0, %v1793_v41 }
 0x5a6   : > { %1800 = vst.msk [vmem:[#allocation2 + $0x30] sm:$0xff] %vm1137_vm0, %v1792_v36 }
 0x5ac   : > { %v6228_v21 = vpop.f32.mrb[44].mxu0 }
 0x5ad   : > { %v2006_v58 = vpop.f32.mrb[45].mxu0  ;;  %v2124_v39 = vsel %vm1137_vm0, %v6228_v21, -inf }
 0x5ae   : > { %2125 = vmax.xlane.f32.xlu0 %v2124_v39  ;;  %v6229_v55 = vpop.f32.mrb[46].mxu0  ;;  %v2118_v37 = vsel %vm1137_vm0, %v2006_v58, -inf }
 0x5af   : > { %v2009_v30 = vpop.f32.mrb[47].mxu0  ;;  %v2127_v17 = vsel %vm1137_vm0, %v6229_v55, -inf }
 0x5b0   : > { %v6212_v25 = vpop.f32.mrb[36].mxu1  ;;  %2128 = vmax.xlane.f32.xlu1 %v2127_v17  ;;  %v2121_v20 = vsel %vm1137_vm0, %v2009_v30, -inf }
 0x5b1   : > { %v7967_v19 = vpop.f32.mrb[37].mxu1  ;;  %v2100_v2 = vsel %vm1137_vm0, %v6212_v25, -inf }
 0x5b2   : > { %v7970_v31 = vpop.f32.mrb[38].mxu1  ;;  %2119 = vmax.xlane.f32.xlu0 %v2118_v37  ;;  %v2094_v18 = vsel %vm1137_vm0, %v7967_v19, -inf }
 0x5b3   : > { %v7972_v5 = vpop.f32.mrb[39].mxu1  ;;  %v2103_v16 = vsel %vm1137_vm0, %v7970_v31, -inf }
 0x5b4   : > { %2122 = vmax.xlane.f32.xlu1 %v2121_v20  ;;  %v2097_v45 = vsel %vm1137_vm0, %v7972_v5, -inf }
 0x5b6   : > { %2101 = vmax.xlane.f32.xlu0 %v2100_v2 }
 0x5b8   : > { %2098 = vmax.xlane.f32.xlu1 %v2097_v45 }
 0x5ba   : > { %2095 = vmax.xlane.f32.xlu0 %v2094_v18 }
 0x5be   : > { %2104 = vmax.xlane.f32.xlu0 %v2103_v16 }
 0x5c0   : > { %v7982_v38 = vpop.f32.mrb[40].mxu1 }
 0x5c1   : > { %v7984_v0 = vpop.f32.mrb[41].mxu1  ;;  %v2112_v40 = vsel %vm1137_vm0, %v7982_v38, -inf }
 0x5c2   : > { %v7988_v46 = vpop.f32.mrb[42].mxu1  ;;  %2113 = vmax.xlane.f32.xlu0 %v2112_v40  ;;  %v2106_v24 = vsel %vm1137_vm0, %v7984_v0, -inf }
 0x5c3   : > { %v7990_v34 = vpop.f32.mrb[43].mxu1  ;;  %v2115_v33 = vsel %vm1137_vm0, %v7988_v46, -inf }
 0x5c4   : > { %2116 = vmax.xlane.f32.xlu1 %v2115_v33  ;;  %v2109_v1 = vsel %vm1137_vm0, %v7990_v34, -inf }
 0x5c6   : > { %2107 = vmax.xlane.f32.xlu0 %v2106_v24 }
 0x5c8   : > { %2110 = vmax.xlane.f32.xlu1 %v2109_v1 }
 0x5d0   : > { %v7998_v51 = vpop.f32.mrb[44].mxu1 }
 0x5d1   : > { %v8000_v56 = vpop.f32.mrb[45].mxu1  ;;  %v2136_v50 = vsel %vm1137_vm0, %v7998_v51, -inf }
 0x5d2   : > { %2137 = vmax.xlane.f32.xlu0 %v2136_v50  ;;  %v8004_v60 = vpop.f32.mrb[46].mxu1  ;;  %v2130_v11 = vsel %vm1137_vm0, %v8000_v56, -inf }
 0x5d3   : > { %v8006_v14 = vpop.f32.mrb[47].mxu1  ;;  %v2139_v8 = vsel %vm1137_vm0, %v8004_v60, -inf }
 0x5d4   : > { %v2133_v63 = vsel %vm1137_vm0, %v8006_v14, -inf }
 0x5d6   : > { %2131 = vmax.xlane.f32.xlu0 %v2130_v11 }
 0x5d9   : > { %2585 = vrot.lane.b32.xlu1 %v7570_v3, %s9500_s23 }
 0x5ec   : > { %2471 = vrot.lane.b32.xlu0 %v7626_v4, %s7074_s24 }
 0x5fd   : > { %2140 = vmax.xlane.f32.xlu1 %v2139_v8 }
 0x601   : > { %2134 = vmax.xlane.f32.xlu1 %v2133_v63 }
 0x63b   : > { %v2126_v41 = vpop.xlane.xlu0 %2125 }
 0x63c   : > { %v2152_v52 = vsub.f32 %v6228_v21, %v2126_v41 }
 0x63d   : > { %v2129_v36 = vpop.xlane.xlu1 %2128 }
 0x63e   : > { %v2178_v39 = vmul.f32 1.442695, %v2152_v52  ;;  %v2153_v17 = vsub.f32 %v6229_v55, %v2129_v36 }
 0x63f   : > { %v2120_v37 = vpop.xlane.xlu0 %2119 }
 0x640   : > { %6732 = vpow2.f32 %v2178_v39  ;;  %v2180_v20 = vmul.f32 1.442695, %v2153_v17  ;;  %v2150_v2 = vsub.f32 %v2006_v58, %v2120_v37 }
 0x641   : > { %v2123_v45 = vpop.xlane.xlu1 %2122 }
 0x642   : > { %6734 = vpow2.f32 %v2180_v20  ;;  %v2174_v18 = vmul.f32 1.442695, %v2150_v2  ;;  %v2151_v16 = vsub.f32 %v2009_v30, %v2123_v45 }
 0x643   : > { %v2102_v40 = vpop.xlane.xlu0 %2101 }
 0x644   : > { %6736 = vpow2.f32 %v2174_v18  ;;  %v2176_v33 = vmul.f32 1.442695, %v2151_v16  ;;  %v2144_v24 = vsub.f32 %v6212_v25, %v2102_v40 }
 0x645   : > { %v2099_v50 = vpop.xlane.xlu1 %2098 }
 0x646   : > { %6738 = vpow2.f32 %v2176_v33  ;;  %v2162_v1 = vmul.f32 1.442695, %v2144_v24  ;;  %v2143_v8 = vsub.f32 %v7972_v5, %v2099_v50 }
 0x647   : > { %v2096_v11 = vpop.xlane.xlu0 %2095 }
 0x648   : > { %6740 = vpow2.f32 %v2162_v1  ;;  %v2142_v21 = vsub.f32 %v7967_v19, %v2096_v11  ;;  %v2160_v19 = vmul.f32 1.442695, %v2143_v8 }
 0x64a   : > { %v8021_v55 = vpop.eup %6732  ;;  %v2158_v58 = vmul.f32 1.442695, %v2142_v21 }
 0x64b   : > { %v2105_v63 = vpop.xlane.xlu0 %2104  ;;  %v2220_v30 = vsel %vm1137_vm0, %v8021_v55, 0.0 }
 0x64c   : > { %v8026_v41 = vpop.eup %6734  ;;  %6742 = vpow2.f32 %v2158_v58  ;;  %v2145_v25 = vsub.f32 %v7970_v31, %v2105_v63  ;;  %2221 = vadd.xlane.f32.xlu0 %v2220_v30 }
 0x64d   : > { %v2223_v52 = vsel %vm1137_vm0, %v8026_v41, 0.0 }
 0x64e   : > { %v8031_v36 = vpop.eup %6736  ;;  %v2164_v39 = vmul.f32 1.442695, %v2145_v25  ;;  %2224 = vadd.xlane.f32.xlu1 %v2223_v52 }
 0x64f   : > { %v2114_v5 = vpop.xlane.xlu0 %2113  ;;  %v2214_v17 = vsel %vm1137_vm0, %v8031_v36, 0.0 }
 0x650   : > { %v8035_v37 = vpop.eup %6738  ;;  %6744 = vpow2.f32 %v2164_v39  ;;  %v2148_v20 = vsub.f32 %v7982_v38, %v2114_v5  ;;  %2215 = vadd.xlane.f32.xlu0 %v2214_v17 }
 0x651   : > { %v2217_v31 = vsel %vm1137_vm0, %v8035_v37, 0.0  ;;  %6746 = vpow2.f32 %v2160_v19  ;;  %v2117_v30 = vpop.xlane.xlu1 %2116 }
 0x652   : > { %v8040_v2 = vpop.eup %6740  ;;  %v2170_v45 = vmul.f32 1.442695, %v2148_v20  ;;  %2218 = vadd.xlane.f32.xlu1 %v2217_v31  ;;  %v2149_v25 = vsub.f32 %v7988_v46, %v2117_v30 }
 0x653   : > { %v2108_v18 = vpop.xlane.xlu0 %2107  ;;  %v2196_v16 = vsel %vm1137_vm0, %v8040_v2, 0.0 }
 0x654   : > { %6748 = vpow2.f32 %v2170_v45  ;;  %v2146_v40 = vsub.f32 %v7984_v0, %v2108_v18  ;;  %2197 = vadd.xlane.f32.xlu0 %v2196_v16  ;;  %v2172_v39 = vmul.f32 1.442695, %v2149_v25 }
 0x655   : > { %v2111_v52 = vpop.xlane.xlu1 %2110 }
 0x656   : > { %v8045_v33 = vpop.eup %6742  ;;  %v2166_v38 = vmul.f32 1.442695, %v2146_v40  ;;  %v2147_v5 = vsub.f32 %v7990_v34, %v2111_v52 }
 0x657   : > { %v2190_v24 = vsel %vm1137_vm0, %v8045_v33, 0.0 }
 0x658   : > { %6750 = vpow2.f32 %v2166_v38  ;;  %2191 = vadd.xlane.f32.xlu0 %v2190_v24  ;;  %v2168_v20 = vmul.f32 1.442695, %v2147_v5 }
 0x659   : > { %v8071_v17 = vpop.permute.xlu1 %2585  ;;  %6752 = vpow2.f32 %v2172_v39 }
 0x65a   : > { %v8049_v1 = vpop.eup %6744  ;;  %6754 = vpow2.f32 %v2168_v20 }
 0x65b   : > { %v2199_v50 = vsel %vm1137_vm0, %v8049_v1, 0.0  ;;  %v8053_v11 = vpop.eup %6746 }
 0x65c   : > { %2200 = vadd.xlane.f32.xlu1 %v2199_v50  ;;  %v2193_v8 = vsel %vm1137_vm0, %v8053_v11, 0.0 }
 0x65e   : > { %v8055_v21 = vpop.eup %6748 }
 0x65f   : > { %v2208_v0 = vsel %vm1137_vm0, %v8055_v21, 0.0  ;;  %v2138_v19 = vpop.xlane.xlu0 %2137 }
 0x660   : > { %2209 = vadd.xlane.f32.xlu0 %v2208_v0  ;;  %2194 = vadd.xlane.f32.xlu1 %v2193_v8  ;;  %v2156_v31 = vsub.f32 %v7998_v51, %v2138_v19 }
 0x662   : > { %v8061_v58 = vpop.eup %6750  ;;  %v2186_v40 = vmul.f32 1.442695, %v2156_v31 }
 0x663   : > { %v2202_v63 = vsel %vm1137_vm0, %v8061_v58, 0.0  ;;  %v2132_v45 = vpop.xlane.xlu0 %2131  ;;  %v8077_v34 = vpop.eup %6752 }
 0x664   : > { %2203 = vadd.xlane.f32.xlu0 %v2202_v63  ;;  %v2154_v18 = vsub.f32 %v8000_v56, %v2132_v45  ;;  %6756 = vpow2.f32 %v2186_v40  ;;  %v2211_v51 = vsel %vm1137_vm0, %v8077_v34, 0.0  ;;  %v8081_v56 = vpop.eup %6754 }
 0x665   : > { %v2205_v63 = vsel %vm1137_vm0, %v8081_v56, 0.0 }
 0x666   : > { %v2182_v38 = vmul.f32 1.442695, %v2154_v18 }
 0x667   : > { %v8133_v20 = vpop.permute.xlu0 %2471 }
 0x668   : > { %6758 = vpow2.f32 %v2182_v38 }
 0x66e   : > { %v8085_v30 = vpop.eup %6756 }
 0x671   : > { %2652 = vrot.lane.b32.xlu1 %v7591_v7, %s9500_s23 }
 0x67a   : > { %2579 = vrot.lane.b32.xlu0 %v7550_v12, %s9500_s23 }
 0x68a   : > { %v2141_v16 = vpop.xlane.xlu1 %2140 }
 0x68b   : > { %v2157_v46 = vsub.f32 %v8004_v60, %v2141_v16  ;;  %v8087_v60 = vpop.eup %6758 }
 0x68c   : > { %v2226_v19 = vsel %vm1137_vm0, %v8087_v60, 0.0 }
 0x68d   : > { %v2188_v8 = vmul.f32 1.442695, %v2157_v46 }
 0x68e   : > { %v2135_v24 = vpop.xlane.xlu1 %2134 }
 0x68f   : > { %v2155_v50 = vsub.f32 %v8006_v14, %v2135_v24  ;;  %v2232_v14 = vsel %vm1137_vm0, %v8085_v30, 0.0 }
 0x691   : > { %v2184_v0 = vmul.f32 1.442695, %v2155_v50 }
 0x693   : > { %6760 = vpow2.f32 %v2184_v0 }
 0x694   : > { %6762 = vpow2.f32 %v2188_v8 }
 0x695   : > { %2212 = vadd.xlane.f32.xlu1 %v2211_v51 }
 0x699   : > { %2206 = vadd.xlane.f32.xlu1 %v2205_v63 }
 0x69d   : > { %v8091_v25 = vpop.eup %6760  ;;  %2233 = vadd.xlane.f32.xlu1 %v2232_v14 }
 0x69e   : > { %v2229_v52 = vsel %vm1137_vm0, %v8091_v25, 0.0  ;;  %v8097_v39 = vpop.eup %6762 }
 0x69f   : > { %2230 = vadd.xlane.f32.xlu0 %v2229_v52  ;;  %v2235_v5 = vsel %vm1137_vm0, %v8097_v39, 0.0 }
 0x6a1   : > { %2227 = vadd.xlane.f32.xlu1 %v2226_v19 }
 0x6a5   : > { %2236 = vadd.xlane.f32.xlu1 %v2235_v5 }
 0x6b5   : > { %2721 = vrot.lane.b32.xlu0 %v7634_v62, %s9500_s23 }
 0x6b6   : > { %2581 = vrot.lane.b32.xlu1 %v7572_v47, %s9500_s23 }
 0x6b9   : > { %2654 = vrot.lane.b32.xlu0 %v7615_v32, %s9500_s23 }
 0x6ba   : > { %2723 = vrot.lane.b32.xlu1 %v7650_v13, %s9500_s23 }
 0x6bd   : > { %2717 = vrot.lane.b32.xlu0 %v7636_v28, %s9500_s23 }
 0x6be   : > { %2648 = vrot.lane.b32.xlu1 %v7593_v9, %s9500_s23 }
 0x6c1   : > { %2719 = vrot.lane.b32.xlu0 %v7652_v26, %s9500_s23 }
 0x6c2   : > { %2790 = vrot.lane.b32.xlu1 %v7663_v43, %s9500_s23 }
 0x6c5   : > { %2650 = vrot.lane.b32.xlu0 %v7617_v42, %s9500_s23 }
 0x6c6   : > { %2792 = vrot.lane.b32.xlu1 %v7681_v27, %s9500_s23 }
 0x6c9   : > { %2786 = vrot.lane.b32.xlu0 %v7665_v44, %s9500_s23 }
 0x6ca   : > { %2788 = vrot.lane.b32.xlu1 %v7684_v61, %s9500_s23 }
 0x6cd   : > { %3039 = vrot.lane.b32.xlu0 %v7565_v35, %s9500_s23 }
 0x6ce   : > { %3041 = vrot.lane.b32.xlu1 %v7560_v49, %s9500_s23 }
 0x6d1   : > { %3161 = vrot.lane.b32.xlu0 %v7609_v29, %s9500_s23 }
 0x6d2   : > { %3163 = vrot.lane.b32.xlu1 %v7604_v23, %s9500_s23 }
 0x6d5   : > { %3100 = vrot.lane.b32.xlu0 %v7585_v59, %s9500_s23 }
 0x6d6   : > { %3102 = vrot.lane.b32.xlu1 %v7582_v54, %s9500_s23 }
 0x6d9   : > { %3336 = vrot.lane.b32.xlu0 %v7548_v48, %s7076_s25  ;;  %v2222_v31 = vpop.xlane.xlu0 %2221 }
 0x6da   : > { %3222 = vrot.lane.b32.xlu1 %v7629_v53, %s9500_s23 }
 0x6db   : > { %v2225_v18 = vpop.xlane.xlu1 %2224 }
 0x6dd   : > { %v2216_v45 = vpop.xlane.xlu0 %2215 }
 0x6de   : > { %6764 = vrcp.f32 %v2216_v45 }
 0x6df   : > { %v2219_v40 = vpop.xlane.xlu1 %2218 }
 0x6e0   : > { %6766 = vrcp.f32 %v2219_v40 }
 0x6e1   : > { %v2198_v16 = vpop.xlane.xlu0 %2197 }
 0x6e5   : > { %v2192_v24 = vpop.xlane.xlu0 %2191 }
 0x6e8   : > { %v6765_v50 = vpop.eup %6764 }
 0x6e9   : > { %v2201_v38 = vpop.xlane.xlu1 %2200 }
 0x6ea   : > { %6768 = vrcp.f32 %v2201_v38  ;;  %v6767_v48 = vpop.eup %6766 }
 0x6eb   : > { %6770 = vrcp.f32 %v2192_v24  ;;  %v2263_v5 = vmul.f32 %v6767_v48, %v8035_v37 }
 0x6ec   : > { %6772 = vrcp.f32 %v2198_v16 }
 0x6ed   : > { %v2195_v46 = vpop.xlane.xlu1 %2194  ;;  %v2210_v16 = vpop.xlane.xlu0 %2209 }
 0x6ee   : > { %6774 = vrcp.f32 %v2195_v46 }
 0x6ef   : > { %6776 = vrcp.f32 %v2225_v18  ;;  %v2262_v18 = vmul.f32 %v6765_v50, %v8031_v36 }
 0x6f0   : > { %6778 = vrcp.f32 %v2222_v31 }
 0x6f1   : > { %v2274_v31 = vpack.c.bf16 %v2263_v5, %v2262_v18 }
 0x6f4   : > { %v6769_v0 = vpop.eup %6768 }
 0x6f5   : > { %v6771_v8 = vpop.eup %6770  ;;  %v2257_v14 = vmul.f32 %v6769_v0, %v8049_v1 }
 0x6f6   : > { %v6773_v51 = vpop.eup %6772  ;;  %v2254_v52 = vmul.f32 %v6771_v8, %v8045_v33  ;;  %v2204_v33 = vpop.xlane.xlu0 %2203 }
 0x6f7   : > { %v2256_v45 = vmul.f32 %v6773_v51, %v8040_v2 }
 0x6f8   : > { %v6775_v63 = vpop.eup %6774 }
 0x6f9   : > { %v2255_v19 = vmul.f32 %v6775_v63, %v8053_v11  ;;  %v2271_v38 = vpack.c.bf16 %v2257_v14, %v2256_v45  ;;  %v6777_v24 = vpop.eup %6776 }
 0x6fa   : > { %v6779_v1 = vpop.eup %6778  ;;  %v2265_v37 = vmul.f32 %v6777_v24, %v8026_v41  ;;  %v2580_v11 = vpop.permute.xlu0 %2579 }
 0x6fb   : > { %v2270_v40 = vpack.c.bf16 %v2255_v19, %v2254_v52  ;;  %v2264_v2 = vmul.f32 %v6779_v1, %v8021_v55  ;;  %v2597_v55 = vsel %vm1137_vm0, %v8071_v17, 0 }
 0x6fd   : > { %6242 = vmatprep.mubr.msk.bf16.mxu0 %vm1137_vm0, %v2270_v40  ;;  %v2275_v36 = vpack.c.bf16 %v2265_v37, %v2264_v2 }
 0x6fe   : > { %6243 = vmatmul.mubr.msk.bf16.vlgmr.msra.gmra.mrb[48].mxu0 %vm1137_vm0, %v2271_v38 }
 0x6ff   : > { %6255 = vmatpush3.bf16.msra.mxu0 %v7942_v15  ;;  %6258 = vmatprep.mubr.msk.bf16.mxu0 %vm1137_vm0, %v2274_v31  ;;  %v2594_v15 = vsel %vm1137_vm0, %v8018_v10, 0 }
 0x700   : > { %6256 = vmatprep.subr.bf16.mxu0 %v7951_v57 }
 0x703   : > { %6257 = vmatpush3.bf16.msra.mxu0 %v7951_v57  ;;  %v2653_v57 = vpop.permute.xlu1 %2652 }
 0x704   : > { %6446 = vmatprep.subr.msk.bf16.mxu0 %vm1137_vm0, %v8018_v10 }
 0x706   : > { %6259 = vmatmul.mubr.msk.bf16.vlgmr.msra.gmra.mrb[52].mxu0 %vm1137_vm0, %v2275_v36 }
 0x707   : > { %6274 = vmatprep.mubr.msk.bf16.mxu0 %vm1137_vm0, %v2580_v11 }
 0x70c   : > { %6271 = vmatpush3.bf16.xpose.msra.mxu0 %v2594_v15 }
 0x70d   : > { %6447 = vmatprep.subr.msk.bf16.mxu0 %vm1137_vm0, %v8071_v17 }
 0x714   : > { %6273 = vmatpush3.bf16.xpose.msra.mxu0 %v2597_v55 }
 0x722   : > { %v2213_v41 = vpop.xlane.xlu1 %2212 }
 0x723   : > { %6780 = vrcp.f32 %v2213_v41 }
 0x724   : > { %6782 = vrcp.f32 %v2204_v33 }
 0x725   : > { %6784 = vrcp.f32 %v2210_v16 }
 0x726   : > { %v2207_v46 = vpop.xlane.xlu1 %2206 }
 0x727   : > { %6786 = vrcp.f32 %v2207_v46  ;;  %v2663_v46 = vsel %vm1137_vm0, %v2653_v57, 0 }
 0x72a   : > { %v2234_v50 = vpop.xlane.xlu1 %2233 }
 0x72c   : > { %v2231_v48 = vpop.xlane.xlu0 %2230 }
 0x72d   : > { %6788 = vrcp.f32 %v2231_v48  ;;  %v6781_v0 = vpop.eup %6780 }
 0x72e   : > { %v2228_v10 = vpop.xlane.xlu1 %2227  ;;  %v6783_v8 = vpop.eup %6782  ;;  %v2261_v17 = vmul.f32 %v6781_v0, %v8077_v34 }
 0x72f   : > { %6790 = vrcp.f32 %v2228_v10  ;;  %v6785_v51 = vpop.eup %6784  ;;  %v2258_v19 = vmul.f32 %v6783_v8, %v8061_v58 }
 0x730   : > { %v2722_v63 = vpop.permute.xlu0 %2721  ;;  %6792 = vrcp.f32 %v2234_v50  ;;  %v2260_v45 = vmul.f32 %v6785_v51, %v8055_v21 }
 0x731   : > { %v6787_v14 = vpop.eup %6786  ;;  %6450 = vmatprep.subr.msk.bf16.mxu0 %vm1137_vm0, %v2722_v63  ;;  %v2732_v34 = vsel %vm1137_vm0, %v2722_v63, 0 }
 0x732   : > { %v2237_v52 = vpop.xlane.xlu1 %2236  ;;  %v2259_v5 = vmul.f32 %v6787_v14, %v8081_v56  ;;  %v2273_v18 = vpack.c.bf16 %v2261_v17, %v2260_v45 }
 0x733   : > { %6794 = vrcp.f32 %v2237_v52 }
 0x734   : > { %v2655_v16 = vpop.permute.xlu0 %2654  ;;  %v2272_v40 = vpack.c.bf16 %v2259_v5, %v2258_v19 }
 0x735   : > { %v2666_v48 = vsel %vm1137_vm0, %v2655_v16, 0 }
 0x736   : > { %6250 = vmatprep.mubr.msk.bf16.mxu1 %vm1137_vm0, %v2272_v40  ;;  %v2582_v38 = vpop.permute.xlu1 %2581 }
 0x737   : > { %v6789_v24 = vpop.eup %6788  ;;  %6251 = vmatmul.mubr.msk.bf16.vlgmr.msra.gmra.mrb[48].mxu1 %vm1137_vm0, %v2273_v18  ;;  %6275 = vmatmul.mubr.msk.bf16.vlgmr.msra.gmra.mrb[56].mxu0 %vm1137_vm0, %v2582_v38 }
 0x738   : > { %v2718_v31 = vpop.permute.xlu0 %2717  ;;  %6263 = vmatpush3.bf16.msra.mxu1 %v7954_v6  ;;  %6287 = vmatpush3.bf16.xpose.msra.mxu0 %v2732_v34  ;;  %v2267_v1 = vmul.f32 %v6789_v24, %v8091_v25 }
 0x739   : > { %v6791_v58 = vpop.eup %6790  ;;  %6264 = vmatprep.subr.bf16.mxu1 %v8133_v20  ;;  %6290 = vmatprep.mubr.msk.bf16.mxu0 %vm1137_vm0, %v2718_v31 }
 0x73a   : > { %v2724_v21 = vpop.permute.xlu1 %2723  ;;  %v2266_v56 = vmul.f32 %v6791_v58, %v8087_v60  ;;  %v6793_v37 = vpop.eup %6792 }
 0x73b   : > { %6451 = vmatprep.subr.msk.bf16.mxu0 %vm1137_vm0, %v2724_v21  ;;  %v2268_v6 = vmul.f32 %v6793_v37, %v8085_v30  ;;  %v2735_v60 = vsel %vm1137_vm0, %v2724_v21, 0 }
 0x73c   : > { %v2720_v33 = vpop.permute.xlu0 %2719  ;;  %6265 = vmatpush3.bf16.msra.mxu1 %v8133_v20  ;;  %v2276_v2 = vpack.c.bf16 %v2267_v1, %v2266_v56 }
 0x73d   : > { %v6795_v36 = vpop.eup %6794  ;;  %6448 = vmatprep.subr.msk.bf16.mxu1 %vm1137_vm0, %v2653_v57 }
 0x73e   : > { %v2269_v11 = vmul.f32 %v6795_v36, %v8097_v39  ;;  %6266 = vmatprep.mubr.msk.bf16.mxu1 %vm1137_vm0, %v2276_v2  ;;  %v2649_v15 = vpop.permute.xlu1 %2648 }
 0x740   : > { %v2651_v25 = vpop.permute.xlu0 %2650  ;;  %6289 = vmatpush3.bf16.xpose.msra.mxu0 %v2735_v60  ;;  %v2277_v55 = vpack.c.bf16 %v2269_v11, %v2268_v6 }
 0x742   : > { %6267 = vmatmul.mubr.msk.bf16.vlgmr.msra.gmra.mrb[52].mxu1 %vm1137_vm0, %v2277_v55  ;;  %v2791_v41 = vpop.permute.xlu1 %2790 }
 0x743   : > { %6282 = vmatprep.mubr.msk.bf16.mxu1 %vm1137_vm0, %v2649_v15  ;;  %v2801_v57 = vsel %vm1137_vm0, %v2791_v41, 0 }
 0x744   : > { %v2787_v20 = vpop.permute.xlu0 %2786 }
 0x745   : > { %6279 = vmatpush3.bf16.xpose.msra.mxu1 %v2663_v46 }
 0x746   : > { %6449 = vmatprep.subr.msk.bf16.mxu1 %vm1137_vm0, %v2655_v16  ;;  %v2793_v30 = vpop.permute.xlu1 %2792 }
 0x747   : > { %6291 = vmatmul.mubr.msk.bf16.vlgmr.msra.gmra.mrb[60].mxu0 %vm1137_vm0, %v2720_v33  ;;  %v2804_v8 = vsel %vm1137_vm0, %v2793_v30, 0 }
 0x748   : > { %v3040_v39 = vpop.permute.xlu0 %3039 }
 0x749   : > { %6302 = vmatprep.subr.bf16.mxu0 %v3040_v39 }
 0x74a   : > { %6303 = vmatpush3.bf16.msra.mxu0 %v3040_v39  ;;  %v2789_v50 = vpop.permute.xlu1 %2788 }
 0x74c   : > { %v8195_v10 = vpop.permute.xlu0 %3161 }
 0x74d   : > { %6281 = vmatpush3.bf16.xpose.msra.mxu1 %v2666_v48 }
 0x74e   : > { %6452 = vmatprep.subr.msk.bf16.mxu1 %vm1137_vm0, %v2791_v41  ;;  %v3042_v0 = vpop.permute.xlu1 %3041 }
 0x74f   : > { %6304 = vmatprep.subr.bf16.mxu0 %v3042_v0 }
 0x750   : > { %6305 = vmatpush3.bf16.msra.mxu0 %v3042_v0  ;;  %v3101_v51 = vpop.permute.xlu0 %3100 }
 0x751   : > { %6318 = vmatprep.subr.bf16.mxu0 %v8195_v10 }
 0x752   : > { %v8203_v63 = vpop.permute.xlu1 %3163 }
 0x754   : > { %6283 = vmatmul.mubr.msk.bf16.vlgmr.msra.gmra.mrb[56].mxu1 %vm1137_vm0, %v2651_v25 }
 0x755   : > { %6295 = vmatpush3.bf16.xpose.msra.mxu1 %v2801_v57  ;;  %6298 = vmatprep.mubr.msk.bf16.mxu1 %vm1137_vm0, %v2787_v20 }
 0x756   : > { %6453 = vmatprep.subr.msk.bf16.mxu1 %vm1137_vm0, %v2793_v30  ;;  %v3103_v14 = vpop.permute.xlu1 %3102 }
 0x75a   : > { %v8206_v17 = vpop.permute.xlu1 %3222 }
 0x75d   : > { %6297 = vmatpush3.bf16.xpose.msra.mxu1 %v2804_v8 }
 0x75e   : > { %6310 = vmatprep.subr.bf16.mxu1 %v3101_v51 }
 0x764   : > { %6299 = vmatmul.mubr.msk.bf16.vlgmr.msra.gmra.mrb[60].mxu1 %vm1137_vm0, %v2789_v50 }
 0x765   : > { %6311 = vmatpush3.bf16.msra.mxu1 %v3101_v51 }
 0x766   : > { %6312 = vmatprep.subr.bf16.mxu1 %v3103_v14 }
 0x769   : > { %6313 = vmatpush3.bf16.msra.mxu1 %v3103_v14 }
 0x76a   : > { %6326 = vmatprep.subr.bf16.mxu1 %v8206_v17 }
 0x7d1   : > { %v8209_v52 = vpop.f32.mrb[48].mxu0 }
 0x7d2   : > { %v8211_v19 = vpop.f32.mrb[49].mxu0 }
 0x7d3   : > { %v8213_v5 = vpop.f32.mrb[50].mxu0 }
 0x7d4   : > { %v8217_v16 = vpop.f32.mrb[51].mxu0 }
 0x7d9   : > { %v8221_v18 = vpop.f32.mrb[52].mxu0 }
 0x7da   : > { %9512 = vst [vmem:[#allocation14_spill] sm:$0xff] %v8221_v18  ;;  %v8223_v38 = vpop.f32.mrb[53].mxu0 }
 0x7db   : > { %9513 = vst [vmem:[#allocation15_spill] sm:$0xff] %v8223_v38  ;;  %v8225_v24 = vpop.f32.mrb[54].mxu0 }
 0x7dc   : > { %v8229_v31 = vpop.f32.mrb[55].mxu0 }
 0x7dd   : > { %9514 = vst [vmem:[#allocation16_spill] sm:$0xff] %v8229_v31 }
 0x80a   : > { %v8233_v21 = vpop.f32.mrb[48].mxu1  ;;  %v8235_v56 = vpop.f32.mrb[56].mxu0 }
 0x80b   : > { %v8237_v1 = vpop.f32.mrb[49].mxu1  ;;  %v8239_v37 = vpop.f32.mrb[57].mxu0  ;;  %v2861_v33 = vsel %vm1137_vm0, %v8235_v56, -inf }
 0x80c   : > { %v8243_v2 = vpop.f32.mrb[50].mxu1  ;;  %2862 = vmax.xlane.f32.xlu0 %v2861_v33  ;;  %v8245_v36 = vpop.f32.mrb[58].mxu0  ;;  %v2855_v55 = vsel %vm1137_vm0, %v8239_v37, -inf }
 0x80d   : > { %v8249_v11 = vpop.f32.mrb[51].mxu1  ;;  %v8251_v15 = vpop.f32.mrb[59].mxu0  ;;  %v2864_v41 = vsel %vm1137_vm0, %v8245_v36, -inf }
 0x80e   : > { %v2858_v25 = vsel %vm1137_vm0, %v8251_v15, -inf }
 0x80f   : > { %2859 = vmax.xlane.f32.xlu1 %v2858_v25 }
 0x810   : > { %2856 = vmax.xlane.f32.xlu0 %v2855_v55 }
 0x814   : > { %2865 = vmax.xlane.f32.xlu0 %v2864_v41 }
 0x815   : > { %v8261_v20 = vpop.f32.mrb[52].mxu1 }
 0x816   : > { %9515 = vst [vmem:[#allocation17_spill] sm:$0xff] %v8261_v20  ;;  %v8263_v46 = vpop.f32.mrb[53].mxu1 }
 0x817   : > { %9516 = vst [vmem:[#allocation18_spill] sm:$0xff] %v8263_v46  ;;  %v8265_v30 = vpop.f32.mrb[54].mxu1 }
 0x818   : > { %9517 = vst [vmem:[#allocation19_spill] sm:$0xff] %v8265_v30  ;;  %v8269_v50 = vpop.f32.mrb[55].mxu1 }
 0x819   : > { %9518 = vst [vmem:[#allocation20_spill] sm:$0xff] %v8269_v50 }
 0x81a   : > { %v6292_v0 = vpop.f32.mrb[60].mxu0 }
 0x81b   : > { %v8273_v57 = vpop.f32.mrb[61].mxu0  ;;  %v2885_v8 = vsel %vm1137_vm0, %v6292_v0, -inf }
 0x81c   : > { %2886 = vmax.xlane.f32.xlu0 %v2885_v8  ;;  %v8276_v51 = vpop.f32.mrb[62].mxu0  ;;  %v2879_v25 = vsel %vm1137_vm0, %v8273_v57, -inf }
 0x81d   : > { %v8278_v14 = vpop.f32.mrb[63].mxu0  ;;  %v2888_v33 = vsel %vm1137_vm0, %v8276_v51, -inf }
 0x81e   : > { %2889 = vmax.xlane.f32.xlu1 %v2888_v33  ;;  %v2882_v55 = vsel %vm1137_vm0, %v8278_v14, -inf }
 0x820   : > { %2880 = vmax.xlane.f32.xlu0 %v2879_v25 }
 0x822   : > { %2883 = vmax.xlane.f32.xlu1 %v2882_v55 }
 0x827   : > { %v8286_v41 = vpop.f32.mrb[56].mxu1 }
 0x828   : > { %v8288_v48 = vpop.f32.mrb[57].mxu1  ;;  %v2873_v8 = vsel %vm1137_vm0, %v8286_v41, -inf }
 0x829   : > { %2874 = vmax.xlane.f32.xlu0 %v2873_v8  ;;  %v8292_v39 = vpop.f32.mrb[58].mxu1  ;;  %v2867_v25 = vsel %vm1137_vm0, %v8288_v48, -inf }
 0x82a   : > { %v8294_v58 = vpop.f32.mrb[59].mxu1  ;;  %v2876_v33 = vsel %vm1137_vm0, %v8292_v39, -inf }
 0x82b   : > { %2877 = vmax.xlane.f32.xlu1 %v2876_v33  ;;  %v2870_v55 = vsel %vm1137_vm0, %v8294_v58, -inf }
 0x82d   : > { %2868 = vmax.xlane.f32.xlu0 %v2867_v25 }
 0x82f   : > { %2871 = vmax.xlane.f32.xlu1 %v2870_v55 }
 0x837   : > { %v8302_v34 = vpop.f32.mrb[60].mxu1 }
 0x838   : > { %v8304_v60 = vpop.f32.mrb[61].mxu1  ;;  %v2897_v8 = vsel %vm1137_vm0, %v8302_v34, -inf }
 0x839   : > { %2898 = vmax.xlane.f32.xlu0 %v2897_v8  ;;  %v8308_v6 = vpop.f32.mrb[62].mxu1  ;;  %v2891_v25 = vsel %vm1137_vm0, %v8304_v60, -inf  ;;  %v8322_v8 = vpop.permute.xlu0 %3336 }
 0x83a   : > { %v8310_v45 = vpop.f32.mrb[63].mxu1  ;;  %v2900_v33 = vsel %vm1137_vm0, %v8308_v6, -inf }
 0x83b   : > { %2901 = vmax.xlane.f32.xlu1 %v2900_v33  ;;  %v2894_v55 = vsel %vm1137_vm0, %v8310_v45, -inf }
 0x83d   : > { %2892 = vmax.xlane.f32.xlu0 %v2891_v25 }
 0x83f   : > { %2895 = vmax.xlane.f32.xlu1 %v2894_v55 }
 0x850   : > { %3338 = vrot.lane.b32.xlu1 %v7570_v3, %s7076_s25 }
 0x853   : > { %3224 = vrot.lane.b32.xlu0 %v7626_v4, %s9500_s23 }
 0x899   : > { %v2863_v40 = vpop.xlane.xlu0 %2862 }
 0x89a   : > { %v2905_v22 = vsub.f32 %v8235_v56, %v2863_v40 }
 0x89c   : > { %v2923_v33 = vmul.f32 1.442695, %v2905_v22  ;;  %v2860_v46 = vpop.xlane.xlu1 %2859 }
 0x89d   : > { %v2857_v50 = vpop.xlane.xlu0 %2856  ;;  %v2904_v20 = vsub.f32 %v8251_v15, %v2860_v46 }
 0x89e   : > { %6796 = vpow2.f32 %v2923_v33  ;;  %v2903_v25 = vsub.f32 %v8239_v37, %v2857_v50 }
 0x89f   : > { %v2921_v38 = vmul.f32 1.442695, %v2904_v20 }
 0x8a0   : > { %v2919_v55 = vmul.f32 1.442695, %v2903_v25 }
 0x8a1   : > { %v2866_v30 = vpop.xlane.xlu0 %2865 }
 0x8a2   : > { %6798 = vpow2.f32 %v2919_v55  ;;  %v2906_v3 = vsub.f32 %v8245_v36, %v2866_v30 }
 0x8a4   : > { %v2925_v31 = vmul.f32 1.442695, %v2906_v3 }
 0x8a6   : > { %6800 = vpow2.f32 %v2925_v31 }
 0x8a7   : > { %6802 = vpow2.f32 %v2921_v38 }
 0x8a8   : > { %v8328_v18 = vpop.eup %6796 }
 0x8a9   : > { %v2887_v40 = vpop.xlane.xlu0 %2886  ;;  %v2957_v22 = vsel %vm1137_vm0, %v8328_v18, 0.0 }
 0x8aa   : > { %v2913_v56 = vsub.f32 %v6292_v0, %v2887_v40  ;;  %2958 = vadd.xlane.f32.xlu0 %v2957_v22 }
 0x8ab   : > { %v2890_v37 = vpop.xlane.xlu1 %2889 }
 0x8ac   : > { %v8332_v50 = vpop.eup %6798  ;;  %v2939_v15 = vmul.f32 1.442695, %v2913_v56  ;;  %v2914_v46 = vsub.f32 %v8276_v51, %v2890_v37 }
 0x8ad   : > { %v2881_v33 = vpop.xlane.xlu0 %2880  ;;  %v2951_v36 = vsel %vm1137_vm0, %v8332_v50, 0.0 }
 0x8ae   : > { %6804 = vpow2.f32 %v2939_v15  ;;  %v2941_v31 = vmul.f32 1.442695, %v2914_v46  ;;  %v2911_v38 = vsub.f32 %v8273_v57, %v2881_v33  ;;  %2952 = vadd.xlane.f32.xlu0 %v2951_v36 }
 0x8af   : > { %v2884_v20 = vpop.xlane.xlu1 %2883 }
 0x8b0   : > { %v8338_v30 = vpop.eup %6800  ;;  %6806 = vpow2.f32 %v2941_v31  ;;  %v2935_v0 = vmul.f32 1.442695, %v2911_v38  ;;  %v2912_v25 = vsub.f32 %v8278_v14, %v2884_v20 }
 0x8b1   : > { %v2960_v55 = vsel %vm1137_vm0, %v8338_v30, 0.0  ;;  %v8343_v51 = vpop.eup %6802 }
 0x8b2   : > { %6808 = vpow2.f32 %v2935_v0  ;;  %v2937_v3 = vmul.f32 1.442695, %v2912_v25  ;;  %2961 = vadd.xlane.f32.xlu1 %v2960_v55  ;;  %v2954_v57 = vsel %vm1137_vm0, %v8343_v51, 0.0 }
 0x8b4   : > { %6810 = vpow2.f32 %v2937_v3 }
 0x8b6   : > { %v2875_v40 = vpop.xlane.xlu0 %2874  ;;  %2955 = vadd.xlane.f32.xlu1 %v2954_v57 }
 0x8b7   : > { %v2909_v22 = vsub.f32 %v8286_v41, %v2875_v40 }
 0x8b8   : > { %v8348_v56 = vpop.eup %6804  ;;  %v2878_v37 = vpop.xlane.xlu1 %2877 }
 0x8b9   : > { %v2931_v14 = vmul.f32 1.442695, %v2909_v22  ;;  %v2910_v15 = vsub.f32 %v8292_v39, %v2878_v37  ;;  %v2981_v46 = vsel %vm1137_vm0, %v8348_v56, 0.0 }
 0x8ba   : > { %v8353_v33 = vpop.eup %6806  ;;  %v2869_v36 = vpop.xlane.xlu0 %2868  ;;  %2982 = vadd.xlane.f32.xlu0 %v2981_v46 }
 0x8bb   : > { %6812 = vpow2.f32 %v2931_v14  ;;  %v2933_v31 = vmul.f32 1.442695, %v2910_v15  ;;  %v2907_v38 = vsub.f32 %v8288_v48, %v2869_v36  ;;  %v2984_v41 = vsel %vm1137_vm0, %v8353_v33, 0.0 }
 0x8bc   : > { %v8358_v20 = vpop.eup %6808  ;;  %2985 = vadd.xlane.f32.xlu1 %v2984_v41  ;;  %v2872_v0 = vpop.xlane.xlu1 %2871 }
 0x8bd   : > { %6814 = vpow2.f32 %v2933_v31  ;;  %v2927_v39 = vmul.f32 1.442695, %v2907_v38  ;;  %v2908_v25 = vsub.f32 %v8294_v58, %v2872_v0  ;;  %v2975_v55 = vsel %vm1137_vm0, %v8358_v20, 0.0 }
 0x8be   : > { %v8363_v3 = vpop.eup %6810  ;;  %2976 = vadd.xlane.f32.xlu0 %v2975_v55 }
 0x8bf   : > { %6816 = vpow2.f32 %v2927_v39  ;;  %v2929_v57 = vmul.f32 1.442695, %v2908_v25  ;;  %v2978_v48 = vsel %vm1137_vm0, %v8363_v3, 0.0 }
 0x8c0   : > { %2979 = vadd.xlane.f32.xlu1 %v2978_v48 }
 0x8c1   : > { %6818 = vpow2.f32 %v2929_v57 }
 0x8c5   : > { %v8367_v40 = vpop.eup %6812 }
 0x8c6   : > { %v2969_v22 = vsel %vm1137_vm0, %v8367_v40, 0.0  ;;  %v2899_v38 = vpop.xlane.xlu0 %2898 }
 0x8c7   : > { %v8371_v37 = vpop.eup %6814  ;;  %2970 = vadd.xlane.f32.xlu0 %v2969_v22  ;;  %v2917_v39 = vsub.f32 %v8302_v34, %v2899_v38 }
 0x8c8   : > { %v2972_v58 = vsel %vm1137_vm0, %v8371_v37, 0.0  ;;  %v2902_v31 = vpop.xlane.xlu1 %2901 }
 0x8c9   : > { %v8375_v14 = vpop.eup %6816  ;;  %2973 = vadd.xlane.f32.xlu1 %v2972_v58  ;;  %v2947_v57 = vmul.f32 1.442695, %v2917_v39  ;;  %v2918_v22 = vsub.f32 %v8308_v6, %v2902_v31 }
 0x8ca   : > { %v2963_v15 = vsel %vm1137_vm0, %v8375_v14, 0.0  ;;  %v2893_v25 = vpop.xlane.xlu0 %2892 }
 0x8cb   : > { %v8379_v46 = vpop.eup %6818  ;;  %2964 = vadd.xlane.f32.xlu0 %v2963_v15  ;;  %v2915_v48 = vsub.f32 %v8304_v60, %v2893_v25  ;;  %v2949_v58 = vmul.f32 1.442695, %v2918_v22 }
 0x8cc   : > { %v2966_v36 = vsel %vm1137_vm0, %v8379_v46, 0.0  ;;  %v2896_v41 = vpop.xlane.xlu1 %2895 }
 0x8cd   : > { %2967 = vadd.xlane.f32.xlu1 %v2966_v36  ;;  %v2916_v0 = vsub.f32 %v8310_v45, %v2896_v41 }
 0x8cf   : > { %v2945_v55 = vmul.f32 1.442695, %v2916_v0 }
 0x8d1   : > { %6820 = vpow2.f32 %v2945_v55 }
 0x8d2   : > { %6822 = vpow2.f32 %v2947_v57 }
 0x8db   : > { %v8391_v15 = vpop.eup %6820 }
 0x8dc   : > { %v2990_v45 = vsel %vm1137_vm0, %v8391_v15, 0.0 }
 0x8de   : > { %3334 = vrot.lane.b32.xlu1 %v7572_v47, %s7076_s25  ;;  %v2943_v47 = vmul.f32 1.442695, %v2915_v48 }
 0x8e0   : > { %6824 = vpow2.f32 %v2943_v47 }
 0x8e1   : > { %3332 = vrot.lane.b32.xlu0 %v7550_v12, %s7076_s25  ;;  %6826 = vpow2.f32 %v2949_v58  ;;  %v8393_v12 = vpop.eup %6822 }
 0x8e2   : > { %v2993_v34 = vsel %vm1137_vm0, %v8393_v12, 0.0 }
 0x8ea   : > { %v8399_v60 = vpop.eup %6824 }
 0x8eb   : > { %v2987_v6 = vsel %vm1137_vm0, %v8399_v60, 0.0  ;;  %v8403_v36 = vpop.eup %6826 }
 0x8ec   : > { %v2996_v31 = vsel %vm1137_vm0, %v8403_v36, 0.0 }
 0x900   : > { %2991 = vadd.xlane.f32.xlu0 %v2990_v45 }
 0x902   : > { %2994 = vadd.xlane.f32.xlu1 %v2993_v34 }
 0x906   : > { %2988 = vadd.xlane.f32.xlu1 %v2987_v6 }
 0x90a   : > { %2997 = vadd.xlane.f32.xlu1 %v2996_v31 }
 0x916   : > { %3405 = vrot.lane.b32.xlu0 %v7591_v7, %s7076_s25  ;;  %v8431_v7 = vpop.permute.xlu0 %3224 }
 0x91a   : > { %3401 = vrot.lane.b32.xlu0 %v7593_v9, %s7076_s25 }
 0x91b   : > { %3407 = vrot.lane.b32.xlu1 %v7615_v32, %s7076_s25  ;;  %v8433_v32 = vpop.permute.xlu1 %3338 }
 0x91e   : > { %3474 = vrot.lane.b32.xlu0 %v7634_v62, %s7076_s25 }
 0x91f   : > { %3403 = vrot.lane.b32.xlu1 %v7617_v42, %s7076_s25 }
 0x922   : > { %3470 = vrot.lane.b32.xlu0 %v7636_v28, %s7076_s25 }
 0x923   : > { %3476 = vrot.lane.b32.xlu1 %v7650_v13, %s7076_s25 }
 0x926   : > { %3543 = vrot.lane.b32.xlu0 %v7663_v43, %s7076_s25 }
 0x927   : > { %3472 = vrot.lane.b32.xlu1 %v7652_v26, %s7076_s25 }
 0x92a   : > { %3539 = vrot.lane.b32.xlu0 %v7665_v44, %s7076_s25 }
 0x92b   : > { %3545 = vrot.lane.b32.xlu1 %v7681_v27, %s7076_s25 }
 0x92f   : > { %3541 = vrot.lane.b32.xlu1 %v7684_v61, %s7076_s25 }
 0x937   : > { %v2959_v9 = vpop.xlane.xlu0 %2958 }
 0x93b   : > { %v2953_v42 = vpop.xlane.xlu0 %2952 }
 0x93f   : > { %v2962_v62 = vpop.xlane.xlu1 %2961 }
 0x940   : > { %6828 = vrcp.f32 %v2962_v62 }
 0x941   : > { %6830 = vrcp.f32 %v2953_v42 }
 0x942   : > { %6832 = vrcp.f32 %v2959_v9 }
 0x943   : > { %v2956_v28 = vpop.xlane.xlu1 %2955 }
 0x944   : > { %6834 = vrcp.f32 %v2956_v28 }
 0x947   : > { %v2983_v13 = vpop.xlane.xlu0 %2982 }
 0x949   : > { %v2986_v26 = vpop.xlane.xlu1 %2985 }
 0x94a   : > { %v6829_v43 = vpop.eup %6828  ;;  %6836 = vrcp.f32 %v2986_v26 }
 0x94b   : > { %v2977_v44 = vpop.xlane.xlu0 %2976  ;;  %v6831_v27 = vpop.eup %6830  ;;  %v3018_v0 = vmul.f32 %v6829_v43, %v8338_v30 }
 0x94c   : > { %6838 = vrcp.f32 %v2977_v44  ;;  %v6833_v61 = vpop.eup %6832  ;;  %v3015_v39 = vmul.f32 %v6831_v27, %v8332_v50 }
 0x94d   : > { %6840 = vrcp.f32 %v2983_v13  ;;  %v2980_v38 = vpop.xlane.xlu1 %2979  ;;  %v3017_v55 = vmul.f32 %v6833_v61, %v8328_v18 }
 0x94e   : > { %v6835_v41 = vpop.eup %6834  ;;  %6842 = vrcp.f32 %v2980_v38 }
 0x94f   : > { %v3016_v25 = vmul.f32 %v6835_v41, %v8343_v51  ;;  %v3032_v48 = vpack.c.bf16 %v3018_v0, %v3017_v55 }
 0x951   : > { %v3031_v57 = vpack.c.bf16 %v3016_v25, %v3015_v39 }
 0x953   : > { %6306 = vmatprep.mubr.msk.bf16.mxu0 %vm1137_vm0, %v3031_v57 }
 0x954   : > { %v2971_v22 = vpop.xlane.xlu0 %2970  ;;  %6307 = vmatmul.mubr.msk.bf16.vlgmr.msra.gmra.mrb[64].mxu0 %vm1137_vm0, %v3032_v48  ;;  %v6837_v47 = vpop.eup %6836 }
 0x955   : > { %6319 = vmatpush3.bf16.msra.mxu0 %v8195_v10  ;;  %v3026_v51 = vmul.f32 %v6837_v47, %v8353_v33 }
 0x956   : > { %v6839_v58 = vpop.eup %6838  ;;  %6320 = vmatprep.subr.bf16.mxu0 %v8203_v63  ;;  %v2974_v30 = vpop.xlane.xlu1 %2973 }
 0x957   : > { %v6841_v45 = vpop.eup %6840  ;;  %6844 = vrcp.f32 %v2974_v30  ;;  %v3023_v34 = vmul.f32 %v6839_v58, %v8358_v20 }
 0x958   : > { %v6843_v50 = vpop.eup %6842  ;;  %v2965_v18 = vpop.xlane.xlu0 %2964  ;;  %v3025_v31 = vmul.f32 %v6841_v45, %v8348_v56 }
 0x959   : > { %6846 = vrcp.f32 %v2965_v18  ;;  %6321 = vmatpush3.bf16.msra.mxu0 %v8203_v63  ;;  %v3024_v6 = vmul.f32 %v6843_v50, %v8363_v3  ;;  %v3347_v63 = vsel %vm1137_vm0, %v8322_v8, 0 }
 0x95a   : > { %6848 = vrcp.f32 %v2971_v22  ;;  %6454 = vmatprep.subr.msk.bf16.mxu0 %vm1137_vm0, %v8322_v8  ;;  %v2968_v10 = vpop.xlane.xlu1 %2967  ;;  %v3036_v42 = vpack.c.bf16 %v3026_v51, %v3025_v31  ;;  %v3350_v8 = vsel %vm1137_vm0, %v8433_v32, 0 }
 0x95b   : > { %6850 = vrcp.f32 %v2968_v10  ;;  %v3035_v9 = vpack.c.bf16 %v3024_v6, %v3023_v34 }
 0x95c   : > { %v3333_v33 = vpop.permute.xlu0 %3332 }
 0x95d   : > { %6322 = vmatprep.mubr.msk.bf16.mxu0 %vm1137_vm0, %v3035_v9 }
 0x95e   : > { %6323 = vmatmul.mubr.msk.bf16.vlgmr.msra.gmra.mrb[68].mxu0 %vm1137_vm0, %v3036_v42 }
 0x95f   : > { %6338 = vmatprep.mubr.msk.bf16.mxu0 %vm1137_vm0, %v3333_v33 }
 0x961   : > { %v6845_v20 = vpop.eup %6844 }
 0x962   : > { %6335 = vmatpush3.bf16.xpose.msra.mxu0 %v3347_v63  ;;  %v3022_v28 = vmul.f32 %v6845_v20, %v8371_v37  ;;  %v3335_v37 = vpop.permute.xlu1 %3334 }
 0x963   : > { %v6847_v56 = vpop.eup %6846  ;;  %6455 = vmatprep.subr.msk.bf16.mxu0 %vm1137_vm0, %v8433_v32 }
 0x964   : > { %v6849_v3 = vpop.eup %6848  ;;  %v3019_v13 = vmul.f32 %v6847_v56, %v8375_v14 }
 0x965   : > { %v6851_v62 = vpop.eup %6850  ;;  %v3021_v43 = vmul.f32 %v6849_v3, %v8367_v40 }
 0x966   : > { %v3020_v26 = vmul.f32 %v6851_v62, %v8379_v46 }
 0x967   : > { %v3034_v27 = vpack.c.bf16 %v3022_v28, %v3021_v43 }
 0x968   : > { %v3033_v44 = vpack.c.bf16 %v3020_v26, %v3019_v13 }
 0x96a   : > { %6314 = vmatprep.mubr.msk.bf16.mxu1 %vm1137_vm0, %v3033_v44  ;;  %6337 = vmatpush3.bf16.xpose.msra.mxu0 %v3350_v8 }
 0x96b   : > { %6315 = vmatmul.mubr.msk.bf16.vlgmr.msra.gmra.mrb[64].mxu1 %vm1137_vm0, %v3034_v27 }
 0x96c   : > { %6327 = vmatpush3.bf16.msra.mxu1 %v8206_v17 }
 0x96d   : > { %6328 = vmatprep.subr.bf16.mxu1 %v8431_v7 }
 0x970   : > { %6329 = vmatpush3.bf16.msra.mxu1 %v8431_v7 }
 0x971   : > { %6339 = vmatmul.mubr.msk.bf16.vlgmr.msra.gmra.mrb[72].mxu0 %vm1137_vm0, %v3335_v37 }
 0x98d   : > { %v2992_v40 = vpop.xlane.xlu0 %2991 }
 0x98e   : > { %6852 = vrcp.f32 %v2992_v40 }
 0x98f   : > { %v2995_v14 = vpop.xlane.xlu1 %2994 }
 0x991   : > { %v3406_v46 = vpop.permute.xlu0 %3405 }
 0x992   : > { %6456 = vmatprep.subr.msk.bf16.mxu1 %vm1137_vm0, %v3406_v46 }
 0x993   : > { %v2989_v32 = vpop.xlane.xlu1 %2988 }
 0x994   : > { %6854 = vrcp.f32 %v2989_v32 }
 0x995   : > { %v3402_v61 = vpop.permute.xlu0 %3401  ;;  %6856 = vrcp.f32 %v2995_v14 }
 0x997   : > { %v2998_v38 = vpop.xlane.xlu1 %2997 }
 0x998   : > { %6858 = vrcp.f32 %v2998_v38  ;;  %v6853_v0 = vpop.eup %6852 }
 0x999   : > { %v3475_v17 = vpop.permute.xlu0 %3474  ;;  %v3028_v48 = vmul.f32 %v6853_v0, %v8391_v15  ;;  %v3416_v15 = vsel %vm1137_vm0, %v3406_v46, 0 }
 0x99a   : > { %6458 = vmatprep.subr.msk.bf16.mxu0 %vm1137_vm0, %v3475_v17  ;;  %v3485_v41 = vsel %vm1137_vm0, %v3475_v17, 0 }
 0x99b   : > { %6351 = vmatpush3.bf16.xpose.msra.mxu0 %v3485_v41  ;;  %v3408_v7 = vpop.permute.xlu1 %3407 }
 0x99d   : > { %v3471_v39 = vpop.permute.xlu0 %3470 }
 0x99e   : > { %v6855_v25 = vpop.eup %6854  ;;  %6354 = vmatprep.mubr.msk.bf16.mxu0 %vm1137_vm0, %v3471_v39 }
 0x99f   : > { %v3404_v55 = vpop.permute.xlu1 %3403  ;;  %v3027_v57 = vmul.f32 %v6855_v25, %v8399_v60  ;;  %v6857_v22 = vpop.eup %6856  ;;  %v3419_v60 = vsel %vm1137_vm0, %v3408_v7, 0 }
 0x9a0   : > { %v3029_v30 = vmul.f32 %v6857_v22, %v8393_v12 }
 0x9a1   : > { %v3037_v47 = vpack.c.bf16 %v3028_v48, %v3027_v57 }
 0x9a2   : > { %v6859_v58 = vpop.eup %6858 }
 0x9a3   : > { %v3030_v45 = vmul.f32 %v6859_v58, %v8403_v36  ;;  %6330 = vmatprep.mubr.msk.bf16.mxu1 %vm1137_vm0, %v3037_v47  ;;  %v3477_v50 = vpop.permute.xlu1 %3476  ;;  %v3544_v36 = vpop.permute.xlu0 %3543 }
 0x9a4   : > { %6459 = vmatprep.subr.msk.bf16.mxu0 %vm1137_vm0, %v3477_v50  ;;  %v3488_v51 = vsel %vm1137_vm0, %v3477_v50, 0  ;;  %v3554_v6 = vsel %vm1137_vm0, %v3544_v36, 0 }
 0x9a5   : > { %6353 = vmatpush3.bf16.xpose.msra.mxu0 %v3488_v51  ;;  %v3038_v18 = vpack.c.bf16 %v3030_v45, %v3029_v30 }
 0x9a7   : > { %6331 = vmatmul.mubr.msk.bf16.vlgmr.msra.gmra.mrb[68].mxu1 %vm1137_vm0, %v3038_v18  ;;  %v3473_v12 = vpop.permute.xlu1 %3472  ;;  %v3540_v34 = vpop.permute.xlu0 %3539 }
 0x9a8   : > { %6343 = vmatpush3.bf16.xpose.msra.mxu1 %v3416_v15  ;;  %6346 = vmatprep.mubr.msk.bf16.mxu1 %vm1137_vm0, %v3402_v61 }
 0x9a9   : > { %6457 = vmatprep.subr.msk.bf16.mxu1 %vm1137_vm0, %v3408_v7 }
 0x9ab   : > { %v3546_v31 = vpop.permute.xlu1 %3545 }
 0x9ac   : > { %6355 = vmatmul.mubr.msk.bf16.vlgmr.msra.gmra.mrb[76].mxu0 %vm1137_vm0, %v3473_v12  ;;  %v3557_v10 = vsel %vm1137_vm0, %v3546_v31, 0 }
 0x9af   : > { %v3542_v9 = vpop.permute.xlu1 %3541 }
 0x9b0   : > { %6345 = vmatpush3.bf16.xpose.msra.mxu1 %v3419_v60 }
 0x9b1   : > { %6460 = vmatprep.subr.msk.bf16.mxu1 %vm1137_vm0, %v3544_v36 }
 0x9b7   : > { %6347 = vmatmul.mubr.msk.bf16.vlgmr.msra.gmra.mrb[72].mxu1 %vm1137_vm0, %v3404_v55 }
 0x9b8   : > { %6359 = vmatpush3.bf16.xpose.msra.mxu1 %v3554_v6  ;;  %6362 = vmatprep.mubr.msk.bf16.mxu1 %vm1137_vm0, %v3540_v34 }
 0x9b9   : > { %6461 = vmatprep.subr.msk.bf16.mxu1 %vm1137_vm0, %v3546_v31 }
 0x9c0   : > { %6361 = vmatpush3.bf16.xpose.msra.mxu1 %v3557_v10 }
 0x9c7   : > { %6363 = vmatmul.mubr.msk.bf16.vlgmr.msra.gmra.mrb[76].mxu1 %vm1137_vm0, %v3542_v9 }
 0xa27   : > { %v8493_v42 = vpop.f32.mrb[64].mxu0 }
 0xa28   : > { %v8495_v33 = vpop.f32.mrb[65].mxu0 }
 0xa29   : > { %v8497_v63 = vpop.f32.mrb[66].mxu0 }
 0xa2a   : > { %v3284_v20 = vpack.c.bf16 %v8497_v63, %v8493_v42  ;;  %v8501_v56 = vpop.f32.mrb[67].mxu0 }
 0xa2b   : > { %v3283_v3 = vpack.c.bf16 %v8501_v56, %v8495_v33 }
 0xa31   : > { %v8505_v62 = vpop.f32.mrb[68].mxu0 }
 0xa32   : > { %v8507_v28 = vpop.f32.mrb[69].mxu0 }
 0xa33   : > { %v8509_v13 = vpop.f32.mrb[70].mxu0 }
 0xa34   : > { %v3288_v26 = vpack.c.bf16 %v8509_v13, %v8505_v62  ;;  %v8513_v43 = vpop.f32.mrb[71].mxu0  ;;  %v9531_v13 = vld [vmem:[#allocation19_spill] sm:$0xff] }
 0xa3e   : > { %v8517_v8 = vpop.f32.mrb[64].mxu1 }
 0xa3f   : > { %v8519_v27 = vpop.f32.mrb[65].mxu1 }
 0xa40   : > { %v8521_v37 = vpop.f32.mrb[66].mxu1 }
 0xa41   : > { %v3286_v40 = vpack.c.bf16 %v8521_v37, %v8517_v8  ;;  %v8525_v14 = vpop.f32.mrb[67].mxu1  ;;  %v9527_v8 = vld [vmem:[#allocation16_spill] sm:$0xff]  ;;  %v9528_v37 = vld [vmem:[#allocation15_spill] sm:$0xff] }
 0xa42   : > { %v3285_v46 = vpack.c.bf16 %v8525_v14, %v8519_v27  ;;  %v9529_v27 = vpack.c.bf16 %v9527_v8, %v9528_v37 }
 0xa44   : > { %v8529_v32 = vpop.f32.mrb[72].mxu0 }
 0xa45   : > { %v8531_v61 = vpop.f32.mrb[73].mxu0  ;;  %v3614_v38 = vsel %vm1137_vm0, %v8529_v32, -inf }
 0xa46   : > { %3615 = vmax.xlane.f32.xlu0 %v3614_v38  ;;  %v8535_v17 = vpop.f32.mrb[74].mxu0  ;;  %v3608_v0 = vsel %vm1137_vm0, %v8531_v61, -inf }
 0xa47   : > { %v8537_v41 = vpop.f32.mrb[75].mxu0  ;;  %v3617_v39 = vsel %vm1137_vm0, %v8535_v17, -inf }
 0xa48   : > { %v3611_v7 = vsel %vm1137_vm0, %v8537_v41, -inf }
 0xa49   : > { %3612 = vmax.xlane.f32.xlu1 %v3611_v7 }
 0xa4a   : > { %3609 = vmax.xlane.f32.xlu0 %v3608_v0 }
 0xa4e   : > { %3618 = vmax.xlane.f32.xlu0 %v3617_v39 }
 0xa7a   : > { %v8545_v25 = vpop.f32.mrb[68].mxu1 }
 0xa7b   : > { %v8547_v55 = vpop.f32.mrb[69].mxu1 }
 0xa7c   : > { %v8549_v57 = vpop.f32.mrb[70].mxu1 }
 0xa7d   : > { %v8553_v22 = vpop.f32.mrb[71].mxu1 }
 0xa7f   : > { %v8557_v58 = vpop.f32.mrb[76].mxu0 }
 0xa80   : > { %v8559_v30 = vpop.f32.mrb[77].mxu0  ;;  %v3638_v45 = vsel %vm1137_vm0, %v8557_v58, -inf }
 0xa81   : > { %3639 = vmax.xlane.f32.xlu0 %v3638_v45  ;;  %v8563_v50 = vpop.f32.mrb[78].mxu0  ;;  %v3632_v15 = vsel %vm1137_vm0, %v8559_v30, -inf }
 0xa82   : > { %v8565_v51 = vpop.f32.mrb[79].mxu0  ;;  %v3641_v18 = vsel %vm1137_vm0, %v8563_v50, -inf }
 0xa83   : > { %3642 = vmax.xlane.f32.xlu1 %v3641_v18  ;;  %v3635_v12 = vsel %vm1137_vm0, %v8565_v51, -inf }
 0xa85   : > { %3633 = vmax.xlane.f32.xlu0 %v3632_v15 }
 0xa87   : > { %3636 = vmax.xlane.f32.xlu1 %v3635_v12 }
 0xa8a   : > { %v8573_v60 = vpop.f32.mrb[72].mxu1 }
 0xa8b   : > { %v8575_v36 = vpop.f32.mrb[73].mxu1  ;;  %v3626_v34 = vsel %vm1137_vm0, %v8573_v60, -inf }
 0xa8c   : > { %v8579_v6 = vpop.f32.mrb[74].mxu1  ;;  %3627 = vmax.xlane.f32.xlu0 %v3626_v34  ;;  %v3620_v9 = vsel %vm1137_vm0, %v8575_v36, -inf }
 0xa8d   : > { %v8581_v31 = vpop.f32.mrb[75].mxu1  ;;  %v3629_v10 = vsel %vm1137_vm0, %v8579_v6, -inf }
 0xa8e   : > { %3630 = vmax.xlane.f32.xlu1 %v3629_v10  ;;  %v3623_v38 = vsel %vm1137_vm0, %v8581_v31, -inf }
 0xa90   : > { %3621 = vmax.xlane.f32.xlu0 %v3620_v9 }
 0xa92   : > { %3624 = vmax.xlane.f32.xlu1 %v3623_v38 }
 0xa9a   : > { %v8589_v7 = vpop.f32.mrb[76].mxu1 }
 0xa9b   : > { %v8591_v0 = vpop.f32.mrb[77].mxu1  ;;  %v3650_v18 = vsel %vm1137_vm0, %v8589_v7, -inf }
 0xa9c   : > { %v8593_v39 = vpop.f32.mrb[78].mxu1  ;;  %v3644_v12 = vsel %vm1137_vm0, %v8591_v0, -inf }
 0xa9d   : > { %v8595_v45 = vpop.f32.mrb[79].mxu1  ;;  %v3653_v15 = vsel %vm1137_vm0, %v8593_v39, -inf }
 0xa9e   : > { %v3647_v34 = vsel %vm1137_vm0, %v8595_v45, -inf }
 0xaa3   : > { %3794 = vrot.lane.b32.xlu1 %v7560_v49, %s7076_s25 }
 0xaa6   : > { %3792 = vrot.lane.b32.xlu0 %v7565_v35, %s7076_s25 }
 0xac5   : > { %3651 = vmax.xlane.f32.xlu0 %v3650_v18 }
 0xac7   : > { %3654 = vmax.xlane.f32.xlu1 %v3653_v15 }
 0xac9   : > { %3645 = vmax.xlane.f32.xlu0 %v3644_v12 }
 0xacb   : > { %3648 = vmax.xlane.f32.xlu1 %v3647_v34 }
 0xad3   : > { %v3616_v49 = vpop.xlane.xlu0 %3615 }
 0xad4   : > { %v3658_v9 = vsub.f32 %v8529_v32, %v3616_v49 }
 0xad6   : > { %v3613_v18 = vpop.xlane.xlu1 %3612  ;;  %v3676_v15 = vmul.f32 1.442695, %v3658_v9 }
 0xad7   : > { %v3610_v35 = vpop.xlane.xlu0 %3609  ;;  %v3657_v47 = vsub.f32 %v8537_v41, %v3613_v18 }
 0xad8   : > { %v3656_v12 = vsub.f32 %v8531_v61, %v3610_v35  ;;  %6860 = vpow2.f32 %v3676_v15 }
 0xad9   : > { %v3674_v44 = vmul.f32 1.442695, %v3657_v47 }
 0xada   : > { %v3672_v48 = vmul.f32 1.442695, %v3656_v12 }
 0xadb   : > { %v3619_v10 = vpop.xlane.xlu0 %3618 }
 0xadc   : > { %3855 = vrot.lane.b32.xlu1 %v7582_v54, %s7076_s25  ;;  %v3659_v38 = vsub.f32 %v8535_v17, %v3619_v10 }
 0xade   : > { %v3678_v34 = vmul.f32 1.442695, %v3659_v38 }
 0xadf   : > { %3853 = vrot.lane.b32.xlu0 %v7585_v59, %s7076_s25 }
 0xae0   : > { %6862 = vpow2.f32 %v3678_v34 }
 0xae1   : > { %6864 = vpow2.f32 %v3672_v48 }
 0xae2   : > { %6866 = vpow2.f32 %v3674_v44  ;;  %v8617_v54 = vpop.eup %6860 }
 0xae3   : > { %v3710_v32 = vsel %vm1137_vm0, %v8617_v54, 0.0 }
 0xaea   : > { %v8619_v59 = vpop.eup %6862 }
 0xaeb   : > { %v8623_v17 = vpop.eup %6864  ;;  %v3713_v61 = vsel %vm1137_vm0, %v8619_v59, 0.0 }
 0xaec   : > { %v8627_v41 = vpop.eup %6866  ;;  %v3704_v48 = vsel %vm1137_vm0, %v8623_v17, 0.0 }
 0xaed   : > { %v3707_v44 = vsel %vm1137_vm0, %v8627_v41, 0.0 }
 0xafe   : > { %3711 = vadd.xlane.f32.xlu0 %v3710_v32 }
 0xb00   : > { %3714 = vadd.xlane.f32.xlu1 %v3713_v61 }
 0xb02   : > { %3705 = vadd.xlane.f32.xlu0 %v3704_v48 }
 0xb04   : > { %3708 = vadd.xlane.f32.xlu1 %v3707_v44 }
 0xb0e   : > { %v3640_v47 = vpop.xlane.xlu0 %3639 }
 0xb0f   : > { %v3666_v49 = vsub.f32 %v8557_v58, %v3640_v47 }
 0xb10   : > { %v3643_v35 = vpop.xlane.xlu1 %3642 }
 0xb11   : > { %v3692_v10 = vmul.f32 1.442695, %v3666_v49  ;;  %v3667_v9 = vsub.f32 %v8563_v50, %v3643_v35 }
 0xb12   : > { %v3634_v38 = vpop.xlane.xlu0 %3633 }
 0xb13   : > { %6868 = vpow2.f32 %v3692_v10  ;;  %v3664_v18 = vsub.f32 %v8559_v30, %v3634_v38  ;;  %v3694_v12 = vmul.f32 1.442695, %v3667_v9 }
 0xb14   : > { %v3637_v15 = vpop.xlane.xlu1 %3636 }
 0xb15   : > { %v3688_v34 = vmul.f32 1.442695, %v3664_v18  ;;  %v3665_v32 = vsub.f32 %v8565_v51, %v3637_v15 }
 0xb17   : > { %6870 = vpow2.f32 %v3688_v34  ;;  %v3690_v44 = vmul.f32 1.442695, %v3665_v32 }
 0xb18   : > { %6872 = vpow2.f32 %v3694_v12 }
 0xb19   : > { %v3628_v61 = vpop.xlane.xlu0 %3627 }
 0xb1a   : > { %v3662_v48 = vsub.f32 %v8573_v60, %v3628_v61 }
 0xb1b   : > { %v3631_v58 = vpop.xlane.xlu1 %3630 }
 0xb1c   : > { %v3684_v47 = vmul.f32 1.442695, %v3662_v48  ;;  %v3663_v49 = vsub.f32 %v8579_v6, %v3631_v58 }
 0xb1d   : > { %v8639_v50 = vpop.eup %6868  ;;  %v3622_v35 = vpop.xlane.xlu0 %3621 }
 0xb1e   : > { %6874 = vpow2.f32 %v3684_v47  ;;  %v3686_v30 = vmul.f32 1.442695, %v3663_v49  ;;  %v3660_v10 = vsub.f32 %v8575_v36, %v3622_v35  ;;  %v3734_v9 = vsel %vm1137_vm0, %v8639_v50, 0.0 }
 0xb1f   : > { %6876 = vpow2.f32 %v3690_v44  ;;  %v3625_v51 = vpop.xlane.xlu1 %3624  ;;  %3735 = vadd.xlane.f32.xlu0 %v3734_v9 }
 0xb20   : > { %6878 = vpow2.f32 %v3686_v30  ;;  %v3680_v60 = vmul.f32 1.442695, %v3660_v10  ;;  %v3661_v38 = vsub.f32 %v8581_v31, %v3625_v51 }
 0xb21   : > { %v8645_v18 = vpop.eup %6870  ;;  %v3793_v6 = vpop.permute.xlu0 %3792 }
 0xb22   : > { %v3682_v15 = vmul.f32 1.442695, %v3661_v38  ;;  %6366 = vmatprep.subr.bf16.mxu0 %v3793_v6  ;;  %v3728_v12 = vsel %vm1137_vm0, %v8645_v18, 0.0  ;;  %v8649_v34 = vpop.eup %6872  ;;  %6880 = vpow2.f32 %v3680_v60 }
 0xb23   : > { %6367 = vmatpush3.bf16.msra.mxu0 %v3793_v6  ;;  %v3795_v36 = vpop.permute.xlu1 %3794  ;;  %3729 = vadd.xlane.f32.xlu1 %v3728_v12  ;;  %v3737_v32 = vsel %vm1137_vm0, %v8649_v34, 0.0 }
 0xb24   : > { %6882 = vpow2.f32 %v3682_v15  ;;  %6368 = vmatprep.subr.bf16.mxu0 %v3795_v36 }
 0xb27   : > { %6369 = vmatpush3.bf16.msra.mxu0 %v3795_v36  ;;  %3738 = vadd.xlane.f32.xlu1 %v3737_v32 }
 0xb28   : > { %v8653_v31 = vpop.eup %6874 }
 0xb29   : > { %v8655_v61 = vpop.eup %6876  ;;  %v3722_v48 = vsel %vm1137_vm0, %v8653_v31, 0.0 }
 0xb2a   : > { %v8659_v44 = vpop.eup %6878  ;;  %3723 = vadd.xlane.f32.xlu0 %v3722_v48  ;;  %v3731_v49 = vsel %vm1137_vm0, %v8655_v61, 0.0 }
 0xb2b   : > { %v3725_v58 = vsel %vm1137_vm0, %v8659_v44, 0.0 }
 0xb2c   : > { %3726 = vadd.xlane.f32.xlu1 %v3725_v58  ;;  %v8663_v47 = vpop.eup %6880 }
 0xb2d   : > { %v3716_v10 = vsel %vm1137_vm0, %v8663_v47, 0.0 }
 0xb2e   : > { %v8667_v35 = vpop.eup %6882  ;;  %3732 = vadd.xlane.f32.xlu0 %v3731_v49 }
 0xb2f   : > { %v3719_v30 = vsel %vm1137_vm0, %v8667_v35, 0.0 }
 0xb30   : > { %3720 = vadd.xlane.f32.xlu1 %v3719_v30 }
 0xb32   : > { %3717 = vadd.xlane.f32.xlu0 %v3716_v10 }
 0xb52   : > { %v3652_v9 = vpop.xlane.xlu0 %3651 }
 0xb53   : > { %v3670_v51 = vsub.f32 %v8589_v7, %v3652_v9 }
 0xb54   : > { %v3655_v60 = vpop.xlane.xlu1 %3654 }
 0xb55   : > { %v3700_v38 = vmul.f32 1.442695, %v3670_v51  ;;  %v3671_v6 = vsub.f32 %v8593_v39, %v3655_v60 }
 0xb56   : > { %v3646_v15 = vpop.xlane.xlu0 %3645 }
 0xb57   : > { %6884 = vpow2.f32 %v3700_v38  ;;  %v3668_v12 = vsub.f32 %v8591_v0, %v3646_v15  ;;  %v3702_v36 = vmul.f32 1.442695, %v3671_v6  ;;  %v9519_v6 = vpack.c.bf16 %v8217_v16, %v8211_v19 }
 0xb58   : > { %v3649_v32 = vpop.xlane.xlu1 %3648 }
 0xb59   : > { %v3696_v48 = vmul.f32 1.442695, %v3668_v12  ;;  %v3669_v58 = vsub.f32 %v8595_v45, %v3649_v32 }
 0xb5a   : > { %v3854_v49 = vpop.permute.xlu0 %3853 }
 0xb5b   : > { %6886 = vpow2.f32 %v3696_v48  ;;  %v3698_v30 = vmul.f32 1.442695, %v3669_v58  ;;  %6374 = vmatprep.subr.bf16.mxu1 %v3854_v49 }
 0xb5c   : > { %6888 = vpow2.f32 %v3702_v36  ;;  %6375 = vmatpush3.bf16.msra.mxu1 %v3854_v49  ;;  %v3856_v7 = vpop.permute.xlu1 %3855 }
 0xb5d   : > { %6890 = vpow2.f32 %v3698_v30  ;;  %6376 = vmatprep.subr.bf16.mxu1 %v3856_v7 }
 0xb60   : > { %6377 = vmatpush3.bf16.msra.mxu1 %v3856_v7 }
 0xb61   : > { %v8677_v39 = vpop.eup %6884 }
 0xb62   : > { %v3746_v0 = vsel %vm1137_vm0, %v8677_v39, 0.0 }
 0xb63   : > { %3747 = vadd.xlane.f32.xlu0 %v3746_v0 }
 0xb65   : > { %v8681_v10 = vpop.eup %6886 }
 0xb66   : > { %v8683_v9 = vpop.eup %6888  ;;  %v3740_v45 = vsel %vm1137_vm0, %v8681_v10, 0.0 }
 0xb67   : > { %v8687_v51 = vpop.eup %6890  ;;  %3741 = vadd.xlane.f32.xlu1 %v3740_v45  ;;  %v3749_v38 = vsel %vm1137_vm0, %v8683_v9, 0.0 }
 0xb68   : > { %v3743_v60 = vsel %vm1137_vm0, %v8687_v51, 0.0 }
 0xb69   : > { %3744 = vadd.xlane.f32.xlu0 %v3743_v60 }
 0xb6b   : > { %3750 = vadd.xlane.f32.xlu1 %v3749_v38 }
 0xb7c   : > { %3916 = vrot.lane.b32.xlu1 %v7604_v23, %s7076_s25  ;;  %v9520_v23 = vpack.c.bf16 %v8213_v5, %v8209_v52 }
 0xb7f   : > { %3914 = vrot.lane.b32.xlu0 %v7609_v29, %s7076_s25 }
 0xb80   : > { %3975 = vrot.lane.b32.xlu1 %v7629_v53, %s7076_s25 }
 0xb83   : > { %2546 = vrot.lane.b32.xlu0 %v9519_v6, %s7076_s25 }
 0xb84   : > { %3977 = vrot.lane.b32.xlu1 %v7626_v4, %s7076_s25 }
 0xb87   : > { %3299 = vrot.lane.b32.xlu0 %v3283_v3, %s9500_s23 }
 0xb88   : > { %2548 = vrot.lane.b32.xlu1 %v9520_v23, %s7076_s25 }
 0xb8b   : > { %v3712_v29 = vpop.xlane.xlu0 %3711 }
 0xb8c   : > { %3301 = vrot.lane.b32.xlu1 %v3284_v20, %s9500_s23  ;;  %s5821_s23 = sshll.u32 %s7171_s29, 11  ;;  %s7002_s29 = scalar_lea.vmem %s9419_s15, 2048 }
 0xb8d   : > { %v3715_v53 = vpop.xlane.xlu1 %3714  ;;  %p7003_p6 = scmp.ne.s32.totalorder %s9419_s15, %s7002_s29 }
 0xb8e   : > { %6892 = vrcp.f32 %v3715_v53 }
 0xb8f   : > { %v3706_v19 = vpop.xlane.xlu0 %3705  ;;  %p7004_p12 = pnand %p7003_p6, %p9544_p11 }
 0xb90   : > { %6894 = vrcp.f32 %v3706_v19 }
 0xb91   : > { %6896 = vrcp.f32 %v3712_v29  ;;  %v3709_v4 = vpop.xlane.xlu1 %3708  ;;  %p7005_p13 = pneg %p7004_p12 }
 0xb92   : > { %6898 = vrcp.f32 %v3709_v4 }
 0xb98   : > { %v6893_v16 = vpop.eup %6892 }
 0xb99   : > { %v3771_v52 = vmul.f32 %v6893_v16, %v8619_v59 }
 0xb9a   : > { %v6895_v33 = vpop.eup %6894 }
 0xb9b   : > { %v6897_v56 = vpop.eup %6896  ;;  %v3768_v5 = vmul.f32 %v6895_v33, %v8623_v17 }
 0xb9c   : > { %v6899_v3 = vpop.eup %6898  ;;  %v3770_v42 = vmul.f32 %v6897_v56, %v8617_v54 }
 0xb9d   : > { %v3769_v15 = vmul.f32 %v6899_v3, %v8627_v41 }
 0xb9e   : > { %v3785_v20 = vpack.c.bf16 %v3771_v52, %v3770_v42 }
 0xb9f   : > { %v3784_v63 = vpack.c.bf16 %v3769_v15, %v3768_v5 }
 0xba1   : > { %6370 = vmatprep.mubr.msk.bf16.mxu0 %vm1137_vm0, %v3784_v63 }
 0xba2   : > { %6371 = vmatmul.mubr.msk.bf16.vlgmr.msra.gmra.mrb[80].mxu0 %vm1137_vm0, %v3785_v20 }
 0xbac   : > { %v3736_v36 = vpop.xlane.xlu0 %3735 }
 0xbb0   : > { %v3730_v12 = vpop.xlane.xlu1 %3729 }
 0xbb1   : > { %6900 = vrcp.f32 %v3730_v12 }
 0xbb4   : > { %v3739_v32 = vpop.xlane.xlu1 %3738 }
 0xbb7   : > { %v3724_v48 = vpop.xlane.xlu0 %3723 }
 0xbb9   : > { %v3727_v58 = vpop.xlane.xlu1 %3726 }
 0xbbb   : > { %v3733_v49 = vpop.xlane.xlu0 %3732  ;;  %v6901_v54 = vpop.eup %6900 }
 0xbbc   : > { %6902 = vrcp.f32 %v3733_v49  ;;  %v3776_v7 = vmul.f32 %v6901_v54, %v8645_v18 }
 0xbbd   : > { %6904 = vrcp.f32 %v3727_v58  ;;  %v3721_v59 = vpop.xlane.xlu1 %3720 }
 0xbbe   : > { %6906 = vrcp.f32 %v3721_v59 }
 0xbbf   : > { %6908 = vrcp.f32 %v3724_v48  ;;  %v3718_v17 = vpop.xlane.xlu0 %3717 }
 0xbc0   : > { %6910 = vrcp.f32 %v3718_v17 }
 0xbc1   : > { %6912 = vrcp.f32 %v3739_v32 }
 0xbc2   : > { %6914 = vrcp.f32 %v3736_v36 }
 0xbc6   : > { %v6903_v41 = vpop.eup %6902 }
 0xbc7   : > { %v6905_v30 = vpop.eup %6904  ;;  %v3777_v0 = vmul.f32 %v6903_v41, %v8655_v61  ;;  %v6550_v41 = vld [vmem:[%s9471_s5 + $0x10] sm:$0xff]  }
 0xbc8   : > { %v6907_v45 = vpop.eup %6906  ;;  %v3775_v23 = vmul.f32 %v6905_v30, %v8659_v44  ;;  %v6551_v30 = vld [vmem:[%s9471_s5 + $0x18] sm:$0xff]  }
 0xbc9   : > { %v6909_v60 = vpop.eup %6908  ;;  %v3788_v38 = vpack.c.bf16 %v3777_v0, %v3776_v7  ;;  %v3773_v53 = vmul.f32 %v6907_v45, %v8667_v35  ;;  %v6552_v7 = vld [vmem:[%s9471_s5 + $0x20] sm:$0xff]   ;;  %v6553_v0 = vld [vmem:[%s9471_s5 + $0x28] sm:$0xff]   ;;  %v6554_v45 = vld [vmem:[%s9471_s5 + $0x30] sm:$0xff]  }
 0xbca   : > { %v6911_v6 = vpop.eup %6910  ;;  %v3774_v19 = vmul.f32 %v6909_v60, %v8653_v31  ;;  %v6555_v60 = vld [vmem:[%s9471_s5 + $0x38] sm:$0xff]  }
 0xbcb   : > { %6386 = vmatprep.mubr.msk.bf16.mxu0 %vm1137_vm0, %v3788_v38  ;;  %v3772_v29 = vmul.f32 %v6911_v6, %v8663_v47  ;;  %v6913_v47 = vpop.eup %6912 }
 0xbcc   : > { %v3787_v16 = vpack.c.bf16 %v3775_v23, %v3774_v19  ;;  %v6915_v31 = vpop.eup %6914  ;;  %v3779_v3 = vmul.f32 %v6913_v47, %v8649_v34 }
 0xbcd   : > { %v3786_v4 = vpack.c.bf16 %v3773_v53, %v3772_v29  ;;  %v3778_v15 = vmul.f32 %v6915_v31, %v8639_v50 }
 0xbcf   : > { %6378 = vmatprep.mubr.msk.bf16.mxu1 %vm1137_vm0, %v3786_v4  ;;  %v3789_v12 = vpack.c.bf16 %v3779_v3, %v3778_v15  ;;  %v9522_v4 = vpack.c.bf16 %v8243_v2, %v8233_v21  ;;  %v9534_v15 = vld [vmem:[#allocation20_spill] sm:$0xff] }
 0xbd0   : > { %6379 = vmatmul.mubr.msk.bf16.vlgmr.msra.gmra.mrb[80].mxu1 %vm1137_vm0, %v3787_v16  ;;  %v9523_v16 = vpack.c.bf16 %v8249_v11, %v8237_v1  ;;  %v9525_v1 = vld [vmem:[#allocation14_spill] sm:$0xff] }
 0xbd1   : > { %v9526_v11 = vpack.c.bf16 %v8225_v24, %v9525_v1 }
 0xbf0   : > { %v3748_v18 = vpop.xlane.xlu0 %3747 }
 0xbf4   : > { %v3742_v61 = vpop.xlane.xlu1 %3741 }
 0xbf5   : > { %6916 = vrcp.f32 %v3742_v61 }
 0xbf6   : > { %6918 = vrcp.f32 %v3748_v18  ;;  %v3745_v44 = vpop.xlane.xlu0 %3744 }
 0xbf7   : > { %6920 = vrcp.f32 %v3745_v44 }
 0xbf8   : > { %v3751_v33 = vpop.xlane.xlu1 %3750 }
 0xbf9   : > { %6922 = vrcp.f32 %v3751_v33 }
 0xbfa   : > { %v3915_v35 = vpop.permute.xlu0 %3914 }
 0xbfb   : > { %6382 = vmatprep.subr.bf16.mxu0 %v3915_v35 }
 0xbfc   : > { %6383 = vmatpush3.bf16.msra.mxu0 %v3915_v35  ;;  %v3917_v56 = vpop.permute.xlu1 %3916 }
 0xbfd   : > { %6384 = vmatprep.subr.bf16.mxu0 %v3917_v56 }
 0xbfe   : > { %v2547_v52 = vpop.permute.xlu0 %2546 }
 0xbff   : > { %v6917_v5 = vpop.eup %6916  ;;  %2571 = vst.msk [vmem:[#allocation2] sm:$0xff] %vm2570_vm1, %v2547_v52 }
 0xc00   : > { %v6919_v42 = vpop.eup %6918  ;;  %6385 = vmatpush3.bf16.msra.mxu0 %v3917_v56  ;;  %v3976_v63 = vpop.permute.xlu1 %3975  ;;  %v3780_v32 = vmul.f32 %v6917_v5, %v8681_v10  ;;  %v9521_v10 = vmov 0  }
 0xc01   : > { %v6921_v20 = vpop.eup %6920  ;;  %6390 = vmatprep.subr.bf16.mxu1 %v3976_v63  ;;  %v3782_v50 = vmul.f32 %v6919_v42, %v8677_v39  ;;  %v6548_v39 = vld [vmem:[%s9471_s5] sm:$0xff]   ;;  %v9535_v42 = vld [vmem:[#allocation18_spill] sm:$0xff] }
 0xc02   : > { %v3300_v36 = vpop.permute.xlu0 %3299  ;;  %6391 = vmatpush3.bf16.msra.mxu1 %v3976_v63  ;;  %v3781_v34 = vmul.f32 %v6921_v20, %v8687_v51  ;;  %6398 = vmatprep.subr.bf16.mxu0 %v6548_v39  ;;  %v9536_v63 = vpack.c.bf16 %v9534_v15, %v9535_v42  ;;  %v9537_v20 = vpack.c.bf16 %v8549_v57, %v8545_v25 }
 0xc03   : > { %v6923_v48 = vpop.eup %6922  ;;  %3324 = vst.msk [vmem:[#allocation2] sm:$0xff] %vm3323_vm2, %v3300_v36  ;;  %6387 = vmatmul.mubr.msk.bf16.vlgmr.msra.gmra.mrb[84].mxu0 %vm1137_vm0, %v3789_v12  ;;  %v9538_v12 = vpack.c.bf16 %v8553_v22, %v8547_v55 }
 0xc04   : > { %v3783_v58 = vmul.f32 %v6923_v48, %v8683_v9  ;;  %v3978_v49 = vpop.permute.xlu1 %3977  ;;  %v3790_v59 = vpack.c.bf16 %v3781_v34, %v3780_v32  ;;  %6399 = vmatpush3.bf16.msra.mxu0 %v6548_v39  ;;  %v6549_v9 = vld [vmem:[%s9471_s5 + $0x8] sm:$0xff]  }
 0xc05   : > { %6392 = vmatprep.subr.bf16.mxu1 %v3978_v49  ;;  %6400 = vmatprep.subr.bf16.mxu0 %v6549_v9 }
 0xc06   : > { %6393 = vmatpush3.bf16.msra.mxu1 %v3978_v49  ;;  %6394 = vmatprep.mubr.msk.bf16.mxu1 %vm1137_vm0, %v3790_v59  ;;  %v3791_v17 = vpack.c.bf16 %v3783_v58, %v3782_v50 }
 0xc08   : > { %v2549_v54 = vpop.permute.xlu1 %2548  ;;  %6401 = vmatpush3.bf16.msra.mxu0 %v6549_v9 }
 0xc09   : > { %2572 = vst.msk [vmem:[#allocation2 + $0x8] sm:$0xff] %vm2570_vm1, %v2549_v54  ;;  %6395 = vmatmul.mubr.msk.bf16.vlgmr.msra.gmra.mrb[84].mxu1 %vm1137_vm0, %v3791_v17  ;;  %6402 = vmatprep.subr.bf16.mxu0 %v6550_v41 }
 0xc0a   : > { %4769 = vmatprep.mubr.bf16.mxu1 %v9521_v10 }
 0xc0c   : > { %v3302_v51 = vpop.permute.xlu1 %3301  ;;  %6403 = vmatpush3.bf16.msra.mxu0 %v6550_v41 }
 0xc0d   : > { %3325 = vst.msk [vmem:[#allocation2 + $0x8] sm:$0xff] %vm3323_vm2, %v3302_v51  ;;  %6404 = vmatprep.subr.bf16.mxu0 %v6551_v30 }
 0xc10   : > { %6405 = vmatpush3.bf16.msra.mxu0 %v6551_v30 }
 0xc11   : > { %6406 = vmatprep.subr.bf16.mxu0 %v6552_v7 }
 0xc14   : > { %6407 = vmatpush3.bf16.msra.mxu0 %v6552_v7 }
 0xc15   : > { %6408 = vmatprep.subr.bf16.mxu0 %v6553_v0 }
 0xc18   : > { %6409 = vmatpush3.bf16.msra.mxu0 %v6553_v0 }
 0xc19   : > { %6410 = vmatprep.subr.bf16.mxu0 %v6554_v45 }
 0xc1c   : > { %6411 = vmatpush3.bf16.msra.mxu0 %v6554_v45 }
 0xc1d   : > { %6412 = vmatprep.subr.bf16.mxu0 %v6555_v60 }
 0xc20   : > { %6413 = vmatpush3.bf16.msra.mxu0 %v6555_v60 }
 0xc75   : > { %v6372_v38 = vpop.f32.mrb[80].mxu0 }
 0xc76   : > { %v3838_v6 = vpop.f32.mrb[81].mxu0 }
 0xc77   : > { %v6373_v23 = vpop.f32.mrb[82].mxu0 }
 0xc78   : > { %v4037_v29 = vpack.c.bf16 %v6373_v23, %v6372_v38  ;;  %v3841_v53 = vpop.f32.mrb[83].mxu0 }
 0xc79   : > { %v4036_v19 = vpack.c.bf16 %v3841_v53, %v3838_v6 }
 0xc7a   : > { %4054 = vrot.lane.b32.xlu1 %v4037_v29, %s7074_s24 }
 0xc7b   : > { %4052 = vrot.lane.b32.xlu0 %v4036_v19, %s7074_s24 }
 0xc7e   : > { %2552 = vrot.lane.b32.xlu1 %v9522_v4, %s7076_s25  ;;  %v8850_v4 = vld [vmem:[%s9472_s6] ss:$0 sm:$0xff] }
 0xc7f   : > { %2550 = vrot.lane.b32.xlu0 %v9523_v16, %s7076_s25 }
 0xc82   : > { %3305 = vrot.lane.b32.xlu1 %v3286_v40, %s9524_s27  ;;  %v9530_v40 = vpack.c.bf16 %v8513_v43, %v8507_v28 }
 0xc83   : > { %3303 = vrot.lane.b32.xlu0 %v3285_v46, %s9524_s27 }
 0xca3   : > { %v6380_v18 = vpop.f32.mrb[80].mxu1 }
 0xca4   : > { %v3899_v61 = vpop.f32.mrb[81].mxu1 }
 0xca5   : > { %v6381_v44 = vpop.f32.mrb[82].mxu1 }
 0xca6   : > { %v4039_v21 = vpack.c.bf16 %v6381_v44, %v6380_v18  ;;  %v3902_v2 = vpop.f32.mrb[83].mxu1  ;;  %v6956_v18 = vld [vmem:[%s7260_s18] sm:$0xff] }
 0xca7   : > { %v4038_v33 = vpack.c.bf16 %v3902_v2, %v3899_v61  ;;  %v6957_v2 = vld [vmem:[%s7260_s18 + $0x10] sm:$0xff] }
 0xca8   : > { %4058 = vrot.lane.b32.xlu1 %v4039_v21, %s7074_s24 }
 0xca9   : > { %4056 = vrot.lane.b32.xlu0 %v4038_v33, %s7074_s24 }
 0xcac   : > { %2556 = vrot.lane.b32.xlu1 %v9526_v11, %s7076_s25  ;;  %v6958_v11 = vld [vmem:[%s7260_s18 + $0x8] sm:$0xff] }
 0xcad   : > { %2554 = vrot.lane.b32.xlu0 %v9529_v27, %s7076_s25 }
 0xcb0   : > { %3309 = vrot.lane.b32.xlu1 %v3288_v26, %s9524_s27  ;;  %v9532_v26 = vld [vmem:[#allocation17_spill] sm:$0xff] }
 0xcb1   : > { %3307 = vrot.lane.b32.xlu0 %v9530_v40, %s9524_s27  ;;  %v9533_v5 = vpack.c.bf16 %v9531_v13, %v9532_v26  ;;  %v6959_v40 = vld [vmem:[%s7260_s18 + $0x18] sm:$0xff]  ;;  %v6962_v26 = vld [vmem:[%s7260_s18 + $0x28] sm:$0xff] }
 0xcd6   : > { %v6388_v14 = vpop.f32.mrb[84].mxu0 }
 0xcd7   : > { %v3960_v46 = vpop.f32.mrb[85].mxu0 }
 0xcd8   : > { %v6389_v47 = vpop.f32.mrb[86].mxu0 }
 0xcd9   : > { %v4041_v24 = vpack.c.bf16 %v6389_v47, %v6388_v14  ;;  %v3963_v35 = vpop.f32.mrb[87].mxu0 }
 0xcda   : > { %v4040_v31 = vpack.c.bf16 %v3963_v35, %v3960_v46  ;;  %v6960_v35 = vld [vmem:[%s7260_s18 + $0x20] sm:$0xff] }
 0xcdb   : > { %4062 = vrot.lane.b32.xlu1 %v4041_v24, %s7074_s24 }
 0xcdc   : > { %4060 = vrot.lane.b32.xlu0 %v4040_v31, %s7074_s24  ;;  %v6396_v56 = vpop.f32.mrb[84].mxu1 }
 0xcdd   : > { %v4021_v3 = vpop.f32.mrb[85].mxu1 }
 0xcde   : > { %v6397_v52 = vpop.f32.mrb[86].mxu1 }
 0xcdf   : > { %v4043_v62 = vpack.c.bf16 %v6397_v52, %v6396_v56  ;;  %2560 = vrot.lane.b32.xlu1 %v9533_v5, %s7076_s25  ;;  %v4024_v28 = vpop.f32.mrb[87].mxu1  ;;  %v6961_v52 = vld [vmem:[%s7260_s18 + $0x30] sm:$0xff] }
 0xce0   : > { %v4042_v43 = vpack.c.bf16 %v4024_v28, %v4021_v3  ;;  %2558 = vrot.lane.b32.xlu0 %v9536_v63, %s7076_s25  ;;  %v6963_v28 = vld [vmem:[%s7260_s18 + $0x38] sm:$0xff]  ;;  %s9417_s25 = scalar_lea.hbm %s9479_s13, %s5821_s23 }
 0xce3   : > { %3313 = vrot.lane.b32.xlu1 %v9537_v20, %s9524_s27 }
 0xce4   : > { %3311 = vrot.lane.b32.xlu0 %v9538_v12, %s9524_s27 }
 0xce7   : > { %4066 = vrot.lane.b32.xlu1 %v4043_v62, %s7074_s24 }
 0xce8   : > { %4064 = vrot.lane.b32.xlu0 %v4042_v43, %s7074_s24 }
 0xcec   : > { %v4055_v36 = vpop.permute.xlu1 %4054 }
 0xced   : > { %4078 = vst.msk [vmem:[#allocation2 + $0x8] sm:$0xff] %vm4076_vm3, %v4055_v36  ;;  %v4053_v32 = vpop.permute.xlu0 %4052  ;;  %v6964_v36 = vld [vmem:[%s7260_s18 + $0x40] sm:$0xff] }
 0xcee   : > { %4077 = vst.msk [vmem:[#allocation2] sm:$0xff] %vm4076_vm3, %v4053_v32 }
 0xcf0   : > { %v2553_v34 = vpop.permute.xlu1 %2552 }
 0xcf1   : > { %2574 = vst.msk [vmem:[#allocation2 + $0x18] sm:$0xff] %vm2570_vm1, %v2553_v34  ;;  %v2551_v25 = vpop.permute.xlu0 %2550 }
 0xcf2   : > { %2573 = vst.msk [vmem:[#allocation2 + $0x10] sm:$0xff] %vm2570_vm1, %v2551_v25 }
 0xcf4   : > { %v3306_v57 = vpop.permute.xlu1 %3305  ;;  %v4086_v48 = vld [vmem:[#allocation2 + $0x8] sm:$0xff] }
 0xcf5   : > { %3327 = vst.msk [vmem:[#allocation2 + $0x18] sm:$0xff] %vm3323_vm2, %v3306_v57  ;;  %v3304_v55 = vpop.permute.xlu0 %3303  ;;  %v4085_v22 = vld [vmem:[#allocation2] sm:$0xff]  ;;  %v6965_v57 = vld [vmem:[%s7260_s18 + $0x50] sm:$0xff] }
 0xcf6   : > { %3326 = vst.msk [vmem:[#allocation2 + $0x10] sm:$0xff] %vm3323_vm2, %v3304_v55  ;;  %6414 = vmatprep.mubr.bf16.mxu0 %v4085_v22 }
 0xcf7   : > { %6415 = vmatmul.mubr.bf16.vlgmr.msra.gmra.mrb[88].mxu0 %v4086_v48  ;;  %v6966_v48 = vld [vmem:[%s7260_s18 + $0x48] sm:$0xff] }
 0xd1a   : > { %v4059_v50 = vpop.permute.xlu1 %4058 }
 0xd1b   : > { %4080 = vst.msk [vmem:[#allocation2 + $0x18] sm:$0xff] %vm4076_vm3, %v4059_v50  ;;  %v4057_v58 = vpop.permute.xlu0 %4056 }
 0xd1c   : > { %4079 = vst.msk [vmem:[#allocation2 + $0x10] sm:$0xff] %vm4076_vm3, %v4057_v58  ;;  %v6967_v58 = vld [vmem:[%s7260_s18 + $0x58] sm:$0xff] }
 0xd1e   : > { %v2557_v49 = vpop.permute.xlu1 %2556 }
 0xd1f   : > { %2576 = vst.msk [vmem:[#allocation2 + $0x28] sm:$0xff] %vm2570_vm1, %v2557_v49  ;;  %v2555_v59 = vpop.permute.xlu0 %2554 }
 0xd20   : > { %2575 = vst.msk [vmem:[#allocation2 + $0x20] sm:$0xff] %vm2570_vm1, %v2555_v59 }
 0xd22   : > { %v3310_v17 = vpop.permute.xlu1 %3309  ;;  %v4088_v39 = vld [vmem:[#allocation2 + $0x18] sm:$0xff] }
 0xd23   : > { %3329 = vst.msk [vmem:[#allocation2 + $0x28] sm:$0xff] %vm3323_vm2, %v3310_v17  ;;  %v3308_v54 = vpop.permute.xlu0 %3307  ;;  %v4087_v51 = vld [vmem:[#allocation2 + $0x10] sm:$0xff] }
 0xd24   : > { %3328 = vst.msk [vmem:[#allocation2 + $0x20] sm:$0xff] %vm3323_vm2, %v3308_v54  ;;  %6418 = vmatprep.mubr.bf16.mxu0 %v4087_v51 }
 0xd25   : > { %6419 = vmatmul.mubr.bf16.gmra.mrb[92].mxu0 %v4088_v39 }
 0xd4d   : > { %v4063_v9 = vpop.permute.xlu1 %4062 }
 0xd4e   : > { %4082 = vst.msk [vmem:[#allocation2 + $0x28] sm:$0xff] %vm4076_vm3, %v4063_v9  ;;  %v4061_v41 = vpop.permute.xlu0 %4060  ;;  %v6968_v9 = vld [vmem:[%s7260_s18 + $0x60] sm:$0xff] }
 0xd4f   : > { %4081 = vst.msk [vmem:[#allocation2 + $0x20] sm:$0xff] %vm4076_vm3, %v4061_v41 }
 0xd51   : > { %v2561_v30 = vpop.permute.xlu1 %2560 }
 0xd52   : > { %2578 = vst.msk [vmem:[#allocation2 + $0x38] sm:$0xff] %vm2570_vm1, %v2561_v30  ;;  %v2559_v7 = vpop.permute.xlu0 %2558 }
 0xd53   : > { %2577 = vst.msk [vmem:[#allocation2 + $0x30] sm:$0xff] %vm2570_vm1, %v2559_v7 }
 0xd55   : > { %v3314_v0 = vpop.permute.xlu1 %3313  ;;  %v4090_v38 = vld [vmem:[#allocation2 + $0x28] sm:$0xff] }
 0xd56   : > { %3331 = vst.msk [vmem:[#allocation2 + $0x38] sm:$0xff] %vm3323_vm2, %v3314_v0  ;;  %v3312_v45 = vpop.permute.xlu0 %3311  ;;  %v4089_v60 = vld [vmem:[#allocation2 + $0x20] sm:$0xff]  ;;  %v6969_v0 = vld [vmem:[%s7260_s18 + $0x70] sm:$0xff] }
 0xd57   : > { %3330 = vst.msk [vmem:[#allocation2 + $0x30] sm:$0xff] %vm3323_vm2, %v3312_v45  ;;  %6422 = vmatprep.mubr.bf16.mxu0 %v4089_v60 }
 0xd58   : > { %6423 = vmatmul.mubr.bf16.gmra.mrb[96].mxu0 %v4090_v38  ;;  %v6970_v38 = vld [vmem:[%s7260_s18 + $0x68] sm:$0xff] }
 0xd59   : > { %v4067_v6 = vpop.permute.xlu1 %4066 }
 0xd5a   : > { %4084 = vst.msk [vmem:[#allocation2 + $0x38] sm:$0xff] %vm4076_vm3, %v4067_v6  ;;  %v4065_v23 = vpop.permute.xlu0 %4064 }
 0xd5b   : > { %4083 = vst.msk [vmem:[#allocation2 + $0x30] sm:$0xff] %vm4076_vm3, %v4065_v23  ;;  %v6971_v23 = vld [vmem:[%s7260_s18 + $0x78] sm:$0xff]  ;;  %s7077_s18 = smov [#allocation6]  }
 0xd5c   : > { %s7006_s14 = sshll.u32 %s7077_s18, 4  ;;  %s7007_s14 = int_to_ptr.vmem [resolvable:$false] %s7006_s14 }
 0xd5d   : > { %s7008_s17 = scalar_lea.vmem %s7007_s14, 4096  ;;  %p7009_p8 = scmp.lt.s32.totalorder %s9419_s15, %s7007_s14 }
 0xd5e   : > { %p7010_p10 = scmp.lt.s32.totalorder %s7008_s17, %s7002_s29 }
 0xd60   : > { %p7011_p0 = por %p7010_p10, %p7009_p8 }
 0xd61   : > { %v4092_v53 = vld [vmem:[#allocation2 + $0x38] sm:$0xff] }
 0xd62   : > { %v4091_v29 = vld [vmem:[#allocation2 + $0x30] sm:$0xff]  ;;  %p7012_p2 = pnand %p7011_p0, %p7005_p13 }
 0xd63   : > { %6426 = vmatprep.mubr.bf16.mxu0 %v4091_v29 }
 0xd64   : > { %6427 = vmatmul.mubr.bf16.gmra.mrb[100].mxu0 %v4092_v53 }
 0xd65   : > { %4882 = vmatprep.mubr.bf16.mxu0 %v9521_v10 }
 0xdca   : > { %v6416_v19 = vpop.f32.mrb[88].mxu0 }
 0xdcb   : > { %v4191_v16 = vpop.f32.mrb[89].mxu0  ;;  %v4256_v33 = vadd.f32 %v6957_v2, %v6416_v19  ;;  %v6567_v2 = vld [vmem:[%s9475_s9 + $0x2c] ss:$16 sps:$4 sm:$0xff]  }
 0xdcc   : > { %v4254_v61 = vadd.f32 %v6956_v18, %v4191_v16  ;;  %v6417_v44 = vpop.f32.mrb[90].mxu0  ;;  %v6556_v18 = vld [vmem:[%s9475_s9] ss:$16 sps:$4 sm:$0xff]  }
 0xdcd   : > { %v4194_v21 = vpop.f32.mrb[91].mxu0  ;;  %v8863_v27 = vadd.f32 %v8850_v4, %v4256_v33  ;;  %v4257_v14 = vadd.f32 %v6959_v40, %v6417_v44  ;;  %v6559_v44 = vld [vmem:[%s9475_s9 + $0x8] ss:$16 sps:$4 sm:$0xff]   ;;  %v6562_v33 = vld [vmem:[%s9475_s9 + $0x20] ss:$16 sps:$4 sm:$0xff]  }
 0xdce   : > { %v8855_v1 = vadd.f32 %v8850_v4, %v4254_v61  ;;  %v4255_v8 = vadd.f32 %v6958_v11, %v4194_v21  ;;  %v6558_v61 = vld [vmem:[%s9475_s9 + $0x4] ss:$16 sps:$4 sm:$0xff]   ;;  %v6565_v11 = vld [vmem:[%s9475_s9 + $0x28] ss:$16 sps:$4 sm:$0xff]  }
 0xdcf   : > { %v8869_v46 = vadd.f32 %v8850_v4, %v4257_v14  ;;  %v6564_v21 = vld [vmem:[%s9475_s9 + $0x24] ss:$16 sps:$4 sm:$0xff]   ;;  %4737 = vmatprep.subr.bf16.mxu1 %v6558_v61 }
 0xdd0   : > { %v8859_v37 = vadd.f32 %v8850_v4, %v4255_v8  ;;  %4295 = vadd.xlane.f32.xlu0 %v8855_v1  ;;  %4738 = vmatpush1.bf16.msra.mxu1 %v6556_v18  ;;  %v6603_v18 = vld [vmem:[%s9475_s9 + $0xec] ss:$16 sps:$4 sm:$0xff]  }
 0xdd1   : > { %4739 = vmatprep.subr.bf16.mxu1 %v6564_v21 }
 0xdd2   : > { %4297 = vadd.xlane.f32.xlu1 %v8859_v37 }
 0xdd4   : > { %4299 = vadd.xlane.f32.xlu0 %v8863_v27  ;;  %4740 = vmatpush1.bf16.msra.mxu1 %v6562_v33 }
 0xdd8   : > { %4301 = vadd.xlane.f32.xlu0 %v8869_v46 }
 0xdf8   : > { %v6420_v47 = vpop.f32.mrb[92].mxu0 }
 0xdf9   : > { %v4207_v24 = vpop.f32.mrb[93].mxu0  ;;  %v4260_v62 = vadd.f32 %v6961_v52, %v6420_v47 }
 0xdfa   : > { %v4258_v31 = vadd.f32 %v6960_v35, %v4207_v24  ;;  %v6421_v56 = vpop.f32.mrb[94].mxu0 }
 0xdfb   : > { %v4210_v3 = vpop.f32.mrb[95].mxu0  ;;  %v4261_v43 = vadd.f32 %v6963_v28, %v6421_v56  ;;  %v8884_v42 = vadd.f32 %v8850_v4, %v4260_v62 }
 0xdfc   : > { %v8875_v13 = vadd.f32 %v8850_v4, %v4258_v31  ;;  %v4259_v5 = vadd.f32 %v6962_v26, %v4210_v3 }
 0xdfd   : > { %v8888_v63 = vadd.f32 %v8850_v4, %v4261_v43 }
 0xdfe   : > { %v8880_v15 = vadd.f32 %v8850_v4, %v4259_v5  ;;  %4303 = vadd.xlane.f32.xlu0 %v8875_v13 }
 0xe00   : > { %4305 = vadd.xlane.f32.xlu1 %v8880_v15 }
 0xe02   : > { %4307 = vadd.xlane.f32.xlu0 %v8884_v42 }
 0xe04   : > { %4309 = vadd.xlane.f32.xlu1 %v8888_v63 }
 0xe2b   : > { %v6424_v20 = vpop.f32.mrb[96].mxu0 }
 0xe2c   : > { %v4223_v12 = vpop.f32.mrb[97].mxu0  ;;  %v4264_v55 = vadd.f32 %v6965_v57, %v6424_v20  ;;  %v6579_v57 = vld [vmem:[%s9475_s9 + $0x6c] ss:$16 sps:$4 sm:$0xff]  }
 0xe2d   : > { %v4262_v32 = vadd.f32 %v6964_v36, %v4223_v12  ;;  %v6425_v34 = vpop.f32.mrb[98].mxu0  ;;  %v6570_v12 = vld [vmem:[%s9475_s9 + $0x44] ss:$16 sps:$4 sm:$0xff]   ;;  %v6573_v36 = vld [vmem:[%s9475_s9 + $0x4c] ss:$16 sps:$4 sm:$0xff]  }
 0xe2e   : > { %v4226_v25 = vpop.f32.mrb[99].mxu0  ;;  %v4265_v49 = vadd.f32 %v6967_v58, %v6425_v34  ;;  %v8904_v17 = vadd.f32 %v8850_v4, %v4264_v55  ;;  %v6571_v34 = vld [vmem:[%s9475_s9 + $0x48] ss:$16 sps:$4 sm:$0xff]   ;;  %4741 = vmatprep.subr.bf16.mxu1 %v6570_v12  ;;  %v6574_v55 = vld [vmem:[%s9475_s9 + $0x60] ss:$16 sps:$4 sm:$0xff]  }
 0xe2f   : > { %v8895_v22 = vadd.f32 %v8850_v4, %v4262_v32  ;;  %v4263_v50 = vadd.f32 %v6966_v48, %v4226_v25  ;;  %v6568_v32 = vld [vmem:[%s9475_s9 + $0x40] ss:$16 sps:$4 sm:$0xff]   ;;  %v6576_v25 = vld [vmem:[%s9475_s9 + $0x64] ss:$16 sps:$4 sm:$0xff]   ;;  %v6577_v48 = vld [vmem:[%s9475_s9 + $0x68] ss:$16 sps:$4 sm:$0xff]  }
 0xe30   : > { %v8908_v54 = vadd.f32 %v8850_v4, %v4265_v49  ;;  %4742 = vmatpush1.bf16.msra.mxu1 %v6568_v32  ;;  %v6585_v58 = vld [vmem:[%s9475_s9 + $0x8c] ss:$16 sps:$4 sm:$0xff]   ;;  %v6580_v49 = vld [vmem:[%s9475_s9 + $0x80] ss:$16 sps:$4 sm:$0xff]  }
 0xe31   : > { %v8900_v59 = vadd.f32 %v8850_v4, %v4263_v50  ;;  %4311 = vadd.xlane.f32.xlu0 %v8895_v22  ;;  %4743 = vmatprep.subr.bf16.mxu1 %v6576_v25  ;;  %v6582_v50 = vld [vmem:[%s9475_s9 + $0x84] ss:$16 sps:$4 sm:$0xff]  }
 0xe33   : > { %4313 = vadd.xlane.f32.xlu1 %v8900_v59 }
 0xe34   : > { %4744 = vmatpush1.bf16.msra.mxu1 %v6574_v55 }
 0xe35   : > { %4315 = vadd.xlane.f32.xlu0 %v8904_v17  ;;  %4745 = vmatprep.subr.bf16.mxu1 %v6582_v50 }
 0xe37   : > { %4317 = vadd.xlane.f32.xlu1 %v8908_v54  ;;  %v6428_v51 = vpop.f32.mrb[100].mxu0 }
 0xe38   : > { %v4239_v39 = vpop.f32.mrb[101].mxu0  ;;  %v4268_v45 = vadd.f32 %v6969_v0, %v6428_v51  ;;  %v6583_v51 = vld [vmem:[%s9475_s9 + $0x88] ss:$16 sps:$4 sm:$0xff]   ;;  %4746 = vmatpush1.bf16.msra.mxu1 %v6580_v49  ;;  %v6597_v0 = vld [vmem:[%s9475_s9 + $0xcc] ss:$16 sps:$4 sm:$0xff]  }
 0xe39   : > { %v4266_v41 = vadd.f32 %v6968_v9, %v4239_v39  ;;  %v6429_v30 = vpop.f32.mrb[102].mxu0  ;;  %v6588_v39 = vld [vmem:[%s9475_s9 + $0xa4] ss:$16 sps:$4 sm:$0xff]   ;;  %v6591_v9 = vld [vmem:[%s9475_s9 + $0xac] ss:$16 sps:$4 sm:$0xff]  }
 0xe3a   : > { %v4242_v7 = vpop.f32.mrb[103].mxu0  ;;  %v4269_v29 = vadd.f32 %v6971_v23, %v6429_v30  ;;  %v8924_v19 = vadd.f32 %v8850_v4, %v4268_v45  ;;  %v6589_v30 = vld [vmem:[%s9475_s9 + $0xa8] ss:$16 sps:$4 sm:$0xff]   ;;  %4747 = vmatprep.subr.bf16.mxu1 %v6588_v39  ;;  %v6592_v45 = vld [vmem:[%s9475_s9 + $0xc0] ss:$16 sps:$4 sm:$0xff]  }
 0xe3b   : > { %v8915_v60 = vadd.f32 %v8850_v4, %v4266_v41  ;;  %v4267_v6 = vadd.f32 %v6970_v38, %v4242_v7  ;;  %v6586_v41 = vld [vmem:[%s9475_s9 + $0xa0] ss:$16 sps:$4 sm:$0xff]   ;;  %v6594_v7 = vld [vmem:[%s9475_s9 + $0xc4] ss:$16 sps:$4 sm:$0xff]   ;;  %v6595_v38 = vld [vmem:[%s9475_s9 + $0xc8] ss:$16 sps:$4 sm:$0xff]  }
 0xe3c   : > { %v8928_v16 = vadd.f32 %v8850_v4, %v4269_v29  ;;  %4748 = vmatpush1.bf16.msra.mxu1 %v6586_v41  ;;  %v6598_v23 = vld [vmem:[%s9475_s9 + $0xe0] ss:$16 sps:$4 sm:$0xff]   ;;  %v6601_v29 = vld [vmem:[%s9475_s9 + $0xe8] ss:$16 sps:$4 sm:$0xff]  }
 0xe3d   : > { %v8920_v53 = vadd.f32 %v8850_v4, %v4267_v6  ;;  %4319 = vadd.xlane.f32.xlu0 %v8915_v60  ;;  %v6561_v4 = vld [vmem:[%s9475_s9 + $0xc] ss:$16 sps:$4 sm:$0xff]   ;;  %4749 = vmatprep.subr.bf16.mxu1 %v6594_v7  ;;  %v6600_v6 = vld [vmem:[%s9475_s9 + $0xe4] ss:$16 sps:$4 sm:$0xff]  }
 0xe3e   : > { %4850 = vmatprep.subr.bf16.mxu0 %v6561_v4 }
 0xe3f   : > { %4321 = vadd.xlane.f32.xlu1 %v8920_v53  ;;  %4851 = vmatpush1.bf16.msra.mxu0 %v6559_v44 }
 0xe40   : > { %4852 = vmatprep.subr.bf16.mxu0 %v6567_v2  ;;  %4750 = vmatpush1.bf16.msra.mxu1 %v6592_v45 }
 0xe41   : > { %4323 = vadd.xlane.f32.xlu0 %v8924_v19  ;;  %4751 = vmatprep.subr.bf16.mxu1 %v6600_v6 }
 0xe43   : > { %4325 = vadd.xlane.f32.xlu1 %v8928_v16  ;;  %4853 = vmatpush1.bf16.msra.mxu0 %v6565_v11 }
 0xe44   : > { %4854 = vmatprep.subr.bf16.mxu0 %v6573_v36  ;;  %4752 = vmatpush1.bf16.msra.mxu1 %v6598_v23 }
 0xe47   : > { %4855 = vmatpush1.bf16.msra.mxu0 %v6571_v34 }
 0xe48   : > { %4856 = vmatprep.subr.bf16.mxu0 %v6579_v57 }
 0xe4b   : > { %4857 = vmatpush1.bf16.msra.mxu0 %v6577_v48 }
 0xe4c   : > { %4858 = vmatprep.subr.bf16.mxu0 %v6585_v58 }
 0xe4f   : > { %4859 = vmatpush1.bf16.msra.mxu0 %v6583_v51 }
 0xe50   : > { %4860 = vmatprep.subr.bf16.mxu0 %v6591_v9 }
 0xe53   : > { %4861 = vmatpush1.bf16.msra.mxu0 %v6589_v30 }
 0xe54   : > { %4862 = vmatprep.subr.bf16.mxu0 %v6597_v0 }
 0xe57   : > { %4863 = vmatpush1.bf16.msra.mxu0 %v6595_v38 }
 0xe58   : > { %4864 = vmatprep.subr.bf16.mxu0 %v6603_v18 }
 0xe5b   : > { %4865 = vmatpush1.bf16.msra.mxu0 %v6601_v29 }
 0xe5d   : > { %v4296_v8 = vpop.xlane.xlu0 %4295 }
 0xe5e   : > { %v4327_v40 = vmul.f32 0.0078125, %v4296_v8 }
 0xe5f   : > { %v4298_v14 = vpop.xlane.xlu1 %4297 }
 0xe60   : > { %v8957_v47 = vsub.f32 %v8855_v1, %v4327_v40  ;;  %v4328_v24 = vmul.f32 0.0078125, %v4298_v14 }
 0xe61   : > { %v4300_v35 = vpop.xlane.xlu0 %4299 }
 0xe62   : > { %v8960_v31 = vsub.f32 %v8859_v37, %v4328_v24  ;;  %v4329_v56 = vmul.f32 0.0078125, %v4300_v35  ;;  %v4359_v3 = vmul.f32 %v8957_v47, %v8957_v47 }
 0xe64   : > { %v8965_v52 = vsub.f32 %v8863_v27, %v4329_v56  ;;  %4375 = vadd.xlane.f32.xlu0 %v4359_v3  ;;  %v4360_v62 = vmul.f32 %v8960_v31, %v8960_v31 }
 0xe65   : > { %v4302_v26 = vpop.xlane.xlu0 %4301 }
 0xe66   : > { %v4330_v5 = vmul.f32 0.0078125, %v4302_v26  ;;  %4377 = vadd.xlane.f32.xlu1 %v4360_v62  ;;  %v4361_v28 = vmul.f32 %v8965_v52, %v8965_v52 }
 0xe68   : > { %v8972_v43 = vsub.f32 %v8869_v46, %v4330_v5  ;;  %4379 = vadd.xlane.f32.xlu0 %v4361_v28 }
 0xe6a   : > { %v4362_v20 = vmul.f32 %v8972_v43, %v8972_v43 }
 0xe6c   : > { %4381 = vadd.xlane.f32.xlu1 %v4362_v20 }
 0xe8b   : > { %v4304_v61 = vpop.xlane.xlu0 %4303 }
 0xe8c   : > { %v4331_v44 = vmul.f32 0.0078125, %v4304_v61 }
 0xe8d   : > { %v4306_v4 = vpop.xlane.xlu1 %4305 }
 0xe8e   : > { %v9049_v21 = vsub.f32 %v8875_v13, %v4331_v44  ;;  %v4332_v2 = vmul.f32 0.0078125, %v4306_v4 }
 0xe8f   : > { %v4308_v33 = vpop.xlane.xlu0 %4307 }
 0xe90   : > { %v9052_v11 = vsub.f32 %v8880_v15, %v4332_v2  ;;  %v4333_v8 = vmul.f32 0.0078125, %v4308_v33  ;;  %v4363_v40 = vmul.f32 %v9049_v21, %v9049_v21 }
 0xe91   : > { %v4310_v14 = vpop.xlane.xlu1 %4309 }
 0xe92   : > { %v9057_v24 = vsub.f32 %v8884_v42, %v4333_v8  ;;  %v4334_v35 = vmul.f32 0.0078125, %v4310_v14  ;;  %4383 = vadd.xlane.f32.xlu0 %v4363_v40  ;;  %v4364_v56 = vmul.f32 %v9052_v11, %v9052_v11 }
 0xe94   : > { %v9062_v3 = vsub.f32 %v8888_v63, %v4334_v35  ;;  %4385 = vadd.xlane.f32.xlu1 %v4364_v56  ;;  %v4365_v62 = vmul.f32 %v9057_v24, %v9057_v24 }
 0xe96   : > { %4387 = vadd.xlane.f32.xlu0 %v4365_v62  ;;  %v4366_v26 = vmul.f32 %v9062_v3, %v9062_v3 }
 0xe98   : > { %4389 = vadd.xlane.f32.xlu1 %v4366_v26 }
 0xebe   : > { %v4312_v5 = vpop.xlane.xlu0 %4311 }
 0xebf   : > { %v4335_v28 = vmul.f32 0.0078125, %v4312_v5 }
 0xec0   : > { %v4314_v20 = vpop.xlane.xlu1 %4313 }
 0xec1   : > { %v9069_v12 = vsub.f32 %v8895_v22, %v4335_v28  ;;  %v4336_v36 = vmul.f32 0.0078125, %v4314_v20 }
 0xec2   : > { %v4316_v32 = vpop.xlane.xlu0 %4315 }
 0xec3   : > { %v9072_v34 = vsub.f32 %v8900_v59, %v4336_v36  ;;  %v4337_v25 = vmul.f32 0.0078125, %v4316_v32  ;;  %v4367_v57 = vmul.f32 %v9069_v12, %v9069_v12 }
 0xec4   : > { %v4318_v55 = vpop.xlane.xlu1 %4317 }
 0xec5   : > { %v9077_v48 = vsub.f32 %v8904_v17, %v4337_v25  ;;  %v4338_v50 = vmul.f32 0.0078125, %v4318_v55  ;;  %4391 = vadd.xlane.f32.xlu0 %v4367_v57  ;;  %v4368_v58 = vmul.f32 %v9072_v34, %v9072_v34  ;;  %v9111_v57 = vld [vmem:[%s9473_s7] ss:$0 sm:$0xff] }
 0xec7   : > { %v9082_v49 = vsub.f32 %v8908_v54, %v4338_v50  ;;  %4393 = vadd.xlane.f32.xlu1 %v4368_v58  ;;  %v4369_v51 = vmul.f32 %v9077_v48, %v9077_v48 }
 0xec9   : > { %4395 = vadd.xlane.f32.xlu0 %v4369_v51  ;;  %v4370_v39 = vmul.f32 %v9082_v49, %v9082_v49 }
 0xeca   : > { %v4320_v9 = vpop.xlane.xlu0 %4319 }
 0xecb   : > { %v4339_v41 = vmul.f32 0.0078125, %v4320_v9  ;;  %4397 = vadd.xlane.f32.xlu1 %v4370_v39  ;;  %v9119_v9 = vld [vmem:[%s9474_s8] ss:$0 sm:$0xff] }
 0xecc   : > { %v4322_v30 = vpop.xlane.xlu1 %4321 }
 0xecd   : > { %v9089_v7 = vsub.f32 %v8915_v60, %v4339_v41  ;;  %v4340_v0 = vmul.f32 0.0078125, %v4322_v30  ;;  %v6604_v41 = vld [vmem:[%s9477_s11 + $0x40] sm:$0xff]  }
 0xece   : > { %v4324_v45 = vpop.xlane.xlu0 %4323  ;;  %v6605_v30 = vld [vmem:[%s9477_s11 + $0xc0] sm:$0xff]   ;;  %5982 = vmatprep.subr.bf16.mxu1 %v6604_v41  ;;  %v6625_v41 = vld [vmem:[%s9477_s11 + $0xe8] sm:$0xff]  }
 0xecf   : > { %v9092_v38 = vsub.f32 %v8920_v53, %v4340_v0  ;;  %v4341_v6 = vmul.f32 0.0078125, %v4324_v45  ;;  %v4371_v23 = vmul.f32 %v9089_v7, %v9089_v7  ;;  %6046 = vmatprep.subr.bf16.mxu0 %v6605_v30 }
 0xed0   : > { %v4326_v29 = vpop.xlane.xlu1 %4325 }
 0xed1   : > { %v9097_v18 = vsub.f32 %v8924_v19, %v4341_v6  ;;  %v4342_v61 = vmul.f32 0.0078125, %v4326_v29  ;;  %4399 = vadd.xlane.f32.xlu0 %v4371_v23  ;;  %v4372_v44 = vmul.f32 %v9092_v38, %v9092_v38 }
 0xed3   : > { %v9102_v4 = vsub.f32 %v8928_v16, %v4342_v61  ;;  %4401 = vadd.xlane.f32.xlu1 %v4372_v44  ;;  %v4373_v2 = vmul.f32 %v9097_v18, %v9097_v18  ;;  %v6606_v61 = vld [vmem:[%s9477_s11] sm:$0xff]  }
 0xed4   : > { %v6607_v44 = vld [vmem:[%s9477_s11 + $0x80] sm:$0xff]  }
 0xed5   : > { %4403 = vadd.xlane.f32.xlu0 %v4373_v2  ;;  %v4374_v33 = vmul.f32 %v9102_v4, %v9102_v4  ;;  %v6608_v2 = vld [vmem:[%s9477_s11 + $0x48] sm:$0xff]  }
 0xed7   : > { %4405 = vadd.xlane.f32.xlu1 %v4374_v33 }
 0xef1   : > { %v4376_v8 = vpop.xlane.xlu0 %4375 }
 0xef2   : > { %v4407_v40 = vmul.f32 0.0078125, %v4376_v8 }
 0xef3   : > { %v4378_v14 = vpop.xlane.xlu1 %4377 }
 0xef4   : > { %v4423_v35 = vadd.f32 1e-05, %v4407_v40  ;;  %v4408_v56 = vmul.f32 0.0078125, %v4378_v14  ;;  %v6610_v40 = vld [vmem:[%s9477_s11 + $0x8] sm:$0xff]  }
 0xef5   : > { %v4380_v62 = vpop.xlane.xlu0 %4379  ;;  %v6611_v14 = vld [vmem:[%s9477_s11 + $0x88] sm:$0xff]  }
 0xef6   : > { %6924 = vrsqrt.f32 %v4423_v35  ;;  %v4424_v26 = vadd.f32 1e-05, %v4408_v56  ;;  %v4409_v5 = vmul.f32 0.0078125, %v4380_v62  ;;  %v6612_v35 = vld [vmem:[%s9477_s11 + $0x50] sm:$0xff]  }
 0xef7   : > { %v6613_v56 = vld [vmem:[%s9477_s11 + $0xd0] sm:$0xff]  }
 0xef8   : > { %6926 = vrsqrt.f32 %v4424_v26  ;;  %v4425_v28 = vadd.f32 1e-05, %v4409_v5  ;;  %v6614_v5 = vld [vmem:[%s9477_s11 + $0x10] sm:$0xff]  }
 0xef9   : > { %v4382_v20 = vpop.xlane.xlu1 %4381 }
 0xefa   : > { %6928 = vrsqrt.f32 %v4425_v28  ;;  %v4410_v36 = vmul.f32 0.0078125, %v4382_v20  ;;  %v6615_v28 = vld [vmem:[%s9477_s11 + $0x90] sm:$0xff]   ;;  %v6616_v20 = vld [vmem:[%s9477_s11 + $0x58] sm:$0xff]  }
 0xefc   : > { %v4426_v32 = vadd.f32 1e-05, %v4410_v36  ;;  %v6617_v36 = vld [vmem:[%s9477_s11 + $0xd8] sm:$0xff]  }
 0xefe   : > { %6930 = vrsqrt.f32 %v4426_v32  ;;  %v6618_v32 = vld [vmem:[%s9477_s11 + $0x18] sm:$0xff]  }
 0xf00   : > { %v6925_v25 = vpop.eup %6924 }
 0xf01   : > { %v4455_v55 = vmul.f32 %v6925_v25, %v8957_v47  ;;  %v6619_v25 = vld [vmem:[%s9477_s11 + $0x98] sm:$0xff]  }
 0xf02   : > { %v6927_v50 = vpop.eup %6926 }
 0xf03   : > { %v4456_v58 = vmul.f32 %v6927_v50, %v8960_v31  ;;  %v4477_v51 = vmul.f32 %v9111_v57, %v4455_v55  ;;  %v6620_v55 = vld [vmem:[%s9477_s11 + $0x60] sm:$0xff]  }
 0xf04   : > { %v6929_v39 = vpop.eup %6928  ;;  %v6621_v50 = vld [vmem:[%s9477_s11 + $0xe0] sm:$0xff]  }
 0xf05   : > { %v4478_v47 = vmul.f32 %v9111_v57, %v4456_v58  ;;  %v4499_v31 = vadd.f32 %v9119_v9, %v4477_v51  ;;  %v4457_v45 = vmul.f32 %v6929_v39, %v8965_v52  ;;  %v6609_v52 = vld [vmem:[%s9477_s11 + $0xc8] sm:$0xff]   ;;  %v6622_v58 = vld [vmem:[%s9477_s11 + $0x20] sm:$0xff]  }
 0xf06   : > { %v6623_v51 = vld [vmem:[%s9477_s11 + $0xa0] sm:$0xff]   ;;  %v6624_v39 = vld [vmem:[%s9477_s11 + $0x68] sm:$0xff]  }
 0xf07   : > { %v4500_v0 = vadd.f32 %v9119_v9, %v4478_v47 }
 0xf08   : > { %v6931_v6 = vpop.eup %6930 }
 0xf09   : > { %v4515_v23 = vpack.c.bf16 %v4500_v0, %v4499_v31  ;;  %v4458_v29 = vmul.f32 %v6931_v6, %v8972_v43  ;;  %v4479_v43 = vmul.f32 %v9111_v57, %v4457_v45 }
 0xf0b   : > { %4770 = vmatmul.mubr.bf16.vlgmr.msra.gmra.mrb[88].mxu1 %v4515_v23  ;;  %4883 = vmatmul.mubr.bf16.vlgmr.msra.gmra.mrb[104].mxu0 %v4515_v23  ;;  %v4480_v33 = vmul.f32 %v9111_v57, %v4458_v29  ;;  %v4501_v62 = vadd.f32 %v9119_v9, %v4479_v43 }
 0xf0c   : > { %4779 = vmatprep.mubr.bf16.mxu1 %v9521_v10  ;;  %4892 = vmatprep.mubr.bf16.mxu0 %v9521_v10 }
 0xf0d   : > { %v4502_v8 = vadd.f32 %v9119_v9, %v4480_v33  ;;  %5983 = vmatpush3.bf16.msra.mxu1 %v6606_v61  ;;  %6047 = vmatpush3.bf16.msra.mxu0 %v6607_v44 }
 0xf0e   : > { %5984 = vmatprep.subr.bf16.mxu1 %v6608_v2  ;;  %6048 = vmatprep.subr.bf16.mxu0 %v6609_v52 }
 0xf0f   : > { %v4516_v26 = vpack.c.bf16 %v4502_v8, %v4501_v62 }
 0xf11   : > { %5985 = vmatpush3.bf16.msra.mxu1 %v6610_v40  ;;  %6049 = vmatpush3.bf16.msra.mxu0 %v6611_v14 }
 0xf12   : > { %5986 = vmatprep.subr.bf16.mxu1 %v6612_v35  ;;  %6050 = vmatprep.subr.bf16.mxu0 %v6613_v56 }
 0xf13   : > { %4780 = vmatmul.mubr.bf16.gmra.mrb[92].mxu1 %v4516_v26  ;;  %4893 = vmatmul.mubr.bf16.gmra.mrb[108].mxu0 %v4516_v26 }
 0xf14   : > { %4789 = vmatprep.mubr.bf16.mxu1 %v9521_v10  ;;  %4902 = vmatprep.mubr.bf16.mxu0 %v9521_v10 }
 0xf15   : > { %5987 = vmatpush3.bf16.msra.mxu1 %v6614_v5  ;;  %6051 = vmatpush3.bf16.msra.mxu0 %v6615_v28 }
 0xf16   : > { %5988 = vmatprep.subr.bf16.mxu1 %v6616_v20  ;;  %6052 = vmatprep.subr.bf16.mxu0 %v6617_v36 }
 0xf19   : > { %5989 = vmatpush3.bf16.msra.mxu1 %v6618_v32  ;;  %6053 = vmatpush3.bf16.msra.mxu0 %v6619_v25 }
 0xf1a   : > { %5990 = vmatprep.subr.bf16.mxu1 %v6620_v55  ;;  %6054 = vmatprep.subr.bf16.mxu0 %v6621_v50 }
 0xf1d   : > { %5991 = vmatpush3.bf16.msra.mxu1 %v6622_v58  ;;  %6055 = vmatpush3.bf16.msra.mxu0 %v6623_v51 }
 0xf1e   : > { %5992 = vmatprep.subr.bf16.mxu1 %v6624_v39  ;;  %6056 = vmatprep.subr.bf16.mxu0 %v6625_v41 }
 0xf1f   : > { %v4384_v30 = vpop.xlane.xlu0 %4383 }
 0xf20   : > { %v4411_v47 = vmul.f32 0.0078125, %v4384_v30 }
 0xf21   : > { %v4386_v31 = vpop.xlane.xlu1 %4385 }
 0xf22   : > { %v4427_v0 = vadd.f32 1e-05, %v4411_v47  ;;  %v4412_v45 = vmul.f32 0.0078125, %v4386_v31 }
 0xf23   : > { %v4388_v6 = vpop.xlane.xlu0 %4387 }
 0xf24   : > { %6932 = vrsqrt.f32 %v4427_v0  ;;  %v4428_v23 = vadd.f32 1e-05, %v4412_v45  ;;  %v4413_v29 = vmul.f32 0.0078125, %v4388_v6  ;;  %v6626_v6 = vld [vmem:[%s9477_s11 + $0x28] sm:$0xff]  }
 0xf25   : > { %v4390_v61 = vpop.xlane.xlu1 %4389  ;;  %5993 = vmatpush3.bf16.msra.mxu1 %v6626_v6 }
 0xf26   : > { %6934 = vrsqrt.f32 %v4428_v23  ;;  %v4429_v44 = vadd.f32 1e-05, %v4413_v29  ;;  %v4414_v2 = vmul.f32 0.0078125, %v4390_v61  ;;  %v6627_v23 = vld [vmem:[%s9477_s11 + $0xa8] sm:$0xff]  }
 0xf27   : > { %6057 = vmatpush3.bf16.msra.mxu0 %v6627_v23 }
 0xf28   : > { %6936 = vrsqrt.f32 %v4429_v44  ;;  %v4430_v52 = vadd.f32 1e-05, %v4414_v2  ;;  %v6628_v44 = vld [vmem:[%s9477_s11 + $0x70] sm:$0xff]  }
 0xf29   : > { %v6629_v2 = vld [vmem:[%s9477_s11 + $0xf0] sm:$0xff]   ;;  %5994 = vmatprep.subr.bf16.mxu1 %v6628_v44 }
 0xf2a   : > { %6938 = vrsqrt.f32 %v4430_v52  ;;  %6058 = vmatprep.subr.bf16.mxu0 %v6629_v2 }
 0xf2e   : > { %v6933_v43 = vpop.eup %6932 }
 0xf2f   : > { %v4459_v33 = vmul.f32 %v6933_v43, %v9049_v21  ;;  %v6630_v43 = vld [vmem:[%s9477_s11 + $0x30] sm:$0xff]  }
 0xf30   : > { %v6935_v8 = vpop.eup %6934  ;;  %5995 = vmatpush3.bf16.msra.mxu1 %v6630_v43 }
 0xf31   : > { %v4460_v40 = vmul.f32 %v6935_v8, %v9052_v11  ;;  %v4481_v14 = vmul.f32 %v9111_v57, %v4459_v33  ;;  %v6631_v33 = vld [vmem:[%s9477_s11 + $0xb0] sm:$0xff]  }
 0xf32   : > { %v6937_v35 = vpop.eup %6936  ;;  %6059 = vmatpush3.bf16.msra.mxu0 %v6631_v33 }
 0xf33   : > { %v4482_v56 = vmul.f32 %v9111_v57, %v4460_v40  ;;  %v4503_v26 = vadd.f32 %v9119_v9, %v4481_v14  ;;  %v4461_v28 = vmul.f32 %v6937_v35, %v9057_v24 }
 0xf34   : > { %v6939_v62 = vpop.eup %6938 }
 0xf35   : > { %v4504_v5 = vadd.f32 %v9119_v9, %v4482_v56  ;;  %v4462_v20 = vmul.f32 %v6939_v62, %v9062_v3  ;;  %v4483_v11 = vmul.f32 %v9111_v57, %v4461_v28  ;;  %v6632_v28 = vld [vmem:[%s9477_s11 + $0x78] sm:$0xff]  }
 0xf36   : > { %5996 = vmatprep.subr.bf16.mxu1 %v6632_v28 }
 0xf37   : > { %v4517_v36 = vpack.c.bf16 %v4504_v5, %v4503_v26  ;;  %v4484_v21 = vmul.f32 %v9111_v57, %v4462_v20  ;;  %v4505_v25 = vadd.f32 %v9119_v9, %v4483_v11  ;;  %v6633_v20 = vld [vmem:[%s9477_s11 + $0xf8] sm:$0xff]  }
 0xf38   : > { %6060 = vmatprep.subr.bf16.mxu0 %v6633_v20 }
 0xf39   : > { %4790 = vmatmul.mubr.bf16.gmra.mrb[96].mxu1 %v4517_v36  ;;  %4903 = vmatmul.mubr.bf16.gmra.mrb[112].mxu0 %v4517_v36  ;;  %v4506_v32 = vadd.f32 %v9119_v9, %v4484_v21 }
 0xf3a   : > { %4799 = vmatprep.mubr.bf16.mxu1 %v9521_v10  ;;  %4912 = vmatprep.mubr.bf16.mxu0 %v9521_v10 }
 0xf3b   : > { %v4518_v55 = vpack.c.bf16 %v4506_v32, %v4505_v25  ;;  %v6635_v32 = vld [vmem:[%s9477_s11 + $0xb8] sm:$0xff]  }
 0xf3c   : > { %6061 = vmatpush3.bf16.msra.mxu0 %v6635_v32 }
 0xf41   : > { %4800 = vmatmul.mubr.bf16.gmra.mrb[100].mxu1 %v4518_v55  ;;  %4913 = vmatmul.mubr.bf16.gmra.mrb[116].mxu0 %v4518_v55 }
 0xf42   : > { %4809 = vmatprep.mubr.bf16.mxu1 %v9521_v10  ;;  %4922 = vmatprep.mubr.bf16.mxu0 %v9521_v10 }
 0xf52   : > { %v4392_v24 = vpop.xlane.xlu0 %4391 }
 0xf53   : > { %v4415_v3 = vmul.f32 0.0078125, %v4392_v24 }
 0xf54   : > { %v4394_v50 = vpop.xlane.xlu1 %4393 }
 0xf55   : > { %v4431_v58 = vadd.f32 1e-05, %v4415_v3  ;;  %v4416_v51 = vmul.f32 0.0078125, %v4394_v50 }
 0xf56   : > { %v4396_v39 = vpop.xlane.xlu0 %4395 }
 0xf57   : > { %6940 = vrsqrt.f32 %v4431_v58  ;;  %v4432_v41 = vadd.f32 1e-05, %v4416_v51  ;;  %v4417_v30 = vmul.f32 0.0078125, %v4396_v39 }
 0xf58   : > { %v4398_v47 = vpop.xlane.xlu1 %4397 }
 0xf59   : > { %6942 = vrsqrt.f32 %v4432_v41  ;;  %v4433_v31 = vadd.f32 1e-05, %v4417_v30  ;;  %v4418_v0 = vmul.f32 0.0078125, %v4398_v47 }
 0xf5b   : > { %6944 = vrsqrt.f32 %v4433_v31  ;;  %v4434_v45 = vadd.f32 1e-05, %v4418_v0 }
 0xf5d   : > { %6946 = vrsqrt.f32 %v4434_v45 }
 0xf5e   : > { %v4400_v29 = vpop.xlane.xlu0 %4399 }
 0xf5f   : > { %v4419_v61 = vmul.f32 0.0078125, %v4400_v29 }
 0xf60   : > { %v4402_v52 = vpop.xlane.xlu1 %4401 }
 0xf61   : > { %v6941_v8 = vpop.eup %6940  ;;  %v4435_v40 = vadd.f32 1e-05, %v4419_v61  ;;  %v4420_v14 = vmul.f32 0.0078125, %v4402_v52 }
 0xf62   : > { %v4404_v35 = vpop.xlane.xlu0 %4403  ;;  %v4463_v56 = vmul.f32 %v6941_v8, %v9069_v12  ;;  %v6634_v12 = vld [vmem:[%s9477_s11 + $0x38] sm:$0xff]  }
 0xf63   : > { %v6943_v62 = vpop.eup %6942  ;;  %6948 = vrsqrt.f32 %v4435_v40  ;;  %v4436_v26 = vadd.f32 1e-05, %v4420_v14  ;;  %v4421_v5 = vmul.f32 0.0078125, %v4404_v35  ;;  %5997 = vmatpush3.bf16.msra.mxu1 %v6634_v12 }
 0xf64   : > { %v4406_v36 = vpop.xlane.xlu1 %4405  ;;  %v4464_v21 = vmul.f32 %v6943_v62, %v9072_v34  ;;  %v4485_v11 = vmul.f32 %v9111_v57, %v4463_v56  ;;  %v9539_v62 = vld [vmem:[#allocation13_spill] sm:$0xff] }
 0xf65   : > { %v6945_v25 = vpop.eup %6944  ;;  %6950 = vrsqrt.f32 %v4436_v26  ;;  %v4422_v55 = vmul.f32 0.0078125, %v4406_v36  ;;  %v4437_v3 = vadd.f32 1e-05, %v4421_v5  ;;  %v4571_v26 = vsub.s32 3, %v9539_v62 }
 0xf66   : > { %v4486_v24 = vmul.f32 %v9111_v57, %v4464_v21  ;;  %v4507_v58 = vadd.f32 %v9119_v9, %v4485_v11  ;;  %v4465_v39 = vmul.f32 %v6945_v25, %v9077_v48  ;;  %v9540_v5 = vsub.s32 0, %v9539_v62 }
 0xf67   : > { %v6947_v34 = vpop.eup %6946  ;;  %v4438_v50 = vadd.f32 1e-05, %v4422_v55  ;;  %v9541_v28 = vsub.s32 2, %v9539_v62  ;;  %v9542_v20 = vsub.s32 1, %v9539_v62 }
 0xf68   : > { %v4508_v51 = vadd.f32 %v9119_v9, %v4486_v24  ;;  %v4466_v41 = vmul.f32 %v6947_v34, %v9082_v49  ;;  %v4487_v31 = vmul.f32 %v9111_v57, %v4465_v39 }
 0xf69   : > { %6952 = vrsqrt.f32 %v4438_v50 }
 0xf6a   : > { %v4519_v30 = vpack.c.bf16 %v4508_v51, %v4507_v58  ;;  %v4488_v47 = vmul.f32 %v9111_v57, %v4466_v41  ;;  %6954 = vrsqrt.f32 %v4437_v3  ;;  %v4509_v48 = vadd.f32 %v9119_v9, %v4487_v31 }
 0xf6c   : > { %4810 = vmatmul.mubr.bf16.gmra.mrb[104].mxu1 %v4519_v30  ;;  %4923 = vmatmul.mubr.bf16.gmra.mrb[120].mxu0 %v4519_v30  ;;  %v4510_v45 = vadd.f32 %v9119_v9, %v4488_v47 }
 0xf6d   : > { %v6949_v0 = vpop.eup %6948  ;;  %4819 = vmatprep.mubr.bf16.mxu1 %v9521_v10  ;;  %4932 = vmatprep.mubr.bf16.mxu0 %v9521_v10 }
 0xf6e   : > { %v4467_v49 = vmul.f32 %v6949_v0, %v9089_v7  ;;  %v4520_v29 = vpack.c.bf16 %v4510_v45, %v4509_v48 }
 0xf6f   : > { %v6951_v6 = vpop.eup %6950 }
 0xf70   : > { %v4468_v23 = vmul.f32 %v6951_v6, %v9092_v38  ;;  %v4489_v2 = vmul.f32 %v9111_v57, %v4467_v49 }
 0xf72   : > { %v4490_v61 = vmul.f32 %v9111_v57, %v4468_v23  ;;  %v4511_v7 = vadd.f32 %v9119_v9, %v4489_v2 }
 0xf73   : > { %v6953_v44 = vpop.eup %6952 }
 0xf74   : > { %4820 = vmatmul.mubr.bf16.gmra.mrb[108].mxu1 %v4520_v29  ;;  %4933 = vmatmul.mubr.bf16.gmra.mrb[124].mxu0 %v4520_v29  ;;  %v6955_v52 = vpop.eup %6954  ;;  %v4512_v43 = vadd.f32 %v9119_v9, %v4490_v61  ;;  %v4470_v33 = vmul.f32 %v6953_v44, %v9102_v4 }
 0xf75   : > { %4829 = vmatprep.mubr.bf16.mxu1 %v9521_v10  ;;  %4942 = vmatprep.mubr.bf16.mxu0 %v9521_v10  ;;  %v4469_v38 = vmul.f32 %v6955_v52, %v9097_v18  ;;  %v4555_v18 = vld [vmem:[%s9476_s10] sm:$0xf] }
 0xf76   : > { %v4521_v8 = vpack.c.bf16 %v4512_v43, %v4511_v7  ;;  %v4492_v40 = vmul.f32 %v9111_v57, %v4470_v33  ;;  %v9292_v36 = vrot.slane %v4555_v18, %v4571_v26 }
 0xf77   : > { %v4491_v14 = vmul.f32 %v9111_v57, %v4469_v38  ;;  %v9282_v57 = vrot.slane %v4555_v18, %v9540_v5 }
 0xf78   : > { %v4514_v35 = vadd.f32 %v9119_v9, %v4492_v40 }
 0xf79   : > { %v4513_v56 = vadd.f32 %v9119_v9, %v4491_v14  ;;  %v9290_v9 = vrot.slane %v4555_v18, %v9542_v20 }
 0xf7b   : > { %v4522_v4 = vpack.c.bf16 %v4514_v35, %v4513_v56 }
 0xf7c   : > { %4830 = vmatmul.mubr.bf16.gmra.mrb[112].mxu1 %v4521_v8  ;;  %4943 = vmatmul.mubr.bf16.gmra.mrb[128].mxu0 %v4521_v8 }
 0xf7d   : > { %4839 = vmatprep.mubr.bf16.mxu1 %v9521_v10  ;;  %4952 = vmatprep.mubr.bf16.mxu0 %v9521_v10  ;;  %v9286_v10 = vrot.slane %v4555_v18, %v9541_v28 }
 0xf84   : > { %4840 = vmatmul.mubr.bf16.gmra.mrb[116].mxu1 %v4522_v4  ;;  %4953 = vmatmul.mubr.bf16.gmra.mrb[132].mxu0 %v4522_v4 }
 0xfde   : > { %v4771_v21 = vpop.f32.mrb[88].mxu1  ;;  %v4884_v11 = vpop.f32.mrb[104].mxu0 }
 0xfdf   : > { %v4772_v12 = vadd.f32 %v4771_v21, %v9282_v57  ;;  %v4885_v32 = vadd.f32 %v4884_v11, %v9286_v10  ;;  %v4773_v25 = vpop.f32.mrb[89].mxu1  ;;  %v4886_v55 = vpop.f32.mrb[105].mxu0 }
 0xfe0   : > { %v4774_v24 = vadd.f32 %v4773_v25, %v9290_v9  ;;  %v4887_v34 = vadd.f32 %v4886_v55, %v9292_v36  ;;  %v4775_v3 = vpop.f32.mrb[90].mxu1  ;;  %v4888_v50 = vpop.f32.mrb[106].mxu0 }
 0xfe1   : > { %v4776_v58 = vadd.f32 %v4775_v3, %v9282_v57  ;;  %v4889_v51 = vadd.f32 %v4888_v50, %v9286_v10  ;;  %v4777_v39 = vpop.f32.mrb[91].mxu1  ;;  %v4890_v41 = vpop.f32.mrb[107].mxu0  ;;  %v4963_v31 = vmax.f32 %v4772_v12, 0.0  ;;  %v4965_v0 = vmax.f32 %v4885_v32, 0.0 }
 0xfe2   : > { %v4778_v30 = vadd.f32 %v4777_v39, %v9290_v9  ;;  %v4891_v47 = vadd.f32 %v4890_v41, %v9292_v36  ;;  %v4964_v48 = vmax.f32 %v4774_v24, 0.0  ;;  %v4966_v49 = vmax.f32 %v4887_v34, 0.0 }
 0xfe3   : > { %v4967_v45 = vmax.f32 %v4776_v58, 0.0  ;;  %v4969_v6 = vmax.f32 %v4889_v51, 0.0 }
 0xfe4   : > { %v4968_v23 = vmax.f32 %v4778_v30, 0.0  ;;  %v4970_v29 = vmax.f32 %v4891_v47, 0.0 }
 0xfe5   : > { %v5027_v61 = vpack.c.bf16 %v4967_v45, %v4963_v31  ;;  %v5029_v44 = vpack.c.bf16 %v4969_v6, %v4965_v0 }
 0xfe6   : > { %v5028_v2 = vpack.c.bf16 %v4968_v23, %v4964_v48  ;;  %v5030_v52 = vpack.c.bf16 %v4970_v29, %v4966_v49  ;;  %v4781_v43 = vpop.f32.mrb[92].mxu1  ;;  %v4894_v33 = vpop.f32.mrb[108].mxu0 }
 0xfe7   : > { %v4782_v7 = vadd.f32 %v4781_v43, %v9282_v57  ;;  %v4895_v38 = vadd.f32 %v4894_v33, %v9286_v10  ;;  %v4783_v8 = vpop.f32.mrb[93].mxu1  ;;  %v4896_v40 = vpop.f32.mrb[109].mxu0 }
 0xfe8   : > { %v4784_v14 = vadd.f32 %v4783_v8, %v9290_v9  ;;  %v4897_v35 = vadd.f32 %v4896_v40, %v9292_v36  ;;  %v4785_v56 = vpop.f32.mrb[94].mxu1  ;;  %v4898_v4 = vpop.f32.mrb[110].mxu0  ;;  %5354 = vmatprep.mubr.bf16.mxu1 %v5028_v2  ;;  %5451 = vmatprep.mubr.bf16.mxu0 %v5030_v52 }
 0xfe9   : > { %v4786_v18 = vadd.f32 %v4785_v56, %v9282_v57  ;;  %v4899_v62 = vadd.f32 %v4898_v4, %v9286_v10  ;;  %v4787_v26 = vpop.f32.mrb[95].mxu1  ;;  %v4900_v5 = vpop.f32.mrb[111].mxu0  ;;  %5355 = vmatmul.mubr.bf16.vlgmr.msra.gmra.mrb[120].mxu1 %v5027_v61  ;;  %5452 = vmatmul.mubr.bf16.vlgmr.msra.gmra.mrb[136].mxu0 %v5029_v44  ;;  %v4971_v21 = vmax.f32 %v4782_v7, 0.0  ;;  %v4973_v11 = vmax.f32 %v4895_v38, 0.0 }
 0xfea   : > { %v4788_v28 = vadd.f32 %v4787_v26, %v9290_v9  ;;  %v4901_v20 = vadd.f32 %v4900_v5, %v9292_v36  ;;  %v4972_v25 = vmax.f32 %v4784_v14, 0.0  ;;  %v4974_v55 = vmax.f32 %v4897_v35, 0.0 }
 0xfeb   : > { %v4975_v12 = vmax.f32 %v4786_v18, 0.0  ;;  %v4977_v32 = vmax.f32 %v4899_v62, 0.0 }
 0xfec   : > { %v4976_v24 = vmax.f32 %v4788_v28, 0.0  ;;  %v4978_v34 = vmax.f32 %v4901_v20, 0.0 }
 0xfed   : > { %v5031_v3 = vpack.c.bf16 %v4975_v12, %v4971_v21  ;;  %v5033_v50 = vpack.c.bf16 %v4977_v32, %v4973_v11 }
 0xfee   : > { %v5032_v58 = vpack.c.bf16 %v4976_v24, %v4972_v25  ;;  %v5034_v51 = vpack.c.bf16 %v4978_v34, %v4974_v55 }
 0xff0   : > { %5362 = vmatprep.mubr.bf16.mxu1 %v5032_v58  ;;  %5459 = vmatprep.mubr.bf16.mxu0 %v5034_v51 }
 0xff1   : > { %5363 = vmatmul.mubr.bf16.gmra.mrb[124].mxu1 %v5031_v3  ;;  %5460 = vmatmul.mubr.bf16.gmra.mrb[140].mxu0 %v5033_v50 }
0x100c   : > { %v4791_v39 = vpop.f32.mrb[96].mxu1  ;;  %v4904_v41 = vpop.f32.mrb[112].mxu0 }
0x100d   : > { %v4792_v30 = vadd.f32 %v4791_v39, %v9282_v57  ;;  %v4905_v47 = vadd.f32 %v4904_v41, %v9286_v10  ;;  %v4793_v31 = vpop.f32.mrb[97].mxu1  ;;  %v4906_v0 = vpop.f32.mrb[113].mxu0 }
0x100e   : > { %v4794_v45 = vadd.f32 %v4793_v31, %v9290_v9  ;;  %v4907_v6 = vadd.f32 %v4906_v0, %v9292_v36  ;;  %v4795_v48 = vpop.f32.mrb[98].mxu1  ;;  %v4908_v49 = vpop.f32.mrb[114].mxu0 }
0x100f   : > { %v4796_v23 = vadd.f32 %v4795_v48, %v9282_v57  ;;  %v4909_v29 = vadd.f32 %v4908_v49, %v9286_v10  ;;  %v4797_v61 = vpop.f32.mrb[99].mxu1  ;;  %v4910_v44 = vpop.f32.mrb[115].mxu0  ;;  %v4979_v43 = vmax.f32 %v4792_v30, 0.0  ;;  %v4981_v33 = vmax.f32 %v4905_v47, 0.0 }
0x1010   : > { %v4798_v2 = vadd.f32 %v4797_v61, %v9290_v9  ;;  %v4911_v52 = vadd.f32 %v4910_v44, %v9292_v36  ;;  %v4980_v8 = vmax.f32 %v4794_v45, 0.0  ;;  %v4982_v40 = vmax.f32 %v4907_v6, 0.0 }
0x1011   : > { %v4983_v7 = vmax.f32 %v4796_v23, 0.0  ;;  %v4985_v38 = vmax.f32 %v4909_v29, 0.0 }
0x1012   : > { %v4984_v14 = vmax.f32 %v4798_v2, 0.0  ;;  %v4986_v35 = vmax.f32 %v4911_v52, 0.0 }
0x1013   : > { %v5035_v56 = vpack.c.bf16 %v4983_v7, %v4979_v43  ;;  %v5037_v4 = vpack.c.bf16 %v4985_v38, %v4981_v33 }
0x1014   : > { %v5036_v18 = vpack.c.bf16 %v4984_v14, %v4980_v8  ;;  %v5038_v62 = vpack.c.bf16 %v4986_v35, %v4982_v40  ;;  %v4801_v26 = vpop.f32.mrb[100].mxu1  ;;  %v4914_v5 = vpop.f32.mrb[116].mxu0 }
0x1015   : > { %v4802_v28 = vadd.f32 %v4801_v26, %v9282_v57  ;;  %v4915_v20 = vadd.f32 %v4914_v5, %v9286_v10  ;;  %v4803_v21 = vpop.f32.mrb[101].mxu1  ;;  %v4916_v11 = vpop.f32.mrb[117].mxu0 }
0x1016   : > { %v4804_v12 = vadd.f32 %v4803_v21, %v9290_v9  ;;  %v4917_v32 = vadd.f32 %v4916_v11, %v9292_v36  ;;  %v4805_v25 = vpop.f32.mrb[102].mxu1  ;;  %v4918_v55 = vpop.f32.mrb[118].mxu0  ;;  %5370 = vmatprep.mubr.bf16.mxu1 %v5036_v18  ;;  %5467 = vmatprep.mubr.bf16.mxu0 %v5038_v62 }
0x1017   : > { %v4806_v24 = vadd.f32 %v4805_v25, %v9282_v57  ;;  %v4919_v34 = vadd.f32 %v4918_v55, %v9286_v10  ;;  %v4807_v3 = vpop.f32.mrb[103].mxu1  ;;  %v4920_v50 = vpop.f32.mrb[119].mxu0  ;;  %5371 = vmatmul.mubr.bf16.gmra.mrb[128].mxu1 %v5035_v56  ;;  %5468 = vmatmul.mubr.bf16.gmra.mrb[144].mxu0 %v5037_v4  ;;  %v4987_v39 = vmax.f32 %v4802_v28, 0.0  ;;  %v4989_v41 = vmax.f32 %v4915_v20, 0.0 }
0x1018   : > { %v4808_v58 = vadd.f32 %v4807_v3, %v9290_v9  ;;  %v4921_v51 = vadd.f32 %v4920_v50, %v9292_v36  ;;  %v4988_v31 = vmax.f32 %v4804_v12, 0.0  ;;  %v4990_v0 = vmax.f32 %v4917_v32, 0.0 }
0x1019   : > { %v4991_v30 = vmax.f32 %v4806_v24, 0.0  ;;  %v4993_v47 = vmax.f32 %v4919_v34, 0.0 }
0x101a   : > { %v4992_v45 = vmax.f32 %v4808_v58, 0.0  ;;  %v4994_v6 = vmax.f32 %v4921_v51, 0.0 }
0x101b   : > { %v5039_v48 = vpack.c.bf16 %v4991_v30, %v4987_v39  ;;  %v5041_v49 = vpack.c.bf16 %v4993_v47, %v4989_v41 }
0x101c   : > { %v5040_v23 = vpack.c.bf16 %v4992_v45, %v4988_v31  ;;  %v5042_v29 = vpack.c.bf16 %v4994_v6, %v4990_v0 }
0x101e   : > { %5378 = vmatprep.mubr.bf16.mxu1 %v5040_v23  ;;  %5475 = vmatprep.mubr.bf16.mxu0 %v5042_v29 }
0x101f   : > { %5379 = vmatmul.mubr.bf16.gmra.mrb[132].mxu1 %v5039_v48  ;;  %5476 = vmatmul.mubr.bf16.gmra.mrb[148].mxu0 %v5041_v49 }
0x103f   : > { %v4811_v61 = vpop.f32.mrb[104].mxu1  ;;  %v4924_v44 = vpop.f32.mrb[120].mxu0 }
0x1040   : > { %v4812_v2 = vadd.f32 %v4811_v61, %v9282_v57  ;;  %v4925_v52 = vadd.f32 %v4924_v44, %v9286_v10  ;;  %v4813_v43 = vpop.f32.mrb[105].mxu1  ;;  %v4926_v33 = vpop.f32.mrb[121].mxu0 }
0x1041   : > { %v4814_v7 = vadd.f32 %v4813_v43, %v9290_v9  ;;  %v4927_v38 = vadd.f32 %v4926_v33, %v9292_v36  ;;  %v4815_v8 = vpop.f32.mrb[106].mxu1  ;;  %v4928_v40 = vpop.f32.mrb[122].mxu0 }
0x1042   : > { %v4816_v14 = vadd.f32 %v4815_v8, %v9282_v57  ;;  %v4929_v35 = vadd.f32 %v4928_v40, %v9286_v10  ;;  %v4817_v56 = vpop.f32.mrb[107].mxu1  ;;  %v4930_v4 = vpop.f32.mrb[123].mxu0  ;;  %v4995_v26 = vmax.f32 %v4812_v2, 0.0  ;;  %v4997_v5 = vmax.f32 %v4925_v52, 0.0 }
0x1043   : > { %v4818_v18 = vadd.f32 %v4817_v56, %v9290_v9  ;;  %v4931_v62 = vadd.f32 %v4930_v4, %v9292_v36  ;;  %v4996_v21 = vmax.f32 %v4814_v7, 0.0  ;;  %v4998_v11 = vmax.f32 %v4927_v38, 0.0 }
0x1044   : > { %v4999_v28 = vmax.f32 %v4816_v14, 0.0  ;;  %v5001_v20 = vmax.f32 %v4929_v35, 0.0 }
0x1045   : > { %v5000_v12 = vmax.f32 %v4818_v18, 0.0  ;;  %v5002_v32 = vmax.f32 %v4931_v62, 0.0 }
0x1046   : > { %v5043_v25 = vpack.c.bf16 %v4999_v28, %v4995_v26  ;;  %v5045_v55 = vpack.c.bf16 %v5001_v20, %v4997_v5 }
0x1047   : > { %v5044_v24 = vpack.c.bf16 %v5000_v12, %v4996_v21  ;;  %v5046_v34 = vpack.c.bf16 %v5002_v32, %v4998_v11  ;;  %v4821_v3 = vpop.f32.mrb[108].mxu1  ;;  %v4934_v50 = vpop.f32.mrb[124].mxu0 }
0x1048   : > { %v4822_v58 = vadd.f32 %v4821_v3, %v9282_v57  ;;  %v4935_v51 = vadd.f32 %v4934_v50, %v9286_v10  ;;  %v4823_v39 = vpop.f32.mrb[109].mxu1  ;;  %v4936_v41 = vpop.f32.mrb[125].mxu0 }
0x1049   : > { %v4824_v30 = vadd.f32 %v4823_v39, %v9290_v9  ;;  %v4937_v47 = vadd.f32 %v4936_v41, %v9292_v36  ;;  %v4825_v31 = vpop.f32.mrb[110].mxu1  ;;  %v4938_v0 = vpop.f32.mrb[126].mxu0  ;;  %5386 = vmatprep.mubr.bf16.mxu1 %v5044_v24  ;;  %5483 = vmatprep.mubr.bf16.mxu0 %v5046_v34 }
0x104a   : > { %v4826_v45 = vadd.f32 %v4825_v31, %v9282_v57  ;;  %v4939_v6 = vadd.f32 %v4938_v0, %v9286_v10  ;;  %v4827_v48 = vpop.f32.mrb[111].mxu1  ;;  %v4940_v49 = vpop.f32.mrb[127].mxu0  ;;  %5387 = vmatmul.mubr.bf16.gmra.mrb[136].mxu1 %v5043_v25  ;;  %5484 = vmatmul.mubr.bf16.gmra.mrb[152].mxu0 %v5045_v55  ;;  %v5003_v61 = vmax.f32 %v4822_v58, 0.0  ;;  %v5005_v44 = vmax.f32 %v4935_v51, 0.0 }
0x104b   : > { %v4828_v23 = vadd.f32 %v4827_v48, %v9290_v9  ;;  %v4941_v29 = vadd.f32 %v4940_v49, %v9292_v36  ;;  %v5004_v43 = vmax.f32 %v4824_v30, 0.0  ;;  %v5006_v33 = vmax.f32 %v4937_v47, 0.0 }
0x104c   : > { %v5007_v2 = vmax.f32 %v4826_v45, 0.0  ;;  %v5009_v52 = vmax.f32 %v4939_v6, 0.0 }
0x104d   : > { %v5008_v7 = vmax.f32 %v4828_v23, 0.0  ;;  %v5010_v38 = vmax.f32 %v4941_v29, 0.0 }
0x104e   : > { %v5047_v8 = vpack.c.bf16 %v5007_v2, %v5003_v61  ;;  %v5049_v40 = vpack.c.bf16 %v5009_v52, %v5005_v44 }
0x104f   : > { %v5048_v14 = vpack.c.bf16 %v5008_v7, %v5004_v43  ;;  %v5050_v35 = vpack.c.bf16 %v5010_v38, %v5006_v33  ;;  %v4831_v56 = vpop.f32.mrb[112].mxu1  ;;  %v4944_v4 = vpop.f32.mrb[128].mxu0 }
0x1050   : > { %v4832_v18 = vadd.f32 %v4831_v56, %v9282_v57  ;;  %v4945_v62 = vadd.f32 %v4944_v4, %v9286_v10  ;;  %v4833_v26 = vpop.f32.mrb[113].mxu1  ;;  %v4946_v5 = vpop.f32.mrb[129].mxu0 }
0x1051   : > { %v4834_v28 = vadd.f32 %v4833_v26, %v9290_v9  ;;  %v4947_v20 = vadd.f32 %v4946_v5, %v9292_v36  ;;  %v4835_v21 = vpop.f32.mrb[114].mxu1  ;;  %v4948_v11 = vpop.f32.mrb[130].mxu0  ;;  %5394 = vmatprep.mubr.bf16.mxu1 %v5048_v14  ;;  %5491 = vmatprep.mubr.bf16.mxu0 %v5050_v35 }
0x1052   : > { %v4836_v12 = vadd.f32 %v4835_v21, %v9282_v57  ;;  %v4949_v32 = vadd.f32 %v4948_v11, %v9286_v10  ;;  %v4837_v25 = vpop.f32.mrb[115].mxu1  ;;  %v4950_v55 = vpop.f32.mrb[131].mxu0  ;;  %5395 = vmatmul.mubr.bf16.gmra.mrb[140].mxu1 %v5047_v8  ;;  %5492 = vmatmul.mubr.bf16.gmra.mrb[156].mxu0 %v5049_v40  ;;  %v5011_v3 = vmax.f32 %v4832_v18, 0.0  ;;  %v5013_v50 = vmax.f32 %v4945_v62, 0.0 }
0x1053   : > { %v4838_v24 = vadd.f32 %v4837_v25, %v9290_v9  ;;  %v4951_v34 = vadd.f32 %v4950_v55, %v9292_v36  ;;  %v5012_v39 = vmax.f32 %v4834_v28, 0.0  ;;  %v5014_v41 = vmax.f32 %v4947_v20, 0.0 }
0x1054   : > { %v5015_v58 = vmax.f32 %v4836_v12, 0.0  ;;  %v5017_v51 = vmax.f32 %v4949_v32, 0.0 }
0x1055   : > { %v5016_v30 = vmax.f32 %v4838_v24, 0.0  ;;  %v5018_v47 = vmax.f32 %v4951_v34, 0.0 }
0x1056   : > { %v5051_v31 = vpack.c.bf16 %v5015_v58, %v5011_v3  ;;  %v5053_v0 = vpack.c.bf16 %v5017_v51, %v5013_v50 }
0x1057   : > { %v5052_v45 = vpack.c.bf16 %v5016_v30, %v5012_v39  ;;  %v5054_v6 = vpack.c.bf16 %v5018_v47, %v5014_v41  ;;  %v4841_v48 = vpop.f32.mrb[116].mxu1  ;;  %v4954_v49 = vpop.f32.mrb[132].mxu0 }
0x1058   : > { %v4842_v23 = vadd.f32 %v4841_v48, %v9282_v57  ;;  %v4955_v29 = vadd.f32 %v4954_v49, %v9286_v10  ;;  %v4843_v61 = vpop.f32.mrb[117].mxu1  ;;  %v4956_v44 = vpop.f32.mrb[133].mxu0 }
0x1059   : > { %v4844_v2 = vadd.f32 %v4843_v61, %v9290_v9  ;;  %v4957_v52 = vadd.f32 %v4956_v44, %v9292_v36  ;;  %v4845_v43 = vpop.f32.mrb[118].mxu1  ;;  %v4958_v33 = vpop.f32.mrb[134].mxu0  ;;  %5402 = vmatprep.mubr.bf16.mxu1 %v5052_v45  ;;  %5499 = vmatprep.mubr.bf16.mxu0 %v5054_v6 }
0x105a   : > { %v4846_v7 = vadd.f32 %v4845_v43, %v9282_v57  ;;  %v4959_v38 = vadd.f32 %v4958_v33, %v9286_v10  ;;  %v4847_v8 = vpop.f32.mrb[119].mxu1  ;;  %v4960_v40 = vpop.f32.mrb[135].mxu0  ;;  %5403 = vmatmul.mubr.bf16.gmra.mrb[144].mxu1 %v5051_v31  ;;  %5500 = vmatmul.mubr.bf16.gmra.mrb[160].mxu0 %v5053_v0  ;;  %v5019_v56 = vmax.f32 %v4842_v23, 0.0  ;;  %v5021_v4 = vmax.f32 %v4955_v29, 0.0 }
0x105b   : > { %v4848_v14 = vadd.f32 %v4847_v8, %v9290_v9  ;;  %v4961_v35 = vadd.f32 %v4960_v40, %v9292_v36  ;;  %v5020_v26 = vmax.f32 %v4844_v2, 0.0  ;;  %v5022_v5 = vmax.f32 %v4957_v52, 0.0  ;;  %v9361_v36 = vld [vmem:[%s9478_s12] ss:$0 sm:$0xff] }
0x105c   : > { %v5023_v18 = vmax.f32 %v4846_v7, 0.0  ;;  %v5025_v62 = vmax.f32 %v4959_v38, 0.0 }
0x105d   : > { %v5024_v28 = vmax.f32 %v4848_v14, 0.0  ;;  %v5026_v20 = vmax.f32 %v4961_v35, 0.0 }
0x105e   : > { %v5055_v21 = vpack.c.bf16 %v5023_v18, %v5019_v56  ;;  %v5057_v57 = vpack.c.bf16 %v5025_v62, %v5021_v4 }
0x105f   : > { %v5056_v11 = vpack.c.bf16 %v5024_v28, %v5020_v26  ;;  %v5058_v10 = vpack.c.bf16 %v5026_v20, %v5022_v5 }
0x1061   : > { %5410 = vmatprep.mubr.bf16.mxu1 %v5056_v11  ;;  %5507 = vmatprep.mubr.bf16.mxu0 %v5058_v10 }
0x1062   : > { %5411 = vmatmul.mubr.bf16.gmra.mrb[148].mxu1 %v5055_v21  ;;  %5508 = vmatmul.mubr.bf16.gmra.mrb[164].mxu0 %v5057_v57 }
0x10bc   : > { %v5998_v12 = vpop.f32.mrb[120].mxu1  ;;  %v6062_v9 = vpop.f32.mrb[136].mxu0 }
0x10bd   : > { %v5999_v32 = vpop.f32.mrb[121].mxu1  ;;  %v6063_v25 = vpop.f32.mrb[137].mxu0 }
0x10be   : > { %v6000_v55 = vadd.f32 %v5999_v32, %v5998_v12  ;;  %v6064_v24 = vadd.f32 %v6063_v25, %v6062_v9  ;;  %v6001_v34 = vpop.f32.mrb[122].mxu1  ;;  %v6065_v3 = vpop.f32.mrb[138].mxu0 }
0x10bf   : > { %v6002_v50 = vpop.f32.mrb[123].mxu1  ;;  %v6066_v58 = vpop.f32.mrb[139].mxu0 }
0x10c0   : > { %v5357_v51 = vadd.f32 %v6000_v55, %v9361_v36  ;;  %v6003_v39 = vadd.f32 %v6002_v50, %v6001_v34  ;;  %v6067_v41 = vadd.f32 %v6066_v58, %v6065_v3 }
0x10c2   : > { %v5454_v30 = vadd.f32 %v6064_v24, %v5357_v51  ;;  %v5360_v47 = vadd.f32 %v6003_v39, %v9361_v36 }
0x10c4   : > { %v5516_v31 = vadd.f32 %v5454_v30, %v8855_v1  ;;  %v5457_v0 = vadd.f32 %v6067_v41, %v5360_v47  ;;  %v6004_v45 = vpop.f32.mrb[124].mxu1  ;;  %v6068_v6 = vpop.f32.mrb[140].mxu0 }
0x10c5   : > { %v6005_v48 = vpop.f32.mrb[125].mxu1  ;;  %v6069_v49 = vpop.f32.mrb[141].mxu0 }
0x10c6   : > { %5532 = vst [vmem:[%s9368_s16] sm:$0xff] %v5516_v31  ;;  %v5517_v23 = vadd.f32 %v5457_v0, %v8859_v37  ;;  %v6006_v29 = vadd.f32 %v6005_v48, %v6004_v45  ;;  %v6070_v61 = vadd.f32 %v6069_v49, %v6068_v6  ;;  %v6007_v44 = vpop.f32.mrb[126].mxu1  ;;  %v6071_v2 = vpop.f32.mrb[142].mxu0 }
0x10c7   : > { %v6008_v1 = vpop.f32.mrb[127].mxu1  ;;  %v6072_v52 = vpop.f32.mrb[143].mxu0 }
0x10c8   : > { %5533 = vst [vmem:[%s9368_s16 + $0x8] sm:$0xff] %v5517_v23  ;;  %v5365_v43 = vadd.f32 %v6006_v29, %v9361_v36  ;;  %v6009_v33 = vadd.f32 %v6008_v1, %v6007_v44  ;;  %v6073_v7 = vadd.f32 %v6072_v52, %v6071_v2 }
0x10ca   : > { %v5462_v38 = vadd.f32 %v6070_v61, %v5365_v43  ;;  %v5368_v8 = vadd.f32 %v6009_v33, %v9361_v36 }
0x10cc   : > { %v5518_v40 = vadd.f32 %v5462_v38, %v8863_v27  ;;  %v5465_v14 = vadd.f32 %v6073_v7, %v5368_v8 }
0x10ce   : > { %5534 = vst [vmem:[%s9368_s16 + $0x10] sm:$0xff] %v5518_v40  ;;  %v5519_v37 = vadd.f32 %v5465_v14, %v8869_v46 }
0x10d0   : > { %5535 = vst [vmem:[%s9368_s16 + $0x18] sm:$0xff] %v5519_v37 }
0x10ea   : > { %v6010_v35 = vpop.f32.mrb[128].mxu1  ;;  %v6074_v56 = vpop.f32.mrb[144].mxu0 }
0x10eb   : > { %v6011_v4 = vpop.f32.mrb[129].mxu1  ;;  %v6075_v18 = vpop.f32.mrb[145].mxu0 }
0x10ec   : > { %v6012_v62 = vadd.f32 %v6011_v4, %v6010_v35  ;;  %v6076_v26 = vadd.f32 %v6075_v18, %v6074_v56  ;;  %v6013_v5 = vpop.f32.mrb[130].mxu1  ;;  %v6077_v28 = vpop.f32.mrb[146].mxu0 }
0x10ed   : > { %v6014_v20 = vpop.f32.mrb[131].mxu1  ;;  %v6078_v21 = vpop.f32.mrb[147].mxu0 }
0x10ee   : > { %v5373_v57 = vadd.f32 %v6012_v62, %v9361_v36  ;;  %v6015_v11 = vadd.f32 %v6014_v20, %v6013_v5  ;;  %v6079_v27 = vadd.f32 %v6078_v21, %v6077_v28 }
0x10f0   : > { %v5470_v10 = vadd.f32 %v6076_v26, %v5373_v57  ;;  %v5376_v46 = vadd.f32 %v6015_v11, %v9361_v36 }
0x10f2   : > { %v5520_v12 = vadd.f32 %v5470_v10, %v8875_v13  ;;  %v5473_v9 = vadd.f32 %v6079_v27, %v5376_v46  ;;  %v6016_v32 = vpop.f32.mrb[132].mxu1  ;;  %v6080_v25 = vpop.f32.mrb[148].mxu0 }
0x10f3   : > { %v6017_v55 = vpop.f32.mrb[133].mxu1  ;;  %v6081_v24 = vpop.f32.mrb[149].mxu0 }
0x10f4   : > { %5536 = vst [vmem:[%s9368_s16 + $0x20] sm:$0xff] %v5520_v12  ;;  %v5521_v34 = vadd.f32 %v5473_v9, %v8880_v15  ;;  %v6018_v3 = vadd.f32 %v6017_v55, %v6016_v32  ;;  %v6082_v50 = vadd.f32 %v6081_v24, %v6080_v25  ;;  %v6019_v58 = vpop.f32.mrb[134].mxu1  ;;  %v6083_v51 = vpop.f32.mrb[150].mxu0 }
0x10f5   : > { %v6020_v39 = vpop.f32.mrb[135].mxu1  ;;  %v6084_v41 = vpop.f32.mrb[151].mxu0 }
0x10f6   : > { %5537 = vst [vmem:[%s9368_s16 + $0x28] sm:$0xff] %v5521_v34  ;;  %v5381_v30 = vadd.f32 %v6018_v3, %v9361_v36  ;;  %v6021_v13 = vadd.f32 %v6020_v39, %v6019_v58  ;;  %v6085_v47 = vadd.f32 %v6084_v41, %v6083_v51 }
0x10f8   : > { %v5478_v31 = vadd.f32 %v6082_v50, %v5381_v30  ;;  %v5384_v0 = vadd.f32 %v6021_v13, %v9361_v36 }
0x10fa   : > { %v5522_v45 = vadd.f32 %v5478_v31, %v8884_v42  ;;  %v5481_v6 = vadd.f32 %v6085_v47, %v5384_v0 }
0x10fc   : > { %5538 = vst [vmem:[%s9368_s16 + $0x30] sm:$0xff] %v5522_v45  ;;  %v5523_v15 = vadd.f32 %v5481_v6, %v8888_v63 }
0x10fe   : > { %5539 = vst [vmem:[%s9368_s16 + $0x38] sm:$0xff] %v5523_v15 }
0x111d   : > { %v6022_v48 = vpop.f32.mrb[136].mxu1  ;;  %v6086_v49 = vpop.f32.mrb[152].mxu0 }
0x111e   : > { %v6023_v23 = vpop.f32.mrb[137].mxu1  ;;  %v6087_v29 = vpop.f32.mrb[153].mxu0 }
0x111f   : > { %v6024_v61 = vadd.f32 %v6023_v23, %v6022_v48  ;;  %v6088_v44 = vadd.f32 %v6087_v29, %v6086_v49  ;;  %v6025_v2 = vpop.f32.mrb[138].mxu1  ;;  %v6089_v1 = vpop.f32.mrb[154].mxu0 }
0x1120   : > { %v6026_v52 = vpop.f32.mrb[139].mxu1  ;;  %v6090_v43 = vpop.f32.mrb[155].mxu0 }
0x1121   : > { %v5389_v33 = vadd.f32 %v6024_v61, %v9361_v36  ;;  %v6027_v7 = vadd.f32 %v6026_v52, %v6025_v2  ;;  %v6091_v42 = vadd.f32 %v6090_v43, %v6089_v1 }
0x1123   : > { %v5486_v38 = vadd.f32 %v6088_v44, %v5389_v33  ;;  %v5392_v63 = vadd.f32 %v6027_v7, %v9361_v36 }
0x1125   : > { %v5524_v8 = vadd.f32 %v5486_v38, %v8895_v22  ;;  %v5489_v40 = vadd.f32 %v6091_v42, %v5392_v63  ;;  %v6028_v14 = vpop.f32.mrb[140].mxu1  ;;  %v6092_v37 = vpop.f32.mrb[156].mxu0 }
0x1126   : > { %v6029_v35 = vpop.f32.mrb[141].mxu1  ;;  %v6093_v56 = vpop.f32.mrb[157].mxu0 }
0x1127   : > { %5540 = vst [vmem:[%s9368_s16 + $0x40] sm:$0xff] %v5524_v8  ;;  %v5525_v4 = vadd.f32 %v5489_v40, %v8900_v59  ;;  %v6030_v18 = vadd.f32 %v6029_v35, %v6028_v14  ;;  %v6094_v62 = vadd.f32 %v6093_v56, %v6092_v37  ;;  %v6031_v26 = vpop.f32.mrb[142].mxu1  ;;  %v6095_v5 = vpop.f32.mrb[158].mxu0 }
0x1128   : > { %v6032_v28 = vpop.f32.mrb[143].mxu1  ;;  %v6096_v20 = vpop.f32.mrb[159].mxu0 }
0x1129   : > { %5541 = vst [vmem:[%s9368_s16 + $0x48] sm:$0xff] %v5525_v4  ;;  %v5397_v21 = vadd.f32 %v6030_v18, %v9361_v36  ;;  %v6033_v57 = vadd.f32 %v6032_v28, %v6031_v26  ;;  %v6097_v22 = vadd.f32 %v6096_v20, %v6095_v5 }
0x112b   : > { %v5494_v11 = vadd.f32 %v6094_v62, %v5397_v21  ;;  %v5400_v27 = vadd.f32 %v6033_v57, %v9361_v36 }
0x112d   : > { %v5526_v10 = vadd.f32 %v5494_v11, %v8904_v17  ;;  %v5497_v46 = vadd.f32 %v6097_v22, %v5400_v27  ;;  %v6034_v59 = vpop.f32.mrb[144].mxu1  ;;  %v6098_v12 = vpop.f32.mrb[160].mxu0 }
0x112e   : > { %v6035_v9 = vpop.f32.mrb[145].mxu1  ;;  %v6099_v32 = vpop.f32.mrb[161].mxu0 }
0x112f   : > { %5542 = vst [vmem:[%s9368_s16 + $0x50] sm:$0xff] %v5526_v10  ;;  %v5527_v25 = vadd.f32 %v5497_v46, %v8908_v54  ;;  %v6036_v55 = vadd.f32 %v6035_v9, %v6034_v59  ;;  %v6100_v24 = vadd.f32 %v6099_v32, %v6098_v12  ;;  %v6037_v34 = vpop.f32.mrb[146].mxu1  ;;  %v6101_v3 = vpop.f32.mrb[162].mxu0 }
0x1130   : > { %v6038_v50 = vpop.f32.mrb[147].mxu1  ;;  %v6102_v58 = vpop.f32.mrb[163].mxu0 }
0x1131   : > { %5543 = vst [vmem:[%s9368_s16 + $0x58] sm:$0xff] %v5527_v25  ;;  %v5405_v51 = vadd.f32 %v6036_v55, %v9361_v36  ;;  %v6039_v39 = vadd.f32 %v6038_v50, %v6037_v34  ;;  %v6103_v17 = vadd.f32 %v6102_v58, %v6101_v3 }
0x1133   : > { %v5502_v41 = vadd.f32 %v6100_v24, %v5405_v51  ;;  %v5408_v30 = vadd.f32 %v6039_v39, %v9361_v36 }
0x1135   : > { %v5528_v13 = vadd.f32 %v5502_v41, %v8915_v60  ;;  %v5505_v47 = vadd.f32 %v6103_v17, %v5408_v30  ;;  %v6040_v54 = vpop.f32.mrb[148].mxu1  ;;  %v6104_v31 = vpop.f32.mrb[164].mxu0 }
0x1136   : > { %v6041_v0 = vpop.f32.mrb[149].mxu1  ;;  %v6105_v45 = vpop.f32.mrb[165].mxu0 }
0x1137   : > { %5544 = vst [vmem:[%s9368_s16 + $0x60] sm:$0xff] %v5528_v13  ;;  %v5529_v6 = vadd.f32 %v5505_v47, %v8920_v53  ;;  %v6042_v15 = vadd.f32 %v6041_v0, %v6040_v54  ;;  %v6106_v48 = vadd.f32 %v6105_v45, %v6104_v31  ;;  %v6043_v49 = vpop.f32.mrb[150].mxu1  ;;  %v6107_v23 = vpop.f32.mrb[166].mxu0 }
0x1138   : > { %v6044_v29 = vpop.f32.mrb[151].mxu1  ;;  %v6108_v61 = vpop.f32.mrb[167].mxu0 }
0x1139   : > { %5545 = vst [vmem:[%s9368_s16 + $0x68] sm:$0xff] %v5529_v6  ;;  %v5413_v60 = vadd.f32 %v6042_v15, %v9361_v36  ;;  %v6045_v44 = vadd.f32 %v6044_v29, %v6043_v49  ;;  %v6109_v2 = vadd.f32 %v6108_v61, %v6107_v23 }
0x113b   : > { %v5510_v1 = vadd.f32 %v6106_v48, %v5413_v60  ;;  %v5416_v52 = vadd.f32 %v6045_v44, %v9361_v36 }
0x113d   : > { %v5530_v53 = vadd.f32 %v5510_v1, %v8924_v19  ;;  %v5513_v43 = vadd.f32 %v6109_v2, %v5416_v52 }
0x113f   : > { %5546 = vst [vmem:[%s9368_s16 + $0x70] sm:$0xff] %v5530_v53  ;;  %v5531_v33 = vadd.f32 %v5513_v43, %v8928_v16 }
0x1141   : > { %5547 = vst [vmem:[%s9368_s16 + $0x78] sm:$0xff] %v5531_v33 }
0x1142   : > { %7015 = shalt.err (!%p7012_p2)
}
0x1143   : > { %s7016_s19 = scalar_lea.hbm %s9417_s25, 2048  ;;  %s7020_s27 = scalar_lea.hbm %s9479_s13, 4096 }
0x1144   : > { %p7017_p4 = scmp.ne.s32.totalorder %s9417_s25, %s7016_s19  ;;  %p7021_p9 = scmp.lt.u32.totalorder %s9417_s25, %s9479_s13 }
0x1145   : > { %p7022_p1 = scmp.lt.u32.totalorder %s7020_s27, %s7016_s19  ;;  %p7024_p6 = scmp.lt.u32.totalorder %s7016_s19, %s9417_s25 }
0x1146   : > { %p7018_p5 = pnand %p7017_p4, %p9544_p11 }
0x1147   : > { %p7023_p3 = por %p7022_p1, %p7021_p9 }
0x1148   : > { %p7019_p7 = pneg %p7018_p5 }
0x1149   : > { %p7025_p12 = por %p7024_p6, %p7023_p3 }
0x114b   : > { %p7026_p13 = pnand %p7025_p12, %p7019_p7 }
0x114d   : > { %7029 = shalt.err (!%p7026_p13)
}
0x114e   : > { %s7078_s29 = smov 128   ;;  %s7079_s14 = smov 8  }
0x114f   : > { %6464 = dma.vmem_to_hbm [thread:$0]  (%p9544_p11), %s9419_s15, 2048, %s9417_s25, %s5549_s22, %s7078_s29, %s7078_s29, %s7079_s14  }
0x1150 PF: > { %s9545_s17 = sld [smem:[#allocation9_spill]]  ;;  %p9546_p8 = scmp.ne.s32.totalorder %s9509_s21, 0 }
0x1151   : > { %p9547_p10 = scmp.ge.s32.totalorder %s7068_s28, 2 }
0x1153   : > { %p6471_p0 = pnand %p9547_p10, %p9546_p8 }
0x1156   : > { %s5578_s16 = sand.u32 1, %s9545_s17  }
0x1157   : > { %s5579_s19 = scalar_lea.sflag [#allocation5], %s5578_s16 }
0x1158   : > { %7051 = dma.done.wait (!%p6471_p0), %s5579_s19, 2048  }
0x1159   : > { %7053 = vsyncadd (!%p6471_p0), %s5579_s19, 4294965248  ;;  %s9548_s28 = sld [smem:[#allocation11_spill]]  ;;  %s9549_s23 = sld [smem:[#allocation10_spill]] }
0x115a   : > { %s9550_s27 = sld [smem:[#allocation12_spill]]  ;;  %s9551_s25 = smov %s7060_s26 }
0x115f   : > { %p26_p2 = scmp.ge.s32.totalorder %s9548_s28, 4   ;;  %s9552_s26 = smov %s9549_s23 }
0x1161   :  { %28 = sbr.rel (!%p26_p2) target bundleno = 5 (0x5), region = 117 }
0x1168   :  { %5584 = vsyncpa [#allocation4], 1 }
0x1169   :  { %5586 = vsyncpa [#allocation4 + $0x1], 1 }
0x116a   :  { %5587 = vsyncpa [#allocation5], 1 }
0x116b   :  { %5589 = vsyncpa [#allocation5 + $0x1], 1 }

// kernel: forward.2
= control target key start
LH: loop header
LB: loop body
LE: loop exit
PB: predicated region body
PF: predicated region fallthrough
CT: control target
= control target key end

     0   :  { %s9513_s0 = inlined_call_operand.hbm [shape: f32[8,32,128], index: 0, kind: input, shape index: {}, may-alias: {0,13}]   ;;  %s9514_s1 = inlined_call_operand.vmem [shape: f32[1,128], index: 1, kind: input, shape index: {}]   ;;  %s9515_s2 = inlined_call_operand.vmem [shape: f32[1,128], index: 2, kind: input, shape index: {}]   ;;  %s9516_s3 = inlined_call_operand.hbm [shape: bf16[128,384], index: 3, kind: input, shape index: {}]   ;;  %s9517_s4 = inlined_call_operand.vmem [shape: f32[1,384], index: 4, kind: input, shape index: {}]   ;;  %s9518_s5 = inlined_call_operand.vmem [shape: bf16[128,128], index: 5, kind: input, shape index: {}]   ;;  %s9519_s6 = inlined_call_operand.vmem [shape: f32[1,128], index: 6, kind: input, shape index: {}]   ;;  %s9520_s7 = inlined_call_operand.vmem [shape: f32[1,128], index: 7, kind: input, shape index: {}]   ;;  %s9521_s8 = inlined_call_operand.vmem [shape: f32[1,128], index: 8, kind: input, shape index: {}]   ;;  %s9522_s9 = inlined_call_operand.hbm [shape: bf16[128,512], index: 9, kind: input, shape index: {}]   ;;  %s9523_s10 = inlined_call_operand.vmem [shape: f32[1,512], index: 10, kind: input, shape index: {}]   ;;  %s9524_s11 = inlined_call_operand.hbm [shape: bf16[512,128], index: 11, kind: input, shape index: {}]   ;;  %s9525_s12 = inlined_call_operand.vmem [shape: f32[1,128], index: 12, kind: input, shape index: {}]   ;;  %s9526_s13 = inlined_call_operand.hbm [shape: f32[8,32,128], index: 13, kind: output, shape index: {}, may-alias: {0,13}]  }
   0x1   :  { %9547 = sst [smem:[#allocation26_spill]] %s9516_s3 }
   0x2   :  { %9548 = sst [smem:[#allocation27_spill]] %s9521_s8 }
   0x3   :  { %9549 = sst [smem:[#allocation28_spill]] %s9523_s10 }
   0x4   :  { %9550 = sst [smem:[#allocation29_spill]] %s9525_s12 }
   0x5   :  { %9551 = sst [smem:[#allocation30_spill]] %s9526_s13 }
   0x6   :  { %18 = vsyncpa [#allocation4], 0 }
   0x7   :  { %20 = vsyncpa [#allocation4 + $0x1], 0 }
   0x8   :  { %21 = vsyncpa [#allocation7], 0 }
   0x9   :  { %22 = vsyncpa [#allocation10], 0 }
   0xa   :  { %23 = vsyncpa [#allocation5], 0 }
   0xb   :  { %25 = vsyncpa [#allocation5 + $0x1], 0  ;;  %s7367_s25 = smov 0   ;;  %s7369_s26 = smov 0  }
   0xc   :  { %s7371_s27 = smov 0   ;;  %s7373_s28 = smov 0  }
   0xd LB: > { %9552 = sst [smem:[#allocation16_spill]] %s7264_s25  ;;  %s7388_s29 = sadd.s32 4294967295, %s7276_s28   ;;  %s7276_s28 = sphi %s7373_s28, %s9611_s28   ;;  %s7272_s27 = sphi %s7371_s27, %s9610_s27   ;;  %s7268_s26 = sphi %s7369_s26, %s9609_s26   ;;  %s7264_s25 = sphi %s7367_s25, %s9608_s25  }
   0xe   : > { %s5709_s30 = sadd.s32 4294967294, %s7276_s28   ;;  %p51_p0 = scmp.ne.s32.totalorder %s7268_s26, %s7264_s25 }
   0xf   : > { %p9529_p1 = scmp.eq.s32.totalorder %s7388_s29, 0  ;;  %p333_p3 = scmp.eq.s32.totalorder %s5709_s30, 1 }
  0x10   : > { %p5710_p5 = scmp.ge.s32.totalorder %s7276_s28, 1  ;;  %p340_p7 = scmp.lt.s32.totalorder %s7276_s28, 3 }
  0x11   : > { %p7397_p4 = por %p9529_p1, %p51_p0  ;;  %p7402_p6 = por %p333_p3, %p51_p0 }
  0x12   : > { %p7407_p8 = pnand %p5710_p5, %p340_p7  ;;  %s7278_s17 = smov [#allocation6]  }
  0x13   : > { %s9553_s14 = scalar_select %p7397_p4, 1, 0 }
  0x14   : > { %s9554_s15 = scalar_select %p7402_p6, 1, 0 }
  0x15   : > { %s9556_s16 = scalar_select %p7407_p8, 1, 0 }
  0x16   : > { %9555 = sst [smem:[#allocation17_spill]] %s9554_s15  ;;  %s358_s18 = sshll.u32 %s7278_s17, 4  ;;  %s7411_s18 = int_to_ptr.vmem [resolvable:$true] %s358_s18 }
  0x17   : > { %p6557_p9 = pneg %p7407_p8  ;;  %s7279_s20 = smov [#allocation8]  }
  0x18   : > { %s386_s21 = sshll.u32 %s7279_s20, 4  ;;  %s9558_s3 = sld [smem:[#allocation26_spill]]  ;;  %s7422_s21 = int_to_ptr.vmem [resolvable:$true] %s386_s21 }
  0x19   : > { %p7418_p11 = pnand %p6557_p9, %p9529_p1 }
  0x1b   : > { %p7432_p13 = pneg %p7418_p11 }
  0x1e   : > { %s7088_s24 = scalar_lea.hbm %s9558_s3, 3072 }
  0x1f   : > { %p7089_p12 = scmp.ne.s32.totalorder %s9558_s3, %s7088_s24  ;;  %p7095_p5 = scmp.lt.u32.totalorder %s7088_s24, %s9558_s3 }
  0x21   : > { %p7091_p0 = pnand %p7432_p13, %p7089_p12 }
  0x23   : > { %p7092_p3 = pneg %p7091_p0 }
  0x25   : > { %p7097_p7 = pnand %p7095_p5, %p7092_p3 }
  0x27   : > { %7100 = shalt.err (!%p7097_p7)
}
  0x28   : > { %s7101_s22 = scalar_lea.vmem %s7411_s18, 3072  ;;  %p7109_p2 = scmp.lt.s32.totalorder %s7411_s18, %s7411_s18 }
  0x29   : > { %p7102_p9 = scmp.ne.s32.totalorder %s7411_s18, %s7101_s22  ;;  %p7110_p6 = scmp.lt.s32.totalorder %s7101_s22, %s7101_s22 }
  0x2b   : > { %p7104_p10 = pnand %p7102_p9, %p7432_p13  ;;  %p7111_p12 = por %p7110_p6, %p7109_p2 }
  0x2d   : > { %p7105_p1 = pneg %p7104_p10 }
  0x2f   : > { %p7112_p0 = pnand %p7111_p12, %p7105_p1 }
  0x31   : > { %7115 = shalt.err (!%p7112_p0)
}
  0x32   : > { %s7280_s23 = smov 192   ;;  %s7281_s25 = smov 12  }
  0x33   : > { %6560 = dma.hbm_to_vmem [thread:$0]  (!%p7418_p11), %s9558_s3, 3072, %s7411_s18, [#allocation7], %s7280_s23, %s7280_s23, %s7281_s25  }
  0x34   : > { %s7116_s13 = scalar_lea.hbm %s9522_s9, 4096 }
  0x35   : > { %p7117_p2 = scmp.ne.s32.totalorder %s9522_s9, %s7116_s13  ;;  %p7123_p10 = scmp.lt.u32.totalorder %s7116_s13, %s9522_s9 }
  0x37   : > { %p7119_p1 = pnand %p7117_p2, %p7432_p13 }
  0x39   : > { %p7120_p6 = pneg %p7119_p1 }
  0x3b   : > { %p7125_p3 = pnand %p7123_p10, %p7120_p6 }
  0x3d   : > { %7128 = shalt.err (!%p7125_p3)
}
  0x3e   : > { %s7129_s18 = scalar_lea.vmem %s7422_s21, 4096  ;;  %p7137_p12 = scmp.lt.s32.totalorder %s7422_s21, %s7422_s21 }
  0x3f   : > { %p7130_p5 = scmp.ne.s32.totalorder %s7422_s21, %s7129_s18  ;;  %p7138_p0 = scmp.lt.s32.totalorder %s7129_s18, %s7129_s18 }
  0x41   : > { %p7132_p7 = pnand %p7130_p5, %p7432_p13  ;;  %p7139_p2 = por %p7138_p0, %p7137_p12 }
  0x43   : > { %p7133_p9 = pneg %p7132_p7 }
  0x45   : > { %p7140_p1 = pnand %p7139_p2, %p7133_p9 }
  0x47   : > { %7143 = shalt.err (!%p7140_p1)
}
  0x48   : > { %s7282_s10 = smov 256   ;;  %s7283_s8 = smov 16  }
  0x49   : > { %6563 = dma.hbm_to_vmem [thread:$0]  (!%p7418_p11), %s9522_s9, 4096, %s7422_s21, [#allocation7], %s7282_s10, %s7282_s10, %s7283_s8  }
  0x4a   : > { %s7284_s23 = smov [#allocation9]   ;;  %s7144_s17 = scalar_lea.hbm %s9524_s11, 4096 }
  0x4b   : > { %s402_s25 = sshll.u32 %s7284_s23, 4  ;;  %p7145_p6 = scmp.ne.s32.totalorder %s9524_s11, %s7144_s17  ;;  %s403_s25 = int_to_ptr.vmem [resolvable:$true] %s402_s25 }
  0x4c   : > { %p7151_p5 = scmp.lt.u32.totalorder %s7144_s17, %s9524_s11 }
  0x4d   : > { %p7147_p10 = pnand %p7145_p6, %p7432_p13 }
  0x4f   : > { %p7148_p3 = pneg %p7147_p10 }
  0x51   : > { %p7153_p7 = pnand %p7151_p5, %p7148_p3 }
  0x53   : > { %7156 = shalt.err (!%p7153_p7)
}
  0x54   : > { %s7157_s21 = scalar_lea.vmem %s403_s25, 4096  ;;  %p7165_p2 = scmp.lt.s32.totalorder %s403_s25, %s403_s25 }
  0x55   : > { %p7158_p9 = scmp.ne.s32.totalorder %s403_s25, %s7157_s21  ;;  %p7166_p1 = scmp.lt.s32.totalorder %s7157_s21, %s7157_s21 }
  0x57   : > { %p7160_p12 = pnand %p7158_p9, %p7432_p13  ;;  %p7167_p4 = por %p7166_p1, %p7165_p2 }
  0x59   : > { %p7161_p0 = pneg %p7160_p12 }
  0x5b   : > { %p7168_p8 = pnand %p7167_p4, %p7161_p0 }
  0x5d   : > { %7171 = shalt.err (!%p7168_p8)
}
  0x5e   : > { %s7285_s10 = smov 64   ;;  %s7286_s3 = smov 4  }
  0x5f   : > { %6566 = dma.hbm_to_vmem [thread:$0]  (!%p7418_p11), %s9524_s11, 4096, %s403_s25, [#allocation10], %s7285_s10, %s7285_s10, %s7286_s3  }
  0x60   : > { %s7495_s12 = sadd.s32 1, %s7276_s28   ;;  %s38_s23 = sadd.s32 1, %s7272_s27 }
  0x61   : > { %s35_s13 = ssub.s32 %s7276_s28, %s7495_s12  ;;  %p45_p8 = scmp.ne.s32.totalorder %s7272_s27, %s7268_s26 }
  0x62   : > { %p36_p4 = scmp.eq.s32.totalorder %s35_s13, 0  ;;  %p46_p13 = scmp.eq.s32.totalorder %s7276_s28, 0 }
  0x63   : > { %p6578_p6 = scmp.lt.s32.totalorder %s7276_s28, 2  ;;  %p9560_p3 = scmp.eq.s32.totalorder %s7388_s29, 1 }
  0x64   : > { %s7505_s24 = scalar_select %p36_p4, %s7272_s27, %s38_s23  }
  0x65   : > { %p47_p10 = por %p46_p13, %p45_p8  ;;  %p7509_p5 = por %p9560_p3, %p45_p8 }
  0x66   : > { %s419_s19 = sand.u32 1, %s7272_s27   ;;  %s5898_s17 = sshll.u32 %s7276_s28, 11 }
  0x67   : > { %s5715_s25 = sshll.u32 %s419_s19, 7  ;;  %s7518_s18 = scalar_lea.hbm %s9513_s0, %s5898_s17 }
  0x68   : > { %s423_s21 = scalar_lea.vmem [#allocation3], %s5715_s25  ;;  %p7520_p11 = pnand %p6578_p6, %p47_p10 }
  0x69   : > { %s431_s10 = sshll.u32 %s423_s21, 4  ;;  %s7526_s15 = scalar_lea.sflag [#allocation4], %s419_s19  ;;  %s7524_s10 = int_to_ptr.vmem [resolvable:$true] %s431_s10 }
  0x6a   : > { %s7172_s8 = scalar_lea.hbm %s7518_s18, 2048  ;;  %p7174_p9 = pneg %p7520_p11 }
  0x6b   : > { %p7173_p7 = scmp.ne.s32.totalorder %s7518_s18, %s7172_s8  ;;  %s7177_s17 = scalar_lea.hbm %s9513_s0, 4096 }
  0x6c   : > { %p7178_p2 = scmp.lt.u32.totalorder %s7518_s18, %s9513_s0  ;;  %p7179_p1 = scmp.lt.u32.totalorder %s7177_s17, %s7172_s8 }
  0x6d   : > { %p7175_p12 = pnand %p7174_p9, %p7173_p7  ;;  %p7181_p8 = scmp.lt.u32.totalorder %s7172_s8, %s7518_s18 }
  0x6e   : > { %p7180_p4 = por %p7179_p1, %p7178_p2 }
  0x6f   : > { %p7176_p0 = pneg %p7175_p12 }
  0x70   : > { %p7182_p13 = por %p7181_p8, %p7180_p4 }
  0x72   : > { %p7183_p6 = pnand %p7182_p13, %p7176_p0 }
  0x74   : > { %7186 = shalt.err (!%p7183_p6)
}
  0x75   : > { %s7187_s19 = scalar_lea.vmem %s7524_s10, 2048  ;;  %s7287_s22 = smov [#allocation3]  }
  0x76   : > { %p7188_p10 = scmp.ne.s32.totalorder %s7524_s10, %s7187_s19  ;;  %s7192_s21 = sshll.u32 %s7287_s22, 4  ;;  %s7193_s21 = int_to_ptr.vmem [resolvable:$false] %s7192_s21 }
  0x77   : > { %s7194_s13 = scalar_lea.vmem %s7193_s21, 4096  ;;  %p7195_p12 = scmp.lt.s32.totalorder %s7524_s10, %s7193_s21 }
  0x78   : > { %p7190_p3 = pnand %p7188_p10, %p7174_p9  ;;  %p7196_p2 = scmp.lt.s32.totalorder %s7194_s13, %s7187_s19 }
  0x7a   : > { %p7191_p7 = pneg %p7190_p3  ;;  %p7197_p1 = por %p7196_p2, %p7195_p12 }
  0x7c   : > { %p7198_p4 = pnand %p7197_p1, %p7191_p7 }
  0x7e   : > { %7201 = shalt.err (!%p7198_p4)
}
  0x7f   : > { %s7288_s8 = smov 128   ;;  %s7289_s23 = smov 8  }
  0x80   : > { %6570 = dma.hbm_to_vmem [thread:$0]  (!%p7520_p11), %s7518_s18, 2048, %s7524_s10, %s7526_s15, %s7288_s8, %s7288_s8, %s7289_s23  }
  0x81   : > { %p9563_p9 = scmp.ne.s32.totalorder %s9556_s16, 0 }
  0x83   : > { %443 = sbr.rel (%p9563_p9) target bundleno = 4520 (0x11a8), region = 72 }
  0x8a   : > { %s7557_s17 = sand.u32 1, %s7268_s26   ;;  %p9564_p0 = scmp.ne.s32.totalorder %s9553_s14, 0 }
  0x8b   : > { %s5720_s25 = sshll.u32 %s7557_s17, 7  ;;  %s446_s20 = scalar_lea.sflag [#allocation4], %s7557_s17 }
  0x8c   : > { %s7563_s19 = scalar_lea.vmem [#allocation3], %s5720_s25 }
  0x8d   : > { %7247 = dma.done.wait (%p9564_p0), %s446_s20, 2048  }
  0x8e   : > { %7249 = vsyncadd (%p9564_p0), %s446_s20, 4294965248  ;;  %p9565_p11 = scmp.eq.s32.totalorder %s7388_s29, 0 }
  0x90   : > { %7251 = dma.done.wait (%p9565_p11), [#allocation7], 7168   ;;  %p9566_p8 = pmov %p9565_p11 }
  0x92   : > { %7253 = vsyncadd (%p9566_p8), [#allocation7], 4294960128  ;;  %p9567_p13 = pmov %p9566_p8 }
  0x93   : > { %p9568_p6 = pmov %p9566_p8 }
  0x94   : > { %7255 = dma.done.wait (%p9567_p13), [#allocation10], 4096  }
  0x95   : > { %7257 = vsyncadd (%p9568_p6), [#allocation10], 4294963200  ;;  %v507_v0 = vld [vmem:[%s7563_s19] sm:$0xff]  ;;  %v509_v1 = vld [vmem:[%s7563_s19 + $0x10] sm:$0xff]  ;;  %vm1181_vm0 = vcmask 261120   ;;  %s7291_s22 = smov 96  }
  0x96   : > { %525 = vadd.xlane.f32.xlu0 %v507_v0  ;;  %529 = vadd.xlane.f32.xlu1 %v509_v1  ;;  %v508_v2 = vld [vmem:[%s7563_s19 + $0x8] sm:$0xff]  ;;  %v510_v3 = vld [vmem:[%s7563_s19 + $0x18] sm:$0xff]  ;;  %v511_v4 = vld [vmem:[%s7563_s19 + $0x20] sm:$0xff]  ;;  %s7292_s21 = smov 64   ;;  %s7293_s13 = smov 32   ;;  %vm2614_vm1 = vcmask 523520  }
  0x97   : > { %v512_v5 = vld [vmem:[%s7563_s19 + $0x28] sm:$0xff]  ;;  %v7584_v6 = vld [vmem:[%s7563_s19 + $0x30] sm:$0xff]  ;;  %v7587_v7 = vld [vmem:[%s7563_s19 + $0x38] sm:$0xff]  ;;  %vm3367_vm2 = vcmask 785920   ;;  %vm4120_vm3 = vcmask 1048320   ;;  %s9596_s8 = sld [smem:[#allocation27_spill]] }
  0x98   : > { %v7590_v8 = vld [vmem:[%s7563_s19 + $0x40] sm:$0xff]  ;;  %v7593_v9 = vld [vmem:[%s7563_s19 + $0x48] sm:$0xff]  ;;  %v7598_v10 = vld [vmem:[%s7563_s19 + $0x50] sm:$0xff]  ;;  %s9597_s14 = sld [smem:[#allocation28_spill]]  ;;  %s9602_s10 = sld [smem:[#allocation29_spill]] }
  0x99   : > { %v7601_v11 = vld [vmem:[%s7563_s19 + $0x58] sm:$0xff]  ;;  %v7606_v12 = vld [vmem:[%s7563_s19 + $0x60] sm:$0xff]  ;;  %v7609_v13 = vld [vmem:[%s7563_s19 + $0x68] sm:$0xff]  ;;  %s9603_s3 = sld [smem:[#allocation30_spill]]  ;;  %s7294_s23 = smov [#allocation11]  }
  0x9a   : > { %527 = vadd.xlane.f32.xlu0 %v508_v2  ;;  %531 = vadd.xlane.f32.xlu1 %v510_v3  ;;  %v7614_v14 = vld [vmem:[%s7563_s19 + $0x70] sm:$0xff]  ;;  %v7617_v15 = vld [vmem:[%s7563_s19 + $0x78] sm:$0xff]  ;;  %v6634_v17 = vld [vmem:[#allocation6] ss:$12 sps:$4 sm:$0xff]   ;;  %s7206_s20 = sshll.u32 %s7294_s23, 4  ;;  %s7207_s20 = int_to_ptr.vmem [resolvable:$false] %s7206_s20 }
  0x9b   : > { %v6632_v16 = vld [vmem:[#allocation6 + $0x4] ss:$12 sps:$4 sm:$0xff]   ;;  %v6635_v18 = vld [vmem:[#allocation6 + $0x1c] ss:$12 sps:$4 sm:$0xff]  }
  0x9c   : > { %v6637_v19 = vld [vmem:[#allocation6 + $0x8] ss:$12 sps:$4 sm:$0xff]   ;;  %931 = vmatprep.subr.bf16.mxu0 %v6632_v16  ;;  %v6638_v58 = vld [vmem:[#allocation6 + $0x18] ss:$12 sps:$4 sm:$0xff]  }
  0x9d   : > { %932 = vmatpush1.bf16.msra.mxu0 %v6634_v17  ;;  %6189 = vmatprep.subr.bf16.mxu1 %v6637_v19 }
  0x9e   : > { %533 = vadd.xlane.f32.xlu0 %v511_v4  ;;  %535 = vadd.xlane.f32.xlu1 %v512_v5 }
  0x9f   : > { %933 = vmatprep.subr.bf16.mxu0 %v6635_v18  ;;  %6190 = vmatpush3.bf16.msra.mxu1 %v6637_v19  ;;  %v6643_v18 = vld [vmem:[#allocation6 + $0x4c] ss:$12 sps:$4 sm:$0xff]  }
  0xa0   : > { %v6645_v19 = vld [vmem:[#allocation6 + $0x38] ss:$12 sps:$4 sm:$0xff]  }
  0xa1   : > { %934 = vmatpush1.bf16.msra.mxu0 %v6638_v58 }
  0xa2   : > { %537 = vadd.xlane.f32.xlu0 %v7584_v6  ;;  %539 = vadd.xlane.f32.xlu1 %v7587_v7 }
  0xa6   : > { %541 = vadd.xlane.f32.xlu0 %v7590_v8  ;;  %543 = vadd.xlane.f32.xlu1 %v7593_v9 }
  0xaa   : > { %545 = vadd.xlane.f32.xlu0 %v7598_v10  ;;  %547 = vadd.xlane.f32.xlu1 %v7601_v11 }
  0xae   : > { %549 = vadd.xlane.f32.xlu0 %v7606_v12  ;;  %551 = vadd.xlane.f32.xlu1 %v7609_v13 }
  0xb2   : > { %553 = vadd.xlane.f32.xlu0 %v7614_v14  ;;  %555 = vadd.xlane.f32.xlu1 %v7617_v15 }
 0x123   : > { %v526_v20 = vpop.xlane.xlu0 %525  ;;  %v530_v21 = vpop.xlane.xlu1 %529 }
 0x124   : > { %v558_v22 = vmul.f32 0.0078125, %v526_v20  ;;  %v560_v23 = vmul.f32 0.0078125, %v530_v21 }
 0x126   : > { %v7623_v24 = vsub.f32 %v507_v0, %v558_v22  ;;  %v7625_v25 = vsub.f32 %v509_v1, %v560_v23  ;;  %v6639_v0 = vld [vmem:[#allocation6 + $0x34] ss:$12 sps:$4 sm:$0xff]  }
 0x127   : > { %v528_v26 = vpop.xlane.xlu0 %527  ;;  %v532_v27 = vpop.xlane.xlu1 %531  ;;  %v6641_v1 = vld [vmem:[#allocation6 + $0x20] ss:$12 sps:$4 sm:$0xff]   ;;  %935 = vmatprep.subr.bf16.mxu0 %v6639_v0  ;;  %v6646_v22 = vld [vmem:[#allocation6 + $0x48] ss:$12 sps:$4 sm:$0xff]  }
 0x128   : > { %v559_v28 = vmul.f32 0.0078125, %v528_v26  ;;  %v590_v29 = vmul.f32 %v7623_v24, %v7623_v24  ;;  %v561_v30 = vmul.f32 0.0078125, %v532_v27  ;;  %v592_v31 = vmul.f32 %v7625_v25, %v7625_v25  ;;  %6191 = vmatprep.subr.bf16.mxu1 %v6641_v1 }
 0x129   : > { %6192 = vmatpush3.bf16.msra.mxu1 %v6641_v1 }
 0x12a   : > { %606 = vadd.xlane.f32.xlu0 %v590_v29  ;;  %v7631_v32 = vsub.f32 %v508_v2, %v559_v28  ;;  %v7633_v33 = vsub.f32 %v510_v3, %v561_v30  ;;  %6193 = vmatprep.subr.bf16.mxu1 %v6645_v19  ;;  %v6647_v29 = vld [vmem:[#allocation6 + $0x64] ss:$12 sps:$4 sm:$0xff]  }
 0x12b   : > { %v534_v34 = vpop.xlane.xlu0 %533  ;;  %v536_v35 = vpop.xlane.xlu1 %535  ;;  %v6649_v30 = vld [vmem:[#allocation6 + $0x50] ss:$12 sps:$4 sm:$0xff]  }
 0x12c   : > { %v562_v36 = vmul.f32 0.0078125, %v534_v34  ;;  %v591_v37 = vmul.f32 %v7631_v32, %v7631_v32  ;;  %v563_v38 = vmul.f32 0.0078125, %v536_v35  ;;  %v593_v39 = vmul.f32 %v7633_v33, %v7633_v33 }
 0x12d   : > { %6194 = vmatpush3.bf16.msra.mxu1 %v6645_v19 }
 0x12e   : > { %610 = vadd.xlane.f32.xlu0 %v592_v31  ;;  %608 = vadd.xlane.f32.xlu1 %v591_v37  ;;  %v7639_v40 = vsub.f32 %v511_v4, %v562_v36  ;;  %v7641_v41 = vsub.f32 %v512_v5, %v563_v38  ;;  %v6650_v31 = vld [vmem:[#allocation6 + $0x60] ss:$12 sps:$4 sm:$0xff]   ;;  %v6653_v36 = vld [vmem:[#allocation6 + $0x68] ss:$12 sps:$4 sm:$0xff]   ;;  %v6654_v37 = vld [vmem:[#allocation6 + $0x78] ss:$12 sps:$4 sm:$0xff]  }
 0x12f   : > { %v538_v42 = vpop.xlane.xlu0 %537  ;;  %v540_v43 = vpop.xlane.xlu1 %539  ;;  %6195 = vmatprep.subr.bf16.mxu1 %v6649_v30  ;;  %v6657_v38 = vld [vmem:[#allocation6 + $0x80] ss:$12 sps:$4 sm:$0xff]  }
 0x130   : > { %v564_v44 = vmul.f32 0.0078125, %v538_v42  ;;  %v594_v45 = vmul.f32 %v7639_v40, %v7639_v40  ;;  %v565_v46 = vmul.f32 0.0078125, %v540_v43  ;;  %v595_v47 = vmul.f32 %v7641_v41, %v7641_v41  ;;  %v6659_v42 = vld [vmem:[#allocation6 + $0xac] ss:$12 sps:$4 sm:$0xff]  }
 0x131   : > { %6196 = vmatpush3.bf16.msra.mxu1 %v6649_v30  ;;  %v6661_v43 = vld [vmem:[#allocation6 + $0x98] ss:$12 sps:$4 sm:$0xff]  }
 0x132   : > { %612 = vadd.xlane.f32.xlu1 %v593_v39  ;;  %614 = vadd.xlane.f32.xlu0 %v594_v45  ;;  %v7648_v48 = vsub.f32 %v7584_v6, %v564_v44  ;;  %v7651_v49 = vsub.f32 %v7587_v7, %v565_v46  ;;  %v6642_v7 = vld [vmem:[#allocation6 + $0x30] ss:$12 sps:$4 sm:$0xff]   ;;  %v6662_v44 = vld [vmem:[#allocation6 + $0xa8] ss:$12 sps:$4 sm:$0xff]   ;;  %v9536_v46 = vmov 0  }
 0x133   : > { %v542_v50 = vpop.xlane.xlu0 %541  ;;  %v544_v51 = vpop.xlane.xlu1 %543  ;;  %936 = vmatpush1.bf16.msra.mxu0 %v6642_v7  ;;  %6197 = vmatprep.subr.bf16.mxu1 %v6653_v36  ;;  %v6658_v39 = vld [vmem:[#allocation6 + $0x90] ss:$12 sps:$4 sm:$0xff]  }
 0x134   : > { %v566_v52 = vmul.f32 0.0078125, %v542_v50  ;;  %v596_v53 = vmul.f32 %v7648_v48, %v7648_v48  ;;  %v567_v54 = vmul.f32 0.0078125, %v544_v51  ;;  %v597_v55 = vmul.f32 %v7651_v49, %v7651_v49  ;;  %937 = vmatprep.subr.bf16.mxu0 %v6643_v18  ;;  %v6663_v45 = vld [vmem:[#allocation6 + $0xb0] ss:$12 sps:$4 sm:$0xff]   ;;  %963 = vmatprep.mubr.bf16.mxu0 %v9536_v46 }
 0x135   : > { %6198 = vmatpush3.bf16.msra.mxu1 %v6653_v36 }
 0x136   : > { %616 = vadd.xlane.f32.xlu1 %v595_v47  ;;  %618 = vadd.xlane.f32.xlu0 %v596_v53  ;;  %v7658_v56 = vsub.f32 %v7590_v8, %v566_v52  ;;  %v7661_v57 = vsub.f32 %v7593_v9, %v567_v54 }
 0x137   : > { %v546_v59 = vpop.xlane.xlu0 %545  ;;  %v548_v60 = vpop.xlane.xlu1 %547  ;;  %938 = vmatpush1.bf16.msra.mxu0 %v6646_v22  ;;  %6199 = vmatprep.subr.bf16.mxu1 %v6657_v38  ;;  %v7702_v22 = vld [vmem:[%s9514_s1] ss:$0 sm:$0xff] }
 0x138   : > { %v568_v61 = vmul.f32 0.0078125, %v546_v59  ;;  %v598_v62 = vmul.f32 %v7658_v56, %v7658_v56  ;;  %v569_v63 = vmul.f32 0.0078125, %v548_v60  ;;  %v599_v2 = vmul.f32 %v7661_v57, %v7661_v57  ;;  %939 = vmatprep.subr.bf16.mxu0 %v6647_v29 }
 0x139   : > { %6200 = vmatpush3.bf16.msra.mxu1 %v6657_v38 }
 0x13a   : > { %620 = vadd.xlane.f32.xlu1 %v597_v55  ;;  %622 = vadd.xlane.f32.xlu0 %v598_v62  ;;  %v7668_v3 = vsub.f32 %v7598_v10, %v568_v61  ;;  %v7671_v4 = vsub.f32 %v7601_v11, %v569_v63 }
 0x13b   : > { %v550_v5 = vpop.xlane.xlu0 %549  ;;  %v552_v6 = vpop.xlane.xlu1 %551  ;;  %940 = vmatpush1.bf16.msra.mxu0 %v6650_v31  ;;  %6201 = vmatprep.subr.bf16.mxu1 %v6661_v43 }
 0x13c   : > { %v570_v8 = vmul.f32 0.0078125, %v550_v5  ;;  %v600_v9 = vmul.f32 %v7668_v3, %v7668_v3  ;;  %v571_v16 = vmul.f32 0.0078125, %v552_v6  ;;  %v601_v10 = vmul.f32 %v7671_v4, %v7671_v4 }
 0x13d   : > { %6202 = vmatpush3.bf16.msra.mxu1 %v6661_v43 }
 0x13e   : > { %624 = vadd.xlane.f32.xlu1 %v599_v2  ;;  %626 = vadd.xlane.f32.xlu0 %v600_v9  ;;  %v7678_v11 = vsub.f32 %v7606_v12, %v570_v8  ;;  %v7681_v17 = vsub.f32 %v7609_v13, %v571_v16 }
 0x13f   : > { %v554_v20 = vpop.xlane.xlu0 %553  ;;  %v556_v21 = vpop.xlane.xlu1 %555  ;;  %6203 = vmatprep.subr.bf16.mxu1 %v6663_v45 }
 0x140   : > { %v572_v23 = vmul.f32 0.0078125, %v554_v20  ;;  %v602_v26 = vmul.f32 %v7678_v11, %v7678_v11  ;;  %v573_v27 = vmul.f32 0.0078125, %v556_v21  ;;  %v603_v12 = vmul.f32 %v7681_v17, %v7681_v17 }
 0x141   : > { %6204 = vmatpush3.bf16.msra.mxu1 %v6663_v45 }
 0x142   : > { %628 = vadd.xlane.f32.xlu1 %v601_v10  ;;  %630 = vadd.xlane.f32.xlu0 %v602_v26  ;;  %v7688_v13 = vsub.f32 %v7614_v14, %v572_v23  ;;  %v7691_v28 = vsub.f32 %v7617_v15, %v573_v27  ;;  %v6651_v14 = vld [vmem:[#allocation6 + $0x7c] ss:$12 sps:$4 sm:$0xff]   ;;  %v6655_v15 = vld [vmem:[#allocation6 + $0x94] ss:$12 sps:$4 sm:$0xff]  }
 0x143   : > { %941 = vmatprep.subr.bf16.mxu0 %v6651_v14  ;;  %v7709_v14 = vld [vmem:[%s9515_s2] ss:$0 sm:$0xff] }
 0x144   : > { %v604_v34 = vmul.f32 %v7688_v13, %v7688_v13  ;;  %v605_v35 = vmul.f32 %v7691_v28, %v7691_v28  ;;  %942 = vmatpush1.bf16.msra.mxu0 %v6654_v37 }
 0x145   : > { %943 = vmatprep.subr.bf16.mxu0 %v6655_v15 }
 0x146   : > { %632 = vadd.xlane.f32.xlu1 %v603_v12  ;;  %634 = vadd.xlane.f32.xlu0 %v604_v34 }
 0x148   : > { %944 = vmatpush1.bf16.msra.mxu0 %v6658_v39 }
 0x149   : > { %945 = vmatprep.subr.bf16.mxu0 %v6659_v42 }
 0x14a   : > { %636 = vadd.xlane.f32.xlu1 %v605_v35 }
 0x14c   : > { %946 = vmatpush1.bf16.msra.mxu0 %v6662_v44 }
 0x1b7   : > { %v607_v47 = vpop.xlane.xlu0 %606 }
 0x1b8   : > { %v638_v50 = vmul.f32 0.0078125, %v607_v47 }
 0x1ba   : > { %v654_v51 = vadd.f32 1e-05, %v638_v50 }
 0x1bb   : > { %v609_v52 = vpop.xlane.xlu1 %608  ;;  %v611_v53 = vpop.xlane.xlu0 %610 }
 0x1bc   : > { %6752 = vrsqrt.f32 %v654_v51  ;;  %v639_v54 = vmul.f32 0.0078125, %v609_v52  ;;  %v640_v55 = vmul.f32 0.0078125, %v611_v53 }
 0x1be   : > { %v655_v58 = vadd.f32 1e-05, %v639_v54  ;;  %v656_v59 = vadd.f32 1e-05, %v640_v55 }
 0x1bf   : > { %v613_v60 = vpop.xlane.xlu1 %612  ;;  %v615_v61 = vpop.xlane.xlu0 %614 }
 0x1c0   : > { %6754 = vrsqrt.f32 %v655_v58  ;;  %v641_v62 = vmul.f32 0.0078125, %v613_v60  ;;  %v642_v63 = vmul.f32 0.0078125, %v615_v61 }
 0x1c1   : > { %6756 = vrsqrt.f32 %v656_v59 }
 0x1c2   : > { %v657_v0 = vadd.f32 1e-05, %v641_v62  ;;  %v658_v1 = vadd.f32 1e-05, %v642_v63 }
 0x1c3   : > { %v617_v2 = vpop.xlane.xlu1 %616  ;;  %v619_v5 = vpop.xlane.xlu0 %618 }
 0x1c4   : > { %6758 = vrsqrt.f32 %v657_v0  ;;  %v643_v6 = vmul.f32 0.0078125, %v617_v2  ;;  %v644_v7 = vmul.f32 0.0078125, %v619_v5 }
 0x1c5   : > { %6760 = vrsqrt.f32 %v658_v1 }
 0x1c6   : > { %v6753_v8 = vpop.eup %6752  ;;  %v659_v9 = vadd.f32 1e-05, %v643_v6  ;;  %v660_v16 = vadd.f32 1e-05, %v644_v7 }
 0x1c7   : > { %v621_v10 = vpop.xlane.xlu1 %620  ;;  %v623_v18 = vpop.xlane.xlu0 %622  ;;  %v686_v19 = vmul.f32 %v6753_v8, %v7623_v24 }
 0x1c8   : > { %6762 = vrsqrt.f32 %v659_v9  ;;  %v645_v20 = vmul.f32 0.0078125, %v621_v10  ;;  %v646_v21 = vmul.f32 0.0078125, %v623_v18 }
 0x1c9   : > { %6764 = vrsqrt.f32 %v660_v16  ;;  %v708_v34 = vmul.f32 %v7702_v22, %v686_v19 }
 0x1ca   : > { %v6755_v23 = vpop.eup %6754  ;;  %v661_v26 = vadd.f32 1e-05, %v645_v20  ;;  %v662_v27 = vadd.f32 1e-05, %v646_v21 }
 0x1cb   : > { %v6757_v12 = vpop.eup %6756  ;;  %v625_v29 = vpop.xlane.xlu1 %624  ;;  %v687_v31 = vmul.f32 %v6755_v23, %v7631_v32  ;;  %v730_v45 = vadd.f32 %v7709_v14, %v708_v34 }
 0x1cc   : > { %v627_v30 = vpop.xlane.xlu0 %626  ;;  %6766 = vrsqrt.f32 %v661_v26  ;;  %v647_v24 = vmul.f32 0.0078125, %v625_v29  ;;  %v688_v36 = vmul.f32 %v6757_v12, %v7625_v25 }
 0x1cd   : > { %v648_v35 = vmul.f32 0.0078125, %v627_v30  ;;  %6768 = vrsqrt.f32 %v662_v27  ;;  %v709_v37 = vmul.f32 %v7702_v22, %v687_v31 }
 0x1ce   : > { %v6759_v15 = vpop.eup %6758  ;;  %v663_v38 = vadd.f32 1e-05, %v647_v24  ;;  %v710_v32 = vmul.f32 %v7702_v22, %v688_v36 }
 0x1cf   : > { %v664_v39 = vadd.f32 1e-05, %v648_v35  ;;  %v6761_v42 = vpop.eup %6760  ;;  %v629_v43 = vpop.xlane.xlu1 %628  ;;  %v731_v47 = vadd.f32 %v7709_v14, %v709_v37  ;;  %v689_v50 = vmul.f32 %v6759_v15, %v7633_v33 }
 0x1d0   : > { %v631_v44 = vpop.xlane.xlu0 %630  ;;  %6770 = vrsqrt.f32 %v663_v38  ;;  %v649_v51 = vmul.f32 0.0078125, %v629_v43  ;;  %v690_v54 = vmul.f32 %v6761_v42, %v7639_v40  ;;  %v732_v60 = vadd.f32 %v7709_v14, %v710_v32 }
 0x1d1   : > { %v650_v25 = vmul.f32 0.0078125, %v631_v44  ;;  %6772 = vrsqrt.f32 %v664_v39  ;;  %v746_v52 = vpack.c.bf16 %v731_v47, %v730_v45  ;;  %v711_v53 = vmul.f32 %v7702_v22, %v689_v50 }
 0x1d2   : > { %v6763_v55 = vpop.eup %6762  ;;  %v665_v58 = vadd.f32 1e-05, %v649_v51  ;;  %v712_v1 = vmul.f32 %v7702_v22, %v690_v54 }
 0x1d3   : > { %v666_v59 = vadd.f32 1e-05, %v650_v25  ;;  %v6765_v61 = vpop.eup %6764  ;;  %v633_v62 = vpop.xlane.xlu1 %632  ;;  %964 = vmatmul.mubr.bf16.vlgmr.msra.gmra.mrb[0].mxu0 %v746_v52  ;;  %6205 = vmatprep.mubr.bf16.mxu1 %v746_v52  ;;  %v733_v33 = vadd.f32 %v7709_v14, %v711_v53  ;;  %v691_v0 = vmul.f32 %v6763_v55, %v7641_v41 }
 0x1d4   : > { %v635_v63 = vpop.xlane.xlu0 %634  ;;  %6774 = vrsqrt.f32 %v665_v58  ;;  %v651_v2 = vmul.f32 0.0078125, %v633_v62  ;;  %973 = vmatprep.mubr.bf16.mxu0 %v9536_v46  ;;  %v692_v40 = vmul.f32 %v6765_v61, %v7648_v48  ;;  %v734_v19 = vadd.f32 %v7709_v14, %v712_v1 }
 0x1d5   : > { %v652_v5 = vmul.f32 0.0078125, %v635_v63  ;;  %6776 = vrsqrt.f32 %v666_v59  ;;  %v747_v6 = vpack.c.bf16 %v733_v33, %v732_v60  ;;  %v713_v7 = vmul.f32 %v7702_v22, %v691_v0 }
 0x1d6   : > { %v6767_v8 = vpop.eup %6766  ;;  %v667_v9 = vadd.f32 1e-05, %v651_v2  ;;  %v714_v10 = vmul.f32 %v7702_v22, %v692_v40 }
 0x1d7   : > { %v668_v16 = vadd.f32 1e-05, %v652_v5  ;;  %v6769_v18 = vpop.eup %6768  ;;  %v637_v41 = vpop.xlane.xlu1 %636  ;;  %6206 = vmatmul.mubr.bf16.vlgmr.msra.gmra.mrb[0].mxu1 %v747_v6  ;;  %v735_v20 = vadd.f32 %v7709_v14, %v713_v7  ;;  %v693_v21 = vmul.f32 %v6767_v8, %v7651_v49 }
 0x1d8   : > { %6778 = vrsqrt.f32 %v667_v9  ;;  %v653_v48 = vmul.f32 0.0078125, %v637_v41  ;;  %v694_v23 = vmul.f32 %v6769_v18, %v7658_v56  ;;  %v736_v30 = vadd.f32 %v7709_v14, %v714_v10 }
 0x1d9   : > { %6780 = vrsqrt.f32 %v668_v16  ;;  %v748_v26 = vpack.c.bf16 %v735_v20, %v734_v19  ;;  %v715_v27 = vmul.f32 %v7702_v22, %v693_v21 }
 0x1da   : > { %v6771_v12 = vpop.eup %6770  ;;  %v669_v29 = vadd.f32 1e-05, %v653_v48  ;;  %v716_v49 = vmul.f32 %v7702_v22, %v694_v23 }
 0x1db   : > { %v6773_v31 = vpop.eup %6772  ;;  %974 = vmatmul.mubr.bf16.gmra.mrb[4].mxu0 %v747_v6  ;;  %6209 = vmatprep.mubr.bf16.mxu1 %v748_v26  ;;  %v737_v34 = vadd.f32 %v7709_v14, %v715_v27  ;;  %v695_v24 = vmul.f32 %v6771_v12, %v7661_v57 }
 0x1dc   : > { %6782 = vrsqrt.f32 %v669_v29  ;;  %983 = vmatprep.mubr.bf16.mxu0 %v9536_v46  ;;  %v696_v56 = vmul.f32 %v6773_v31, %v7668_v3  ;;  %v738_v39 = vadd.f32 %v7709_v14, %v716_v49 }
 0x1dd   : > { %v749_v35 = vpack.c.bf16 %v737_v34, %v736_v30  ;;  %v717_v36 = vmul.f32 %v7702_v22, %v695_v24 }
 0x1de   : > { %v6775_v37 = vpop.eup %6774  ;;  %v718_v15 = vmul.f32 %v7702_v22, %v696_v56 }
 0x1df   : > { %v6777_v38 = vpop.eup %6776  ;;  %6210 = vmatmul.mubr.bf16.gmra.mrb[4].mxu1 %v749_v35  ;;  %v739_v32 = vadd.f32 %v7709_v14, %v717_v36  ;;  %v697_v57 = vmul.f32 %v6775_v37, %v7671_v4 }
 0x1e0   : > { %v698_v42 = vmul.f32 %v6777_v38, %v7678_v11  ;;  %v740_v45 = vadd.f32 %v7709_v14, %v718_v15 }
 0x1e1   : > { %v750_v43 = vpack.c.bf16 %v739_v32, %v738_v39  ;;  %v719_v44 = vmul.f32 %v7702_v22, %v697_v57 }
 0x1e2   : > { %v6779_v3 = vpop.eup %6778  ;;  %v720_v25 = vmul.f32 %v7702_v22, %v698_v42 }
 0x1e3   : > { %v6781_v47 = vpop.eup %6780  ;;  %984 = vmatmul.mubr.bf16.gmra.mrb[8].mxu0 %v748_v26  ;;  %6213 = vmatprep.mubr.bf16.mxu1 %v750_v43  ;;  %v741_v50 = vadd.f32 %v7709_v14, %v719_v44  ;;  %v699_v51 = vmul.f32 %v6779_v3, %v7681_v17 }
 0x1e4   : > { %993 = vmatprep.mubr.bf16.mxu0 %v9536_v46  ;;  %v700_v4 = vmul.f32 %v6781_v47, %v7688_v13  ;;  %v742_v54 = vadd.f32 %v7709_v14, %v720_v25 }
 0x1e5   : > { %v751_v11 = vpack.c.bf16 %v741_v50, %v740_v45  ;;  %v721_v52 = vmul.f32 %v7702_v22, %v699_v51 }
 0x1e6   : > { %v6783_v53 = vpop.eup %6782  ;;  %v722_v59 = vmul.f32 %v7702_v22, %v700_v4 }
 0x1e7   : > { %6214 = vmatmul.mubr.bf16.gmra.mrb[8].mxu1 %v751_v11  ;;  %v743_v55 = vadd.f32 %v7709_v14, %v721_v52  ;;  %v701_v58 = vmul.f32 %v6783_v53, %v7691_v28  ;;  %v788_v28 = vlaneseq }
 0x1e8   : > { %v744_v13 = vadd.f32 %v7709_v14, %v722_v59 }
 0x1e9   : > { %v752_v17 = vpack.c.bf16 %v743_v55, %v742_v54  ;;  %v723_v60 = vmul.f32 %v7702_v22, %v701_v58  ;;  %v7763_v22 = vshrl.u32 %v788_v28, 7 }
 0x1eb   : > { %994 = vmatmul.mubr.bf16.gmra.mrb[12].mxu0 %v749_v35  ;;  %6217 = vmatprep.mubr.bf16.mxu1 %v752_v17  ;;  %v745_v61 = vadd.f32 %v7709_v14, %v723_v60  ;;  %9569 = vst [vmem:[#allocation18_spill] sm:$0xff] %v7763_v22  ;;  %v9535_v63 = vsub.s32 0, %v7763_v22  ;;  %v786_v14 = vld [vmem:[%s9517_s4] sm:$0x7]  ;;  %v9533_v33 = vsub.s32 1, %v7763_v22  ;;  %v9534_v1 = vsub.s32 2, %v7763_v22 }
 0x1ec   : > { %1003 = vmatprep.mubr.bf16.mxu0 %v9536_v46 }
 0x1ed   : > { %v753_v62 = vpack.c.bf16 %v745_v61, %v744_v13  ;;  %v7772_v0 = vrot.slane %v786_v14, %v9535_v63  ;;  %v7777_v5 = vrot.slane %v786_v14, %v9533_v33  ;;  %v7783_v16 = vrot.slane %v786_v14, %v9534_v1 }
 0x1ef   : > { %6218 = vmatmul.mubr.bf16.gmra.mrb[12].mxu1 %v753_v62 }
 0x1f3   : > { %1004 = vmatmul.mubr.bf16.gmra.mrb[16].mxu0 %v750_v43 }
 0x1f4   : > { %1013 = vmatprep.mubr.bf16.mxu0 %v9536_v46 }
 0x1fb   : > { %1014 = vmatmul.mubr.bf16.gmra.mrb[20].mxu0 %v751_v11 }
 0x1fc   : > { %1023 = vmatprep.mubr.bf16.mxu0 %v9536_v46 }
 0x203   : > { %1024 = vmatmul.mubr.bf16.gmra.mrb[24].mxu0 %v752_v17 }
 0x204   : > { %1033 = vmatprep.mubr.bf16.mxu0 %v9536_v46 }
 0x20b   : > { %1034 = vmatmul.mubr.bf16.gmra.mrb[28].mxu0 %v753_v62 }
 0x2a6   : > { %v965_v2 = vpop.f32.mrb[0].mxu0 }
 0x2a7   : > { %v966_v40 = vadd.f32 %v965_v2, %v7772_v0  ;;  %v967_v6 = vpop.f32.mrb[1].mxu0 }
 0x2a8   : > { %v969_v7 = vpop.f32.mrb[2].mxu0  ;;  %v968_v10 = vadd.f32 %v967_v6, %v7777_v5 }
 0x2a9   : > { %v970_v8 = vadd.f32 %v969_v7, %v7772_v0  ;;  %v971_v9 = vpop.f32.mrb[3].mxu0  ;;  %v1141_v19 = vmul.f32 0.17677669, %v966_v40 }
 0x2aa   : > { %v972_v18 = vadd.f32 %v971_v9, %v7777_v5  ;;  %v6207_v41 = vpop.f32.mrb[0].mxu1 }
 0x2ab   : > { %v1142_v20 = vmul.f32 0.17677669, %v970_v8  ;;  %v1078_v21 = vpop.f32.mrb[1].mxu1  ;;  %v1087_v27 = vadd.f32 %v6207_v41, %v7783_v16 }
 0x2ac   : > { %v7787_v48 = vpack.c.bf16 %v972_v18, %v968_v10  ;;  %v6208_v23 = vpop.f32.mrb[2].mxu1  ;;  %v1079_v30 = vadd.f32 %v1078_v21, %v7783_v16 }
 0x2ad   : > { %v7789_v26 = vpack.c.bf16 %v1142_v20, %v1141_v19  ;;  %v1090_v12 = vadd.f32 %v6208_v23, %v7783_v16  ;;  %v1081_v29 = vpop.f32.mrb[3].mxu1 }
 0x2ae   : > { %v1082_v31 = vadd.f32 %v1081_v29, %v7783_v16  ;;  %v975_v34 = vpop.f32.mrb[4].mxu0  ;;  %6509 = vmatprep.subr.msk.bf16.mxu1 %vm1181_vm0, %v7787_v48  ;;  %v1189_v24 = vsel %vm1181_vm0, %v7787_v48, 0 }
 0x2af   : > { %v7799_v49 = vpack.c.bf16 %v1090_v12, %v1087_v27  ;;  %v976_v56 = vadd.f32 %v975_v34, %v7772_v0  ;;  %v977_v35 = vpop.f32.mrb[5].mxu0  ;;  %6222 = vmatpush3.bf16.xpose.msra.mxu1 %v1189_v24  ;;  %6225 = vmatprep.mubr.msk.bf16.mxu1 %vm1181_vm0, %v7789_v26 }
 0x2b0   : > { %v7804_v36 = vpack.c.bf16 %v1082_v31, %v1079_v30  ;;  %v979_v37 = vpop.f32.mrb[6].mxu0  ;;  %v978_v39 = vadd.f32 %v977_v35, %v7777_v5 }
 0x2b1   : > { %v980_v15 = vadd.f32 %v979_v37, %v7772_v0  ;;  %v981_v38 = vpop.f32.mrb[7].mxu0  ;;  %v1143_v42 = vmul.f32 0.17677669, %v976_v56 }
 0x2b2   : > { %v982_v32 = vadd.f32 %v981_v38, %v7777_v5  ;;  %v6211_v57 = vpop.f32.mrb[4].mxu1 }
 0x2b3   : > { %v1144_v43 = vmul.f32 0.17677669, %v980_v15  ;;  %v1094_v44 = vpop.f32.mrb[5].mxu1  ;;  %v1103_v50 = vadd.f32 %v6211_v57, %v7783_v16 }
 0x2b4   : > { %v7809_v3 = vpack.c.bf16 %v982_v32, %v978_v39  ;;  %v6212_v45 = vpop.f32.mrb[6].mxu1  ;;  %v1095_v4 = vadd.f32 %v1094_v44, %v7783_v16 }
 0x2b5   : > { %v7811_v47 = vpack.c.bf16 %v1144_v43, %v1143_v42  ;;  %v1106_v51 = vadd.f32 %v6212_v45, %v7783_v16  ;;  %v1097_v25 = vpop.f32.mrb[7].mxu1 }
 0x2b6   : > { %v1098_v11 = vadd.f32 %v1097_v25, %v7783_v16  ;;  %v985_v52 = vpop.f32.mrb[8].mxu0  ;;  %6510 = vmatprep.subr.msk.bf16.mxu1 %vm1181_vm0, %v7809_v3  ;;  %v1192_v53 = vsel %vm1181_vm0, %v7809_v3, 0 }
 0x2b7   : > { %v7821_v54 = vpack.c.bf16 %v1106_v51, %v1103_v50  ;;  %v986_v55 = vadd.f32 %v985_v52, %v7772_v0  ;;  %v987_v58 = vpop.f32.mrb[9].mxu0  ;;  %6224 = vmatpush3.bf16.xpose.msra.mxu1 %v1192_v53 }
 0x2b8   : > { %v7824_v59 = vpack.c.bf16 %v1098_v11, %v1095_v4  ;;  %v989_v17 = vpop.f32.mrb[10].mxu0  ;;  %v988_v61 = vadd.f32 %v987_v58, %v7777_v5 }
 0x2b9   : > { %v990_v60 = vadd.f32 %v989_v17, %v7772_v0  ;;  %v991_v13 = vpop.f32.mrb[11].mxu0  ;;  %v1145_v14 = vmul.f32 0.17677669, %v986_v55 }
 0x2ba   : > { %v992_v62 = vadd.f32 %v991_v13, %v7777_v5  ;;  %v6215_v28 = vpop.f32.mrb[8].mxu1 }
 0x2bb   : > { %v1146_v2 = vmul.f32 0.17677669, %v990_v60  ;;  %v1119_v40 = vadd.f32 %v6215_v28, %v7783_v16  ;;  %v1110_v6 = vpop.f32.mrb[9].mxu1 }
 0x2bc   : > { %v7830_v7 = vpack.c.bf16 %v992_v62, %v988_v61  ;;  %v6216_v8 = vpop.f32.mrb[10].mxu1  ;;  %v1111_v41 = vadd.f32 %v1110_v6, %v7783_v16 }
 0x2bd   : > { %v7832_v9 = vpack.c.bf16 %v1146_v2, %v1145_v14  ;;  %v1122_v10 = vadd.f32 %v6216_v8, %v7783_v16  ;;  %v1113_v18 = vpop.f32.mrb[11].mxu1 }
 0x2be   : > { %v1114_v19 = vadd.f32 %v1113_v18, %v7783_v16  ;;  %v995_v20 = vpop.f32.mrb[12].mxu0  ;;  %6226 = vmatmul.mubr.msk.bf16.vlgmr.msra.gmra.mrb[16].mxu1 %vm1181_vm0, %v7811_v47  ;;  %6511 = vmatprep.subr.msk.bf16.mxu1 %vm1181_vm0, %v7830_v7  ;;  %v1250_v21 = vsel %vm1181_vm0, %v7830_v7, 0 }
 0x2bf   : > { %v7843_v23 = vpack.c.bf16 %v1122_v10, %v1119_v40  ;;  %v996_v27 = vadd.f32 %v995_v20, %v7772_v0  ;;  %v997_v12 = vpop.f32.mrb[13].mxu0  ;;  %6230 = vmatpush3.bf16.xpose.msra.mxu1 %v1250_v21  ;;  %6233 = vmatprep.mubr.msk.bf16.mxu1 %vm1181_vm0, %v7832_v9 }
 0x2c0   : > { %v7848_v29 = vpack.c.bf16 %v1114_v19, %v1111_v41  ;;  %v999_v30 = vpop.f32.mrb[14].mxu0  ;;  %v998_v24 = vadd.f32 %v997_v12, %v7777_v5 }
 0x2c1   : > { %v1000_v31 = vadd.f32 %v999_v30, %v7772_v0  ;;  %v1001_v34 = vpop.f32.mrb[15].mxu0  ;;  %v1147_v37 = vmul.f32 0.17677669, %v996_v27 }
 0x2c2   : > { %v1002_v56 = vadd.f32 %v1001_v34, %v7777_v5  ;;  %v6219_v35 = vpop.f32.mrb[12].mxu1 }
 0x2c3   : > { %v1148_v15 = vmul.f32 0.17677669, %v1000_v31  ;;  %v1135_v38 = vadd.f32 %v6219_v35, %v7783_v16  ;;  %v1126_v39 = vpop.f32.mrb[13].mxu1 }
 0x2c4   : > { %v7854_v32 = vpack.c.bf16 %v1002_v56, %v998_v24  ;;  %v6220_v57 = vpop.f32.mrb[14].mxu1  ;;  %v1127_v45 = vadd.f32 %v1126_v39, %v7783_v16 }
 0x2c5   : > { %v7856_v42 = vpack.c.bf16 %v1148_v15, %v1147_v37  ;;  %v1138_v43 = vadd.f32 %v6220_v57, %v7783_v16  ;;  %v1129_v44 = vpop.f32.mrb[15].mxu1 }
 0x2c6   : > { %v1130_v50 = vadd.f32 %v1129_v44, %v7783_v16  ;;  %v1005_v51 = vpop.f32.mrb[16].mxu0  ;;  %6512 = vmatprep.subr.msk.bf16.mxu1 %vm1181_vm0, %v7854_v32  ;;  %v1253_v25 = vsel %vm1181_vm0, %v7854_v32, 0 }
 0x2c7   : > { %v7865_v4 = vpack.c.bf16 %v1138_v43, %v1135_v38  ;;  %v1006_v11 = vadd.f32 %v1005_v51, %v7772_v0  ;;  %v1007_v52 = vpop.f32.mrb[17].mxu0  ;;  %6232 = vmatpush3.bf16.xpose.msra.mxu1 %v1253_v25 }
 0x2c8   : > { %v7868_v53 = vpack.c.bf16 %v1130_v50, %v1127_v45  ;;  %v1009_v55 = vpop.f32.mrb[18].mxu0  ;;  %v1008_v16 = vadd.f32 %v1007_v52, %v7777_v5 }
 0x2c9   : > { %v1010_v58 = vadd.f32 %v1009_v55, %v7772_v0  ;;  %v1011_v17 = vpop.f32.mrb[19].mxu0  ;;  %v1149_v13 = vmul.f32 0.17677669, %v1006_v11 }
 0x2ca   : > { %v1012_v60 = vadd.f32 %v1011_v17, %v7777_v5 }
 0x2cb   : > { %v1150_v61 = vmul.f32 0.17677669, %v1010_v58 }
 0x2cc   : > { %v7873_v62 = vpack.c.bf16 %v1012_v60, %v1008_v16 }
 0x2cd   : > { %v7875_v28 = vpack.c.bf16 %v1150_v61, %v1149_v13 }
 0x2ce   : > { %v1015_v14 = vpop.f32.mrb[20].mxu0  ;;  %6234 = vmatmul.mubr.msk.bf16.vlgmr.msra.gmra.mrb[20].mxu1 %vm1181_vm0, %v7856_v42  ;;  %6513 = vmatprep.subr.msk.bf16.mxu0 %vm1181_vm0, %v7873_v62  ;;  %v1311_v2 = vsel %vm1181_vm0, %v7873_v62, 0 }
 0x2cf   : > { %v1016_v40 = vadd.f32 %v1015_v14, %v7772_v0  ;;  %v1017_v6 = vpop.f32.mrb[21].mxu0  ;;  %6238 = vmatpush3.bf16.xpose.msra.mxu0 %v1311_v2  ;;  %6241 = vmatprep.mubr.msk.bf16.mxu0 %vm1181_vm0, %v7875_v28 }
 0x2d0   : > { %v1019_v8 = vpop.f32.mrb[22].mxu0  ;;  %v1018_v41 = vadd.f32 %v1017_v6, %v7777_v5 }
 0x2d1   : > { %v1020_v10 = vadd.f32 %v1019_v8, %v7772_v0  ;;  %v1021_v18 = vpop.f32.mrb[23].mxu0  ;;  %v1151_v20 = vmul.f32 0.17677669, %v1016_v40 }
 0x2d2   : > { %v1022_v19 = vadd.f32 %v1021_v18, %v7777_v5 }
 0x2d3   : > { %v1152_v21 = vmul.f32 0.17677669, %v1020_v10 }
 0x2d4   : > { %v7889_v27 = vpack.c.bf16 %v1022_v19, %v1018_v41 }
 0x2d5   : > { %v7891_v12 = vpack.c.bf16 %v1152_v21, %v1151_v20 }
 0x2d6   : > { %v1025_v30 = vpop.f32.mrb[24].mxu0  ;;  %6514 = vmatprep.subr.msk.bf16.mxu0 %vm1181_vm0, %v7889_v27  ;;  %v1314_v31 = vsel %vm1181_vm0, %v7889_v27, 0 }
 0x2d7   : > { %v1026_v34 = vadd.f32 %v1025_v30, %v7772_v0  ;;  %v1027_v24 = vpop.f32.mrb[25].mxu0  ;;  %6240 = vmatpush3.bf16.xpose.msra.mxu0 %v1314_v31 }
 0x2d8   : > { %v1029_v56 = vpop.f32.mrb[26].mxu0  ;;  %6253 = vmatprep.subr.bf16.mxu0 %v7804_v36  ;;  %v1028_v15 = vadd.f32 %v1027_v24, %v7777_v5 }
 0x2d9   : > { %v1030_v35 = vadd.f32 %v1029_v56, %v7772_v0  ;;  %v1031_v37 = vpop.f32.mrb[27].mxu0  ;;  %v1153_v39 = vmul.f32 0.17677669, %v1026_v34 }
 0x2da   : > { %v1032_v38 = vadd.f32 %v1031_v37, %v7777_v5 }
 0x2db   : > { %v1154_v57 = vmul.f32 0.17677669, %v1030_v35 }
 0x2dc   : > { %v7902_v43 = vpack.c.bf16 %v1032_v38, %v1028_v15 }
 0x2dd   : > { %v7904_v44 = vpack.c.bf16 %v1154_v57, %v1153_v39 }
 0x2de   : > { %v1035_v45 = vpop.f32.mrb[28].mxu0  ;;  %6242 = vmatmul.mubr.msk.bf16.vlgmr.msra.gmra.mrb[32].mxu0 %vm1181_vm0, %v7891_v12  ;;  %6515 = vmatprep.subr.msk.bf16.mxu1 %vm1181_vm0, %v7902_v43  ;;  %v1372_v50 = vsel %vm1181_vm0, %v7902_v43, 0 }
 0x2df   : > { %v1036_v51 = vadd.f32 %v1035_v45, %v7772_v0  ;;  %v1037_v25 = vpop.f32.mrb[29].mxu0  ;;  %6246 = vmatpush3.bf16.xpose.msra.mxu1 %v1372_v50  ;;  %6249 = vmatprep.mubr.msk.bf16.mxu1 %vm1181_vm0, %v7904_v44 }
 0x2e0   : > { %6254 = vmatpush3.bf16.msra.mxu0 %v7804_v36  ;;  %v1039_v11 = vpop.f32.mrb[30].mxu0  ;;  %v1038_v58 = vadd.f32 %v1037_v25, %v7777_v5 }
 0x2e1   : > { %v1040_v52 = vadd.f32 %v1039_v11, %v7772_v0  ;;  %6255 = vmatprep.subr.bf16.mxu0 %v7799_v49  ;;  %v1041_v55 = vpop.f32.mrb[31].mxu0  ;;  %v1155_v16 = vmul.f32 0.17677669, %v1036_v51 }
 0x2e2   : > { %v1042_v17 = vadd.f32 %v1041_v55, %v7777_v5 }
 0x2e3   : > { %v1156_v60 = vmul.f32 0.17677669, %v1040_v52 }
 0x2e4   : > { %v7920_v13 = vpack.c.bf16 %v1042_v17, %v1038_v58  ;;  %6256 = vmatpush3.bf16.msra.mxu0 %v7799_v49 }
 0x2e5   : > { %v7923_v61 = vpack.c.bf16 %v1156_v60, %v1155_v16  ;;  %6269 = vmatprep.subr.bf16.mxu0 %v7848_v29 }
 0x2e6   : > { %6516 = vmatprep.subr.msk.bf16.mxu1 %vm1181_vm0, %v7920_v13  ;;  %v1375_v0 = vsel %vm1181_vm0, %v7920_v13, 0 }
 0x2e7   : > { %6248 = vmatpush3.bf16.xpose.msra.mxu1 %v1375_v0 }
 0x2e8   : > { %6261 = vmatprep.subr.bf16.mxu1 %v7824_v59 }
 0x2ee   : > { %6250 = vmatmul.mubr.msk.bf16.vlgmr.msra.gmra.mrb[24].mxu1 %vm1181_vm0, %v7923_v61 }
 0x2ef   : > { %6262 = vmatpush3.bf16.msra.mxu1 %v7824_v59 }
 0x2f0   : > { %6263 = vmatprep.subr.bf16.mxu1 %v7821_v54 }
 0x2f3   : > { %6264 = vmatpush3.bf16.msra.mxu1 %v7821_v54 }
 0x2f4   : > { %6277 = vmatprep.subr.bf16.mxu1 %v7868_v53 }
 0x391   : > { %v7937_v5 = vpop.f32.mrb[16].mxu1 }
 0x392   : > { %v1228_v14 = vpop.f32.mrb[17].mxu1  ;;  %v1432_v25 = vsel %vm1181_vm0, %v7937_v5, -inf }
 0x393   : > { %v7939_v2 = vpop.f32.mrb[18].mxu1  ;;  %v1426_v30 = vsel %vm1181_vm0, %v1228_v14, -inf }
 0x394   : > { %v7941_v40 = vpop.f32.mrb[19].mxu1  ;;  %v1435_v11 = vsel %vm1181_vm0, %v7939_v2, -inf }
 0x395   : > { %v1429_v31 = vsel %vm1181_vm0, %v7941_v40, -inf }
 0x3a1   : > { %v7943_v6 = vpop.f32.mrb[20].mxu1 }
 0x3a2   : > { %v7945_v8 = vpop.f32.mrb[21].mxu1  ;;  %v1444_v20 = vsel %vm1181_vm0, %v7943_v6, -inf }
 0x3a3   : > { %v7947_v10 = vpop.f32.mrb[22].mxu1  ;;  %v1438_v18 = vsel %vm1181_vm0, %v7945_v8, -inf }
 0x3a4   : > { %1439 = vmax.xlane.f32.xlu0 %v1438_v18  ;;  %v7951_v41 = vpop.f32.mrb[23].mxu1  ;;  %v1447_v21 = vsel %vm1181_vm0, %v7947_v10, -inf }
 0x3a5   : > { %v1441_v19 = vsel %vm1181_vm0, %v7951_v41, -inf }
 0x3a6   : > { %1442 = vmax.xlane.f32.xlu1 %v1441_v19 }
 0x3a8   : > { %1445 = vmax.xlane.f32.xlu0 %v1444_v20 }
 0x3aa   : > { %1448 = vmax.xlane.f32.xlu1 %v1447_v21 }
 0x3ac   : > { %1427 = vmax.xlane.f32.xlu0 %v1426_v30 }
 0x3ae   : > { %1430 = vmax.xlane.f32.xlu1 %v1429_v31 }
 0x3b1   : > { %v7962_v34 = vpop.f32.mrb[32].mxu0 }
 0x3b2   : > { %v7964_v24 = vpop.f32.mrb[33].mxu0  ;;  %v1456_v58 = vsel %vm1181_vm0, %v7962_v34, -inf }
 0x3b3   : > { %v7966_v56 = vpop.f32.mrb[34].mxu0  ;;  %v1450_v52 = vsel %vm1181_vm0, %v7964_v24, -inf }
 0x3b4   : > { %v7968_v35 = vpop.f32.mrb[35].mxu0  ;;  %v1459_v17 = vsel %vm1181_vm0, %v7966_v56, -inf }
 0x3b5   : > { %v1453_v55 = vsel %vm1181_vm0, %v7968_v35, -inf }
 0x3c1   : > { %v7970_v37 = vpop.f32.mrb[24].mxu1 }
 0x3c2   : > { %v7972_v15 = vpop.f32.mrb[25].mxu1  ;;  %v1468_v38 = vsel %vm1181_vm0, %v7970_v37, -inf }
 0x3c3   : > { %1469 = vmax.xlane.f32.xlu0 %v1468_v38  ;;  %v7976_v39 = vpop.f32.mrb[26].mxu1  ;;  %v1462_v50 = vsel %vm1181_vm0, %v7972_v15, -inf }
 0x3c4   : > { %v7978_v57 = vpop.f32.mrb[27].mxu1  ;;  %v1471_v45 = vsel %vm1181_vm0, %v7976_v39, -inf }
 0x3c5   : > { %1472 = vmax.xlane.f32.xlu1 %v1471_v45  ;;  %v1465_v51 = vsel %vm1181_vm0, %v7978_v57, -inf }
 0x3c7   : > { %1463 = vmax.xlane.f32.xlu0 %v1462_v50 }
 0x3c9   : > { %1466 = vmax.xlane.f32.xlu1 %v1465_v51 }
 0x3cb   : > { %1433 = vmax.xlane.f32.xlu0 %v1432_v25 }
 0x3cd   : > { %1436 = vmax.xlane.f32.xlu1 %v1435_v11 }
 0x3cf   : > { %1451 = vmax.xlane.f32.xlu0 %v1450_v52 }
 0x3d1   : > { %1454 = vmax.xlane.f32.xlu1 %v1453_v55 }
 0x3d3   : > { %1457 = vmax.xlane.f32.xlu0 %v1456_v58 }
 0x3d5   : > { %1460 = vmax.xlane.f32.xlu1 %v1459_v17 }
 0x431   : > { %v1440_v16 = vpop.xlane.xlu0 %1439 }
 0x432   : > { %v1478_v46 = vsub.f32 %v7945_v8, %v1440_v16 }
 0x433   : > { %v1443_v60 = vpop.xlane.xlu1 %1442 }
 0x435   : > { %v1446_v0 = vpop.xlane.xlu0 %1445 }
 0x436   : > { %v1480_v55 = vsub.f32 %v7943_v6, %v1446_v0  ;;  %v1498_v0 = vmul.f32 1.442695, %v1478_v46 }
 0x437   : > { %v1449_v18 = vpop.xlane.xlu1 %1448 }
 0x438   : > { %v1481_v1 = vsub.f32 %v7947_v10, %v1449_v18 }
 0x439   : > { %v1428_v19 = vpop.xlane.xlu0 %1427 }
 0x43a   : > { %v1474_v38 = vsub.f32 %v1228_v14, %v1428_v19 }
 0x43b   : > { %v1431_v20 = vpop.xlane.xlu1 %1430 }
 0x43c   : > { %v1475_v51 = vsub.f32 %v7941_v40, %v1431_v20  ;;  %v1490_v11 = vmul.f32 1.442695, %v1474_v38  ;;  %v1502_v40 = vmul.f32 1.442695, %v1480_v55  ;;  %v1479_v20 = vsub.f32 %v7951_v41, %v1443_v60 }
 0x43d   : > { %v1504_v38 = vmul.f32 1.442695, %v1481_v1 }
 0x43e   : > { %v1492_v63 = vmul.f32 1.442695, %v1475_v51  ;;  %v1500_v10 = vmul.f32 1.442695, %v1479_v20 }
 0x450   : > { %v1470_v21 = vpop.xlane.xlu0 %1469 }
 0x452   : > { %v7998_v30 = vpop.xlane.xlu1 %1472 }
 0x454   : > { %v8000_v31 = vpop.xlane.xlu0 %1463 }
 0x456   : > { %v8002_v45 = vpop.xlane.xlu1 %1466 }
 0x458   : > { %v1434_v50 = vpop.xlane.xlu0 %1433 }
 0x459   : > { %v1476_v25 = vsub.f32 %v7937_v5, %v1434_v50 }
 0x45a   : > { %v1437_v52 = vpop.xlane.xlu1 %1436 }
 0x45b   : > { %v1494_v58 = vmul.f32 1.442695, %v1476_v25  ;;  %v1477_v17 = vsub.f32 %v7939_v2, %v1437_v52 }
 0x45c   : > { %v1452_v33 = vpop.xlane.xlu0 %1451 }
 0x45d   : > { %6784 = vpow2.f32 %v1494_v58  ;;  %v1496_v14 = vmul.f32 1.442695, %v1477_v17  ;;  %v1482_v8 = vsub.f32 %v7964_v24, %v1452_v33  ;;  %v1488_v33 = vsub.f32 %v7970_v37, %v1470_v21 }
 0x45e   : > { %6786 = vpow2.f32 %v1490_v11  ;;  %v1455_v19 = vpop.xlane.xlu1 %1454  ;;  %v1486_v21 = vsub.f32 %v7972_v15, %v8000_v31 }
 0x45f   : > { %6788 = vpow2.f32 %v1496_v14  ;;  %v1483_v46 = vsub.f32 %v7968_v35, %v1455_v19  ;;  %v1506_v24 = vmul.f32 1.442695, %v1482_v8  ;;  %v1489_v35 = vsub.f32 %v7976_v39, %v7998_v30 }
 0x460   : > { %v1458_v5 = vpop.xlane.xlu0 %1457  ;;  %6790 = vpow2.f32 %v1492_v63  ;;  %v1518_v37 = vmul.f32 1.442695, %v1488_v33  ;;  %v1487_v30 = vsub.f32 %v7978_v57, %v8002_v45  ;;  %v1514_v15 = vmul.f32 1.442695, %v1486_v21 }
 0x461   : > { %6792 = vpow2.f32 %v1502_v40  ;;  %v1484_v2 = vsub.f32 %v7962_v34, %v1458_v5  ;;  %v1508_v11 = vmul.f32 1.442695, %v1483_v46  ;;  %v1520_v39 = vmul.f32 1.442695, %v1489_v35 }
 0x462   : > { %v1461_v6 = vpop.xlane.xlu1 %1460  ;;  %6794 = vpow2.f32 %v1504_v38  ;;  %v1516_v5 = vmul.f32 1.442695, %v1487_v30 }
 0x463   : > { %v1485_v18 = vsub.f32 %v7966_v56, %v1461_v6  ;;  %6796 = vpow2.f32 %v1498_v0  ;;  %v1510_v16 = vmul.f32 1.442695, %v1484_v2 }
 0x464   : > { %6798 = vpow2.f32 %v1500_v10 }
 0x465   : > { %v1512_v41 = vmul.f32 1.442695, %v1485_v18  ;;  %6800 = vpow2.f32 %v1510_v16 }
 0x467   : > { %v8013_v50 = vpop.eup %6784  ;;  %6802 = vpow2.f32 %v1512_v41 }
 0x468   : > { %v8016_v51 = vpop.eup %6786  ;;  %v1528_v63 = vsel %vm1181_vm0, %v8013_v50, 0.0  ;;  %6804 = vpow2.f32 %v1506_v24 }
 0x469   : > { %v8020_v1 = vpop.eup %6788  ;;  %1529 = vadd.xlane.f32.xlu0 %v1528_v63  ;;  %v1522_v60 = vsel %vm1181_vm0, %v8016_v51, 0.0  ;;  %6806 = vpow2.f32 %v1508_v11 }
 0x46a   : > { %v1531_v34 = vsel %vm1181_vm0, %v8020_v1, 0.0  ;;  %v8025_v56 = vpop.eup %6790  ;;  %6808 = vpow2.f32 %v1518_v37 }
 0x46b   : > { %1532 = vadd.xlane.f32.xlu1 %v1531_v34  ;;  %v8030_v25 = vpop.eup %6792  ;;  %v1525_v52 = vsel %vm1181_vm0, %v8025_v56, 0.0  ;;  %6810 = vpow2.f32 %v1520_v39 }
 0x46c   : > { %v8036_v55 = vpop.eup %6794  ;;  %v1540_v58 = vsel %vm1181_vm0, %v8030_v25, 0.0  ;;  %6812 = vpow2.f32 %v1514_v15 }
 0x46d   : > { %1523 = vadd.xlane.f32.xlu0 %v1522_v60  ;;  %v8042_v17 = vpop.eup %6796  ;;  %v1543_v14 = vsel %vm1181_vm0, %v8036_v55, 0.0  ;;  %6814 = vpow2.f32 %v1516_v5 }
 0x46e   : > { %v8048_v19 = vpop.eup %6798  ;;  %v1534_v31 = vsel %vm1181_vm0, %v8042_v17, 0.0 }
 0x46f   : > { %1526 = vadd.xlane.f32.xlu1 %v1525_v52  ;;  %v8052_v40 = vpop.eup %6800  ;;  %v1537_v57 = vsel %vm1181_vm0, %v8048_v19, 0.0 }
 0x470   : > { %v1552_v20 = vsel %vm1181_vm0, %v8052_v40, 0.0 }
 0x471   : > { %1541 = vadd.xlane.f32.xlu0 %v1540_v58  ;;  %v8056_v45 = vpop.eup %6802 }
 0x472   : > { %v8060_v38 = vpop.eup %6804  ;;  %v1555_v6 = vsel %vm1181_vm0, %v8056_v45, 0.0 }
 0x473   : > { %1544 = vadd.xlane.f32.xlu1 %v1543_v14  ;;  %v8064_v0 = vpop.eup %6806  ;;  %v1546_v2 = vsel %vm1181_vm0, %v8060_v38, 0.0 }
 0x474   : > { %v8068_v10 = vpop.eup %6808  ;;  %v1549_v18 = vsel %vm1181_vm0, %v8064_v0, 0.0 }
 0x475   : > { %1535 = vadd.xlane.f32.xlu0 %v1534_v31  ;;  %v8072_v8 = vpop.eup %6810  ;;  %v1564_v16 = vsel %vm1181_vm0, %v8068_v10, 0.0 }
 0x476   : > { %v8076_v63 = vpop.eup %6812  ;;  %v1567_v46 = vsel %vm1181_vm0, %v8072_v8, 0.0 }
 0x477   : > { %1538 = vadd.xlane.f32.xlu1 %v1537_v57  ;;  %v8080_v41 = vpop.eup %6814  ;;  %v1558_v34 = vsel %vm1181_vm0, %v8076_v63, 0.0 }
 0x478   : > { %v1561_v33 = vsel %vm1181_vm0, %v8080_v41, 0.0 }
 0x479   : > { %1553 = vadd.xlane.f32.xlu0 %v1552_v20 }
 0x47b   : > { %1556 = vadd.xlane.f32.xlu1 %v1555_v6 }
 0x47d   : > { %1547 = vadd.xlane.f32.xlu0 %v1546_v2 }
 0x47f   : > { %1550 = vadd.xlane.f32.xlu1 %v1549_v18 }
 0x481   : > { %1565 = vadd.xlane.f32.xlu0 %v1564_v16 }
 0x483   : > { %1568 = vadd.xlane.f32.xlu1 %v1567_v46 }
 0x485   : > { %1559 = vadd.xlane.f32.xlu0 %v1558_v34 }
 0x487   : > { %1562 = vadd.xlane.f32.xlu1 %v1561_v33 }
 0x498   : > { %1856 = vrot.lane.b32.xlu1 %v7809_v3, %s7291_s22 }
 0x49b   : > { %1854 = vrot.lane.b32.xlu0 %v7787_v48, %s7291_s22 }
 0x49c   : > { %1848 = vrot.lane.b32.xlu1 %v7789_v26, %s7291_s22 }
 0x49f   : > { %2000 = vrot.lane.b32.xlu0 %v7873_v62, %s7291_s22 }
 0x4a0   : > { %1927 = vrot.lane.b32.xlu1 %v7830_v7, %s7291_s22 }
 0x4a3   : > { %1929 = vrot.lane.b32.xlu0 %v7854_v32, %s7291_s22 }
 0x4a4   : > { %1850 = vrot.lane.b32.xlu1 %v7811_v47, %s7291_s22 }
 0x4a7   : > { %1994 = vrot.lane.b32.xlu0 %v7875_v28, %s7291_s22 }
 0x4a8   : > { %2002 = vrot.lane.b32.xlu1 %v7889_v27, %s7291_s22 }
 0x4ab   : > { %1996 = vrot.lane.b32.xlu0 %v7891_v12, %s7291_s22 }
 0x4ac   : > { %1921 = vrot.lane.b32.xlu1 %v7832_v9, %s7291_s22 }
 0x4af   : > { %1923 = vrot.lane.b32.xlu0 %v7856_v42, %s7291_s22 }
 0x4b0   : > { %2073 = vrot.lane.b32.xlu1 %v7902_v43, %s7291_s22 }
 0x4b3   : > { %2067 = vrot.lane.b32.xlu0 %v7904_v44, %s7291_s22 }
 0x4b4   : > { %2075 = vrot.lane.b32.xlu1 %v7920_v13, %s7291_s22 }
 0x4b7   : > { %2324 = vrot.lane.b32.xlu0 %v7804_v36, %s7291_s22 }
 0x4b8   : > { %2069 = vrot.lane.b32.xlu1 %v7923_v61, %s7291_s22 }
 0x4bb   : > { %2450 = vrot.lane.b32.xlu0 %v7848_v29, %s7291_s22 }
 0x4bc   : > { %2326 = vrot.lane.b32.xlu1 %v7799_v49, %s7291_s22 }
 0x4bf   : > { %2387 = vrot.lane.b32.xlu0 %v7824_v59, %s7291_s22 }
 0x4c0   : > { %2452 = vrot.lane.b32.xlu1 %v7843_v23, %s7291_s22 }
 0x4c3   : > { %2627 = vrot.lane.b32.xlu0 %v7787_v48, %s7292_s21 }
 0x4c4   : > { %2389 = vrot.lane.b32.xlu1 %v7821_v54, %s7291_s22 }
 0x4c8   : > { %2513 = vrot.lane.b32.xlu1 %v7868_v53, %s7291_s22 }
 0x4f6   : > { %v1530_v24 = vpop.xlane.xlu0 %1529 }
 0x4f8   : > { %v1533_v60 = vpop.xlane.xlu1 %1532 }
 0x4f9   : > { %6816 = vrcp.f32 %v1533_v60 }
 0x4fa   : > { %v1524_v35 = vpop.xlane.xlu0 %1523 }
 0x4fb   : > { %6818 = vrcp.f32 %v1524_v35 }
 0x4fc   : > { %6820 = vrcp.f32 %v1530_v24  ;;  %v1527_v11 = vpop.xlane.xlu1 %1526 }
 0x4fd   : > { %6822 = vrcp.f32 %v1527_v11 }
 0x4fe   : > { %v1542_v52 = vpop.xlane.xlu0 %1541 }
 0x500   : > { %v1545_v37 = vpop.xlane.xlu1 %1544 }
 0x501   : > { %6824 = vrcp.f32 %v1545_v37 }
 0x502   : > { %v1536_v21 = vpop.xlane.xlu0 %1535 }
 0x503   : > { %6826 = vrcp.f32 %v1536_v21  ;;  %v6817_v58 = vpop.eup %6816 }
 0x504   : > { %6828 = vrcp.f32 %v1542_v52  ;;  %v1539_v39 = vpop.xlane.xlu1 %1538  ;;  %v1589_v5 = vmul.f32 %v6817_v58, %v8020_v1 }
 0x505   : > { %v6819_v30 = vpop.eup %6818  ;;  %6830 = vrcp.f32 %v1539_v39 }
 0x506   : > { %v6821_v14 = vpop.eup %6820  ;;  %v1554_v15 = vpop.xlane.xlu0 %1553  ;;  %v1586_v20 = vmul.f32 %v6819_v30, %v8016_v51 }
 0x507   : > { %v6823_v31 = vpop.eup %6822  ;;  %v1588_v2 = vmul.f32 %v6821_v14, %v8013_v50 }
 0x508   : > { %v1557_v57 = vpop.xlane.xlu1 %1556  ;;  %v1587_v6 = vmul.f32 %v6823_v31, %v8025_v56 }
 0x509   : > { %6832 = vrcp.f32 %v1557_v57  ;;  %v1603_v46 = vpack.c.bf16 %v1589_v5, %v1588_v2 }
 0x50a   : > { %v1548_v18 = vpop.xlane.xlu0 %1547  ;;  %v1602_v16 = vpack.c.bf16 %v1587_v6, %v1586_v20 }
 0x50b   : > { %6834 = vrcp.f32 %v1548_v18  ;;  %v6825_v34 = vpop.eup %6824 }
 0x50c   : > { %6836 = vrcp.f32 %v1554_v15  ;;  %6257 = vmatprep.mubr.msk.bf16.mxu0 %vm1181_vm0, %v1602_v16  ;;  %v1551_v33 = vpop.xlane.xlu1 %1550  ;;  %v1593_v50 = vmul.f32 %v6825_v34, %v8036_v55 }
 0x50d   : > { %v6827_v24 = vpop.eup %6826  ;;  %6838 = vrcp.f32 %v1551_v33  ;;  %6258 = vmatmul.mubr.msk.bf16.vlgmr.msra.gmra.mrb[36].mxu0 %vm1181_vm0, %v1603_v46 }
 0x50e   : > { %v6829_v1 = vpop.eup %6828  ;;  %6270 = vmatpush3.bf16.msra.mxu0 %v7848_v29  ;;  %v1566_v51 = vpop.xlane.xlu0 %1565  ;;  %v1590_v35 = vmul.f32 %v6827_v24, %v8042_v17 }
 0x50f   : > { %v6831_v56 = vpop.eup %6830  ;;  %6271 = vmatprep.subr.bf16.mxu0 %v7843_v23  ;;  %v1592_v52 = vmul.f32 %v6829_v1, %v8030_v25 }
 0x510   : > { %v1569_v60 = vpop.xlane.xlu1 %1568  ;;  %v1591_v11 = vmul.f32 %v6831_v56, %v8048_v19 }
 0x511   : > { %6840 = vrcp.f32 %v1569_v60  ;;  %v1605_v58 = vpack.c.bf16 %v1593_v50, %v1592_v52 }
 0x512   : > { %6272 = vmatpush3.bf16.msra.mxu0 %v7843_v23  ;;  %v1560_v37 = vpop.xlane.xlu0 %1559  ;;  %v1604_v21 = vpack.c.bf16 %v1591_v11, %v1590_v35 }
 0x513   : > { %6842 = vrcp.f32 %v1560_v37  ;;  %v6833_v39 = vpop.eup %6832 }
 0x514   : > { %6844 = vrcp.f32 %v1566_v51  ;;  %6265 = vmatprep.mubr.msk.bf16.mxu1 %vm1181_vm0, %v1604_v21  ;;  %v1563_v55 = vpop.xlane.xlu1 %1562  ;;  %v1597_v14 = vmul.f32 %v6833_v39, %v8056_v45 }
 0x515   : > { %v6835_v30 = vpop.eup %6834  ;;  %6846 = vrcp.f32 %v1563_v55  ;;  %6266 = vmatmul.mubr.msk.bf16.vlgmr.msra.gmra.mrb[28].mxu1 %vm1181_vm0, %v1605_v58 }
 0x516   : > { %v6837_v17 = vpop.eup %6836  ;;  %6278 = vmatpush3.bf16.msra.mxu1 %v7868_v53  ;;  %v1855_v25 = vpop.permute.xlu0 %1854  ;;  %v1594_v31 = vmul.f32 %v6835_v30, %v8060_v38 }
 0x517   : > { %v6839_v19 = vpop.eup %6838  ;;  %6279 = vmatprep.subr.bf16.mxu1 %v7865_v4  ;;  %v1596_v57 = vmul.f32 %v6837_v17, %v8052_v40  ;;  %v1865_v11 = vsel %vm1181_vm0, %v1855_v25, 0 }
 0x518   : > { %v1857_v15 = vpop.permute.xlu1 %1856  ;;  %v1595_v5 = vmul.f32 %v6839_v19, %v8064_v0 }
 0x519   : > { %v1607_v2 = vpack.c.bf16 %v1597_v14, %v1596_v57  ;;  %v1868_v37 = vsel %vm1181_vm0, %v1857_v15, 0 }
 0x51a   : > { %6280 = vmatpush3.bf16.msra.mxu1 %v7865_v4  ;;  %v2001_v20 = vpop.permute.xlu0 %2000  ;;  %v1606_v6 = vpack.c.bf16 %v1595_v5, %v1594_v31 }
 0x51b   : > { %6517 = vmatprep.subr.msk.bf16.mxu1 %vm1181_vm0, %v1855_v25  ;;  %6521 = vmatprep.subr.msk.bf16.mxu0 %vm1181_vm0, %v2001_v20  ;;  %v2011_v45 = vsel %vm1181_vm0, %v2001_v20, 0  ;;  %v6841_v18 = vpop.eup %6840 }
 0x51c   : > { %6273 = vmatprep.mubr.msk.bf16.mxu0 %vm1181_vm0, %v1606_v6  ;;  %v1849_v16 = vpop.permute.xlu1 %1848  ;;  %v1601_v34 = vmul.f32 %v6841_v18, %v8072_v8 }
 0x51d   : > { %v6843_v38 = vpop.eup %6842  ;;  %6274 = vmatmul.mubr.msk.bf16.vlgmr.msra.gmra.mrb[40].mxu0 %vm1181_vm0, %v1607_v2 }
 0x51e   : > { %v6845_v0 = vpop.eup %6844  ;;  %6302 = vmatpush3.bf16.xpose.msra.mxu0 %v2011_v45  ;;  %v1930_v40 = vpop.permute.xlu0 %1929  ;;  %v1598_v24 = vmul.f32 %v6843_v38, %v8076_v63 }
 0x51f   : > { %v6847_v46 = vpop.eup %6846  ;;  %v1600_v51 = vmul.f32 %v6845_v0, %v8068_v10  ;;  %v1941_v19 = vsel %vm1181_vm0, %v1930_v40, 0 }
 0x520   : > { %v1928_v33 = vpop.permute.xlu1 %1927  ;;  %v1599_v1 = vmul.f32 %v6847_v46, %v8080_v41 }
 0x521   : > { %v1609_v60 = vpack.c.bf16 %v1601_v34, %v1600_v51  ;;  %v1938_v30 = vsel %vm1181_vm0, %v1928_v33, 0 }
 0x522   : > { %v1995_v56 = vpop.permute.xlu0 %1994  ;;  %v1608_v50 = vpack.c.bf16 %v1599_v1, %v1598_v24 }
 0x523   : > { %6305 = vmatprep.mubr.msk.bf16.mxu0 %vm1181_vm0, %v1995_v56 }
 0x524   : > { %6281 = vmatprep.mubr.msk.bf16.mxu1 %vm1181_vm0, %v1608_v50  ;;  %v1851_v35 = vpop.permute.xlu1 %1850 }
 0x525   : > { %6282 = vmatmul.mubr.msk.bf16.vlgmr.msra.gmra.mrb[32].mxu1 %vm1181_vm0, %v1609_v60 }
 0x526   : > { %6286 = vmatpush3.bf16.xpose.msra.mxu1 %v1865_v11  ;;  %v1997_v8 = vpop.permute.xlu0 %1996  ;;  %6289 = vmatprep.mubr.msk.bf16.mxu1 %vm1181_vm0, %v1849_v16 }
 0x527   : > { %6518 = vmatprep.subr.msk.bf16.mxu1 %vm1181_vm0, %v1857_v15 }
 0x528   : > { %v2003_v63 = vpop.permute.xlu1 %2002 }
 0x529   : > { %6522 = vmatprep.subr.msk.bf16.mxu0 %vm1181_vm0, %v2003_v63  ;;  %v2014_v10 = vsel %vm1181_vm0, %v2003_v63, 0 }
 0x52a   : > { %v1924_v41 = vpop.permute.xlu0 %1923  ;;  %6304 = vmatpush3.bf16.xpose.msra.mxu0 %v2014_v10 }
 0x52c   : > { %v1922_v52 = vpop.permute.xlu1 %1921 }
 0x52e   : > { %6288 = vmatpush3.bf16.xpose.msra.mxu1 %v1868_v37  ;;  %v2068_v21 = vpop.permute.xlu0 %2067 }
 0x52f   : > { %6519 = vmatprep.subr.msk.bf16.mxu1 %vm1181_vm0, %v1928_v33 }
 0x530   : > { %v2074_v58 = vpop.permute.xlu1 %2073 }
 0x531   : > { %6306 = vmatmul.mubr.msk.bf16.vlgmr.msra.gmra.mrb[44].mxu0 %vm1181_vm0, %v1997_v8  ;;  %v2084_v15 = vsel %vm1181_vm0, %v2074_v58, 0 }
 0x532   : > { %v2325_v39 = vpop.permute.xlu0 %2324 }
 0x533   : > { %6317 = vmatprep.subr.bf16.mxu0 %v2325_v39 }
 0x534   : > { %6318 = vmatpush3.bf16.msra.mxu0 %v2325_v39  ;;  %v2076_v55 = vpop.permute.xlu1 %2075 }
 0x535   : > { %6290 = vmatmul.mubr.msk.bf16.vlgmr.msra.gmra.mrb[36].mxu1 %vm1181_vm0, %v1851_v35  ;;  %v2087_v31 = vsel %vm1181_vm0, %v2076_v55, 0 }
 0x536   : > { %6294 = vmatpush3.bf16.xpose.msra.mxu1 %v1938_v30  ;;  %6297 = vmatprep.mubr.msk.bf16.mxu1 %vm1181_vm0, %v1922_v52  ;;  %v8181_v14 = vpop.permute.xlu0 %2450 }
 0x537   : > { %6520 = vmatprep.subr.msk.bf16.mxu1 %vm1181_vm0, %v1930_v40 }
 0x538   : > { %v2070_v17 = vpop.permute.xlu1 %2069 }
 0x53a   : > { %v2388_v5 = vpop.permute.xlu0 %2387 }
 0x53c   : > { %v2327_v25 = vpop.permute.xlu1 %2326 }
 0x53d   : > { %6319 = vmatprep.subr.bf16.mxu0 %v2327_v25 }
 0x53e   : > { %6296 = vmatpush3.bf16.xpose.msra.mxu1 %v1941_v19  ;;  %6320 = vmatpush3.bf16.msra.mxu0 %v2327_v25 }
 0x53f   : > { %6523 = vmatprep.subr.msk.bf16.mxu1 %vm1181_vm0, %v2074_v58  ;;  %6333 = vmatprep.subr.bf16.mxu0 %v8181_v14 }
 0x540   : > { %v8190_v57 = vpop.permute.xlu1 %2452 }
 0x544   : > { %v2390_v20 = vpop.permute.xlu1 %2389 }
 0x545   : > { %6298 = vmatmul.mubr.msk.bf16.vlgmr.msra.gmra.mrb[40].mxu1 %vm1181_vm0, %v1924_v41 }
 0x546   : > { %6310 = vmatpush3.bf16.xpose.msra.mxu1 %v2084_v15  ;;  %6313 = vmatprep.mubr.msk.bf16.mxu1 %vm1181_vm0, %v2068_v21 }
 0x547   : > { %6524 = vmatprep.subr.msk.bf16.mxu1 %vm1181_vm0, %v2076_v55 }
 0x548   : > { %v8193_v6 = vpop.permute.xlu1 %2513 }
 0x54e   : > { %6312 = vmatpush3.bf16.xpose.msra.mxu1 %v2087_v31 }
 0x54f   : > { %6325 = vmatprep.subr.bf16.mxu1 %v2388_v5 }
 0x555   : > { %6314 = vmatmul.mubr.msk.bf16.vlgmr.msra.gmra.mrb[44].mxu1 %vm1181_vm0, %v2070_v17 }
 0x556   : > { %6326 = vmatpush3.bf16.msra.mxu1 %v2388_v5 }
 0x557   : > { %6327 = vmatprep.subr.bf16.mxu1 %v2390_v20 }
 0x55a   : > { %6328 = vmatpush3.bf16.msra.mxu1 %v2390_v20 }
 0x55b   : > { %6341 = vmatprep.subr.bf16.mxu1 %v8193_v6 }
 0x5e0   : > { %v6259_v2 = vpop.f32.mrb[36].mxu0 }
 0x5e1   : > { %v1650_v45 = vpop.f32.mrb[37].mxu0 }
 0x5e2   : > { %v6260_v18 = vpop.f32.mrb[38].mxu0 }
 0x5e3   : > { %v1831_v16 = vpack.c.bf16 %v6260_v18, %v6259_v2  ;;  %v1653_v38 = vpop.f32.mrb[39].mxu0 }
 0x5e4   : > { %v1830_v0 = vpack.c.bf16 %v1653_v38, %v1650_v45 }
 0x5e5   : > { %1839 = vst.msk [vmem:[#allocation2 + $0x8] sm:$0xff] %vm1181_vm0, %v1831_v16 }
 0x5e6   : > { %1838 = vst.msk [vmem:[#allocation2] sm:$0xff] %vm1181_vm0, %v1830_v0 }
 0x5e8   : > { %v6267_v40 = vpop.f32.mrb[28].mxu1 }
 0x5e9   : > { %v1705_v46 = vpop.f32.mrb[29].mxu1 }
 0x5ea   : > { %v6268_v34 = vpop.f32.mrb[30].mxu1 }
 0x5eb   : > { %v1833_v33 = vpack.c.bf16 %v6268_v34, %v6267_v40  ;;  %v1708_v24 = vpop.f32.mrb[31].mxu1 }
 0x5ec   : > { %v1832_v1 = vpack.c.bf16 %v1708_v24, %v1705_v46 }
 0x5ed   : > { %1841 = vst.msk [vmem:[#allocation2 + $0x18] sm:$0xff] %vm1181_vm0, %v1833_v33 }
 0x5ee   : > { %1840 = vst.msk [vmem:[#allocation2 + $0x10] sm:$0xff] %vm1181_vm0, %v1832_v1 }
 0x5f0   : > { %v6275_v51 = vpop.f32.mrb[40].mxu0 }
 0x5f1   : > { %v1760_v56 = vpop.f32.mrb[41].mxu0 }
 0x5f2   : > { %v6276_v50 = vpop.f32.mrb[42].mxu0 }
 0x5f3   : > { %v1835_v60 = vpack.c.bf16 %v6276_v50, %v6275_v51  ;;  %v1763_v35 = vpop.f32.mrb[43].mxu0 }
 0x5f4   : > { %v1834_v11 = vpack.c.bf16 %v1763_v35, %v1760_v56 }
 0x5f5   : > { %1843 = vst.msk [vmem:[#allocation2 + $0x28] sm:$0xff] %vm1181_vm0, %v1835_v60 }
 0x5f6   : > { %1842 = vst.msk [vmem:[#allocation2 + $0x20] sm:$0xff] %vm1181_vm0, %v1834_v11 }
 0x5f8   : > { %v6283_v8 = vpop.f32.mrb[32].mxu1 }
 0x5f9   : > { %v1815_v63 = vpop.f32.mrb[33].mxu1 }
 0x5fa   : > { %v6284_v10 = vpop.f32.mrb[34].mxu1 }
 0x5fb   : > { %v1837_v41 = vpack.c.bf16 %v6284_v10, %v6283_v8  ;;  %v1818_v52 = vpop.f32.mrb[35].mxu1  ;;  %v8257_v10 = vpop.permute.xlu0 %2627 }
 0x5fc   : > { %v1836_v37 = vpack.c.bf16 %v1818_v52, %v1815_v63 }
 0x5fd   : > { %1845 = vst.msk [vmem:[#allocation2 + $0x38] sm:$0xff] %vm1181_vm0, %v1837_v41 }
 0x5fe   : > { %1844 = vst.msk [vmem:[#allocation2 + $0x30] sm:$0xff] %vm1181_vm0, %v1836_v37 }
 0x604   : > { %v6307_v21 = vpop.f32.mrb[44].mxu0 }
 0x605   : > { %v2050_v58 = vpop.f32.mrb[45].mxu0  ;;  %v2168_v39 = vsel %vm1181_vm0, %v6307_v21, -inf }
 0x606   : > { %2169 = vmax.xlane.f32.xlu0 %v2168_v39  ;;  %v6308_v55 = vpop.f32.mrb[46].mxu0  ;;  %v2162_v15 = vsel %vm1181_vm0, %v2050_v58, -inf }
 0x607   : > { %v2053_v30 = vpop.f32.mrb[47].mxu0  ;;  %v2171_v17 = vsel %vm1181_vm0, %v6308_v55, -inf }
 0x608   : > { %v6291_v25 = vpop.f32.mrb[36].mxu1  ;;  %2172 = vmax.xlane.f32.xlu1 %v2171_v17  ;;  %v2165_v20 = vsel %vm1181_vm0, %v2053_v30, -inf }
 0x609   : > { %v8206_v19 = vpop.f32.mrb[37].mxu1  ;;  %v2144_v2 = vsel %vm1181_vm0, %v6291_v25, -inf }
 0x60a   : > { %v8209_v31 = vpop.f32.mrb[38].mxu1  ;;  %2163 = vmax.xlane.f32.xlu0 %v2162_v15  ;;  %v2138_v18 = vsel %vm1181_vm0, %v8206_v19, -inf }
 0x60b   : > { %v8211_v5 = vpop.f32.mrb[39].mxu1  ;;  %v2147_v16 = vsel %vm1181_vm0, %v8209_v31, -inf }
 0x60c   : > { %2166 = vmax.xlane.f32.xlu1 %v2165_v20  ;;  %v2141_v45 = vsel %vm1181_vm0, %v8211_v5, -inf }
 0x60e   : > { %2145 = vmax.xlane.f32.xlu0 %v2144_v2 }
 0x610   : > { %2142 = vmax.xlane.f32.xlu1 %v2141_v45 }
 0x612   : > { %2139 = vmax.xlane.f32.xlu0 %v2138_v18 }
 0x616   : > { %2148 = vmax.xlane.f32.xlu0 %v2147_v16 }
 0x618   : > { %v8221_v38 = vpop.f32.mrb[40].mxu1 }
 0x619   : > { %v8223_v0 = vpop.f32.mrb[41].mxu1  ;;  %v2156_v40 = vsel %vm1181_vm0, %v8221_v38, -inf }
 0x61a   : > { %v8227_v46 = vpop.f32.mrb[42].mxu1  ;;  %2157 = vmax.xlane.f32.xlu0 %v2156_v40  ;;  %v2150_v24 = vsel %vm1181_vm0, %v8223_v0, -inf }
 0x61b   : > { %v8229_v34 = vpop.f32.mrb[43].mxu1  ;;  %v2159_v33 = vsel %vm1181_vm0, %v8227_v46, -inf }
 0x61c   : > { %2160 = vmax.xlane.f32.xlu1 %v2159_v33  ;;  %v2153_v1 = vsel %vm1181_vm0, %v8229_v34, -inf }
 0x61e   : > { %2151 = vmax.xlane.f32.xlu0 %v2150_v24 }
 0x620   : > { %2154 = vmax.xlane.f32.xlu1 %v2153_v1 }
 0x628   : > { %v8237_v51 = vpop.f32.mrb[44].mxu1 }
 0x629   : > { %v8239_v56 = vpop.f32.mrb[45].mxu1  ;;  %v2180_v50 = vsel %vm1181_vm0, %v8237_v51, -inf }
 0x62a   : > { %2181 = vmax.xlane.f32.xlu0 %v2180_v50  ;;  %v8243_v60 = vpop.f32.mrb[46].mxu1  ;;  %v2174_v11 = vsel %vm1181_vm0, %v8239_v56, -inf }
 0x62b   : > { %v8245_v35 = vpop.f32.mrb[47].mxu1  ;;  %v2183_v8 = vsel %vm1181_vm0, %v8243_v60, -inf }
 0x62c   : > { %v2177_v63 = vsel %vm1181_vm0, %v8245_v35, -inf }
 0x62e   : > { %2175 = vmax.xlane.f32.xlu0 %v2174_v11 }
 0x631   : > { %2629 = vrot.lane.b32.xlu1 %v7809_v3, %s7292_s21 }
 0x644   : > { %2515 = vrot.lane.b32.xlu0 %v7865_v4, %s7291_s22 }
 0x655   : > { %2184 = vmax.xlane.f32.xlu1 %v2183_v8 }
 0x659   : > { %2178 = vmax.xlane.f32.xlu1 %v2177_v63 }
 0x693   : > { %v2170_v41 = vpop.xlane.xlu0 %2169 }
 0x694   : > { %v2196_v52 = vsub.f32 %v6307_v21, %v2170_v41 }
 0x695   : > { %v2173_v37 = vpop.xlane.xlu1 %2172 }
 0x696   : > { %v2222_v39 = vmul.f32 1.442695, %v2196_v52  ;;  %v2197_v17 = vsub.f32 %v6308_v55, %v2173_v37 }
 0x697   : > { %v2164_v15 = vpop.xlane.xlu0 %2163 }
 0x698   : > { %6848 = vpow2.f32 %v2222_v39  ;;  %v2224_v20 = vmul.f32 1.442695, %v2197_v17  ;;  %v2194_v2 = vsub.f32 %v2050_v58, %v2164_v15 }
 0x699   : > { %v2167_v45 = vpop.xlane.xlu1 %2166 }
 0x69a   : > { %6850 = vpow2.f32 %v2224_v20  ;;  %v2218_v18 = vmul.f32 1.442695, %v2194_v2  ;;  %v2195_v16 = vsub.f32 %v2053_v30, %v2167_v45 }
 0x69b   : > { %v2146_v40 = vpop.xlane.xlu0 %2145 }
 0x69c   : > { %6852 = vpow2.f32 %v2218_v18  ;;  %v2220_v33 = vmul.f32 1.442695, %v2195_v16  ;;  %v2188_v24 = vsub.f32 %v6291_v25, %v2146_v40 }
 0x69d   : > { %v2143_v50 = vpop.xlane.xlu1 %2142 }
 0x69e   : > { %6854 = vpow2.f32 %v2220_v33  ;;  %v2206_v1 = vmul.f32 1.442695, %v2188_v24  ;;  %v2187_v8 = vsub.f32 %v8211_v5, %v2143_v50 }
 0x69f   : > { %v2140_v11 = vpop.xlane.xlu0 %2139 }
 0x6a0   : > { %6856 = vpow2.f32 %v2206_v1  ;;  %v2186_v21 = vsub.f32 %v8206_v19, %v2140_v11  ;;  %v2204_v19 = vmul.f32 1.442695, %v2187_v8 }
 0x6a2   : > { %v8260_v55 = vpop.eup %6848  ;;  %v2202_v58 = vmul.f32 1.442695, %v2186_v21 }
 0x6a3   : > { %v2149_v63 = vpop.xlane.xlu0 %2148  ;;  %v2264_v30 = vsel %vm1181_vm0, %v8260_v55, 0.0 }
 0x6a4   : > { %v8265_v41 = vpop.eup %6850  ;;  %6858 = vpow2.f32 %v2202_v58  ;;  %v2189_v25 = vsub.f32 %v8209_v31, %v2149_v63  ;;  %2265 = vadd.xlane.f32.xlu0 %v2264_v30 }
 0x6a5   : > { %v2267_v52 = vsel %vm1181_vm0, %v8265_v41, 0.0 }
 0x6a6   : > { %v8270_v37 = vpop.eup %6852  ;;  %v2208_v39 = vmul.f32 1.442695, %v2189_v25  ;;  %2268 = vadd.xlane.f32.xlu1 %v2267_v52 }
 0x6a7   : > { %v2158_v5 = vpop.xlane.xlu0 %2157  ;;  %v2258_v17 = vsel %vm1181_vm0, %v8270_v37, 0.0 }
 0x6a8   : > { %v8274_v15 = vpop.eup %6854  ;;  %6860 = vpow2.f32 %v2208_v39  ;;  %v2192_v20 = vsub.f32 %v8221_v38, %v2158_v5  ;;  %2259 = vadd.xlane.f32.xlu0 %v2258_v17 }
 0x6a9   : > { %v2261_v31 = vsel %vm1181_vm0, %v8274_v15, 0.0  ;;  %6862 = vpow2.f32 %v2204_v19  ;;  %v2161_v30 = vpop.xlane.xlu1 %2160 }
 0x6aa   : > { %v8279_v2 = vpop.eup %6856  ;;  %v2214_v45 = vmul.f32 1.442695, %v2192_v20  ;;  %2262 = vadd.xlane.f32.xlu1 %v2261_v31  ;;  %v2193_v25 = vsub.f32 %v8227_v46, %v2161_v30 }
 0x6ab   : > { %v2152_v18 = vpop.xlane.xlu0 %2151  ;;  %v2240_v16 = vsel %vm1181_vm0, %v8279_v2, 0.0 }
 0x6ac   : > { %6864 = vpow2.f32 %v2214_v45  ;;  %v2190_v40 = vsub.f32 %v8223_v0, %v2152_v18  ;;  %2241 = vadd.xlane.f32.xlu0 %v2240_v16  ;;  %v2216_v39 = vmul.f32 1.442695, %v2193_v25 }
 0x6ad   : > { %v2155_v52 = vpop.xlane.xlu1 %2154 }
 0x6ae   : > { %v8284_v33 = vpop.eup %6858  ;;  %v2210_v38 = vmul.f32 1.442695, %v2190_v40  ;;  %v2191_v5 = vsub.f32 %v8229_v34, %v2155_v52 }
 0x6af   : > { %v2234_v24 = vsel %vm1181_vm0, %v8284_v33, 0.0 }
 0x6b0   : > { %6866 = vpow2.f32 %v2210_v38  ;;  %2235 = vadd.xlane.f32.xlu0 %v2234_v24  ;;  %v2212_v20 = vmul.f32 1.442695, %v2191_v5 }
 0x6b1   : > { %v8310_v17 = vpop.permute.xlu1 %2629  ;;  %6868 = vpow2.f32 %v2216_v39 }
 0x6b2   : > { %v8288_v1 = vpop.eup %6860  ;;  %6870 = vpow2.f32 %v2212_v20 }
 0x6b3   : > { %v2243_v50 = vsel %vm1181_vm0, %v8288_v1, 0.0  ;;  %v8292_v11 = vpop.eup %6862 }
 0x6b4   : > { %2244 = vadd.xlane.f32.xlu1 %v2243_v50  ;;  %v2237_v8 = vsel %vm1181_vm0, %v8292_v11, 0.0 }
 0x6b6   : > { %v8294_v21 = vpop.eup %6864 }
 0x6b7   : > { %v2252_v0 = vsel %vm1181_vm0, %v8294_v21, 0.0  ;;  %v2182_v19 = vpop.xlane.xlu0 %2181 }
 0x6b8   : > { %2253 = vadd.xlane.f32.xlu0 %v2252_v0  ;;  %2238 = vadd.xlane.f32.xlu1 %v2237_v8  ;;  %v2200_v31 = vsub.f32 %v8237_v51, %v2182_v19 }
 0x6ba   : > { %v8300_v58 = vpop.eup %6866  ;;  %v2230_v40 = vmul.f32 1.442695, %v2200_v31 }
 0x6bb   : > { %v2246_v63 = vsel %vm1181_vm0, %v8300_v58, 0.0  ;;  %v2176_v45 = vpop.xlane.xlu0 %2175  ;;  %v8316_v34 = vpop.eup %6868 }
 0x6bc   : > { %2247 = vadd.xlane.f32.xlu0 %v2246_v63  ;;  %v2198_v18 = vsub.f32 %v8239_v56, %v2176_v45  ;;  %6872 = vpow2.f32 %v2230_v40  ;;  %v2255_v51 = vsel %vm1181_vm0, %v8316_v34, 0.0  ;;  %v8320_v56 = vpop.eup %6870 }
 0x6bd   : > { %v2249_v63 = vsel %vm1181_vm0, %v8320_v56, 0.0 }
 0x6be   : > { %v2226_v38 = vmul.f32 1.442695, %v2198_v18 }
 0x6bf   : > { %v8372_v20 = vpop.permute.xlu0 %2515 }
 0x6c0   : > { %6874 = vpow2.f32 %v2226_v38 }
 0x6c6   : > { %v8324_v30 = vpop.eup %6872 }
 0x6c9   : > { %2696 = vrot.lane.b32.xlu1 %v7830_v7, %s7292_s21 }
 0x6d2   : > { %2623 = vrot.lane.b32.xlu0 %v7789_v26, %s7292_s21 }
 0x6e2   : > { %v2185_v16 = vpop.xlane.xlu1 %2184 }
 0x6e3   : > { %v2201_v46 = vsub.f32 %v8243_v60, %v2185_v16  ;;  %v8326_v60 = vpop.eup %6874 }
 0x6e4   : > { %v2270_v19 = vsel %vm1181_vm0, %v8326_v60, 0.0 }
 0x6e5   : > { %v2232_v8 = vmul.f32 1.442695, %v2201_v46 }
 0x6e6   : > { %v2179_v24 = vpop.xlane.xlu1 %2178 }
 0x6e7   : > { %v2199_v50 = vsub.f32 %v8245_v35, %v2179_v24  ;;  %v2276_v35 = vsel %vm1181_vm0, %v8324_v30, 0.0 }
 0x6e9   : > { %v2228_v0 = vmul.f32 1.442695, %v2199_v50 }
 0x6eb   : > { %6876 = vpow2.f32 %v2228_v0 }
 0x6ec   : > { %6878 = vpow2.f32 %v2232_v8 }
 0x6ed   : > { %2256 = vadd.xlane.f32.xlu1 %v2255_v51 }
 0x6f1   : > { %2250 = vadd.xlane.f32.xlu1 %v2249_v63 }
 0x6f5   : > { %v8330_v25 = vpop.eup %6876  ;;  %2277 = vadd.xlane.f32.xlu1 %v2276_v35 }
 0x6f6   : > { %v2273_v52 = vsel %vm1181_vm0, %v8330_v25, 0.0  ;;  %v8336_v39 = vpop.eup %6878 }
 0x6f7   : > { %2274 = vadd.xlane.f32.xlu0 %v2273_v52  ;;  %v2279_v5 = vsel %vm1181_vm0, %v8336_v39, 0.0 }
 0x6f9   : > { %2271 = vadd.xlane.f32.xlu1 %v2270_v19 }
 0x6fd   : > { %2280 = vadd.xlane.f32.xlu1 %v2279_v5 }
 0x70d   : > { %2765 = vrot.lane.b32.xlu0 %v7873_v62, %s7292_s21 }
 0x70e   : > { %2625 = vrot.lane.b32.xlu1 %v7811_v47, %s7292_s21 }
 0x711   : > { %2698 = vrot.lane.b32.xlu0 %v7854_v32, %s7292_s21 }
 0x712   : > { %2767 = vrot.lane.b32.xlu1 %v7889_v27, %s7292_s21 }
 0x715   : > { %2761 = vrot.lane.b32.xlu0 %v7875_v28, %s7292_s21 }
 0x716   : > { %2692 = vrot.lane.b32.xlu1 %v7832_v9, %s7292_s21 }
 0x719   : > { %2763 = vrot.lane.b32.xlu0 %v7891_v12, %s7292_s21 }
 0x71a   : > { %2834 = vrot.lane.b32.xlu1 %v7902_v43, %s7292_s21 }
 0x71d   : > { %2694 = vrot.lane.b32.xlu0 %v7856_v42, %s7292_s21 }
 0x71e   : > { %2836 = vrot.lane.b32.xlu1 %v7920_v13, %s7292_s21 }
 0x721   : > { %2830 = vrot.lane.b32.xlu0 %v7904_v44, %s7292_s21 }
 0x722   : > { %2832 = vrot.lane.b32.xlu1 %v7923_v61, %s7292_s21 }
 0x725   : > { %3083 = vrot.lane.b32.xlu0 %v7804_v36, %s7292_s21 }
 0x726   : > { %3085 = vrot.lane.b32.xlu1 %v7799_v49, %s7292_s21 }
 0x729   : > { %3205 = vrot.lane.b32.xlu0 %v7848_v29, %s7292_s21 }
 0x72a   : > { %3207 = vrot.lane.b32.xlu1 %v7843_v23, %s7292_s21 }
 0x72d   : > { %3144 = vrot.lane.b32.xlu0 %v7824_v59, %s7292_s21 }
 0x72e   : > { %3146 = vrot.lane.b32.xlu1 %v7821_v54, %s7292_s21 }
 0x731   : > { %3380 = vrot.lane.b32.xlu0 %v7787_v48, %s7293_s13  ;;  %v2266_v31 = vpop.xlane.xlu0 %2265 }
 0x732   : > { %3266 = vrot.lane.b32.xlu1 %v7868_v53, %s7292_s21 }
 0x733   : > { %v2269_v18 = vpop.xlane.xlu1 %2268 }
 0x735   : > { %v2260_v45 = vpop.xlane.xlu0 %2259 }
 0x736   : > { %6880 = vrcp.f32 %v2260_v45 }
 0x737   : > { %v2263_v40 = vpop.xlane.xlu1 %2262 }
 0x738   : > { %6882 = vrcp.f32 %v2263_v40 }
 0x739   : > { %v2242_v16 = vpop.xlane.xlu0 %2241 }
 0x73d   : > { %v2236_v24 = vpop.xlane.xlu0 %2235 }
 0x740   : > { %v6881_v50 = vpop.eup %6880 }
 0x741   : > { %v2245_v38 = vpop.xlane.xlu1 %2244 }
 0x742   : > { %6884 = vrcp.f32 %v2245_v38  ;;  %v6883_v48 = vpop.eup %6882 }
 0x743   : > { %6886 = vrcp.f32 %v2236_v24  ;;  %v2307_v5 = vmul.f32 %v6883_v48, %v8274_v15 }
 0x744   : > { %6888 = vrcp.f32 %v2242_v16 }
 0x745   : > { %v2239_v46 = vpop.xlane.xlu1 %2238  ;;  %v2254_v16 = vpop.xlane.xlu0 %2253 }
 0x746   : > { %6890 = vrcp.f32 %v2239_v46 }
 0x747   : > { %6892 = vrcp.f32 %v2269_v18  ;;  %v2306_v18 = vmul.f32 %v6881_v50, %v8270_v37 }
 0x748   : > { %6894 = vrcp.f32 %v2266_v31 }
 0x749   : > { %v2318_v31 = vpack.c.bf16 %v2307_v5, %v2306_v18 }
 0x74c   : > { %v6885_v0 = vpop.eup %6884 }
 0x74d   : > { %v6887_v8 = vpop.eup %6886  ;;  %v2301_v35 = vmul.f32 %v6885_v0, %v8288_v1 }
 0x74e   : > { %v6889_v51 = vpop.eup %6888  ;;  %v2298_v52 = vmul.f32 %v6887_v8, %v8284_v33  ;;  %v2248_v33 = vpop.xlane.xlu0 %2247 }
 0x74f   : > { %v2300_v45 = vmul.f32 %v6889_v51, %v8279_v2 }
 0x750   : > { %v6891_v63 = vpop.eup %6890 }
 0x751   : > { %v2299_v19 = vmul.f32 %v6891_v63, %v8292_v11  ;;  %v2315_v38 = vpack.c.bf16 %v2301_v35, %v2300_v45  ;;  %v6893_v24 = vpop.eup %6892 }
 0x752   : > { %v6895_v1 = vpop.eup %6894  ;;  %v2309_v15 = vmul.f32 %v6893_v24, %v8265_v41  ;;  %v2624_v11 = vpop.permute.xlu0 %2623 }
 0x753   : > { %v2314_v40 = vpack.c.bf16 %v2299_v19, %v2298_v52  ;;  %v2308_v2 = vmul.f32 %v6895_v1, %v8260_v55  ;;  %v2641_v55 = vsel %vm1181_vm0, %v8310_v17, 0 }
 0x755   : > { %6321 = vmatprep.mubr.msk.bf16.mxu0 %vm1181_vm0, %v2314_v40  ;;  %v2319_v37 = vpack.c.bf16 %v2309_v15, %v2308_v2 }
 0x756   : > { %6322 = vmatmul.mubr.msk.bf16.vlgmr.msra.gmra.mrb[48].mxu0 %vm1181_vm0, %v2315_v38 }
 0x757   : > { %6334 = vmatpush3.bf16.msra.mxu0 %v8181_v14  ;;  %6337 = vmatprep.mubr.msk.bf16.mxu0 %vm1181_vm0, %v2318_v31  ;;  %v2638_v14 = vsel %vm1181_vm0, %v8257_v10, 0 }
 0x758   : > { %6335 = vmatprep.subr.bf16.mxu0 %v8190_v57 }
 0x75b   : > { %6336 = vmatpush3.bf16.msra.mxu0 %v8190_v57  ;;  %v2697_v57 = vpop.permute.xlu1 %2696 }
 0x75c   : > { %6525 = vmatprep.subr.msk.bf16.mxu0 %vm1181_vm0, %v8257_v10 }
 0x75e   : > { %6338 = vmatmul.mubr.msk.bf16.vlgmr.msra.gmra.mrb[52].mxu0 %vm1181_vm0, %v2319_v37 }
 0x75f   : > { %6353 = vmatprep.mubr.msk.bf16.mxu0 %vm1181_vm0, %v2624_v11 }
 0x764   : > { %6350 = vmatpush3.bf16.xpose.msra.mxu0 %v2638_v14 }
 0x765   : > { %6526 = vmatprep.subr.msk.bf16.mxu0 %vm1181_vm0, %v8310_v17 }
 0x76c   : > { %6352 = vmatpush3.bf16.xpose.msra.mxu0 %v2641_v55 }
 0x77a   : > { %v2257_v41 = vpop.xlane.xlu1 %2256 }
 0x77b   : > { %6896 = vrcp.f32 %v2257_v41 }
 0x77c   : > { %6898 = vrcp.f32 %v2248_v33 }
 0x77d   : > { %6900 = vrcp.f32 %v2254_v16 }
 0x77e   : > { %v2251_v46 = vpop.xlane.xlu1 %2250 }
 0x77f   : > { %6902 = vrcp.f32 %v2251_v46  ;;  %v2707_v46 = vsel %vm1181_vm0, %v2697_v57, 0 }
 0x782   : > { %v2278_v50 = vpop.xlane.xlu1 %2277 }
 0x784   : > { %v2275_v48 = vpop.xlane.xlu0 %2274 }
 0x785   : > { %6904 = vrcp.f32 %v2275_v48  ;;  %v6897_v0 = vpop.eup %6896 }
 0x786   : > { %v2272_v10 = vpop.xlane.xlu1 %2271  ;;  %v6899_v8 = vpop.eup %6898  ;;  %v2305_v17 = vmul.f32 %v6897_v0, %v8316_v34 }
 0x787   : > { %6906 = vrcp.f32 %v2272_v10  ;;  %v6901_v51 = vpop.eup %6900  ;;  %v2302_v19 = vmul.f32 %v6899_v8, %v8300_v58 }
 0x788   : > { %v2766_v63 = vpop.permute.xlu0 %2765  ;;  %6908 = vrcp.f32 %v2278_v50  ;;  %v2304_v45 = vmul.f32 %v6901_v51, %v8294_v21 }
 0x789   : > { %v6903_v35 = vpop.eup %6902  ;;  %6529 = vmatprep.subr.msk.bf16.mxu0 %vm1181_vm0, %v2766_v63  ;;  %v2776_v34 = vsel %vm1181_vm0, %v2766_v63, 0 }
 0x78a   : > { %v2281_v52 = vpop.xlane.xlu1 %2280  ;;  %v2303_v5 = vmul.f32 %v6903_v35, %v8320_v56  ;;  %v2317_v18 = vpack.c.bf16 %v2305_v17, %v2304_v45 }
 0x78b   : > { %6910 = vrcp.f32 %v2281_v52 }
 0x78c   : > { %v2699_v16 = vpop.permute.xlu0 %2698  ;;  %v2316_v40 = vpack.c.bf16 %v2303_v5, %v2302_v19 }
 0x78d   : > { %v2710_v48 = vsel %vm1181_vm0, %v2699_v16, 0 }
 0x78e   : > { %6329 = vmatprep.mubr.msk.bf16.mxu1 %vm1181_vm0, %v2316_v40  ;;  %v2626_v38 = vpop.permute.xlu1 %2625 }
 0x78f   : > { %v6905_v24 = vpop.eup %6904  ;;  %6330 = vmatmul.mubr.msk.bf16.vlgmr.msra.gmra.mrb[48].mxu1 %vm1181_vm0, %v2317_v18  ;;  %6354 = vmatmul.mubr.msk.bf16.vlgmr.msra.gmra.mrb[56].mxu0 %vm1181_vm0, %v2626_v38 }
 0x790   : > { %v2762_v31 = vpop.permute.xlu0 %2761  ;;  %6342 = vmatpush3.bf16.msra.mxu1 %v8193_v6  ;;  %6366 = vmatpush3.bf16.xpose.msra.mxu0 %v2776_v34  ;;  %v2311_v1 = vmul.f32 %v6905_v24, %v8330_v25 }
 0x791   : > { %v6907_v58 = vpop.eup %6906  ;;  %6343 = vmatprep.subr.bf16.mxu1 %v8372_v20  ;;  %6369 = vmatprep.mubr.msk.bf16.mxu0 %vm1181_vm0, %v2762_v31 }
 0x792   : > { %v2768_v21 = vpop.permute.xlu1 %2767  ;;  %v2310_v56 = vmul.f32 %v6907_v58, %v8326_v60  ;;  %v6909_v15 = vpop.eup %6908 }
 0x793   : > { %6530 = vmatprep.subr.msk.bf16.mxu0 %vm1181_vm0, %v2768_v21  ;;  %v2312_v6 = vmul.f32 %v6909_v15, %v8324_v30  ;;  %v2779_v60 = vsel %vm1181_vm0, %v2768_v21, 0 }
 0x794   : > { %v2764_v33 = vpop.permute.xlu0 %2763  ;;  %6344 = vmatpush3.bf16.msra.mxu1 %v8372_v20  ;;  %v2320_v2 = vpack.c.bf16 %v2311_v1, %v2310_v56 }
 0x795   : > { %v6911_v37 = vpop.eup %6910  ;;  %6527 = vmatprep.subr.msk.bf16.mxu1 %vm1181_vm0, %v2697_v57 }
 0x796   : > { %v2313_v11 = vmul.f32 %v6911_v37, %v8336_v39  ;;  %6345 = vmatprep.mubr.msk.bf16.mxu1 %vm1181_vm0, %v2320_v2  ;;  %v2693_v14 = vpop.permute.xlu1 %2692 }
 0x798   : > { %v2695_v25 = vpop.permute.xlu0 %2694  ;;  %6368 = vmatpush3.bf16.xpose.msra.mxu0 %v2779_v60  ;;  %v2321_v55 = vpack.c.bf16 %v2313_v11, %v2312_v6 }
 0x79a   : > { %6346 = vmatmul.mubr.msk.bf16.vlgmr.msra.gmra.mrb[52].mxu1 %vm1181_vm0, %v2321_v55  ;;  %v2835_v41 = vpop.permute.xlu1 %2834 }
 0x79b   : > { %6361 = vmatprep.mubr.msk.bf16.mxu1 %vm1181_vm0, %v2693_v14  ;;  %v2845_v57 = vsel %vm1181_vm0, %v2835_v41, 0 }
 0x79c   : > { %v2831_v20 = vpop.permute.xlu0 %2830 }
 0x79d   : > { %6358 = vmatpush3.bf16.xpose.msra.mxu1 %v2707_v46 }
 0x79e   : > { %6528 = vmatprep.subr.msk.bf16.mxu1 %vm1181_vm0, %v2699_v16  ;;  %v2837_v30 = vpop.permute.xlu1 %2836 }
 0x79f   : > { %6370 = vmatmul.mubr.msk.bf16.vlgmr.msra.gmra.mrb[60].mxu0 %vm1181_vm0, %v2764_v33  ;;  %v2848_v8 = vsel %vm1181_vm0, %v2837_v30, 0 }
 0x7a0   : > { %v3084_v39 = vpop.permute.xlu0 %3083 }
 0x7a1   : > { %6381 = vmatprep.subr.bf16.mxu0 %v3084_v39 }
 0x7a2   : > { %6382 = vmatpush3.bf16.msra.mxu0 %v3084_v39  ;;  %v2833_v50 = vpop.permute.xlu1 %2832 }
 0x7a4   : > { %v8434_v10 = vpop.permute.xlu0 %3205 }
 0x7a5   : > { %6360 = vmatpush3.bf16.xpose.msra.mxu1 %v2710_v48 }
 0x7a6   : > { %6531 = vmatprep.subr.msk.bf16.mxu1 %vm1181_vm0, %v2835_v41  ;;  %v3086_v0 = vpop.permute.xlu1 %3085 }
 0x7a7   : > { %6383 = vmatprep.subr.bf16.mxu0 %v3086_v0 }
 0x7a8   : > { %6384 = vmatpush3.bf16.msra.mxu0 %v3086_v0  ;;  %v3145_v51 = vpop.permute.xlu0 %3144 }
 0x7a9   : > { %6397 = vmatprep.subr.bf16.mxu0 %v8434_v10 }
 0x7aa   : > { %v8442_v63 = vpop.permute.xlu1 %3207 }
 0x7ac   : > { %6362 = vmatmul.mubr.msk.bf16.vlgmr.msra.gmra.mrb[56].mxu1 %vm1181_vm0, %v2695_v25 }
 0x7ad   : > { %6374 = vmatpush3.bf16.xpose.msra.mxu1 %v2845_v57  ;;  %6377 = vmatprep.mubr.msk.bf16.mxu1 %vm1181_vm0, %v2831_v20 }
 0x7ae   : > { %6532 = vmatprep.subr.msk.bf16.mxu1 %vm1181_vm0, %v2837_v30  ;;  %v3147_v35 = vpop.permute.xlu1 %3146 }
 0x7b2   : > { %v8445_v17 = vpop.permute.xlu1 %3266 }
 0x7b5   : > { %6376 = vmatpush3.bf16.xpose.msra.mxu1 %v2848_v8 }
 0x7b6   : > { %6389 = vmatprep.subr.bf16.mxu1 %v3145_v51 }
 0x7bc   : > { %6378 = vmatmul.mubr.msk.bf16.vlgmr.msra.gmra.mrb[60].mxu1 %vm1181_vm0, %v2833_v50 }
 0x7bd   : > { %6390 = vmatpush3.bf16.msra.mxu1 %v3145_v51 }
 0x7be   : > { %6391 = vmatprep.subr.bf16.mxu1 %v3147_v35 }
 0x7c1   : > { %6392 = vmatpush3.bf16.msra.mxu1 %v3147_v35 }
 0x7c2   : > { %6405 = vmatprep.subr.bf16.mxu1 %v8445_v17 }
 0x829   : > { %v8448_v52 = vpop.f32.mrb[48].mxu0 }
 0x82a   : > { %v8450_v19 = vpop.f32.mrb[49].mxu0 }
 0x82b   : > { %v8452_v5 = vpop.f32.mrb[50].mxu0 }
 0x82c   : > { %v8456_v16 = vpop.f32.mrb[51].mxu0 }
 0x831   : > { %v8460_v18 = vpop.f32.mrb[52].mxu0 }
 0x832   : > { %9570 = vst [vmem:[#allocation19_spill] sm:$0xff] %v8460_v18  ;;  %v8462_v38 = vpop.f32.mrb[53].mxu0 }
 0x833   : > { %9571 = vst [vmem:[#allocation20_spill] sm:$0xff] %v8462_v38  ;;  %v8464_v24 = vpop.f32.mrb[54].mxu0 }
 0x834   : > { %v8468_v31 = vpop.f32.mrb[55].mxu0 }
 0x835   : > { %9572 = vst [vmem:[#allocation21_spill] sm:$0xff] %v8468_v31 }
 0x862   : > { %v8472_v21 = vpop.f32.mrb[48].mxu1  ;;  %v8474_v56 = vpop.f32.mrb[56].mxu0 }
 0x863   : > { %v8476_v1 = vpop.f32.mrb[49].mxu1  ;;  %v8478_v15 = vpop.f32.mrb[57].mxu0  ;;  %v2905_v33 = vsel %vm1181_vm0, %v8474_v56, -inf }
 0x864   : > { %v8482_v2 = vpop.f32.mrb[50].mxu1  ;;  %2906 = vmax.xlane.f32.xlu0 %v2905_v33  ;;  %v8484_v37 = vpop.f32.mrb[58].mxu0  ;;  %v2899_v55 = vsel %vm1181_vm0, %v8478_v15, -inf }
 0x865   : > { %v8488_v11 = vpop.f32.mrb[51].mxu1  ;;  %v8490_v14 = vpop.f32.mrb[59].mxu0  ;;  %v2908_v41 = vsel %vm1181_vm0, %v8484_v37, -inf }
 0x866   : > { %v2902_v25 = vsel %vm1181_vm0, %v8490_v14, -inf }
 0x867   : > { %2903 = vmax.xlane.f32.xlu1 %v2902_v25 }
 0x868   : > { %2900 = vmax.xlane.f32.xlu0 %v2899_v55 }
 0x86c   : > { %2909 = vmax.xlane.f32.xlu0 %v2908_v41 }
 0x86d   : > { %v8500_v20 = vpop.f32.mrb[52].mxu1 }
 0x86e   : > { %9573 = vst [vmem:[#allocation22_spill] sm:$0xff] %v8500_v20  ;;  %v8502_v46 = vpop.f32.mrb[53].mxu1 }
 0x86f   : > { %9574 = vst [vmem:[#allocation23_spill] sm:$0xff] %v8502_v46  ;;  %v8504_v30 = vpop.f32.mrb[54].mxu1 }
 0x870   : > { %9575 = vst [vmem:[#allocation24_spill] sm:$0xff] %v8504_v30  ;;  %v8508_v50 = vpop.f32.mrb[55].mxu1 }
 0x871   : > { %9576 = vst [vmem:[#allocation25_spill] sm:$0xff] %v8508_v50 }
 0x872   : > { %v6371_v0 = vpop.f32.mrb[60].mxu0 }
 0x873   : > { %v8512_v57 = vpop.f32.mrb[61].mxu0  ;;  %v2929_v8 = vsel %vm1181_vm0, %v6371_v0, -inf }
 0x874   : > { %2930 = vmax.xlane.f32.xlu0 %v2929_v8  ;;  %v8515_v51 = vpop.f32.mrb[62].mxu0  ;;  %v2923_v25 = vsel %vm1181_vm0, %v8512_v57, -inf }
 0x875   : > { %v8517_v35 = vpop.f32.mrb[63].mxu0  ;;  %v2932_v33 = vsel %vm1181_vm0, %v8515_v51, -inf }
 0x876   : > { %2933 = vmax.xlane.f32.xlu1 %v2932_v33  ;;  %v2926_v55 = vsel %vm1181_vm0, %v8517_v35, -inf }
 0x878   : > { %2924 = vmax.xlane.f32.xlu0 %v2923_v25 }
 0x87a   : > { %2927 = vmax.xlane.f32.xlu1 %v2926_v55 }
 0x87f   : > { %v8525_v41 = vpop.f32.mrb[56].mxu1 }
 0x880   : > { %v8527_v48 = vpop.f32.mrb[57].mxu1  ;;  %v2917_v8 = vsel %vm1181_vm0, %v8525_v41, -inf }
 0x881   : > { %2918 = vmax.xlane.f32.xlu0 %v2917_v8  ;;  %v8531_v39 = vpop.f32.mrb[58].mxu1  ;;  %v2911_v25 = vsel %vm1181_vm0, %v8527_v48, -inf }
 0x882   : > { %v8533_v58 = vpop.f32.mrb[59].mxu1  ;;  %v2920_v33 = vsel %vm1181_vm0, %v8531_v39, -inf }
 0x883   : > { %2921 = vmax.xlane.f32.xlu1 %v2920_v33  ;;  %v2914_v55 = vsel %vm1181_vm0, %v8533_v58, -inf }
 0x885   : > { %2912 = vmax.xlane.f32.xlu0 %v2911_v25 }
 0x887   : > { %2915 = vmax.xlane.f32.xlu1 %v2914_v55 }
 0x88f   : > { %v8541_v34 = vpop.f32.mrb[60].mxu1 }
 0x890   : > { %v8543_v60 = vpop.f32.mrb[61].mxu1  ;;  %v2941_v8 = vsel %vm1181_vm0, %v8541_v34, -inf }
 0x891   : > { %2942 = vmax.xlane.f32.xlu0 %v2941_v8  ;;  %v8547_v6 = vpop.f32.mrb[62].mxu1  ;;  %v2935_v25 = vsel %vm1181_vm0, %v8543_v60, -inf  ;;  %v8561_v8 = vpop.permute.xlu0 %3380 }
 0x892   : > { %v8549_v45 = vpop.f32.mrb[63].mxu1  ;;  %v2944_v33 = vsel %vm1181_vm0, %v8547_v6, -inf }
 0x893   : > { %2945 = vmax.xlane.f32.xlu1 %v2944_v33  ;;  %v2938_v55 = vsel %vm1181_vm0, %v8549_v45, -inf }
 0x895   : > { %2936 = vmax.xlane.f32.xlu0 %v2935_v25 }
 0x897   : > { %2939 = vmax.xlane.f32.xlu1 %v2938_v55 }
 0x8a8   : > { %3382 = vrot.lane.b32.xlu1 %v7809_v3, %s7293_s13 }
 0x8ab   : > { %3268 = vrot.lane.b32.xlu0 %v7865_v4, %s7292_s21 }
 0x8f1   : > { %v2907_v40 = vpop.xlane.xlu0 %2906 }
 0x8f2   : > { %v2949_v22 = vsub.f32 %v8474_v56, %v2907_v40 }
 0x8f4   : > { %v2967_v33 = vmul.f32 1.442695, %v2949_v22  ;;  %v2904_v46 = vpop.xlane.xlu1 %2903 }
 0x8f5   : > { %v2901_v50 = vpop.xlane.xlu0 %2900  ;;  %v2948_v20 = vsub.f32 %v8490_v14, %v2904_v46 }
 0x8f6   : > { %6912 = vpow2.f32 %v2967_v33  ;;  %v2947_v25 = vsub.f32 %v8478_v15, %v2901_v50 }
 0x8f7   : > { %v2965_v38 = vmul.f32 1.442695, %v2948_v20 }
 0x8f8   : > { %v2963_v55 = vmul.f32 1.442695, %v2947_v25 }
 0x8f9   : > { %v2910_v30 = vpop.xlane.xlu0 %2909 }
 0x8fa   : > { %6914 = vpow2.f32 %v2963_v55  ;;  %v2950_v3 = vsub.f32 %v8484_v37, %v2910_v30 }
 0x8fc   : > { %v2969_v31 = vmul.f32 1.442695, %v2950_v3 }
 0x8fe   : > { %6916 = vpow2.f32 %v2969_v31 }
 0x8ff   : > { %6918 = vpow2.f32 %v2965_v38 }
 0x900   : > { %v8567_v18 = vpop.eup %6912 }
 0x901   : > { %v2931_v40 = vpop.xlane.xlu0 %2930  ;;  %v3001_v22 = vsel %vm1181_vm0, %v8567_v18, 0.0 }
 0x902   : > { %v2957_v56 = vsub.f32 %v6371_v0, %v2931_v40  ;;  %3002 = vadd.xlane.f32.xlu0 %v3001_v22 }
 0x903   : > { %v2934_v15 = vpop.xlane.xlu1 %2933 }
 0x904   : > { %v8571_v50 = vpop.eup %6914  ;;  %v2983_v14 = vmul.f32 1.442695, %v2957_v56  ;;  %v2958_v46 = vsub.f32 %v8515_v51, %v2934_v15 }
 0x905   : > { %v2925_v33 = vpop.xlane.xlu0 %2924  ;;  %v2995_v37 = vsel %vm1181_vm0, %v8571_v50, 0.0 }
 0x906   : > { %6920 = vpow2.f32 %v2983_v14  ;;  %v2985_v31 = vmul.f32 1.442695, %v2958_v46  ;;  %v2955_v38 = vsub.f32 %v8512_v57, %v2925_v33  ;;  %2996 = vadd.xlane.f32.xlu0 %v2995_v37 }
 0x907   : > { %v2928_v20 = vpop.xlane.xlu1 %2927 }
 0x908   : > { %v8577_v30 = vpop.eup %6916  ;;  %6922 = vpow2.f32 %v2985_v31  ;;  %v2979_v0 = vmul.f32 1.442695, %v2955_v38  ;;  %v2956_v25 = vsub.f32 %v8517_v35, %v2928_v20 }
 0x909   : > { %v3004_v55 = vsel %vm1181_vm0, %v8577_v30, 0.0  ;;  %v8582_v51 = vpop.eup %6918 }
 0x90a   : > { %6924 = vpow2.f32 %v2979_v0  ;;  %v2981_v3 = vmul.f32 1.442695, %v2956_v25  ;;  %3005 = vadd.xlane.f32.xlu1 %v3004_v55  ;;  %v2998_v57 = vsel %vm1181_vm0, %v8582_v51, 0.0 }
 0x90c   : > { %6926 = vpow2.f32 %v2981_v3 }
 0x90e   : > { %v2919_v40 = vpop.xlane.xlu0 %2918  ;;  %2999 = vadd.xlane.f32.xlu1 %v2998_v57 }
 0x90f   : > { %v2953_v22 = vsub.f32 %v8525_v41, %v2919_v40 }
 0x910   : > { %v8587_v56 = vpop.eup %6920  ;;  %v2922_v15 = vpop.xlane.xlu1 %2921 }
 0x911   : > { %v2975_v35 = vmul.f32 1.442695, %v2953_v22  ;;  %v2954_v14 = vsub.f32 %v8531_v39, %v2922_v15  ;;  %v3025_v46 = vsel %vm1181_vm0, %v8587_v56, 0.0 }
 0x912   : > { %v8592_v33 = vpop.eup %6922  ;;  %v2913_v37 = vpop.xlane.xlu0 %2912  ;;  %3026 = vadd.xlane.f32.xlu0 %v3025_v46 }
 0x913   : > { %6928 = vpow2.f32 %v2975_v35  ;;  %v2977_v31 = vmul.f32 1.442695, %v2954_v14  ;;  %v2951_v38 = vsub.f32 %v8527_v48, %v2913_v37  ;;  %v3028_v41 = vsel %vm1181_vm0, %v8592_v33, 0.0 }
 0x914   : > { %v8597_v20 = vpop.eup %6924  ;;  %3029 = vadd.xlane.f32.xlu1 %v3028_v41  ;;  %v2916_v0 = vpop.xlane.xlu1 %2915 }
 0x915   : > { %6930 = vpow2.f32 %v2977_v31  ;;  %v2971_v39 = vmul.f32 1.442695, %v2951_v38  ;;  %v2952_v25 = vsub.f32 %v8533_v58, %v2916_v0  ;;  %v3019_v55 = vsel %vm1181_vm0, %v8597_v20, 0.0 }
 0x916   : > { %v8602_v3 = vpop.eup %6926  ;;  %3020 = vadd.xlane.f32.xlu0 %v3019_v55 }
 0x917   : > { %6932 = vpow2.f32 %v2971_v39  ;;  %v2973_v57 = vmul.f32 1.442695, %v2952_v25  ;;  %v3022_v48 = vsel %vm1181_vm0, %v8602_v3, 0.0 }
 0x918   : > { %3023 = vadd.xlane.f32.xlu1 %v3022_v48 }
 0x919   : > { %6934 = vpow2.f32 %v2973_v57 }
 0x91d   : > { %v8606_v40 = vpop.eup %6928 }
 0x91e   : > { %v3013_v22 = vsel %vm1181_vm0, %v8606_v40, 0.0  ;;  %v2943_v38 = vpop.xlane.xlu0 %2942 }
 0x91f   : > { %v8610_v15 = vpop.eup %6930  ;;  %3014 = vadd.xlane.f32.xlu0 %v3013_v22  ;;  %v2961_v39 = vsub.f32 %v8541_v34, %v2943_v38 }
 0x920   : > { %v3016_v58 = vsel %vm1181_vm0, %v8610_v15, 0.0  ;;  %v2946_v31 = vpop.xlane.xlu1 %2945 }
 0x921   : > { %v8614_v35 = vpop.eup %6932  ;;  %3017 = vadd.xlane.f32.xlu1 %v3016_v58  ;;  %v2991_v57 = vmul.f32 1.442695, %v2961_v39  ;;  %v2962_v22 = vsub.f32 %v8547_v6, %v2946_v31 }
 0x922   : > { %v3007_v14 = vsel %vm1181_vm0, %v8614_v35, 0.0  ;;  %v2937_v25 = vpop.xlane.xlu0 %2936 }
 0x923   : > { %v8618_v46 = vpop.eup %6934  ;;  %3008 = vadd.xlane.f32.xlu0 %v3007_v14  ;;  %v2959_v48 = vsub.f32 %v8543_v60, %v2937_v25  ;;  %v2993_v58 = vmul.f32 1.442695, %v2962_v22 }
 0x924   : > { %v3010_v37 = vsel %vm1181_vm0, %v8618_v46, 0.0  ;;  %v2940_v41 = vpop.xlane.xlu1 %2939 }
 0x925   : > { %3011 = vadd.xlane.f32.xlu1 %v3010_v37  ;;  %v2960_v0 = vsub.f32 %v8549_v45, %v2940_v41 }
 0x927   : > { %v2989_v55 = vmul.f32 1.442695, %v2960_v0 }
 0x929   : > { %6936 = vpow2.f32 %v2989_v55 }
 0x92a   : > { %6938 = vpow2.f32 %v2991_v57 }
 0x933   : > { %v8630_v14 = vpop.eup %6936 }
 0x934   : > { %v3034_v45 = vsel %vm1181_vm0, %v8630_v14, 0.0 }
 0x936   : > { %3378 = vrot.lane.b32.xlu1 %v7811_v47, %s7293_s13  ;;  %v2987_v47 = vmul.f32 1.442695, %v2959_v48 }
 0x938   : > { %6940 = vpow2.f32 %v2987_v47 }
 0x939   : > { %3376 = vrot.lane.b32.xlu0 %v7789_v26, %s7293_s13  ;;  %6942 = vpow2.f32 %v2993_v58  ;;  %v8632_v26 = vpop.eup %6938 }
 0x93a   : > { %v3037_v34 = vsel %vm1181_vm0, %v8632_v26, 0.0 }
 0x942   : > { %v8638_v60 = vpop.eup %6940 }
 0x943   : > { %v3031_v6 = vsel %vm1181_vm0, %v8638_v60, 0.0  ;;  %v8642_v37 = vpop.eup %6942 }
 0x944   : > { %v3040_v31 = vsel %vm1181_vm0, %v8642_v37, 0.0 }
 0x958   : > { %3035 = vadd.xlane.f32.xlu0 %v3034_v45 }
 0x95a   : > { %3038 = vadd.xlane.f32.xlu1 %v3037_v34 }
 0x95e   : > { %3032 = vadd.xlane.f32.xlu1 %v3031_v6 }
 0x962   : > { %3041 = vadd.xlane.f32.xlu1 %v3040_v31 }
 0x96e   : > { %3449 = vrot.lane.b32.xlu0 %v7830_v7, %s7293_s13  ;;  %v8670_v7 = vpop.permute.xlu0 %3268 }
 0x972   : > { %3445 = vrot.lane.b32.xlu0 %v7832_v9, %s7293_s13 }
 0x973   : > { %3451 = vrot.lane.b32.xlu1 %v7854_v32, %s7293_s13  ;;  %v8672_v32 = vpop.permute.xlu1 %3382 }
 0x976   : > { %3518 = vrot.lane.b32.xlu0 %v7873_v62, %s7293_s13 }
 0x977   : > { %3447 = vrot.lane.b32.xlu1 %v7856_v42, %s7293_s13 }
 0x97a   : > { %3514 = vrot.lane.b32.xlu0 %v7875_v28, %s7293_s13 }
 0x97b   : > { %3520 = vrot.lane.b32.xlu1 %v7889_v27, %s7293_s13 }
 0x97e   : > { %3587 = vrot.lane.b32.xlu0 %v7902_v43, %s7293_s13 }
 0x97f   : > { %3516 = vrot.lane.b32.xlu1 %v7891_v12, %s7293_s13 }
 0x982   : > { %3583 = vrot.lane.b32.xlu0 %v7904_v44, %s7293_s13 }
 0x983   : > { %3589 = vrot.lane.b32.xlu1 %v7920_v13, %s7293_s13 }
 0x987   : > { %3585 = vrot.lane.b32.xlu1 %v7923_v61, %s7293_s13 }
 0x98f   : > { %v3003_v9 = vpop.xlane.xlu0 %3002 }
 0x993   : > { %v2997_v42 = vpop.xlane.xlu0 %2996 }
 0x997   : > { %v3006_v62 = vpop.xlane.xlu1 %3005 }
 0x998   : > { %6944 = vrcp.f32 %v3006_v62 }
 0x999   : > { %6946 = vrcp.f32 %v2997_v42 }
 0x99a   : > { %6948 = vrcp.f32 %v3003_v9 }
 0x99b   : > { %v3000_v28 = vpop.xlane.xlu1 %2999 }
 0x99c   : > { %6950 = vrcp.f32 %v3000_v28 }
 0x99f   : > { %v3027_v27 = vpop.xlane.xlu0 %3026 }
 0x9a1   : > { %v3030_v12 = vpop.xlane.xlu1 %3029 }
 0x9a2   : > { %v6945_v43 = vpop.eup %6944  ;;  %6952 = vrcp.f32 %v3030_v12 }
 0x9a3   : > { %v3021_v44 = vpop.xlane.xlu0 %3020  ;;  %v6947_v13 = vpop.eup %6946  ;;  %v3062_v0 = vmul.f32 %v6945_v43, %v8577_v30 }
 0x9a4   : > { %6954 = vrcp.f32 %v3021_v44  ;;  %v6949_v61 = vpop.eup %6948  ;;  %v3059_v39 = vmul.f32 %v6947_v13, %v8571_v50 }
 0x9a5   : > { %6956 = vrcp.f32 %v3027_v27  ;;  %v3024_v38 = vpop.xlane.xlu1 %3023  ;;  %v3061_v55 = vmul.f32 %v6949_v61, %v8567_v18 }
 0x9a6   : > { %v6951_v41 = vpop.eup %6950  ;;  %6958 = vrcp.f32 %v3024_v38 }
 0x9a7   : > { %v3060_v25 = vmul.f32 %v6951_v41, %v8582_v51  ;;  %v3076_v48 = vpack.c.bf16 %v3062_v0, %v3061_v55 }
 0x9a9   : > { %v3075_v57 = vpack.c.bf16 %v3060_v25, %v3059_v39 }
 0x9ab   : > { %6385 = vmatprep.mubr.msk.bf16.mxu0 %vm1181_vm0, %v3075_v57 }
 0x9ac   : > { %v3015_v22 = vpop.xlane.xlu0 %3014  ;;  %6386 = vmatmul.mubr.msk.bf16.vlgmr.msra.gmra.mrb[64].mxu0 %vm1181_vm0, %v3076_v48  ;;  %v6953_v47 = vpop.eup %6952 }
 0x9ad   : > { %6398 = vmatpush3.bf16.msra.mxu0 %v8434_v10  ;;  %v3070_v51 = vmul.f32 %v6953_v47, %v8592_v33 }
 0x9ae   : > { %v6955_v58 = vpop.eup %6954  ;;  %6399 = vmatprep.subr.bf16.mxu0 %v8442_v63  ;;  %v3018_v30 = vpop.xlane.xlu1 %3017 }
 0x9af   : > { %v6957_v45 = vpop.eup %6956  ;;  %6960 = vrcp.f32 %v3018_v30  ;;  %v3067_v34 = vmul.f32 %v6955_v58, %v8597_v20 }
 0x9b0   : > { %v6959_v50 = vpop.eup %6958  ;;  %v3009_v18 = vpop.xlane.xlu0 %3008  ;;  %v3069_v31 = vmul.f32 %v6957_v45, %v8587_v56 }
 0x9b1   : > { %6962 = vrcp.f32 %v3009_v18  ;;  %6400 = vmatpush3.bf16.msra.mxu0 %v8442_v63  ;;  %v3068_v6 = vmul.f32 %v6959_v50, %v8602_v3  ;;  %v3391_v63 = vsel %vm1181_vm0, %v8561_v8, 0 }
 0x9b2   : > { %6964 = vrcp.f32 %v3015_v22  ;;  %6533 = vmatprep.subr.msk.bf16.mxu0 %vm1181_vm0, %v8561_v8  ;;  %v3012_v10 = vpop.xlane.xlu1 %3011  ;;  %v3080_v42 = vpack.c.bf16 %v3070_v51, %v3069_v31  ;;  %v3394_v8 = vsel %vm1181_vm0, %v8672_v32, 0 }
 0x9b3   : > { %6966 = vrcp.f32 %v3012_v10  ;;  %v3079_v9 = vpack.c.bf16 %v3068_v6, %v3067_v34 }
 0x9b4   : > { %v3377_v33 = vpop.permute.xlu0 %3376 }
 0x9b5   : > { %6401 = vmatprep.mubr.msk.bf16.mxu0 %vm1181_vm0, %v3079_v9 }
 0x9b6   : > { %6402 = vmatmul.mubr.msk.bf16.vlgmr.msra.gmra.mrb[68].mxu0 %vm1181_vm0, %v3080_v42 }
 0x9b7   : > { %6417 = vmatprep.mubr.msk.bf16.mxu0 %vm1181_vm0, %v3377_v33 }
 0x9b9   : > { %v6961_v20 = vpop.eup %6960 }
 0x9ba   : > { %6414 = vmatpush3.bf16.xpose.msra.mxu0 %v3391_v63  ;;  %v3066_v28 = vmul.f32 %v6961_v20, %v8610_v15  ;;  %v3379_v15 = vpop.permute.xlu1 %3378 }
 0x9bb   : > { %v6963_v56 = vpop.eup %6962  ;;  %6534 = vmatprep.subr.msk.bf16.mxu0 %vm1181_vm0, %v8672_v32 }
 0x9bc   : > { %v6965_v3 = vpop.eup %6964  ;;  %v3063_v27 = vmul.f32 %v6963_v56, %v8614_v35 }
 0x9bd   : > { %v6967_v62 = vpop.eup %6966  ;;  %v3065_v43 = vmul.f32 %v6965_v3, %v8606_v40 }
 0x9be   : > { %v3064_v12 = vmul.f32 %v6967_v62, %v8618_v46 }
 0x9bf   : > { %v3078_v13 = vpack.c.bf16 %v3066_v28, %v3065_v43 }
 0x9c0   : > { %v3077_v44 = vpack.c.bf16 %v3064_v12, %v3063_v27 }
 0x9c2   : > { %6393 = vmatprep.mubr.msk.bf16.mxu1 %vm1181_vm0, %v3077_v44  ;;  %6416 = vmatpush3.bf16.xpose.msra.mxu0 %v3394_v8 }
 0x9c3   : > { %6394 = vmatmul.mubr.msk.bf16.vlgmr.msra.gmra.mrb[64].mxu1 %vm1181_vm0, %v3078_v13 }
 0x9c4   : > { %6406 = vmatpush3.bf16.msra.mxu1 %v8445_v17 }
 0x9c5   : > { %6407 = vmatprep.subr.bf16.mxu1 %v8670_v7 }
 0x9c8   : > { %6408 = vmatpush3.bf16.msra.mxu1 %v8670_v7 }
 0x9c9   : > { %6418 = vmatmul.mubr.msk.bf16.vlgmr.msra.gmra.mrb[72].mxu0 %vm1181_vm0, %v3379_v15 }
 0x9e5   : > { %v3036_v40 = vpop.xlane.xlu0 %3035 }
 0x9e6   : > { %6968 = vrcp.f32 %v3036_v40 }
 0x9e7   : > { %v3039_v35 = vpop.xlane.xlu1 %3038 }
 0x9e9   : > { %v3450_v46 = vpop.permute.xlu0 %3449 }
 0x9ea   : > { %6535 = vmatprep.subr.msk.bf16.mxu1 %vm1181_vm0, %v3450_v46 }
 0x9eb   : > { %v3033_v32 = vpop.xlane.xlu1 %3032 }
 0x9ec   : > { %6970 = vrcp.f32 %v3033_v32 }
 0x9ed   : > { %v3446_v61 = vpop.permute.xlu0 %3445  ;;  %6972 = vrcp.f32 %v3039_v35 }
 0x9ef   : > { %v3042_v38 = vpop.xlane.xlu1 %3041 }
 0x9f0   : > { %6974 = vrcp.f32 %v3042_v38  ;;  %v6969_v0 = vpop.eup %6968 }
 0x9f1   : > { %v3519_v17 = vpop.permute.xlu0 %3518  ;;  %v3072_v48 = vmul.f32 %v6969_v0, %v8630_v14  ;;  %v3460_v14 = vsel %vm1181_vm0, %v3450_v46, 0 }
 0x9f2   : > { %6537 = vmatprep.subr.msk.bf16.mxu0 %vm1181_vm0, %v3519_v17  ;;  %v3529_v41 = vsel %vm1181_vm0, %v3519_v17, 0 }
 0x9f3   : > { %6430 = vmatpush3.bf16.xpose.msra.mxu0 %v3529_v41  ;;  %v3452_v7 = vpop.permute.xlu1 %3451 }
 0x9f5   : > { %v3515_v39 = vpop.permute.xlu0 %3514 }
 0x9f6   : > { %v6971_v25 = vpop.eup %6970  ;;  %6433 = vmatprep.mubr.msk.bf16.mxu0 %vm1181_vm0, %v3515_v39 }
 0x9f7   : > { %v3448_v55 = vpop.permute.xlu1 %3447  ;;  %v3071_v57 = vmul.f32 %v6971_v25, %v8638_v60  ;;  %v6973_v22 = vpop.eup %6972  ;;  %v3463_v60 = vsel %vm1181_vm0, %v3452_v7, 0 }
 0x9f8   : > { %v3073_v30 = vmul.f32 %v6973_v22, %v8632_v26 }
 0x9f9   : > { %v3081_v47 = vpack.c.bf16 %v3072_v48, %v3071_v57 }
 0x9fa   : > { %v6975_v58 = vpop.eup %6974 }
 0x9fb   : > { %v3074_v45 = vmul.f32 %v6975_v58, %v8642_v37  ;;  %6409 = vmatprep.mubr.msk.bf16.mxu1 %vm1181_vm0, %v3081_v47  ;;  %v3521_v50 = vpop.permute.xlu1 %3520  ;;  %v3588_v37 = vpop.permute.xlu0 %3587 }
 0x9fc   : > { %6538 = vmatprep.subr.msk.bf16.mxu0 %vm1181_vm0, %v3521_v50  ;;  %v3532_v51 = vsel %vm1181_vm0, %v3521_v50, 0  ;;  %v3598_v6 = vsel %vm1181_vm0, %v3588_v37, 0 }
 0x9fd   : > { %6432 = vmatpush3.bf16.xpose.msra.mxu0 %v3532_v51  ;;  %v3082_v18 = vpack.c.bf16 %v3074_v45, %v3073_v30 }
 0x9ff   : > { %6410 = vmatmul.mubr.msk.bf16.vlgmr.msra.gmra.mrb[68].mxu1 %vm1181_vm0, %v3082_v18  ;;  %v3517_v26 = vpop.permute.xlu1 %3516  ;;  %v3584_v34 = vpop.permute.xlu0 %3583 }
 0xa00   : > { %6422 = vmatpush3.bf16.xpose.msra.mxu1 %v3460_v14  ;;  %6425 = vmatprep.mubr.msk.bf16.mxu1 %vm1181_vm0, %v3446_v61 }
 0xa01   : > { %6536 = vmatprep.subr.msk.bf16.mxu1 %vm1181_vm0, %v3452_v7 }
 0xa03   : > { %v3590_v31 = vpop.permute.xlu1 %3589 }
 0xa04   : > { %6434 = vmatmul.mubr.msk.bf16.vlgmr.msra.gmra.mrb[76].mxu0 %vm1181_vm0, %v3517_v26  ;;  %v3601_v10 = vsel %vm1181_vm0, %v3590_v31, 0 }
 0xa07   : > { %v3586_v9 = vpop.permute.xlu1 %3585 }
 0xa08   : > { %6424 = vmatpush3.bf16.xpose.msra.mxu1 %v3463_v60 }
 0xa09   : > { %6539 = vmatprep.subr.msk.bf16.mxu1 %vm1181_vm0, %v3588_v37 }
 0xa0f   : > { %6426 = vmatmul.mubr.msk.bf16.vlgmr.msra.gmra.mrb[72].mxu1 %vm1181_vm0, %v3448_v55 }
 0xa10   : > { %6438 = vmatpush3.bf16.xpose.msra.mxu1 %v3598_v6  ;;  %6441 = vmatprep.mubr.msk.bf16.mxu1 %vm1181_vm0, %v3584_v34 }
 0xa11   : > { %6540 = vmatprep.subr.msk.bf16.mxu1 %vm1181_vm0, %v3590_v31 }
 0xa18   : > { %6440 = vmatpush3.bf16.xpose.msra.mxu1 %v3601_v10 }
 0xa1f   : > { %6442 = vmatmul.mubr.msk.bf16.vlgmr.msra.gmra.mrb[76].mxu1 %vm1181_vm0, %v3586_v9 }
 0xa7f   : > { %v8732_v42 = vpop.f32.mrb[64].mxu0 }
 0xa80   : > { %v8734_v33 = vpop.f32.mrb[65].mxu0 }
 0xa81   : > { %v8736_v63 = vpop.f32.mrb[66].mxu0 }
 0xa82   : > { %v3328_v20 = vpack.c.bf16 %v8736_v63, %v8732_v42  ;;  %v8740_v56 = vpop.f32.mrb[67].mxu0 }
 0xa83   : > { %v3327_v3 = vpack.c.bf16 %v8740_v56, %v8734_v33 }
 0xa89   : > { %v8744_v62 = vpop.f32.mrb[68].mxu0 }
 0xa8a   : > { %v8746_v28 = vpop.f32.mrb[69].mxu0 }
 0xa8b   : > { %v8748_v27 = vpop.f32.mrb[70].mxu0 }
 0xa8c   : > { %v3332_v12 = vpack.c.bf16 %v8748_v27, %v8744_v62  ;;  %v8752_v43 = vpop.f32.mrb[71].mxu0  ;;  %v9588_v27 = vld [vmem:[#allocation24_spill] sm:$0xff] }
 0xa96   : > { %v8756_v8 = vpop.f32.mrb[64].mxu1 }
 0xa97   : > { %v8758_v13 = vpop.f32.mrb[65].mxu1 }
 0xa98   : > { %v8760_v15 = vpop.f32.mrb[66].mxu1 }
 0xa99   : > { %v3330_v40 = vpack.c.bf16 %v8760_v15, %v8756_v8  ;;  %v8764_v35 = vpop.f32.mrb[67].mxu1  ;;  %v9584_v8 = vld [vmem:[#allocation21_spill] sm:$0xff]  ;;  %v9585_v15 = vld [vmem:[#allocation20_spill] sm:$0xff] }
 0xa9a   : > { %v3329_v46 = vpack.c.bf16 %v8764_v35, %v8758_v13  ;;  %v9586_v13 = vpack.c.bf16 %v9584_v8, %v9585_v15 }
 0xa9c   : > { %v8768_v32 = vpop.f32.mrb[72].mxu0 }
 0xa9d   : > { %v8770_v61 = vpop.f32.mrb[73].mxu0  ;;  %v3658_v38 = vsel %vm1181_vm0, %v8768_v32, -inf }
 0xa9e   : > { %3659 = vmax.xlane.f32.xlu0 %v3658_v38  ;;  %v8774_v17 = vpop.f32.mrb[74].mxu0  ;;  %v3652_v0 = vsel %vm1181_vm0, %v8770_v61, -inf }
 0xa9f   : > { %v8776_v41 = vpop.f32.mrb[75].mxu0  ;;  %v3661_v39 = vsel %vm1181_vm0, %v8774_v17, -inf }
 0xaa0   : > { %v3655_v7 = vsel %vm1181_vm0, %v8776_v41, -inf }
 0xaa1   : > { %3656 = vmax.xlane.f32.xlu1 %v3655_v7 }
 0xaa2   : > { %3653 = vmax.xlane.f32.xlu0 %v3652_v0 }
 0xaa6   : > { %3662 = vmax.xlane.f32.xlu0 %v3661_v39 }
 0xad2   : > { %v8784_v25 = vpop.f32.mrb[68].mxu1 }
 0xad3   : > { %v8786_v55 = vpop.f32.mrb[69].mxu1 }
 0xad4   : > { %v8788_v57 = vpop.f32.mrb[70].mxu1 }
 0xad5   : > { %v8792_v22 = vpop.f32.mrb[71].mxu1 }
 0xad7   : > { %v8796_v58 = vpop.f32.mrb[76].mxu0 }
 0xad8   : > { %v8798_v30 = vpop.f32.mrb[77].mxu0  ;;  %v3682_v45 = vsel %vm1181_vm0, %v8796_v58, -inf }
 0xad9   : > { %3683 = vmax.xlane.f32.xlu0 %v3682_v45  ;;  %v8802_v50 = vpop.f32.mrb[78].mxu0  ;;  %v3676_v14 = vsel %vm1181_vm0, %v8798_v30, -inf }
 0xada   : > { %v8804_v51 = vpop.f32.mrb[79].mxu0  ;;  %v3685_v18 = vsel %vm1181_vm0, %v8802_v50, -inf }
 0xadb   : > { %3686 = vmax.xlane.f32.xlu1 %v3685_v18  ;;  %v3679_v26 = vsel %vm1181_vm0, %v8804_v51, -inf }
 0xadd   : > { %3677 = vmax.xlane.f32.xlu0 %v3676_v14 }
 0xadf   : > { %3680 = vmax.xlane.f32.xlu1 %v3679_v26 }
 0xae2   : > { %v8812_v60 = vpop.f32.mrb[72].mxu1 }
 0xae3   : > { %v8814_v37 = vpop.f32.mrb[73].mxu1  ;;  %v3670_v34 = vsel %vm1181_vm0, %v8812_v60, -inf }
 0xae4   : > { %v8818_v6 = vpop.f32.mrb[74].mxu1  ;;  %3671 = vmax.xlane.f32.xlu0 %v3670_v34  ;;  %v3664_v9 = vsel %vm1181_vm0, %v8814_v37, -inf }
 0xae5   : > { %v8820_v31 = vpop.f32.mrb[75].mxu1  ;;  %v3673_v10 = vsel %vm1181_vm0, %v8818_v6, -inf }
 0xae6   : > { %3674 = vmax.xlane.f32.xlu1 %v3673_v10  ;;  %v3667_v38 = vsel %vm1181_vm0, %v8820_v31, -inf }
 0xae8   : > { %3665 = vmax.xlane.f32.xlu0 %v3664_v9 }
 0xaea   : > { %3668 = vmax.xlane.f32.xlu1 %v3667_v38 }
 0xaf2   : > { %v8828_v7 = vpop.f32.mrb[76].mxu1 }
 0xaf3   : > { %v8830_v0 = vpop.f32.mrb[77].mxu1  ;;  %v3694_v18 = vsel %vm1181_vm0, %v8828_v7, -inf }
 0xaf4   : > { %v8832_v39 = vpop.f32.mrb[78].mxu1  ;;  %v3688_v26 = vsel %vm1181_vm0, %v8830_v0, -inf }
 0xaf5   : > { %v8834_v45 = vpop.f32.mrb[79].mxu1  ;;  %v3697_v14 = vsel %vm1181_vm0, %v8832_v39, -inf }
 0xaf6   : > { %v3691_v34 = vsel %vm1181_vm0, %v8834_v45, -inf }
 0xafb   : > { %3838 = vrot.lane.b32.xlu1 %v7799_v49, %s7293_s13 }
 0xafe   : > { %3836 = vrot.lane.b32.xlu0 %v7804_v36, %s7293_s13 }
 0xb1d   : > { %3695 = vmax.xlane.f32.xlu0 %v3694_v18 }
 0xb1f   : > { %3698 = vmax.xlane.f32.xlu1 %v3697_v14 }
 0xb21   : > { %3689 = vmax.xlane.f32.xlu0 %v3688_v26 }
 0xb23   : > { %3692 = vmax.xlane.f32.xlu1 %v3691_v34 }
 0xb2b   : > { %v3660_v49 = vpop.xlane.xlu0 %3659 }
 0xb2c   : > { %v3702_v9 = vsub.f32 %v8768_v32, %v3660_v49 }
 0xb2e   : > { %v3657_v18 = vpop.xlane.xlu1 %3656  ;;  %v3720_v14 = vmul.f32 1.442695, %v3702_v9 }
 0xb2f   : > { %v3654_v36 = vpop.xlane.xlu0 %3653  ;;  %v3701_v47 = vsub.f32 %v8776_v41, %v3657_v18 }
 0xb30   : > { %v3700_v26 = vsub.f32 %v8770_v61, %v3654_v36  ;;  %6976 = vpow2.f32 %v3720_v14 }
 0xb31   : > { %v3718_v44 = vmul.f32 1.442695, %v3701_v47 }
 0xb32   : > { %v3716_v48 = vmul.f32 1.442695, %v3700_v26 }
 0xb33   : > { %v3663_v10 = vpop.xlane.xlu0 %3662 }
 0xb34   : > { %3899 = vrot.lane.b32.xlu1 %v7821_v54, %s7293_s13  ;;  %v3703_v38 = vsub.f32 %v8774_v17, %v3663_v10 }
 0xb36   : > { %v3722_v34 = vmul.f32 1.442695, %v3703_v38 }
 0xb37   : > { %3897 = vrot.lane.b32.xlu0 %v7824_v59, %s7293_s13 }
 0xb38   : > { %6978 = vpow2.f32 %v3722_v34 }
 0xb39   : > { %6980 = vpow2.f32 %v3716_v48 }
 0xb3a   : > { %6982 = vpow2.f32 %v3718_v44  ;;  %v8856_v54 = vpop.eup %6976 }
 0xb3b   : > { %v3754_v32 = vsel %vm1181_vm0, %v8856_v54, 0.0 }
 0xb42   : > { %v8858_v59 = vpop.eup %6978 }
 0xb43   : > { %v8862_v17 = vpop.eup %6980  ;;  %v3757_v61 = vsel %vm1181_vm0, %v8858_v59, 0.0 }
 0xb44   : > { %v8866_v41 = vpop.eup %6982  ;;  %v3748_v48 = vsel %vm1181_vm0, %v8862_v17, 0.0 }
 0xb45   : > { %v3751_v44 = vsel %vm1181_vm0, %v8866_v41, 0.0 }
 0xb56   : > { %3755 = vadd.xlane.f32.xlu0 %v3754_v32 }
 0xb58   : > { %3758 = vadd.xlane.f32.xlu1 %v3757_v61 }
 0xb5a   : > { %3749 = vadd.xlane.f32.xlu0 %v3748_v48 }
 0xb5c   : > { %3752 = vadd.xlane.f32.xlu1 %v3751_v44 }
 0xb66   : > { %v3684_v47 = vpop.xlane.xlu0 %3683 }
 0xb67   : > { %v3710_v49 = vsub.f32 %v8796_v58, %v3684_v47 }
 0xb68   : > { %v3687_v36 = vpop.xlane.xlu1 %3686 }
 0xb69   : > { %v3736_v10 = vmul.f32 1.442695, %v3710_v49  ;;  %v3711_v9 = vsub.f32 %v8802_v50, %v3687_v36 }
 0xb6a   : > { %v3678_v38 = vpop.xlane.xlu0 %3677 }
 0xb6b   : > { %6984 = vpow2.f32 %v3736_v10  ;;  %v3708_v18 = vsub.f32 %v8798_v30, %v3678_v38  ;;  %v3738_v26 = vmul.f32 1.442695, %v3711_v9 }
 0xb6c   : > { %v3681_v14 = vpop.xlane.xlu1 %3680 }
 0xb6d   : > { %v3732_v34 = vmul.f32 1.442695, %v3708_v18  ;;  %v3709_v32 = vsub.f32 %v8804_v51, %v3681_v14 }
 0xb6f   : > { %6986 = vpow2.f32 %v3732_v34  ;;  %v3734_v44 = vmul.f32 1.442695, %v3709_v32 }
 0xb70   : > { %6988 = vpow2.f32 %v3738_v26 }
 0xb71   : > { %v3672_v61 = vpop.xlane.xlu0 %3671 }
 0xb72   : > { %v3706_v48 = vsub.f32 %v8812_v60, %v3672_v61 }
 0xb73   : > { %v3675_v58 = vpop.xlane.xlu1 %3674 }
 0xb74   : > { %v3728_v47 = vmul.f32 1.442695, %v3706_v48  ;;  %v3707_v49 = vsub.f32 %v8818_v6, %v3675_v58 }
 0xb75   : > { %v8878_v50 = vpop.eup %6984  ;;  %v3666_v36 = vpop.xlane.xlu0 %3665 }
 0xb76   : > { %6990 = vpow2.f32 %v3728_v47  ;;  %v3730_v30 = vmul.f32 1.442695, %v3707_v49  ;;  %v3704_v10 = vsub.f32 %v8814_v37, %v3666_v36  ;;  %v3778_v9 = vsel %vm1181_vm0, %v8878_v50, 0.0 }
 0xb77   : > { %6992 = vpow2.f32 %v3734_v44  ;;  %v3669_v51 = vpop.xlane.xlu1 %3668  ;;  %3779 = vadd.xlane.f32.xlu0 %v3778_v9 }
 0xb78   : > { %6994 = vpow2.f32 %v3730_v30  ;;  %v3724_v60 = vmul.f32 1.442695, %v3704_v10  ;;  %v3705_v38 = vsub.f32 %v8820_v31, %v3669_v51 }
 0xb79   : > { %v8884_v18 = vpop.eup %6986  ;;  %v3837_v6 = vpop.permute.xlu0 %3836 }
 0xb7a   : > { %v3726_v14 = vmul.f32 1.442695, %v3705_v38  ;;  %6445 = vmatprep.subr.bf16.mxu0 %v3837_v6  ;;  %v3772_v26 = vsel %vm1181_vm0, %v8884_v18, 0.0  ;;  %v8888_v34 = vpop.eup %6988  ;;  %6996 = vpow2.f32 %v3724_v60 }
 0xb7b   : > { %6446 = vmatpush3.bf16.msra.mxu0 %v3837_v6  ;;  %v3839_v37 = vpop.permute.xlu1 %3838  ;;  %3773 = vadd.xlane.f32.xlu1 %v3772_v26  ;;  %v3781_v32 = vsel %vm1181_vm0, %v8888_v34, 0.0 }
 0xb7c   : > { %6998 = vpow2.f32 %v3726_v14  ;;  %6447 = vmatprep.subr.bf16.mxu0 %v3839_v37 }
 0xb7f   : > { %6448 = vmatpush3.bf16.msra.mxu0 %v3839_v37  ;;  %3782 = vadd.xlane.f32.xlu1 %v3781_v32 }
 0xb80   : > { %v8892_v31 = vpop.eup %6990 }
 0xb81   : > { %v8894_v61 = vpop.eup %6992  ;;  %v3766_v48 = vsel %vm1181_vm0, %v8892_v31, 0.0 }
 0xb82   : > { %v8898_v44 = vpop.eup %6994  ;;  %3767 = vadd.xlane.f32.xlu0 %v3766_v48  ;;  %v3775_v49 = vsel %vm1181_vm0, %v8894_v61, 0.0 }
 0xb83   : > { %v3769_v58 = vsel %vm1181_vm0, %v8898_v44, 0.0 }
 0xb84   : > { %3770 = vadd.xlane.f32.xlu1 %v3769_v58  ;;  %v8902_v47 = vpop.eup %6996 }
 0xb85   : > { %v3760_v10 = vsel %vm1181_vm0, %v8902_v47, 0.0 }
 0xb86   : > { %v8906_v36 = vpop.eup %6998  ;;  %3776 = vadd.xlane.f32.xlu0 %v3775_v49 }
 0xb87   : > { %v3763_v30 = vsel %vm1181_vm0, %v8906_v36, 0.0 }
 0xb88   : > { %3764 = vadd.xlane.f32.xlu1 %v3763_v30 }
 0xb8a   : > { %3761 = vadd.xlane.f32.xlu0 %v3760_v10 }
 0xbaa   : > { %v3696_v9 = vpop.xlane.xlu0 %3695 }
 0xbab   : > { %v3714_v51 = vsub.f32 %v8828_v7, %v3696_v9 }
 0xbac   : > { %v3699_v60 = vpop.xlane.xlu1 %3698 }
 0xbad   : > { %v3744_v38 = vmul.f32 1.442695, %v3714_v51  ;;  %v3715_v6 = vsub.f32 %v8832_v39, %v3699_v60 }
 0xbae   : > { %v3690_v14 = vpop.xlane.xlu0 %3689 }
 0xbaf   : > { %7000 = vpow2.f32 %v3744_v38  ;;  %v3712_v26 = vsub.f32 %v8830_v0, %v3690_v14  ;;  %v3746_v37 = vmul.f32 1.442695, %v3715_v6  ;;  %v9577_v6 = vpack.c.bf16 %v8456_v16, %v8450_v19 }
 0xbb0   : > { %v3693_v32 = vpop.xlane.xlu1 %3692 }
 0xbb1   : > { %v3740_v48 = vmul.f32 1.442695, %v3712_v26  ;;  %v3713_v58 = vsub.f32 %v8834_v45, %v3693_v32 }
 0xbb2   : > { %v3898_v49 = vpop.permute.xlu0 %3897 }
 0xbb3   : > { %7002 = vpow2.f32 %v3740_v48  ;;  %v3742_v30 = vmul.f32 1.442695, %v3713_v58  ;;  %6453 = vmatprep.subr.bf16.mxu1 %v3898_v49 }
 0xbb4   : > { %7004 = vpow2.f32 %v3746_v37  ;;  %6454 = vmatpush3.bf16.msra.mxu1 %v3898_v49  ;;  %v3900_v7 = vpop.permute.xlu1 %3899 }
 0xbb5   : > { %7006 = vpow2.f32 %v3742_v30  ;;  %6455 = vmatprep.subr.bf16.mxu1 %v3900_v7 }
 0xbb8   : > { %6456 = vmatpush3.bf16.msra.mxu1 %v3900_v7 }
 0xbb9   : > { %v8916_v39 = vpop.eup %7000 }
 0xbba   : > { %v3790_v0 = vsel %vm1181_vm0, %v8916_v39, 0.0 }
 0xbbb   : > { %3791 = vadd.xlane.f32.xlu0 %v3790_v0 }
 0xbbd   : > { %v8920_v10 = vpop.eup %7002 }
 0xbbe   : > { %v8922_v9 = vpop.eup %7004  ;;  %v3784_v45 = vsel %vm1181_vm0, %v8920_v10, 0.0 }
 0xbbf   : > { %v8926_v51 = vpop.eup %7006  ;;  %3785 = vadd.xlane.f32.xlu1 %v3784_v45  ;;  %v3793_v38 = vsel %vm1181_vm0, %v8922_v9, 0.0 }
 0xbc0   : > { %v3787_v60 = vsel %vm1181_vm0, %v8926_v51, 0.0 }
 0xbc1   : > { %3788 = vadd.xlane.f32.xlu0 %v3787_v60 }
 0xbc3   : > { %3794 = vadd.xlane.f32.xlu1 %v3793_v38 }
 0xbd4   : > { %3960 = vrot.lane.b32.xlu1 %v7843_v23, %s7293_s13  ;;  %v9578_v23 = vpack.c.bf16 %v8452_v5, %v8448_v52 }
 0xbd7   : > { %3958 = vrot.lane.b32.xlu0 %v7848_v29, %s7293_s13 }
 0xbd8   : > { %4019 = vrot.lane.b32.xlu1 %v7868_v53, %s7293_s13 }
 0xbdb   : > { %2590 = vrot.lane.b32.xlu0 %v9577_v6, %s7293_s13 }
 0xbdc   : > { %4021 = vrot.lane.b32.xlu1 %v7865_v4, %s7293_s13 }
 0xbdf   : > { %3343 = vrot.lane.b32.xlu0 %v3327_v3, %s7292_s21 }
 0xbe0   : > { %2592 = vrot.lane.b32.xlu1 %v9578_v23, %s7293_s13 }
 0xbe3   : > { %v3756_v29 = vpop.xlane.xlu0 %3755 }
 0xbe4   : > { %3345 = vrot.lane.b32.xlu1 %v3328_v20, %s7292_s21 }
 0xbe5   : > { %v3759_v53 = vpop.xlane.xlu1 %3758 }
 0xbe6   : > { %7008 = vrcp.f32 %v3759_v53 }
 0xbe7   : > { %v3750_v19 = vpop.xlane.xlu0 %3749 }
 0xbe8   : > { %7010 = vrcp.f32 %v3750_v19 }
 0xbe9   : > { %7012 = vrcp.f32 %v3756_v29  ;;  %v3753_v4 = vpop.xlane.xlu1 %3752 }
 0xbea   : > { %7014 = vrcp.f32 %v3753_v4 }
 0xbf0   : > { %v7009_v16 = vpop.eup %7008 }
 0xbf1   : > { %v3815_v52 = vmul.f32 %v7009_v16, %v8858_v59 }
 0xbf2   : > { %v7011_v33 = vpop.eup %7010 }
 0xbf3   : > { %v7013_v56 = vpop.eup %7012  ;;  %v3812_v5 = vmul.f32 %v7011_v33, %v8862_v17 }
 0xbf4   : > { %v7015_v3 = vpop.eup %7014  ;;  %v3814_v42 = vmul.f32 %v7013_v56, %v8856_v54 }
 0xbf5   : > { %v3813_v14 = vmul.f32 %v7015_v3, %v8866_v41 }
 0xbf6   : > { %v3829_v20 = vpack.c.bf16 %v3815_v52, %v3814_v42 }
 0xbf7   : > { %v3828_v63 = vpack.c.bf16 %v3813_v14, %v3812_v5 }
 0xbf9   : > { %6449 = vmatprep.mubr.msk.bf16.mxu0 %vm1181_vm0, %v3828_v63 }
 0xbfa   : > { %6450 = vmatmul.mubr.msk.bf16.vlgmr.msra.gmra.mrb[80].mxu0 %vm1181_vm0, %v3829_v20 }
 0xc04   : > { %v3780_v37 = vpop.xlane.xlu0 %3779 }
 0xc08   : > { %v3774_v26 = vpop.xlane.xlu1 %3773 }
 0xc09   : > { %7016 = vrcp.f32 %v3774_v26 }
 0xc0c   : > { %v3783_v32 = vpop.xlane.xlu1 %3782 }
 0xc0f   : > { %v3768_v48 = vpop.xlane.xlu0 %3767 }
 0xc11   : > { %v3771_v58 = vpop.xlane.xlu1 %3770 }
 0xc13   : > { %v3777_v49 = vpop.xlane.xlu0 %3776  ;;  %v7017_v54 = vpop.eup %7016 }
 0xc14   : > { %7018 = vrcp.f32 %v3777_v49  ;;  %v3820_v7 = vmul.f32 %v7017_v54, %v8884_v18 }
 0xc15   : > { %7020 = vrcp.f32 %v3771_v58  ;;  %v3765_v59 = vpop.xlane.xlu1 %3764 }
 0xc16   : > { %7022 = vrcp.f32 %v3765_v59 }
 0xc17   : > { %7024 = vrcp.f32 %v3768_v48  ;;  %v3762_v17 = vpop.xlane.xlu0 %3761 }
 0xc18   : > { %7026 = vrcp.f32 %v3762_v17 }
 0xc19   : > { %7028 = vrcp.f32 %v3783_v32 }
 0xc1a   : > { %7030 = vrcp.f32 %v3780_v37 }
 0xc1e   : > { %v7019_v41 = vpop.eup %7018 }
 0xc1f   : > { %v7021_v30 = vpop.eup %7020  ;;  %v3821_v0 = vmul.f32 %v7019_v41, %v8894_v61  ;;  %v6666_v41 = vld [vmem:[%s9518_s5 + $0x10] sm:$0xff]  }
 0xc20   : > { %v7023_v45 = vpop.eup %7022  ;;  %v3819_v23 = vmul.f32 %v7021_v30, %v8898_v44  ;;  %v6667_v30 = vld [vmem:[%s9518_s5 + $0x18] sm:$0xff]  }
 0xc21   : > { %v7025_v60 = vpop.eup %7024  ;;  %v3832_v38 = vpack.c.bf16 %v3821_v0, %v3820_v7  ;;  %v3817_v53 = vmul.f32 %v7023_v45, %v8906_v36  ;;  %v6668_v7 = vld [vmem:[%s9518_s5 + $0x20] sm:$0xff]   ;;  %v6669_v0 = vld [vmem:[%s9518_s5 + $0x28] sm:$0xff]   ;;  %v6670_v45 = vld [vmem:[%s9518_s5 + $0x30] sm:$0xff]  }
 0xc22   : > { %v7027_v6 = vpop.eup %7026  ;;  %v3818_v19 = vmul.f32 %v7025_v60, %v8892_v31  ;;  %v6671_v60 = vld [vmem:[%s9518_s5 + $0x38] sm:$0xff]  }
 0xc23   : > { %6465 = vmatprep.mubr.msk.bf16.mxu0 %vm1181_vm0, %v3832_v38  ;;  %v3816_v29 = vmul.f32 %v7027_v6, %v8902_v47  ;;  %v7029_v47 = vpop.eup %7028 }
 0xc24   : > { %v3831_v16 = vpack.c.bf16 %v3819_v23, %v3818_v19  ;;  %v7031_v31 = vpop.eup %7030  ;;  %v3823_v3 = vmul.f32 %v7029_v47, %v8888_v34 }
 0xc25   : > { %v3830_v4 = vpack.c.bf16 %v3817_v53, %v3816_v29  ;;  %v3822_v14 = vmul.f32 %v7031_v31, %v8878_v50 }
 0xc27   : > { %6457 = vmatprep.mubr.msk.bf16.mxu1 %vm1181_vm0, %v3830_v4  ;;  %v3833_v26 = vpack.c.bf16 %v3823_v3, %v3822_v14  ;;  %v9580_v4 = vpack.c.bf16 %v8482_v2, %v8472_v21  ;;  %v9591_v14 = vld [vmem:[#allocation25_spill] sm:$0xff] }
 0xc28   : > { %6458 = vmatmul.mubr.msk.bf16.vlgmr.msra.gmra.mrb[80].mxu1 %vm1181_vm0, %v3831_v16  ;;  %v9581_v16 = vpack.c.bf16 %v8488_v11, %v8476_v1  ;;  %v9582_v1 = vld [vmem:[#allocation19_spill] sm:$0xff] }
 0xc29   : > { %v9583_v11 = vpack.c.bf16 %v8464_v24, %v9582_v1 }
 0xc48   : > { %v3792_v18 = vpop.xlane.xlu0 %3791 }
 0xc4c   : > { %v3786_v61 = vpop.xlane.xlu1 %3785 }
 0xc4d   : > { %7032 = vrcp.f32 %v3786_v61 }
 0xc4e   : > { %7034 = vrcp.f32 %v3792_v18  ;;  %v3789_v44 = vpop.xlane.xlu0 %3788 }
 0xc4f   : > { %7036 = vrcp.f32 %v3789_v44 }
 0xc50   : > { %v3795_v33 = vpop.xlane.xlu1 %3794 }
 0xc51   : > { %7038 = vrcp.f32 %v3795_v33 }
 0xc52   : > { %v3959_v36 = vpop.permute.xlu0 %3958 }
 0xc53   : > { %6461 = vmatprep.subr.bf16.mxu0 %v3959_v36 }
 0xc54   : > { %6462 = vmatpush3.bf16.msra.mxu0 %v3959_v36  ;;  %v3961_v56 = vpop.permute.xlu1 %3960 }
 0xc55   : > { %6463 = vmatprep.subr.bf16.mxu0 %v3961_v56 }
 0xc56   : > { %v2591_v52 = vpop.permute.xlu0 %2590 }
 0xc57   : > { %v7033_v5 = vpop.eup %7032  ;;  %2615 = vst.msk [vmem:[#allocation2] sm:$0xff] %vm2614_vm1, %v2591_v52 }
 0xc58   : > { %v7035_v42 = vpop.eup %7034  ;;  %6464 = vmatpush3.bf16.msra.mxu0 %v3961_v56  ;;  %v4020_v63 = vpop.permute.xlu1 %4019  ;;  %v3824_v32 = vmul.f32 %v7033_v5, %v8920_v10  ;;  %v9579_v10 = vmov 0  }
 0xc59   : > { %v7037_v20 = vpop.eup %7036  ;;  %6469 = vmatprep.subr.bf16.mxu1 %v4020_v63  ;;  %v3826_v50 = vmul.f32 %v7035_v42, %v8916_v39  ;;  %v6664_v39 = vld [vmem:[%s9518_s5] sm:$0xff]   ;;  %v9592_v42 = vld [vmem:[#allocation23_spill] sm:$0xff] }
 0xc5a   : > { %v3344_v37 = vpop.permute.xlu0 %3343  ;;  %6470 = vmatpush3.bf16.msra.mxu1 %v4020_v63  ;;  %v3825_v34 = vmul.f32 %v7037_v20, %v8926_v51  ;;  %6477 = vmatprep.subr.bf16.mxu0 %v6664_v39  ;;  %v9593_v63 = vpack.c.bf16 %v9591_v14, %v9592_v42  ;;  %v9594_v20 = vpack.c.bf16 %v8788_v57, %v8784_v25 }
 0xc5b   : > { %v7039_v48 = vpop.eup %7038  ;;  %3368 = vst.msk [vmem:[#allocation2] sm:$0xff] %vm3367_vm2, %v3344_v37  ;;  %6466 = vmatmul.mubr.msk.bf16.vlgmr.msra.gmra.mrb[84].mxu0 %vm1181_vm0, %v3833_v26  ;;  %v9595_v26 = vpack.c.bf16 %v8792_v22, %v8786_v55 }
 0xc5c   : > { %v3827_v58 = vmul.f32 %v7039_v48, %v8922_v9  ;;  %v4022_v49 = vpop.permute.xlu1 %4021  ;;  %v3834_v59 = vpack.c.bf16 %v3825_v34, %v3824_v32  ;;  %6478 = vmatpush3.bf16.msra.mxu0 %v6664_v39  ;;  %v6665_v9 = vld [vmem:[%s9518_s5 + $0x8] sm:$0xff]  }
 0xc5d   : > { %6471 = vmatprep.subr.bf16.mxu1 %v4022_v49  ;;  %6479 = vmatprep.subr.bf16.mxu0 %v6665_v9 }
 0xc5e   : > { %6472 = vmatpush3.bf16.msra.mxu1 %v4022_v49  ;;  %6473 = vmatprep.mubr.msk.bf16.mxu1 %vm1181_vm0, %v3834_v59  ;;  %v3835_v17 = vpack.c.bf16 %v3827_v58, %v3826_v50 }
 0xc60   : > { %v2593_v54 = vpop.permute.xlu1 %2592  ;;  %6480 = vmatpush3.bf16.msra.mxu0 %v6665_v9 }
 0xc61   : > { %2616 = vst.msk [vmem:[#allocation2 + $0x8] sm:$0xff] %vm2614_vm1, %v2593_v54  ;;  %6474 = vmatmul.mubr.msk.bf16.vlgmr.msra.gmra.mrb[84].mxu1 %vm1181_vm0, %v3835_v17  ;;  %6481 = vmatprep.subr.bf16.mxu0 %v6666_v41 }
 0xc62   : > { %4813 = vmatprep.mubr.bf16.mxu1 %v9579_v10 }
 0xc64   : > { %v3346_v51 = vpop.permute.xlu1 %3345  ;;  %6482 = vmatpush3.bf16.msra.mxu0 %v6666_v41 }
 0xc65   : > { %3369 = vst.msk [vmem:[#allocation2 + $0x8] sm:$0xff] %vm3367_vm2, %v3346_v51  ;;  %6483 = vmatprep.subr.bf16.mxu0 %v6667_v30 }
 0xc68   : > { %6484 = vmatpush3.bf16.msra.mxu0 %v6667_v30 }
 0xc69   : > { %6485 = vmatprep.subr.bf16.mxu0 %v6668_v7 }
 0xc6c   : > { %6486 = vmatpush3.bf16.msra.mxu0 %v6668_v7 }
 0xc6d   : > { %6487 = vmatprep.subr.bf16.mxu0 %v6669_v0 }
 0xc70   : > { %6488 = vmatpush3.bf16.msra.mxu0 %v6669_v0 }
 0xc71   : > { %6489 = vmatprep.subr.bf16.mxu0 %v6670_v45 }
 0xc74   : > { %6490 = vmatpush3.bf16.msra.mxu0 %v6670_v45 }
 0xc75   : > { %6491 = vmatprep.subr.bf16.mxu0 %v6671_v60 }
 0xc78   : > { %6492 = vmatpush3.bf16.msra.mxu0 %v6671_v60 }
 0xccd   : > { %v6451_v38 = vpop.f32.mrb[80].mxu0 }
 0xcce   : > { %v3882_v6 = vpop.f32.mrb[81].mxu0 }
 0xccf   : > { %v6452_v23 = vpop.f32.mrb[82].mxu0 }
 0xcd0   : > { %v4081_v29 = vpack.c.bf16 %v6452_v23, %v6451_v38  ;;  %v3885_v53 = vpop.f32.mrb[83].mxu0 }
 0xcd1   : > { %v4080_v19 = vpack.c.bf16 %v3885_v53, %v3882_v6 }
 0xcd2   : > { %4098 = vrot.lane.b32.xlu1 %v4081_v29, %s7291_s22 }
 0xcd3   : > { %4096 = vrot.lane.b32.xlu0 %v4080_v19, %s7291_s22 }
 0xcd6   : > { %2596 = vrot.lane.b32.xlu1 %v9580_v4, %s7293_s13  ;;  %v9089_v4 = vld [vmem:[%s9519_s6] ss:$0 sm:$0xff] }
 0xcd7   : > { %2594 = vrot.lane.b32.xlu0 %v9581_v16, %s7293_s13 }
 0xcda   : > { %3349 = vrot.lane.b32.xlu1 %v3330_v40, %s7292_s21  ;;  %v9587_v40 = vpack.c.bf16 %v8752_v43, %v8746_v28 }
 0xcdb   : > { %3347 = vrot.lane.b32.xlu0 %v3329_v46, %s7292_s21 }
 0xcfb   : > { %v6459_v18 = vpop.f32.mrb[80].mxu1 }
 0xcfc   : > { %v3943_v61 = vpop.f32.mrb[81].mxu1 }
 0xcfd   : > { %v6460_v44 = vpop.f32.mrb[82].mxu1 }
 0xcfe   : > { %v4083_v21 = vpack.c.bf16 %v6460_v44, %v6459_v18  ;;  %v3946_v2 = vpop.f32.mrb[83].mxu1  ;;  %v7072_v18 = vld [vmem:[%s7563_s19] sm:$0xff] }
 0xcff   : > { %v4082_v33 = vpack.c.bf16 %v3946_v2, %v3943_v61  ;;  %v7073_v2 = vld [vmem:[%s7563_s19 + $0x10] sm:$0xff] }
 0xd00   : > { %4102 = vrot.lane.b32.xlu1 %v4083_v21, %s7291_s22 }
 0xd01   : > { %4100 = vrot.lane.b32.xlu0 %v4082_v33, %s7291_s22 }
 0xd04   : > { %2600 = vrot.lane.b32.xlu1 %v9583_v11, %s7293_s13  ;;  %v7074_v11 = vld [vmem:[%s7563_s19 + $0x8] sm:$0xff] }
 0xd05   : > { %2598 = vrot.lane.b32.xlu0 %v9586_v13, %s7293_s13 }
 0xd08   : > { %3353 = vrot.lane.b32.xlu1 %v3332_v12, %s7292_s21  ;;  %v9589_v12 = vld [vmem:[#allocation22_spill] sm:$0xff] }
 0xd09   : > { %3351 = vrot.lane.b32.xlu0 %v9587_v40, %s7292_s21  ;;  %v9590_v5 = vpack.c.bf16 %v9588_v27, %v9589_v12  ;;  %v7075_v40 = vld [vmem:[%s7563_s19 + $0x18] sm:$0xff]  ;;  %v7078_v12 = vld [vmem:[%s7563_s19 + $0x28] sm:$0xff] }
 0xd2e   : > { %v6467_v35 = vpop.f32.mrb[84].mxu0 }
 0xd2f   : > { %v4004_v46 = vpop.f32.mrb[85].mxu0 }
 0xd30   : > { %v6468_v47 = vpop.f32.mrb[86].mxu0 }
 0xd31   : > { %v4085_v24 = vpack.c.bf16 %v6468_v47, %v6467_v35  ;;  %v4007_v36 = vpop.f32.mrb[87].mxu0 }
 0xd32   : > { %v4084_v31 = vpack.c.bf16 %v4007_v36, %v4004_v46  ;;  %v7076_v36 = vld [vmem:[%s7563_s19 + $0x20] sm:$0xff] }
 0xd33   : > { %4106 = vrot.lane.b32.xlu1 %v4085_v24, %s7291_s22 }
 0xd34   : > { %4104 = vrot.lane.b32.xlu0 %v4084_v31, %s7291_s22  ;;  %v6475_v56 = vpop.f32.mrb[84].mxu1 }
 0xd35   : > { %v4065_v3 = vpop.f32.mrb[85].mxu1 }
 0xd36   : > { %v6476_v52 = vpop.f32.mrb[86].mxu1 }
 0xd37   : > { %v4087_v62 = vpack.c.bf16 %v6476_v52, %v6475_v56  ;;  %2604 = vrot.lane.b32.xlu1 %v9590_v5, %s7293_s13  ;;  %v4068_v28 = vpop.f32.mrb[87].mxu1  ;;  %v7077_v52 = vld [vmem:[%s7563_s19 + $0x30] sm:$0xff] }
 0xd38   : > { %v4086_v43 = vpack.c.bf16 %v4068_v28, %v4065_v3  ;;  %2602 = vrot.lane.b32.xlu0 %v9593_v63, %s7293_s13  ;;  %v7079_v28 = vld [vmem:[%s7563_s19 + $0x38] sm:$0xff] }
 0xd3b   : > { %3357 = vrot.lane.b32.xlu1 %v9594_v20, %s7292_s21 }
 0xd3c   : > { %3355 = vrot.lane.b32.xlu0 %v9595_v26, %s7292_s21 }
 0xd3f   : > { %4110 = vrot.lane.b32.xlu1 %v4087_v62, %s7291_s22 }
 0xd40   : > { %4108 = vrot.lane.b32.xlu0 %v4086_v43, %s7291_s22  ;;  %s9415_s22 = scalar_lea.vmem [#allocation11], %s5720_s25  ;;  %s5900_s25 = sshll.u32 %s7388_s29, 11 }
 0xd41   : > { %s5607_s21 = sshll.u32 %s9415_s22, 4  ;;  %s9464_s15 = scalar_lea.hbm %s9603_s3, %s5900_s25  ;;  %s9466_s21 = int_to_ptr.vmem [resolvable:$true] %s5607_s21 }
 0xd42   : > { %s7202_s29 = scalar_lea.vmem %s9466_s21, 2048  ;;  %p7209_p12 = scmp.lt.s32.totalorder %s9466_s21, %s7207_s20 }
 0xd43   : > { %p7203_p10 = scmp.ne.s32.totalorder %s9466_s21, %s7202_s29 }
 0xd44   : > { %v4099_v37 = vpop.permute.xlu1 %4098 }
 0xd45   : > { %4122 = vst.msk [vmem:[#allocation2 + $0x8] sm:$0xff] %vm4120_vm3, %v4099_v37  ;;  %v4097_v32 = vpop.permute.xlu0 %4096  ;;  %v7080_v37 = vld [vmem:[%s7563_s19 + $0x40] sm:$0xff]  ;;  %p7204_p3 = pnand %p7203_p10, %p7509_p5 }
 0xd46   : > { %4121 = vst.msk [vmem:[#allocation2] sm:$0xff] %vm4120_vm3, %v4097_v32 }
 0xd47   : > { %p7205_p7 = pneg %p7204_p3 }
 0xd48   : > { %v2597_v34 = vpop.permute.xlu1 %2596 }
 0xd49   : > { %2618 = vst.msk [vmem:[#allocation2 + $0x18] sm:$0xff] %vm2614_vm1, %v2597_v34  ;;  %v2595_v25 = vpop.permute.xlu0 %2594 }
 0xd4a   : > { %2617 = vst.msk [vmem:[#allocation2 + $0x10] sm:$0xff] %vm2614_vm1, %v2595_v25 }
 0xd4c   : > { %v3350_v57 = vpop.permute.xlu1 %3349  ;;  %v4130_v48 = vld [vmem:[#allocation2 + $0x8] sm:$0xff] }
 0xd4d   : > { %3371 = vst.msk [vmem:[#allocation2 + $0x18] sm:$0xff] %vm3367_vm2, %v3350_v57  ;;  %v3348_v55 = vpop.permute.xlu0 %3347  ;;  %v4129_v22 = vld [vmem:[#allocation2] sm:$0xff]  ;;  %v7081_v57 = vld [vmem:[%s7563_s19 + $0x50] sm:$0xff] }
 0xd4e   : > { %3370 = vst.msk [vmem:[#allocation2 + $0x10] sm:$0xff] %vm3367_vm2, %v3348_v55  ;;  %6493 = vmatprep.mubr.bf16.mxu0 %v4129_v22 }
 0xd4f   : > { %6494 = vmatmul.mubr.bf16.vlgmr.msra.gmra.mrb[88].mxu0 %v4130_v48  ;;  %v7082_v48 = vld [vmem:[%s7563_s19 + $0x48] sm:$0xff] }
 0xd72   : > { %v4103_v50 = vpop.permute.xlu1 %4102 }
 0xd73   : > { %4124 = vst.msk [vmem:[#allocation2 + $0x18] sm:$0xff] %vm4120_vm3, %v4103_v50  ;;  %v4101_v58 = vpop.permute.xlu0 %4100 }
 0xd74   : > { %4123 = vst.msk [vmem:[#allocation2 + $0x10] sm:$0xff] %vm4120_vm3, %v4101_v58  ;;  %v7083_v58 = vld [vmem:[%s7563_s19 + $0x58] sm:$0xff] }
 0xd76   : > { %v2601_v49 = vpop.permute.xlu1 %2600 }
 0xd77   : > { %2620 = vst.msk [vmem:[#allocation2 + $0x28] sm:$0xff] %vm2614_vm1, %v2601_v49  ;;  %v2599_v59 = vpop.permute.xlu0 %2598 }
 0xd78   : > { %2619 = vst.msk [vmem:[#allocation2 + $0x20] sm:$0xff] %vm2614_vm1, %v2599_v59 }
 0xd7a   : > { %v3354_v17 = vpop.permute.xlu1 %3353  ;;  %v4132_v39 = vld [vmem:[#allocation2 + $0x18] sm:$0xff] }
 0xd7b   : > { %3373 = vst.msk [vmem:[#allocation2 + $0x28] sm:$0xff] %vm3367_vm2, %v3354_v17  ;;  %v3352_v54 = vpop.permute.xlu0 %3351  ;;  %v4131_v51 = vld [vmem:[#allocation2 + $0x10] sm:$0xff] }
 0xd7c   : > { %3372 = vst.msk [vmem:[#allocation2 + $0x20] sm:$0xff] %vm3367_vm2, %v3352_v54  ;;  %6497 = vmatprep.mubr.bf16.mxu0 %v4131_v51 }
 0xd7d   : > { %6498 = vmatmul.mubr.bf16.gmra.mrb[92].mxu0 %v4132_v39 }
 0xda5   : > { %v4107_v9 = vpop.permute.xlu1 %4106 }
 0xda6   : > { %4126 = vst.msk [vmem:[#allocation2 + $0x28] sm:$0xff] %vm4120_vm3, %v4107_v9  ;;  %v4105_v41 = vpop.permute.xlu0 %4104  ;;  %v7084_v9 = vld [vmem:[%s7563_s19 + $0x60] sm:$0xff] }
 0xda7   : > { %4125 = vst.msk [vmem:[#allocation2 + $0x20] sm:$0xff] %vm4120_vm3, %v4105_v41 }
 0xda9   : > { %v2605_v30 = vpop.permute.xlu1 %2604 }
 0xdaa   : > { %2622 = vst.msk [vmem:[#allocation2 + $0x38] sm:$0xff] %vm2614_vm1, %v2605_v30  ;;  %v2603_v7 = vpop.permute.xlu0 %2602 }
 0xdab   : > { %2621 = vst.msk [vmem:[#allocation2 + $0x30] sm:$0xff] %vm2614_vm1, %v2603_v7 }
 0xdad   : > { %v3358_v0 = vpop.permute.xlu1 %3357  ;;  %v4134_v38 = vld [vmem:[#allocation2 + $0x28] sm:$0xff] }
 0xdae   : > { %3375 = vst.msk [vmem:[#allocation2 + $0x38] sm:$0xff] %vm3367_vm2, %v3358_v0  ;;  %v3356_v45 = vpop.permute.xlu0 %3355  ;;  %v4133_v60 = vld [vmem:[#allocation2 + $0x20] sm:$0xff]  ;;  %v7085_v0 = vld [vmem:[%s7563_s19 + $0x70] sm:$0xff] }
 0xdaf   : > { %3374 = vst.msk [vmem:[#allocation2 + $0x30] sm:$0xff] %vm3367_vm2, %v3356_v45  ;;  %6501 = vmatprep.mubr.bf16.mxu0 %v4133_v60 }
 0xdb0   : > { %6502 = vmatmul.mubr.bf16.gmra.mrb[96].mxu0 %v4134_v38  ;;  %v7086_v38 = vld [vmem:[%s7563_s19 + $0x68] sm:$0xff] }
 0xdb1   : > { %v4111_v6 = vpop.permute.xlu1 %4110 }
 0xdb2   : > { %4128 = vst.msk [vmem:[#allocation2 + $0x38] sm:$0xff] %vm4120_vm3, %v4111_v6  ;;  %v4109_v23 = vpop.permute.xlu0 %4108 }
 0xdb3   : > { %4127 = vst.msk [vmem:[#allocation2 + $0x30] sm:$0xff] %vm4120_vm3, %v4109_v23  ;;  %v7087_v23 = vld [vmem:[%s7563_s19 + $0x78] sm:$0xff] }
 0xdb9   : > { %v4136_v53 = vld [vmem:[#allocation2 + $0x38] sm:$0xff] }
 0xdba   : > { %v4135_v29 = vld [vmem:[#allocation2 + $0x30] sm:$0xff] }
 0xdbb   : > { %6505 = vmatprep.mubr.bf16.mxu0 %v4135_v29 }
 0xdbc   : > { %6506 = vmatmul.mubr.bf16.gmra.mrb[100].mxu0 %v4136_v53 }
 0xdbd   : > { %4926 = vmatprep.mubr.bf16.mxu0 %v9579_v10 }
 0xe22   : > { %v6495_v19 = vpop.f32.mrb[88].mxu0 }
 0xe23   : > { %v4235_v16 = vpop.f32.mrb[89].mxu0  ;;  %v4300_v33 = vadd.f32 %v7073_v2, %v6495_v19  ;;  %v6680_v2 = vld [vmem:[#allocation8 + $0x24] ss:$16 sps:$4 sm:$0xff]  }
 0xe24   : > { %v4298_v61 = vadd.f32 %v7072_v18, %v4235_v16  ;;  %v6496_v44 = vpop.f32.mrb[90].mxu0  ;;  %v6672_v18 = vld [vmem:[#allocation8] ss:$16 sps:$4 sm:$0xff]  }
 0xe25   : > { %v4238_v21 = vpop.f32.mrb[91].mxu0  ;;  %v9102_v13 = vadd.f32 %v9089_v4, %v4300_v33  ;;  %v4301_v35 = vadd.f32 %v7075_v40, %v6496_v44  ;;  %v6675_v44 = vld [vmem:[#allocation8 + $0x8] ss:$16 sps:$4 sm:$0xff]   ;;  %v6683_v33 = vld [vmem:[#allocation8 + $0x2c] ss:$16 sps:$4 sm:$0xff]  }
 0xe26   : > { %v9094_v1 = vadd.f32 %v9089_v4, %v4298_v61  ;;  %v4299_v8 = vadd.f32 %v7074_v11, %v4238_v21  ;;  %v6674_v61 = vld [vmem:[#allocation8 + $0x4] ss:$16 sps:$4 sm:$0xff]   ;;  %v6677_v21 = vld [vmem:[#allocation8 + $0xc] ss:$16 sps:$4 sm:$0xff]   ;;  %v6678_v11 = vld [vmem:[#allocation8 + $0x20] ss:$16 sps:$4 sm:$0xff]  }
 0xe27   : > { %v9108_v46 = vadd.f32 %v9089_v4, %v4301_v35  ;;  %4781 = vmatprep.subr.bf16.mxu1 %v6674_v61  ;;  %4894 = vmatprep.subr.bf16.mxu0 %v6677_v21 }
 0xe28   : > { %v9098_v15 = vadd.f32 %v9089_v4, %v4299_v8  ;;  %4339 = vadd.xlane.f32.xlu0 %v9094_v1  ;;  %4782 = vmatpush1.bf16.msra.mxu1 %v6672_v18  ;;  %v6681_v8 = vld [vmem:[#allocation8 + $0x28] ss:$16 sps:$4 sm:$0xff]   ;;  %v6719_v18 = vld [vmem:[#allocation8 + $0xec] ss:$16 sps:$4 sm:$0xff]  }
 0xe29   : > { %4895 = vmatpush1.bf16.msra.mxu0 %v6675_v44  ;;  %4783 = vmatprep.subr.bf16.mxu1 %v6680_v2 }
 0xe2a   : > { %4341 = vadd.xlane.f32.xlu1 %v9098_v15  ;;  %4896 = vmatprep.subr.bf16.mxu0 %v6683_v33 }
 0xe2c   : > { %4343 = vadd.xlane.f32.xlu0 %v9102_v13  ;;  %4784 = vmatpush1.bf16.msra.mxu1 %v6678_v11 }
 0xe2d   : > { %4897 = vmatpush1.bf16.msra.mxu0 %v6681_v8 }
 0xe30   : > { %4345 = vadd.xlane.f32.xlu0 %v9108_v46 }
 0xe50   : > { %v6499_v47 = vpop.f32.mrb[92].mxu0 }
 0xe51   : > { %v4251_v24 = vpop.f32.mrb[93].mxu0  ;;  %v4304_v62 = vadd.f32 %v7077_v52, %v6499_v47 }
 0xe52   : > { %v4302_v31 = vadd.f32 %v7076_v36, %v4251_v24  ;;  %v6500_v56 = vpop.f32.mrb[94].mxu0 }
 0xe53   : > { %v4254_v3 = vpop.f32.mrb[95].mxu0  ;;  %v4305_v43 = vadd.f32 %v7079_v28, %v6500_v56  ;;  %v9123_v42 = vadd.f32 %v9089_v4, %v4304_v62 }
 0xe54   : > { %v9114_v27 = vadd.f32 %v9089_v4, %v4302_v31  ;;  %v4303_v5 = vadd.f32 %v7078_v12, %v4254_v3 }
 0xe55   : > { %v9127_v63 = vadd.f32 %v9089_v4, %v4305_v43 }
 0xe56   : > { %v9119_v14 = vadd.f32 %v9089_v4, %v4303_v5  ;;  %4347 = vadd.xlane.f32.xlu0 %v9114_v27 }
 0xe58   : > { %4349 = vadd.xlane.f32.xlu1 %v9119_v14 }
 0xe5a   : > { %4351 = vadd.xlane.f32.xlu0 %v9123_v42 }
 0xe5c   : > { %4353 = vadd.xlane.f32.xlu1 %v9127_v63 }
 0xe83   : > { %v6503_v20 = vpop.f32.mrb[96].mxu0 }
 0xe84   : > { %v4267_v26 = vpop.f32.mrb[97].mxu0  ;;  %v4308_v55 = vadd.f32 %v7081_v57, %v6503_v20  ;;  %v6695_v57 = vld [vmem:[#allocation8 + $0x6c] ss:$16 sps:$4 sm:$0xff]  }
 0xe85   : > { %v4306_v32 = vadd.f32 %v7080_v37, %v4267_v26  ;;  %v6504_v34 = vpop.f32.mrb[98].mxu0  ;;  %v6686_v26 = vld [vmem:[#allocation8 + $0x44] ss:$16 sps:$4 sm:$0xff]   ;;  %v6689_v37 = vld [vmem:[#allocation8 + $0x4c] ss:$16 sps:$4 sm:$0xff]  }
 0xe86   : > { %v4270_v25 = vpop.f32.mrb[99].mxu0  ;;  %v4309_v49 = vadd.f32 %v7083_v58, %v6504_v34  ;;  %v9143_v17 = vadd.f32 %v9089_v4, %v4308_v55  ;;  %v6687_v34 = vld [vmem:[#allocation8 + $0x48] ss:$16 sps:$4 sm:$0xff]   ;;  %4785 = vmatprep.subr.bf16.mxu1 %v6686_v26  ;;  %4898 = vmatprep.subr.bf16.mxu0 %v6689_v37  ;;  %v6690_v55 = vld [vmem:[#allocation8 + $0x60] ss:$16 sps:$4 sm:$0xff]  }
 0xe87   : > { %v9134_v22 = vadd.f32 %v9089_v4, %v4306_v32  ;;  %v4307_v50 = vadd.f32 %v7082_v48, %v4270_v25  ;;  %v6684_v32 = vld [vmem:[#allocation8 + $0x40] ss:$16 sps:$4 sm:$0xff]   ;;  %4899 = vmatpush1.bf16.msra.mxu0 %v6687_v34  ;;  %v6692_v25 = vld [vmem:[#allocation8 + $0x64] ss:$16 sps:$4 sm:$0xff]   ;;  %v6693_v48 = vld [vmem:[#allocation8 + $0x68] ss:$16 sps:$4 sm:$0xff]  }
 0xe88   : > { %v9147_v54 = vadd.f32 %v9089_v4, %v4309_v49  ;;  %4786 = vmatpush1.bf16.msra.mxu1 %v6684_v32  ;;  %4900 = vmatprep.subr.bf16.mxu0 %v6695_v57  ;;  %v6701_v58 = vld [vmem:[#allocation8 + $0x8c] ss:$16 sps:$4 sm:$0xff]   ;;  %v6696_v49 = vld [vmem:[#allocation8 + $0x80] ss:$16 sps:$4 sm:$0xff]  }
 0xe89   : > { %v9139_v59 = vadd.f32 %v9089_v4, %v4307_v50  ;;  %4355 = vadd.xlane.f32.xlu0 %v9134_v22  ;;  %4787 = vmatprep.subr.bf16.mxu1 %v6692_v25  ;;  %v6698_v50 = vld [vmem:[#allocation8 + $0x84] ss:$16 sps:$4 sm:$0xff]  }
 0xe8b   : > { %4357 = vadd.xlane.f32.xlu1 %v9139_v59  ;;  %4901 = vmatpush1.bf16.msra.mxu0 %v6693_v48 }
 0xe8c   : > { %4788 = vmatpush1.bf16.msra.mxu1 %v6690_v55  ;;  %4902 = vmatprep.subr.bf16.mxu0 %v6701_v58 }
 0xe8d   : > { %4359 = vadd.xlane.f32.xlu0 %v9143_v17  ;;  %4789 = vmatprep.subr.bf16.mxu1 %v6698_v50 }
 0xe8f   : > { %4361 = vadd.xlane.f32.xlu1 %v9147_v54  ;;  %v6507_v51 = vpop.f32.mrb[100].mxu0 }
 0xe90   : > { %v4283_v39 = vpop.f32.mrb[101].mxu0  ;;  %v4312_v45 = vadd.f32 %v7085_v0, %v6507_v51  ;;  %v6699_v51 = vld [vmem:[#allocation8 + $0x88] ss:$16 sps:$4 sm:$0xff]   ;;  %4790 = vmatpush1.bf16.msra.mxu1 %v6696_v49  ;;  %v6713_v0 = vld [vmem:[#allocation8 + $0xcc] ss:$16 sps:$4 sm:$0xff]  }
 0xe91   : > { %v4310_v41 = vadd.f32 %v7084_v9, %v4283_v39  ;;  %v6508_v30 = vpop.f32.mrb[102].mxu0  ;;  %4903 = vmatpush1.bf16.msra.mxu0 %v6699_v51  ;;  %v6704_v39 = vld [vmem:[#allocation8 + $0xa4] ss:$16 sps:$4 sm:$0xff]   ;;  %v6707_v9 = vld [vmem:[#allocation8 + $0xac] ss:$16 sps:$4 sm:$0xff]  }
 0xe92   : > { %v4286_v7 = vpop.f32.mrb[103].mxu0  ;;  %v4313_v29 = vadd.f32 %v7087_v23, %v6508_v30  ;;  %v9163_v19 = vadd.f32 %v9089_v4, %v4312_v45  ;;  %v6705_v30 = vld [vmem:[#allocation8 + $0xa8] ss:$16 sps:$4 sm:$0xff]   ;;  %4791 = vmatprep.subr.bf16.mxu1 %v6704_v39  ;;  %4904 = vmatprep.subr.bf16.mxu0 %v6707_v9  ;;  %v6708_v45 = vld [vmem:[#allocation8 + $0xc0] ss:$16 sps:$4 sm:$0xff]  }
 0xe93   : > { %v9154_v60 = vadd.f32 %v9089_v4, %v4310_v41  ;;  %v4311_v6 = vadd.f32 %v7086_v38, %v4286_v7  ;;  %v6702_v41 = vld [vmem:[#allocation8 + $0xa0] ss:$16 sps:$4 sm:$0xff]   ;;  %v6710_v7 = vld [vmem:[#allocation8 + $0xc4] ss:$16 sps:$4 sm:$0xff]   ;;  %v6711_v38 = vld [vmem:[#allocation8 + $0xc8] ss:$16 sps:$4 sm:$0xff]  }
 0xe94   : > { %v9167_v16 = vadd.f32 %v9089_v4, %v4313_v29  ;;  %4792 = vmatpush1.bf16.msra.mxu1 %v6702_v41  ;;  %v6714_v23 = vld [vmem:[#allocation8 + $0xe0] ss:$16 sps:$4 sm:$0xff]   ;;  %v6717_v29 = vld [vmem:[#allocation8 + $0xe8] ss:$16 sps:$4 sm:$0xff]  }
 0xe95   : > { %v9159_v53 = vadd.f32 %v9089_v4, %v4311_v6  ;;  %4363 = vadd.xlane.f32.xlu0 %v9154_v60  ;;  %4905 = vmatpush1.bf16.msra.mxu0 %v6705_v30  ;;  %v6716_v6 = vld [vmem:[#allocation8 + $0xe4] ss:$16 sps:$4 sm:$0xff]  }
 0xe96   : > { %4793 = vmatprep.subr.bf16.mxu1 %v6710_v7  ;;  %4906 = vmatprep.subr.bf16.mxu0 %v6713_v0 }
 0xe97   : > { %4365 = vadd.xlane.f32.xlu1 %v9159_v53 }
 0xe98   : > { %4794 = vmatpush1.bf16.msra.mxu1 %v6708_v45 }
 0xe99   : > { %4367 = vadd.xlane.f32.xlu0 %v9163_v19  ;;  %4907 = vmatpush1.bf16.msra.mxu0 %v6711_v38 }
 0xe9a   : > { %4795 = vmatprep.subr.bf16.mxu1 %v6716_v6  ;;  %4908 = vmatprep.subr.bf16.mxu0 %v6719_v18 }
 0xe9b   : > { %4369 = vadd.xlane.f32.xlu1 %v9167_v16 }
 0xe9c   : > { %4796 = vmatpush1.bf16.msra.mxu1 %v6714_v23 }
 0xe9d   : > { %4909 = vmatpush1.bf16.msra.mxu0 %v6717_v29 }
 0xeb5   : > { %v4340_v4 = vpop.xlane.xlu0 %4339 }
 0xeb6   : > { %v4371_v40 = vmul.f32 0.0078125, %v4340_v4 }
 0xeb7   : > { %v4342_v35 = vpop.xlane.xlu1 %4341 }
 0xeb8   : > { %v9172_v47 = vsub.f32 %v9094_v1, %v4371_v40  ;;  %v4372_v24 = vmul.f32 0.0078125, %v4342_v35 }
 0xeb9   : > { %v4344_v36 = vpop.xlane.xlu0 %4343 }
 0xeba   : > { %v9175_v31 = vsub.f32 %v9098_v15, %v4372_v24  ;;  %v4373_v56 = vmul.f32 0.0078125, %v4344_v36  ;;  %v4403_v3 = vmul.f32 %v9172_v47, %v9172_v47 }
 0xebc   : > { %v9180_v52 = vsub.f32 %v9102_v13, %v4373_v56  ;;  %4419 = vadd.xlane.f32.xlu0 %v4403_v3  ;;  %v4404_v62 = vmul.f32 %v9175_v31, %v9175_v31 }
 0xebd   : > { %v4346_v12 = vpop.xlane.xlu0 %4345 }
 0xebe   : > { %v4374_v5 = vmul.f32 0.0078125, %v4346_v12  ;;  %4421 = vadd.xlane.f32.xlu1 %v4404_v62  ;;  %v4405_v28 = vmul.f32 %v9180_v52, %v9180_v52 }
 0xec0   : > { %v9187_v43 = vsub.f32 %v9108_v46, %v4374_v5  ;;  %4423 = vadd.xlane.f32.xlu0 %v4405_v28 }
 0xec2   : > { %v4406_v20 = vmul.f32 %v9187_v43, %v9187_v43 }
 0xec4   : > { %4425 = vadd.xlane.f32.xlu1 %v4406_v20 }
 0xee3   : > { %v4348_v61 = vpop.xlane.xlu0 %4347 }
 0xee4   : > { %v4375_v44 = vmul.f32 0.0078125, %v4348_v61 }
 0xee5   : > { %v4350_v21 = vpop.xlane.xlu1 %4349 }
 0xee6   : > { %v9192_v2 = vsub.f32 %v9114_v27, %v4375_v44  ;;  %v4376_v33 = vmul.f32 0.0078125, %v4350_v21 }
 0xee7   : > { %v4352_v11 = vpop.xlane.xlu0 %4351 }
 0xee8   : > { %v9195_v8 = vsub.f32 %v9119_v14, %v4376_v33  ;;  %v4377_v4 = vmul.f32 0.0078125, %v4352_v11  ;;  %v4407_v40 = vmul.f32 %v9192_v2, %v9192_v2 }
 0xee9   : > { %v4354_v35 = vpop.xlane.xlu1 %4353 }
 0xeea   : > { %v9200_v24 = vsub.f32 %v9123_v42, %v4377_v4  ;;  %v4378_v36 = vmul.f32 0.0078125, %v4354_v35  ;;  %4427 = vadd.xlane.f32.xlu0 %v4407_v40  ;;  %v4408_v56 = vmul.f32 %v9195_v8, %v9195_v8 }
 0xeec   : > { %v9205_v3 = vsub.f32 %v9127_v63, %v4378_v36  ;;  %4429 = vadd.xlane.f32.xlu1 %v4408_v56  ;;  %v4409_v62 = vmul.f32 %v9200_v24, %v9200_v24 }
 0xeee   : > { %4431 = vadd.xlane.f32.xlu0 %v4409_v62  ;;  %v4410_v12 = vmul.f32 %v9205_v3, %v9205_v3 }
 0xef0   : > { %4433 = vadd.xlane.f32.xlu1 %v4410_v12 }
 0xf16   : > { %v4356_v5 = vpop.xlane.xlu0 %4355 }
 0xf17   : > { %v4379_v28 = vmul.f32 0.0078125, %v4356_v5 }
 0xf18   : > { %v4358_v20 = vpop.xlane.xlu1 %4357 }
 0xf19   : > { %v9212_v26 = vsub.f32 %v9134_v22, %v4379_v28  ;;  %v4380_v37 = vmul.f32 0.0078125, %v4358_v20 }
 0xf1a   : > { %v4360_v32 = vpop.xlane.xlu0 %4359 }
 0xf1b   : > { %v9215_v34 = vsub.f32 %v9139_v59, %v4380_v37  ;;  %v4381_v25 = vmul.f32 0.0078125, %v4360_v32  ;;  %v4411_v57 = vmul.f32 %v9212_v26, %v9212_v26 }
 0xf1c   : > { %v4362_v55 = vpop.xlane.xlu1 %4361 }
 0xf1d   : > { %v9220_v48 = vsub.f32 %v9143_v17, %v4381_v25  ;;  %v4382_v50 = vmul.f32 0.0078125, %v4362_v55  ;;  %4435 = vadd.xlane.f32.xlu0 %v4411_v57  ;;  %v4412_v58 = vmul.f32 %v9215_v34, %v9215_v34  ;;  %v9254_v57 = vld [vmem:[%s9520_s7] ss:$0 sm:$0xff] }
 0xf1f   : > { %v9225_v49 = vsub.f32 %v9147_v54, %v4382_v50  ;;  %4437 = vadd.xlane.f32.xlu1 %v4412_v58  ;;  %v4413_v51 = vmul.f32 %v9220_v48, %v9220_v48 }
 0xf21   : > { %4439 = vadd.xlane.f32.xlu0 %v4413_v51  ;;  %v4414_v39 = vmul.f32 %v9225_v49, %v9225_v49 }
 0xf22   : > { %v4364_v9 = vpop.xlane.xlu0 %4363 }
 0xf23   : > { %v4383_v41 = vmul.f32 0.0078125, %v4364_v9  ;;  %4441 = vadd.xlane.f32.xlu1 %v4414_v39  ;;  %v9262_v9 = vld [vmem:[%s9596_s8] ss:$0 sm:$0xff]  ;;  %s5593_s8 = scalar_lea.sflag [#allocation5], %s7557_s17 }
 0xf24   : > { %v4366_v30 = vpop.xlane.xlu1 %4365 }
 0xf25   : > { %v9232_v7 = vsub.f32 %v9154_v60, %v4383_v41  ;;  %v4384_v0 = vmul.f32 0.0078125, %v4366_v30  ;;  %v6720_v41 = vld [vmem:[#allocation9 + $0x40] sm:$0xff]  }
 0xf26   : > { %v4368_v45 = vpop.xlane.xlu0 %4367  ;;  %v6721_v30 = vld [vmem:[#allocation9 + $0xc0] sm:$0xff]   ;;  %6061 = vmatprep.subr.bf16.mxu1 %v6720_v41  ;;  %v6741_v41 = vld [vmem:[#allocation9 + $0xe8] sm:$0xff]  }
 0xf27   : > { %v9235_v38 = vsub.f32 %v9159_v53, %v4384_v0  ;;  %v4385_v6 = vmul.f32 0.0078125, %v4368_v45  ;;  %v4415_v23 = vmul.f32 %v9232_v7, %v9232_v7  ;;  %6125 = vmatprep.subr.bf16.mxu0 %v6721_v30 }
 0xf28   : > { %v4370_v29 = vpop.xlane.xlu1 %4369 }
 0xf29   : > { %v9240_v18 = vsub.f32 %v9163_v19, %v4385_v6  ;;  %v4386_v61 = vmul.f32 0.0078125, %v4370_v29  ;;  %4443 = vadd.xlane.f32.xlu0 %v4415_v23  ;;  %v4416_v44 = vmul.f32 %v9235_v38, %v9235_v38 }
 0xf2b   : > { %v9245_v21 = vsub.f32 %v9167_v16, %v4386_v61  ;;  %4445 = vadd.xlane.f32.xlu1 %v4416_v44  ;;  %v4417_v33 = vmul.f32 %v9240_v18, %v9240_v18  ;;  %v6722_v61 = vld [vmem:[#allocation9] sm:$0xff]  }
 0xf2c   : > { %v6723_v44 = vld [vmem:[#allocation9 + $0x80] sm:$0xff]  }
 0xf2d   : > { %4447 = vadd.xlane.f32.xlu0 %v4417_v33  ;;  %v4418_v11 = vmul.f32 %v9245_v21, %v9245_v21  ;;  %v6724_v33 = vld [vmem:[#allocation9 + $0x48] sm:$0xff]  }
 0xf2f   : > { %4449 = vadd.xlane.f32.xlu1 %v4418_v11  ;;  %v6725_v11 = vld [vmem:[#allocation9 + $0xc8] sm:$0xff]  }
 0xf49   : > { %v4420_v4 = vpop.xlane.xlu0 %4419 }
 0xf4a   : > { %v4451_v40 = vmul.f32 0.0078125, %v4420_v4 }
 0xf4b   : > { %v4422_v35 = vpop.xlane.xlu1 %4421 }
 0xf4c   : > { %v4467_v36 = vadd.f32 1e-05, %v4451_v40  ;;  %v4452_v56 = vmul.f32 0.0078125, %v4422_v35  ;;  %v6726_v35 = vld [vmem:[#allocation9 + $0x8] sm:$0xff]  }
 0xf4d   : > { %v4424_v62 = vpop.xlane.xlu0 %4423 }
 0xf4e   : > { %7040 = vrsqrt.f32 %v4467_v36  ;;  %v4468_v12 = vadd.f32 1e-05, %v4452_v56  ;;  %v4453_v5 = vmul.f32 0.0078125, %v4424_v62  ;;  %v6728_v36 = vld [vmem:[#allocation9 + $0x50] sm:$0xff]  }
 0xf4f   : > { %v6729_v56 = vld [vmem:[#allocation9 + $0xd0] sm:$0xff]  }
 0xf50   : > { %7042 = vrsqrt.f32 %v4468_v12  ;;  %v4469_v28 = vadd.f32 1e-05, %v4453_v5  ;;  %v6730_v5 = vld [vmem:[#allocation9 + $0x10] sm:$0xff]  }
 0xf51   : > { %v4426_v20 = vpop.xlane.xlu1 %4425 }
 0xf52   : > { %7044 = vrsqrt.f32 %v4469_v28  ;;  %v4454_v37 = vmul.f32 0.0078125, %v4426_v20  ;;  %v6731_v28 = vld [vmem:[#allocation9 + $0x90] sm:$0xff]   ;;  %v6732_v20 = vld [vmem:[#allocation9 + $0x58] sm:$0xff]  }
 0xf54   : > { %v4470_v32 = vadd.f32 1e-05, %v4454_v37  ;;  %v6733_v37 = vld [vmem:[#allocation9 + $0xd8] sm:$0xff]  }
 0xf56   : > { %7046 = vrsqrt.f32 %v4470_v32  ;;  %v6734_v32 = vld [vmem:[#allocation9 + $0x18] sm:$0xff]  }
 0xf58   : > { %v7041_v25 = vpop.eup %7040 }
 0xf59   : > { %v4499_v55 = vmul.f32 %v7041_v25, %v9172_v47  ;;  %v6735_v25 = vld [vmem:[#allocation9 + $0x98] sm:$0xff]  }
 0xf5a   : > { %v7043_v50 = vpop.eup %7042 }
 0xf5b   : > { %v4500_v58 = vmul.f32 %v7043_v50, %v9175_v31  ;;  %v4521_v51 = vmul.f32 %v9254_v57, %v4499_v55  ;;  %v6736_v55 = vld [vmem:[#allocation9 + $0x60] sm:$0xff]  }
 0xf5c   : > { %v7045_v39 = vpop.eup %7044  ;;  %v6737_v50 = vld [vmem:[#allocation9 + $0xe0] sm:$0xff]  }
 0xf5d   : > { %v4522_v0 = vmul.f32 %v9254_v57, %v4500_v58  ;;  %v4543_v45 = vadd.f32 %v9262_v9, %v4521_v51  ;;  %v4501_v31 = vmul.f32 %v7045_v39, %v9180_v52  ;;  %v6738_v58 = vld [vmem:[#allocation9 + $0x20] sm:$0xff]   ;;  %v6740_v39 = vld [vmem:[#allocation9 + $0x68] sm:$0xff]  }
 0xf5e   : > { %v6739_v51 = vld [vmem:[#allocation9 + $0xa0] sm:$0xff]  }
 0xf5f   : > { %v4544_v47 = vadd.f32 %v9262_v9, %v4522_v0  ;;  %v4523_v4 = vmul.f32 %v9254_v57, %v4501_v31 }
 0xf60   : > { %v7047_v6 = vpop.eup %7046 }
 0xf61   : > { %v4559_v23 = vpack.c.bf16 %v4544_v47, %v4543_v45  ;;  %v4502_v29 = vmul.f32 %v7047_v6, %v9187_v43  ;;  %v6727_v43 = vld [vmem:[#allocation9 + $0x88] sm:$0xff]   ;;  %v4545_v62 = vadd.f32 %v9262_v9, %v4523_v4 }
 0xf63   : > { %4814 = vmatmul.mubr.bf16.vlgmr.msra.gmra.mrb[88].mxu1 %v4559_v23  ;;  %4927 = vmatmul.mubr.bf16.vlgmr.msra.gmra.mrb[104].mxu0 %v4559_v23  ;;  %v4524_v40 = vmul.f32 %v9254_v57, %v4502_v29 }
 0xf64   : > { %4823 = vmatprep.mubr.bf16.mxu1 %v9579_v10  ;;  %4936 = vmatprep.mubr.bf16.mxu0 %v9579_v10 }
 0xf65   : > { %v4546_v52 = vadd.f32 %v9262_v9, %v4524_v40  ;;  %6062 = vmatpush3.bf16.msra.mxu1 %v6722_v61  ;;  %6126 = vmatpush3.bf16.msra.mxu0 %v6723_v44 }
 0xf66   : > { %6063 = vmatprep.subr.bf16.mxu1 %v6724_v33  ;;  %6127 = vmatprep.subr.bf16.mxu0 %v6725_v11 }
 0xf67   : > { %v4560_v12 = vpack.c.bf16 %v4546_v52, %v4545_v62 }
 0xf69   : > { %6064 = vmatpush3.bf16.msra.mxu1 %v6726_v35  ;;  %6128 = vmatpush3.bf16.msra.mxu0 %v6727_v43 }
 0xf6a   : > { %6065 = vmatprep.subr.bf16.mxu1 %v6728_v36  ;;  %6129 = vmatprep.subr.bf16.mxu0 %v6729_v56 }
 0xf6b   : > { %4824 = vmatmul.mubr.bf16.gmra.mrb[92].mxu1 %v4560_v12  ;;  %4937 = vmatmul.mubr.bf16.gmra.mrb[108].mxu0 %v4560_v12 }
 0xf6c   : > { %4833 = vmatprep.mubr.bf16.mxu1 %v9579_v10  ;;  %4946 = vmatprep.mubr.bf16.mxu0 %v9579_v10 }
 0xf6d   : > { %6066 = vmatpush3.bf16.msra.mxu1 %v6730_v5  ;;  %6130 = vmatpush3.bf16.msra.mxu0 %v6731_v28 }
 0xf6e   : > { %6067 = vmatprep.subr.bf16.mxu1 %v6732_v20  ;;  %6131 = vmatprep.subr.bf16.mxu0 %v6733_v37 }
 0xf71   : > { %6068 = vmatpush3.bf16.msra.mxu1 %v6734_v32  ;;  %6132 = vmatpush3.bf16.msra.mxu0 %v6735_v25 }
 0xf72   : > { %6069 = vmatprep.subr.bf16.mxu1 %v6736_v55  ;;  %6133 = vmatprep.subr.bf16.mxu0 %v6737_v50 }
 0xf75   : > { %6070 = vmatpush3.bf16.msra.mxu1 %v6738_v58  ;;  %6134 = vmatpush3.bf16.msra.mxu0 %v6739_v51 }
 0xf76   : > { %6071 = vmatprep.subr.bf16.mxu1 %v6740_v39  ;;  %6135 = vmatprep.subr.bf16.mxu0 %v6741_v41 }
 0xf77   : > { %v4428_v30 = vpop.xlane.xlu0 %4427 }
 0xf78   : > { %v4455_v0 = vmul.f32 0.0078125, %v4428_v30 }
 0xf79   : > { %v4430_v45 = vpop.xlane.xlu1 %4429 }
 0xf7a   : > { %v4471_v47 = vadd.f32 1e-05, %v4455_v0  ;;  %v4456_v31 = vmul.f32 0.0078125, %v4430_v45 }
 0xf7b   : > { %v4432_v6 = vpop.xlane.xlu0 %4431 }
 0xf7c   : > { %7048 = vrsqrt.f32 %v4471_v47  ;;  %v4472_v23 = vadd.f32 1e-05, %v4456_v31  ;;  %v4457_v29 = vmul.f32 0.0078125, %v4432_v6  ;;  %v6742_v6 = vld [vmem:[#allocation9 + $0x28] sm:$0xff]  }
 0xf7d   : > { %v4434_v61 = vpop.xlane.xlu1 %4433  ;;  %6072 = vmatpush3.bf16.msra.mxu1 %v6742_v6 }
 0xf7e   : > { %7050 = vrsqrt.f32 %v4472_v23  ;;  %v4473_v44 = vadd.f32 1e-05, %v4457_v29  ;;  %v4458_v33 = vmul.f32 0.0078125, %v4434_v61  ;;  %v6743_v23 = vld [vmem:[#allocation9 + $0xa8] sm:$0xff]  }
 0xf7f   : > { %6136 = vmatpush3.bf16.msra.mxu0 %v6743_v23 }
 0xf80   : > { %7052 = vrsqrt.f32 %v4473_v44  ;;  %v4474_v11 = vadd.f32 1e-05, %v4458_v33  ;;  %v6744_v44 = vld [vmem:[#allocation9 + $0x70] sm:$0xff]  }
 0xf81   : > { %v6745_v33 = vld [vmem:[#allocation9 + $0xf0] sm:$0xff]   ;;  %6073 = vmatprep.subr.bf16.mxu1 %v6744_v44 }
 0xf82   : > { %7054 = vrsqrt.f32 %v4474_v11  ;;  %6137 = vmatprep.subr.bf16.mxu0 %v6745_v33 }
 0xf86   : > { %v7049_v4 = vpop.eup %7048 }
 0xf87   : > { %v4503_v40 = vmul.f32 %v7049_v4, %v9192_v2  ;;  %v6746_v4 = vld [vmem:[#allocation9 + $0x30] sm:$0xff]  }
 0xf88   : > { %v7051_v52 = vpop.eup %7050  ;;  %6074 = vmatpush3.bf16.msra.mxu1 %v6746_v4 }
 0xf89   : > { %v4504_v35 = vmul.f32 %v7051_v52, %v9195_v8  ;;  %v4525_v43 = vmul.f32 %v9254_v57, %v4503_v40  ;;  %v6747_v40 = vld [vmem:[#allocation9 + $0xb0] sm:$0xff]  }
 0xf8a   : > { %v7053_v36 = vpop.eup %7052  ;;  %6138 = vmatpush3.bf16.msra.mxu0 %v6747_v40 }
 0xf8b   : > { %v4526_v56 = vmul.f32 %v9254_v57, %v4504_v35  ;;  %v4547_v12 = vadd.f32 %v9262_v9, %v4525_v43  ;;  %v4505_v28 = vmul.f32 %v7053_v36, %v9200_v24 }
 0xf8c   : > { %v7055_v62 = vpop.eup %7054 }
 0xf8d   : > { %v4548_v5 = vadd.f32 %v9262_v9, %v4526_v56  ;;  %v4506_v20 = vmul.f32 %v7055_v62, %v9205_v3  ;;  %v4527_v8 = vmul.f32 %v9254_v57, %v4505_v28  ;;  %v6748_v28 = vld [vmem:[#allocation9 + $0x78] sm:$0xff]  }
 0xf8e   : > { %6075 = vmatprep.subr.bf16.mxu1 %v6748_v28 }
 0xf8f   : > { %v4561_v37 = vpack.c.bf16 %v4548_v5, %v4547_v12  ;;  %v4528_v2 = vmul.f32 %v9254_v57, %v4506_v20  ;;  %v4549_v25 = vadd.f32 %v9262_v9, %v4527_v8  ;;  %v6749_v20 = vld [vmem:[#allocation9 + $0xf8] sm:$0xff]  }
 0xf90   : > { %6139 = vmatprep.subr.bf16.mxu0 %v6749_v20 }
 0xf91   : > { %4834 = vmatmul.mubr.bf16.gmra.mrb[96].mxu1 %v4561_v37  ;;  %4947 = vmatmul.mubr.bf16.gmra.mrb[112].mxu0 %v4561_v37  ;;  %v4550_v32 = vadd.f32 %v9262_v9, %v4528_v2 }
 0xf92   : > { %4843 = vmatprep.mubr.bf16.mxu1 %v9579_v10  ;;  %4956 = vmatprep.mubr.bf16.mxu0 %v9579_v10 }
 0xf93   : > { %v4562_v55 = vpack.c.bf16 %v4550_v32, %v4549_v25  ;;  %v6750_v32 = vld [vmem:[#allocation9 + $0x38] sm:$0xff]  }
 0xf94   : > { %v6751_v25 = vld [vmem:[#allocation9 + $0xb8] sm:$0xff]   ;;  %6076 = vmatpush3.bf16.msra.mxu1 %v6750_v32 }
 0xf95   : > { %6140 = vmatpush3.bf16.msra.mxu0 %v6751_v25 }
 0xf99   : > { %4844 = vmatmul.mubr.bf16.gmra.mrb[100].mxu1 %v4562_v55  ;;  %4957 = vmatmul.mubr.bf16.gmra.mrb[116].mxu0 %v4562_v55 }
 0xf9a   : > { %4853 = vmatprep.mubr.bf16.mxu1 %v9579_v10  ;;  %4966 = vmatprep.mubr.bf16.mxu0 %v9579_v10 }
 0xfaa   : > { %v4436_v24 = vpop.xlane.xlu0 %4435 }
 0xfab   : > { %v4459_v3 = vmul.f32 0.0078125, %v4436_v24 }
 0xfac   : > { %v4438_v50 = vpop.xlane.xlu1 %4437 }
 0xfad   : > { %v4475_v58 = vadd.f32 1e-05, %v4459_v3  ;;  %v4460_v51 = vmul.f32 0.0078125, %v4438_v50 }
 0xfae   : > { %v4440_v39 = vpop.xlane.xlu0 %4439 }
 0xfaf   : > { %7056 = vrsqrt.f32 %v4475_v58  ;;  %v4476_v41 = vadd.f32 1e-05, %v4460_v51  ;;  %v4461_v30 = vmul.f32 0.0078125, %v4440_v39 }
 0xfb0   : > { %v4442_v0 = vpop.xlane.xlu1 %4441 }
 0xfb1   : > { %7058 = vrsqrt.f32 %v4476_v41  ;;  %v4477_v45 = vadd.f32 1e-05, %v4461_v30  ;;  %v4462_v47 = vmul.f32 0.0078125, %v4442_v0 }
 0xfb3   : > { %7060 = vrsqrt.f32 %v4477_v45  ;;  %v4478_v31 = vadd.f32 1e-05, %v4462_v47 }
 0xfb5   : > { %7062 = vrsqrt.f32 %v4478_v31 }
 0xfb6   : > { %v4444_v29 = vpop.xlane.xlu0 %4443 }
 0xfb7   : > { %v4463_v61 = vmul.f32 0.0078125, %v4444_v29 }
 0xfb8   : > { %v4446_v11 = vpop.xlane.xlu1 %4445 }
 0xfb9   : > { %v7057_v52 = vpop.eup %7056  ;;  %v4479_v35 = vadd.f32 1e-05, %v4463_v61  ;;  %v4464_v43 = vmul.f32 0.0078125, %v4446_v11 }
 0xfba   : > { %v4448_v36 = vpop.xlane.xlu0 %4447  ;;  %v4507_v56 = vmul.f32 %v7057_v52, %v9212_v26 }
 0xfbb   : > { %v7059_v62 = vpop.eup %7058  ;;  %7064 = vrsqrt.f32 %v4479_v35  ;;  %v4480_v12 = vadd.f32 1e-05, %v4464_v43  ;;  %v4465_v5 = vmul.f32 0.0078125, %v4448_v36 }
 0xfbc   : > { %v4450_v37 = vpop.xlane.xlu1 %4449  ;;  %v4508_v2 = vmul.f32 %v7059_v62, %v9215_v34  ;;  %v4529_v8 = vmul.f32 %v9254_v57, %v4507_v56  ;;  %v9598_v62 = vld [vmem:[#allocation18_spill] sm:$0xff] }
 0xfbd   : > { %v7061_v55 = vpop.eup %7060  ;;  %7066 = vrsqrt.f32 %v4480_v12  ;;  %v4466_v24 = vmul.f32 0.0078125, %v4450_v37  ;;  %v4481_v50 = vadd.f32 1e-05, %v4465_v5  ;;  %v4615_v12 = vsub.s32 3, %v9598_v62 }
 0xfbe   : > { %v4530_v26 = vmul.f32 %v9254_v57, %v4508_v2  ;;  %v4551_v51 = vadd.f32 %v9262_v9, %v4529_v8  ;;  %v4509_v39 = vmul.f32 %v7061_v55, %v9220_v48  ;;  %v9599_v5 = vsub.s32 0, %v9598_v62 }
 0xfbf   : > { %v7063_v3 = vpop.eup %7062  ;;  %v4482_v58 = vadd.f32 1e-05, %v4466_v24  ;;  %v9600_v28 = vsub.s32 2, %v9598_v62  ;;  %v9601_v20 = vsub.s32 1, %v9598_v62 }
 0xfc0   : > { %v4552_v34 = vadd.f32 %v9262_v9, %v4530_v26  ;;  %v4510_v41 = vmul.f32 %v7063_v3, %v9225_v49  ;;  %v4531_v45 = vmul.f32 %v9254_v57, %v4509_v39 }
 0xfc1   : > { %7068 = vrsqrt.f32 %v4482_v58 }
 0xfc2   : > { %v4563_v30 = vpack.c.bf16 %v4552_v34, %v4551_v51  ;;  %v4532_v0 = vmul.f32 %v9254_v57, %v4510_v41  ;;  %7070 = vrsqrt.f32 %v4481_v50  ;;  %v4553_v48 = vadd.f32 %v9262_v9, %v4531_v45 }
 0xfc4   : > { %4854 = vmatmul.mubr.bf16.gmra.mrb[104].mxu1 %v4563_v30  ;;  %4967 = vmatmul.mubr.bf16.gmra.mrb[120].mxu0 %v4563_v30  ;;  %v4554_v31 = vadd.f32 %v9262_v9, %v4532_v0 }
 0xfc5   : > { %v7065_v47 = vpop.eup %7064  ;;  %4863 = vmatprep.mubr.bf16.mxu1 %v9579_v10  ;;  %4976 = vmatprep.mubr.bf16.mxu0 %v9579_v10 }
 0xfc6   : > { %v4511_v49 = vmul.f32 %v7065_v47, %v9232_v7  ;;  %v4564_v29 = vpack.c.bf16 %v4554_v31, %v4553_v48 }
 0xfc7   : > { %v7067_v6 = vpop.eup %7066 }
 0xfc8   : > { %v4512_v23 = vmul.f32 %v7067_v6, %v9235_v38  ;;  %v4533_v33 = vmul.f32 %v9254_v57, %v4511_v49 }
 0xfca   : > { %v4534_v61 = vmul.f32 %v9254_v57, %v4512_v23  ;;  %v4555_v7 = vadd.f32 %v9262_v9, %v4533_v33 }
 0xfcb   : > { %v7069_v44 = vpop.eup %7068 }
 0xfcc   : > { %4864 = vmatmul.mubr.bf16.gmra.mrb[108].mxu1 %v4564_v29  ;;  %4977 = vmatmul.mubr.bf16.gmra.mrb[124].mxu0 %v4564_v29  ;;  %v7071_v11 = vpop.eup %7070  ;;  %v4556_v4 = vadd.f32 %v9262_v9, %v4534_v61  ;;  %v4514_v40 = vmul.f32 %v7069_v44, %v9245_v21 }
 0xfcd   : > { %4873 = vmatprep.mubr.bf16.mxu1 %v9579_v10  ;;  %4986 = vmatprep.mubr.bf16.mxu0 %v9579_v10  ;;  %v4513_v38 = vmul.f32 %v7071_v11, %v9240_v18  ;;  %v4599_v18 = vld [vmem:[%s9597_s14] sm:$0xf]  ;;  %s7208_s14 = scalar_lea.vmem %s7207_s20, 4096 }
 0xfce   : > { %v4565_v52 = vpack.c.bf16 %v4556_v4, %v4555_v7  ;;  %v4536_v35 = vmul.f32 %v9254_v57, %v4514_v40  ;;  %v9339_v37 = vrot.slane %v4599_v18, %v4615_v12  ;;  %p7210_p2 = scmp.lt.s32.totalorder %s7208_s14, %s7202_s29 }
 0xfcf   : > { %v4535_v43 = vmul.f32 %v9254_v57, %v4513_v38  ;;  %v9329_v57 = vrot.slane %v4599_v18, %v9599_v5 }
 0xfd0   : > { %v4558_v36 = vadd.f32 %v9262_v9, %v4536_v35  ;;  %p7211_p1 = por %p7210_p2, %p7209_p12 }
 0xfd1   : > { %v4557_v56 = vadd.f32 %v9262_v9, %v4535_v43  ;;  %v9337_v9 = vrot.slane %v4599_v18, %v9601_v20 }
 0xfd2   : > { %p7212_p4 = pnand %p7211_p1, %p7205_p7 }
 0xfd3   : > { %v4566_v21 = vpack.c.bf16 %v4558_v36, %v4557_v56 }
 0xfd4   : > { %4874 = vmatmul.mubr.bf16.gmra.mrb[112].mxu1 %v4565_v52  ;;  %4987 = vmatmul.mubr.bf16.gmra.mrb[128].mxu0 %v4565_v52 }
 0xfd5   : > { %4883 = vmatprep.mubr.bf16.mxu1 %v9579_v10  ;;  %4996 = vmatprep.mubr.bf16.mxu0 %v9579_v10  ;;  %v9333_v10 = vrot.slane %v4599_v18, %v9600_v28 }
 0xfdc   : > { %4884 = vmatmul.mubr.bf16.gmra.mrb[116].mxu1 %v4566_v21  ;;  %4997 = vmatmul.mubr.bf16.gmra.mrb[132].mxu0 %v4566_v21 }
0x1036   : > { %v4815_v2 = vpop.f32.mrb[88].mxu1  ;;  %v4928_v8 = vpop.f32.mrb[104].mxu0 }
0x1037   : > { %v4816_v32 = vadd.f32 %v4815_v2, %v9329_v57  ;;  %v4929_v25 = vadd.f32 %v4928_v8, %v9333_v10  ;;  %v4817_v55 = vpop.f32.mrb[89].mxu1  ;;  %v4930_v24 = vpop.f32.mrb[105].mxu0 }
0x1038   : > { %v4818_v26 = vadd.f32 %v4817_v55, %v9337_v9  ;;  %v4931_v3 = vadd.f32 %v4930_v24, %v9339_v37  ;;  %v4819_v50 = vpop.f32.mrb[90].mxu1  ;;  %v4932_v58 = vpop.f32.mrb[106].mxu0 }
0x1039   : > { %v4820_v51 = vadd.f32 %v4819_v50, %v9329_v57  ;;  %v4933_v34 = vadd.f32 %v4932_v58, %v9333_v10  ;;  %v4821_v39 = vpop.f32.mrb[91].mxu1  ;;  %v4934_v41 = vpop.f32.mrb[107].mxu0  ;;  %v5007_v45 = vmax.f32 %v4816_v32, 0.0  ;;  %v5009_v47 = vmax.f32 %v4929_v25, 0.0 }
0x103a   : > { %v4822_v30 = vadd.f32 %v4821_v39, %v9337_v9  ;;  %v4935_v0 = vadd.f32 %v4934_v41, %v9339_v37  ;;  %v5008_v48 = vmax.f32 %v4818_v26, 0.0  ;;  %v5010_v49 = vmax.f32 %v4931_v3, 0.0 }
0x103b   : > { %v5011_v31 = vmax.f32 %v4820_v51, 0.0  ;;  %v5013_v6 = vmax.f32 %v4933_v34, 0.0 }
0x103c   : > { %v5012_v23 = vmax.f32 %v4822_v30, 0.0  ;;  %v5014_v29 = vmax.f32 %v4935_v0, 0.0 }
0x103d   : > { %v5071_v61 = vpack.c.bf16 %v5011_v31, %v5007_v45  ;;  %v5073_v44 = vpack.c.bf16 %v5013_v6, %v5009_v47 }
0x103e   : > { %v5072_v33 = vpack.c.bf16 %v5012_v23, %v5008_v48  ;;  %v5074_v11 = vpack.c.bf16 %v5014_v29, %v5010_v49  ;;  %v4825_v4 = vpop.f32.mrb[92].mxu1  ;;  %v4938_v40 = vpop.f32.mrb[108].mxu0 }
0x103f   : > { %v4826_v7 = vadd.f32 %v4825_v4, %v9329_v57  ;;  %v4939_v38 = vadd.f32 %v4938_v40, %v9333_v10  ;;  %v4827_v52 = vpop.f32.mrb[93].mxu1  ;;  %v4940_v35 = vpop.f32.mrb[109].mxu0 }
0x1040   : > { %v4828_v43 = vadd.f32 %v4827_v52, %v9337_v9  ;;  %v4941_v36 = vadd.f32 %v4940_v35, %v9339_v37  ;;  %v4829_v56 = vpop.f32.mrb[94].mxu1  ;;  %v4942_v21 = vpop.f32.mrb[110].mxu0  ;;  %5398 = vmatprep.mubr.bf16.mxu1 %v5072_v33  ;;  %5495 = vmatprep.mubr.bf16.mxu0 %v5074_v11 }
0x1041   : > { %v4830_v18 = vadd.f32 %v4829_v56, %v9329_v57  ;;  %v4943_v62 = vadd.f32 %v4942_v21, %v9333_v10  ;;  %v4831_v12 = vpop.f32.mrb[95].mxu1  ;;  %v4944_v5 = vpop.f32.mrb[111].mxu0  ;;  %5399 = vmatmul.mubr.bf16.vlgmr.msra.gmra.mrb[120].mxu1 %v5071_v61  ;;  %5496 = vmatmul.mubr.bf16.vlgmr.msra.gmra.mrb[136].mxu0 %v5073_v44  ;;  %v5015_v2 = vmax.f32 %v4826_v7, 0.0  ;;  %v5017_v8 = vmax.f32 %v4939_v38, 0.0 }
0x1042   : > { %v4832_v28 = vadd.f32 %v4831_v12, %v9337_v9  ;;  %v4945_v20 = vadd.f32 %v4944_v5, %v9339_v37  ;;  %v5016_v55 = vmax.f32 %v4828_v43, 0.0  ;;  %v5018_v24 = vmax.f32 %v4941_v36, 0.0 }
0x1043   : > { %v5019_v32 = vmax.f32 %v4830_v18, 0.0  ;;  %v5021_v25 = vmax.f32 %v4943_v62, 0.0 }
0x1044   : > { %v5020_v26 = vmax.f32 %v4832_v28, 0.0  ;;  %v5022_v3 = vmax.f32 %v4945_v20, 0.0 }
0x1045   : > { %v5075_v50 = vpack.c.bf16 %v5019_v32, %v5015_v2  ;;  %v5077_v58 = vpack.c.bf16 %v5021_v25, %v5017_v8 }
0x1046   : > { %v5076_v51 = vpack.c.bf16 %v5020_v26, %v5016_v55  ;;  %v5078_v34 = vpack.c.bf16 %v5022_v3, %v5018_v24 }
0x1048   : > { %5406 = vmatprep.mubr.bf16.mxu1 %v5076_v51  ;;  %5503 = vmatprep.mubr.bf16.mxu0 %v5078_v34 }
0x1049   : > { %5407 = vmatmul.mubr.bf16.gmra.mrb[124].mxu1 %v5075_v50  ;;  %5504 = vmatmul.mubr.bf16.gmra.mrb[140].mxu0 %v5077_v58 }
0x1064   : > { %v4835_v39 = vpop.f32.mrb[96].mxu1  ;;  %v4948_v41 = vpop.f32.mrb[112].mxu0 }
0x1065   : > { %v4836_v30 = vadd.f32 %v4835_v39, %v9329_v57  ;;  %v4949_v0 = vadd.f32 %v4948_v41, %v9333_v10  ;;  %v4837_v45 = vpop.f32.mrb[97].mxu1  ;;  %v4950_v47 = vpop.f32.mrb[113].mxu0 }
0x1066   : > { %v4838_v31 = vadd.f32 %v4837_v45, %v9337_v9  ;;  %v4951_v6 = vadd.f32 %v4950_v47, %v9339_v37  ;;  %v4839_v48 = vpop.f32.mrb[98].mxu1  ;;  %v4952_v49 = vpop.f32.mrb[114].mxu0 }
0x1067   : > { %v4840_v23 = vadd.f32 %v4839_v48, %v9329_v57  ;;  %v4953_v29 = vadd.f32 %v4952_v49, %v9333_v10  ;;  %v4841_v61 = vpop.f32.mrb[99].mxu1  ;;  %v4954_v44 = vpop.f32.mrb[115].mxu0  ;;  %v5023_v4 = vmax.f32 %v4836_v30, 0.0  ;;  %v5025_v40 = vmax.f32 %v4949_v0, 0.0 }
0x1068   : > { %v4842_v33 = vadd.f32 %v4841_v61, %v9337_v9  ;;  %v4955_v11 = vadd.f32 %v4954_v44, %v9339_v37  ;;  %v5024_v52 = vmax.f32 %v4838_v31, 0.0  ;;  %v5026_v35 = vmax.f32 %v4951_v6, 0.0 }
0x1069   : > { %v5027_v7 = vmax.f32 %v4840_v23, 0.0  ;;  %v5029_v38 = vmax.f32 %v4953_v29, 0.0 }
0x106a   : > { %v5028_v43 = vmax.f32 %v4842_v33, 0.0  ;;  %v5030_v36 = vmax.f32 %v4955_v11, 0.0 }
0x106b   : > { %v5079_v56 = vpack.c.bf16 %v5027_v7, %v5023_v4  ;;  %v5081_v21 = vpack.c.bf16 %v5029_v38, %v5025_v40 }
0x106c   : > { %v5080_v18 = vpack.c.bf16 %v5028_v43, %v5024_v52  ;;  %v5082_v62 = vpack.c.bf16 %v5030_v36, %v5026_v35  ;;  %v4845_v12 = vpop.f32.mrb[100].mxu1  ;;  %v4958_v5 = vpop.f32.mrb[116].mxu0 }
0x106d   : > { %v4846_v28 = vadd.f32 %v4845_v12, %v9329_v57  ;;  %v4959_v20 = vadd.f32 %v4958_v5, %v9333_v10  ;;  %v4847_v2 = vpop.f32.mrb[101].mxu1  ;;  %v4960_v8 = vpop.f32.mrb[117].mxu0 }
0x106e   : > { %v4848_v32 = vadd.f32 %v4847_v2, %v9337_v9  ;;  %v4961_v25 = vadd.f32 %v4960_v8, %v9339_v37  ;;  %v4849_v55 = vpop.f32.mrb[102].mxu1  ;;  %v4962_v24 = vpop.f32.mrb[118].mxu0  ;;  %5414 = vmatprep.mubr.bf16.mxu1 %v5080_v18  ;;  %5511 = vmatprep.mubr.bf16.mxu0 %v5082_v62 }
0x106f   : > { %v4850_v26 = vadd.f32 %v4849_v55, %v9329_v57  ;;  %v4963_v3 = vadd.f32 %v4962_v24, %v9333_v10  ;;  %v4851_v50 = vpop.f32.mrb[103].mxu1  ;;  %v4964_v58 = vpop.f32.mrb[119].mxu0  ;;  %5415 = vmatmul.mubr.bf16.gmra.mrb[128].mxu1 %v5079_v56  ;;  %5512 = vmatmul.mubr.bf16.gmra.mrb[144].mxu0 %v5081_v21  ;;  %v5031_v39 = vmax.f32 %v4846_v28, 0.0  ;;  %v5033_v41 = vmax.f32 %v4959_v20, 0.0 }
0x1070   : > { %v4852_v51 = vadd.f32 %v4851_v50, %v9337_v9  ;;  %v4965_v34 = vadd.f32 %v4964_v58, %v9339_v37  ;;  %v5032_v45 = vmax.f32 %v4848_v32, 0.0  ;;  %v5034_v47 = vmax.f32 %v4961_v25, 0.0 }
0x1071   : > { %v5035_v30 = vmax.f32 %v4850_v26, 0.0  ;;  %v5037_v0 = vmax.f32 %v4963_v3, 0.0 }
0x1072   : > { %v5036_v31 = vmax.f32 %v4852_v51, 0.0  ;;  %v5038_v6 = vmax.f32 %v4965_v34, 0.0 }
0x1073   : > { %v5083_v48 = vpack.c.bf16 %v5035_v30, %v5031_v39  ;;  %v5085_v49 = vpack.c.bf16 %v5037_v0, %v5033_v41 }
0x1074   : > { %v5084_v23 = vpack.c.bf16 %v5036_v31, %v5032_v45  ;;  %v5086_v29 = vpack.c.bf16 %v5038_v6, %v5034_v47 }
0x1076   : > { %5422 = vmatprep.mubr.bf16.mxu1 %v5084_v23  ;;  %5519 = vmatprep.mubr.bf16.mxu0 %v5086_v29 }
0x1077   : > { %5423 = vmatmul.mubr.bf16.gmra.mrb[132].mxu1 %v5083_v48  ;;  %5520 = vmatmul.mubr.bf16.gmra.mrb[148].mxu0 %v5085_v49 }
0x1097   : > { %v4855_v61 = vpop.f32.mrb[104].mxu1  ;;  %v4968_v44 = vpop.f32.mrb[120].mxu0 }
0x1098   : > { %v4856_v33 = vadd.f32 %v4855_v61, %v9329_v57  ;;  %v4969_v11 = vadd.f32 %v4968_v44, %v9333_v10  ;;  %v4857_v4 = vpop.f32.mrb[105].mxu1  ;;  %v4970_v40 = vpop.f32.mrb[121].mxu0 }
0x1099   : > { %v4858_v7 = vadd.f32 %v4857_v4, %v9337_v9  ;;  %v4971_v38 = vadd.f32 %v4970_v40, %v9339_v37  ;;  %v4859_v52 = vpop.f32.mrb[106].mxu1  ;;  %v4972_v35 = vpop.f32.mrb[122].mxu0 }
0x109a   : > { %v4860_v43 = vadd.f32 %v4859_v52, %v9329_v57  ;;  %v4973_v36 = vadd.f32 %v4972_v35, %v9333_v10  ;;  %v4861_v56 = vpop.f32.mrb[107].mxu1  ;;  %v4974_v21 = vpop.f32.mrb[123].mxu0  ;;  %v5039_v12 = vmax.f32 %v4856_v33, 0.0  ;;  %v5041_v5 = vmax.f32 %v4969_v11, 0.0 }
0x109b   : > { %v4862_v18 = vadd.f32 %v4861_v56, %v9337_v9  ;;  %v4975_v62 = vadd.f32 %v4974_v21, %v9339_v37  ;;  %v5040_v2 = vmax.f32 %v4858_v7, 0.0  ;;  %v5042_v8 = vmax.f32 %v4971_v38, 0.0 }
0x109c   : > { %v5043_v28 = vmax.f32 %v4860_v43, 0.0  ;;  %v5045_v20 = vmax.f32 %v4973_v36, 0.0 }
0x109d   : > { %v5044_v32 = vmax.f32 %v4862_v18, 0.0  ;;  %v5046_v25 = vmax.f32 %v4975_v62, 0.0 }
0x109e   : > { %v5087_v55 = vpack.c.bf16 %v5043_v28, %v5039_v12  ;;  %v5089_v24 = vpack.c.bf16 %v5045_v20, %v5041_v5 }
0x109f   : > { %v5088_v26 = vpack.c.bf16 %v5044_v32, %v5040_v2  ;;  %v5090_v3 = vpack.c.bf16 %v5046_v25, %v5042_v8  ;;  %v4865_v50 = vpop.f32.mrb[108].mxu1  ;;  %v4978_v58 = vpop.f32.mrb[124].mxu0 }
0x10a0   : > { %v4866_v51 = vadd.f32 %v4865_v50, %v9329_v57  ;;  %v4979_v34 = vadd.f32 %v4978_v58, %v9333_v10  ;;  %v4867_v39 = vpop.f32.mrb[109].mxu1  ;;  %v4980_v41 = vpop.f32.mrb[125].mxu0 }
0x10a1   : > { %v4868_v30 = vadd.f32 %v4867_v39, %v9337_v9  ;;  %v4981_v0 = vadd.f32 %v4980_v41, %v9339_v37  ;;  %v4869_v45 = vpop.f32.mrb[110].mxu1  ;;  %v4982_v47 = vpop.f32.mrb[126].mxu0  ;;  %5430 = vmatprep.mubr.bf16.mxu1 %v5088_v26  ;;  %5527 = vmatprep.mubr.bf16.mxu0 %v5090_v3 }
0x10a2   : > { %v4870_v31 = vadd.f32 %v4869_v45, %v9329_v57  ;;  %v4983_v6 = vadd.f32 %v4982_v47, %v9333_v10  ;;  %v4871_v48 = vpop.f32.mrb[111].mxu1  ;;  %v4984_v49 = vpop.f32.mrb[127].mxu0  ;;  %5431 = vmatmul.mubr.bf16.gmra.mrb[136].mxu1 %v5087_v55  ;;  %5528 = vmatmul.mubr.bf16.gmra.mrb[152].mxu0 %v5089_v24  ;;  %v5047_v61 = vmax.f32 %v4866_v51, 0.0  ;;  %v5049_v44 = vmax.f32 %v4979_v34, 0.0 }
0x10a3   : > { %v4872_v23 = vadd.f32 %v4871_v48, %v9337_v9  ;;  %v4985_v29 = vadd.f32 %v4984_v49, %v9339_v37  ;;  %v5048_v4 = vmax.f32 %v4868_v30, 0.0  ;;  %v5050_v40 = vmax.f32 %v4981_v0, 0.0 }
0x10a4   : > { %v5051_v33 = vmax.f32 %v4870_v31, 0.0  ;;  %v5053_v11 = vmax.f32 %v4983_v6, 0.0 }
0x10a5   : > { %v5052_v7 = vmax.f32 %v4872_v23, 0.0  ;;  %v5054_v38 = vmax.f32 %v4985_v29, 0.0 }
0x10a6   : > { %v5091_v52 = vpack.c.bf16 %v5051_v33, %v5047_v61  ;;  %v5093_v35 = vpack.c.bf16 %v5053_v11, %v5049_v44 }
0x10a7   : > { %v5092_v43 = vpack.c.bf16 %v5052_v7, %v5048_v4  ;;  %v5094_v36 = vpack.c.bf16 %v5054_v38, %v5050_v40  ;;  %v4875_v56 = vpop.f32.mrb[112].mxu1  ;;  %v4988_v21 = vpop.f32.mrb[128].mxu0 }
0x10a8   : > { %v4876_v18 = vadd.f32 %v4875_v56, %v9329_v57  ;;  %v4989_v62 = vadd.f32 %v4988_v21, %v9333_v10  ;;  %v4877_v12 = vpop.f32.mrb[113].mxu1  ;;  %v4990_v5 = vpop.f32.mrb[129].mxu0 }
0x10a9   : > { %v4878_v28 = vadd.f32 %v4877_v12, %v9337_v9  ;;  %v4991_v20 = vadd.f32 %v4990_v5, %v9339_v37  ;;  %v4879_v2 = vpop.f32.mrb[114].mxu1  ;;  %v4992_v8 = vpop.f32.mrb[130].mxu0  ;;  %5438 = vmatprep.mubr.bf16.mxu1 %v5092_v43  ;;  %5535 = vmatprep.mubr.bf16.mxu0 %v5094_v36 }
0x10aa   : > { %v4880_v32 = vadd.f32 %v4879_v2, %v9329_v57  ;;  %v4993_v25 = vadd.f32 %v4992_v8, %v9333_v10  ;;  %v4881_v55 = vpop.f32.mrb[115].mxu1  ;;  %v4994_v24 = vpop.f32.mrb[131].mxu0  ;;  %5439 = vmatmul.mubr.bf16.gmra.mrb[140].mxu1 %v5091_v52  ;;  %5536 = vmatmul.mubr.bf16.gmra.mrb[156].mxu0 %v5093_v35  ;;  %v5055_v50 = vmax.f32 %v4876_v18, 0.0  ;;  %v5057_v58 = vmax.f32 %v4989_v62, 0.0 }
0x10ab   : > { %v4882_v26 = vadd.f32 %v4881_v55, %v9337_v9  ;;  %v4995_v3 = vadd.f32 %v4994_v24, %v9339_v37  ;;  %v5056_v39 = vmax.f32 %v4878_v28, 0.0  ;;  %v5058_v41 = vmax.f32 %v4991_v20, 0.0 }
0x10ac   : > { %v5059_v51 = vmax.f32 %v4880_v32, 0.0  ;;  %v5061_v34 = vmax.f32 %v4993_v25, 0.0 }
0x10ad   : > { %v5060_v30 = vmax.f32 %v4882_v26, 0.0  ;;  %v5062_v0 = vmax.f32 %v4995_v3, 0.0 }
0x10ae   : > { %v5095_v45 = vpack.c.bf16 %v5059_v51, %v5055_v50  ;;  %v5097_v47 = vpack.c.bf16 %v5061_v34, %v5057_v58 }
0x10af   : > { %v5096_v31 = vpack.c.bf16 %v5060_v30, %v5056_v39  ;;  %v5098_v6 = vpack.c.bf16 %v5062_v0, %v5058_v41  ;;  %v4885_v48 = vpop.f32.mrb[116].mxu1  ;;  %v4998_v49 = vpop.f32.mrb[132].mxu0 }
0x10b0   : > { %v4886_v23 = vadd.f32 %v4885_v48, %v9329_v57  ;;  %v4999_v29 = vadd.f32 %v4998_v49, %v9333_v10  ;;  %v4887_v61 = vpop.f32.mrb[117].mxu1  ;;  %v5000_v44 = vpop.f32.mrb[133].mxu0 }
0x10b1   : > { %v4888_v33 = vadd.f32 %v4887_v61, %v9337_v9  ;;  %v5001_v11 = vadd.f32 %v5000_v44, %v9339_v37  ;;  %v4889_v4 = vpop.f32.mrb[118].mxu1  ;;  %v5002_v40 = vpop.f32.mrb[134].mxu0  ;;  %5446 = vmatprep.mubr.bf16.mxu1 %v5096_v31  ;;  %5543 = vmatprep.mubr.bf16.mxu0 %v5098_v6 }
0x10b2   : > { %v4890_v7 = vadd.f32 %v4889_v4, %v9329_v57  ;;  %v5003_v38 = vadd.f32 %v5002_v40, %v9333_v10  ;;  %v4891_v52 = vpop.f32.mrb[119].mxu1  ;;  %v5004_v35 = vpop.f32.mrb[135].mxu0  ;;  %5447 = vmatmul.mubr.bf16.gmra.mrb[144].mxu1 %v5095_v45  ;;  %5544 = vmatmul.mubr.bf16.gmra.mrb[160].mxu0 %v5097_v47  ;;  %v5063_v56 = vmax.f32 %v4886_v23, 0.0  ;;  %v5065_v21 = vmax.f32 %v4999_v29, 0.0 }
0x10b3   : > { %v4892_v43 = vadd.f32 %v4891_v52, %v9337_v9  ;;  %v5005_v36 = vadd.f32 %v5004_v35, %v9339_v37  ;;  %v5064_v12 = vmax.f32 %v4888_v33, 0.0  ;;  %v5066_v5 = vmax.f32 %v5001_v11, 0.0  ;;  %v9408_v37 = vld [vmem:[%s9602_s10] ss:$0 sm:$0xff] }
0x10b4   : > { %v5067_v18 = vmax.f32 %v4890_v7, 0.0  ;;  %v5069_v62 = vmax.f32 %v5003_v38, 0.0 }
0x10b5   : > { %v5068_v28 = vmax.f32 %v4892_v43, 0.0  ;;  %v5070_v20 = vmax.f32 %v5005_v36, 0.0 }
0x10b6   : > { %v5099_v2 = vpack.c.bf16 %v5067_v18, %v5063_v56  ;;  %v5101_v57 = vpack.c.bf16 %v5069_v62, %v5065_v21 }
0x10b7   : > { %v5100_v8 = vpack.c.bf16 %v5068_v28, %v5064_v12  ;;  %v5102_v10 = vpack.c.bf16 %v5070_v20, %v5066_v5 }
0x10b9   : > { %5454 = vmatprep.mubr.bf16.mxu1 %v5100_v8  ;;  %5551 = vmatprep.mubr.bf16.mxu0 %v5102_v10 }
0x10ba   : > { %5455 = vmatmul.mubr.bf16.gmra.mrb[148].mxu1 %v5099_v2  ;;  %5552 = vmatmul.mubr.bf16.gmra.mrb[164].mxu0 %v5101_v57 }
0x1114   : > { %v6077_v32 = vpop.f32.mrb[120].mxu1  ;;  %v6141_v9 = vpop.f32.mrb[136].mxu0 }
0x1115   : > { %v6078_v25 = vpop.f32.mrb[121].mxu1  ;;  %v6142_v55 = vpop.f32.mrb[137].mxu0 }
0x1116   : > { %v6079_v24 = vadd.f32 %v6078_v25, %v6077_v32  ;;  %v6143_v26 = vadd.f32 %v6142_v55, %v6141_v9  ;;  %v6080_v3 = vpop.f32.mrb[122].mxu1  ;;  %v6144_v50 = vpop.f32.mrb[138].mxu0 }
0x1117   : > { %v6081_v58 = vpop.f32.mrb[123].mxu1  ;;  %v6145_v51 = vpop.f32.mrb[139].mxu0 }
0x1118   : > { %v5401_v34 = vadd.f32 %v6079_v24, %v9408_v37  ;;  %v6082_v39 = vadd.f32 %v6081_v58, %v6080_v3  ;;  %v6146_v41 = vadd.f32 %v6145_v51, %v6144_v50 }
0x111a   : > { %v5498_v30 = vadd.f32 %v6143_v26, %v5401_v34  ;;  %v5404_v0 = vadd.f32 %v6082_v39, %v9408_v37 }
0x111c   : > { %v5560_v45 = vadd.f32 %v5498_v30, %v9094_v1  ;;  %v5501_v47 = vadd.f32 %v6146_v41, %v5404_v0  ;;  %v6083_v31 = vpop.f32.mrb[124].mxu1  ;;  %v6147_v6 = vpop.f32.mrb[140].mxu0 }
0x111d   : > { %v6084_v48 = vpop.f32.mrb[125].mxu1  ;;  %v6148_v49 = vpop.f32.mrb[141].mxu0 }
0x111e   : > { %5576 = vst [vmem:[%s9415_s22] sm:$0xff] %v5560_v45  ;;  %v5561_v23 = vadd.f32 %v5501_v47, %v9098_v15  ;;  %v6085_v29 = vadd.f32 %v6084_v48, %v6083_v31  ;;  %v6149_v61 = vadd.f32 %v6148_v49, %v6147_v6  ;;  %v6086_v44 = vpop.f32.mrb[126].mxu1  ;;  %v6150_v33 = vpop.f32.mrb[142].mxu0 }
0x111f   : > { %v6087_v1 = vpop.f32.mrb[127].mxu1  ;;  %v6151_v11 = vpop.f32.mrb[143].mxu0 }
0x1120   : > { %5577 = vst [vmem:[%s9415_s22 + $0x8] sm:$0xff] %v5561_v23  ;;  %v5409_v4 = vadd.f32 %v6085_v29, %v9408_v37  ;;  %v6088_v40 = vadd.f32 %v6087_v1, %v6086_v44  ;;  %v6152_v7 = vadd.f32 %v6151_v11, %v6150_v33 }
0x1122   : > { %v5506_v38 = vadd.f32 %v6149_v61, %v5409_v4  ;;  %v5412_v52 = vadd.f32 %v6088_v40, %v9408_v37 }
0x1124   : > { %v5562_v35 = vadd.f32 %v5506_v38, %v9102_v13  ;;  %v5509_v43 = vadd.f32 %v6152_v7, %v5412_v52 }
0x1126   : > { %5578 = vst [vmem:[%s9415_s22 + $0x10] sm:$0xff] %v5562_v35  ;;  %v5563_v15 = vadd.f32 %v5509_v43, %v9108_v46 }
0x1128   : > { %5579 = vst [vmem:[%s9415_s22 + $0x18] sm:$0xff] %v5563_v15 }
0x1142   : > { %v6089_v36 = vpop.f32.mrb[128].mxu1  ;;  %v6153_v56 = vpop.f32.mrb[144].mxu0 }
0x1143   : > { %v6090_v21 = vpop.f32.mrb[129].mxu1  ;;  %v6154_v18 = vpop.f32.mrb[145].mxu0 }
0x1144   : > { %v6091_v62 = vadd.f32 %v6090_v21, %v6089_v36  ;;  %v6155_v12 = vadd.f32 %v6154_v18, %v6153_v56  ;;  %v6092_v5 = vpop.f32.mrb[130].mxu1  ;;  %v6156_v28 = vpop.f32.mrb[146].mxu0 }
0x1145   : > { %v6093_v20 = vpop.f32.mrb[131].mxu1  ;;  %v6157_v2 = vpop.f32.mrb[147].mxu0 }
0x1146   : > { %v5417_v57 = vadd.f32 %v6091_v62, %v9408_v37  ;;  %v6094_v8 = vadd.f32 %v6093_v20, %v6092_v5  ;;  %v6158_v13 = vadd.f32 %v6157_v2, %v6156_v28 }
0x1148   : > { %v5514_v10 = vadd.f32 %v6155_v12, %v5417_v57  ;;  %v5420_v46 = vadd.f32 %v6094_v8, %v9408_v37 }
0x114a   : > { %v5564_v32 = vadd.f32 %v5514_v10, %v9114_v27  ;;  %v5517_v9 = vadd.f32 %v6158_v13, %v5420_v46  ;;  %v6095_v25 = vpop.f32.mrb[132].mxu1  ;;  %v6159_v55 = vpop.f32.mrb[148].mxu0 }
0x114b   : > { %v6096_v24 = vpop.f32.mrb[133].mxu1  ;;  %v6160_v26 = vpop.f32.mrb[149].mxu0 }
0x114c   : > { %5580 = vst [vmem:[%s9415_s22 + $0x20] sm:$0xff] %v5564_v32  ;;  %v5565_v3 = vadd.f32 %v5517_v9, %v9119_v14  ;;  %v6097_v50 = vadd.f32 %v6096_v24, %v6095_v25  ;;  %v6161_v58 = vadd.f32 %v6160_v26, %v6159_v55  ;;  %v6098_v51 = vpop.f32.mrb[134].mxu1  ;;  %v6162_v34 = vpop.f32.mrb[150].mxu0 }
0x114d   : > { %v6099_v39 = vpop.f32.mrb[135].mxu1  ;;  %v6163_v41 = vpop.f32.mrb[151].mxu0 }
0x114e   : > { %5581 = vst [vmem:[%s9415_s22 + $0x28] sm:$0xff] %v5565_v3  ;;  %v5425_v30 = vadd.f32 %v6097_v50, %v9408_v37  ;;  %v6100_v27 = vadd.f32 %v6099_v39, %v6098_v51  ;;  %v6164_v0 = vadd.f32 %v6163_v41, %v6162_v34 }
0x1150   : > { %v5522_v45 = vadd.f32 %v6161_v58, %v5425_v30  ;;  %v5428_v47 = vadd.f32 %v6100_v27, %v9408_v37 }
0x1152   : > { %v5566_v31 = vadd.f32 %v5522_v45, %v9123_v42  ;;  %v5525_v6 = vadd.f32 %v6164_v0, %v5428_v47 }
0x1154   : > { %5582 = vst [vmem:[%s9415_s22 + $0x30] sm:$0xff] %v5566_v31  ;;  %v5567_v14 = vadd.f32 %v5525_v6, %v9127_v63 }
0x1156   : > { %5583 = vst [vmem:[%s9415_s22 + $0x38] sm:$0xff] %v5567_v14 }
0x1175   : > { %v6101_v48 = vpop.f32.mrb[136].mxu1  ;;  %v6165_v49 = vpop.f32.mrb[152].mxu0 }
0x1176   : > { %v6102_v23 = vpop.f32.mrb[137].mxu1  ;;  %v6166_v29 = vpop.f32.mrb[153].mxu0 }
0x1177   : > { %v6103_v61 = vadd.f32 %v6102_v23, %v6101_v48  ;;  %v6167_v44 = vadd.f32 %v6166_v29, %v6165_v49  ;;  %v6104_v33 = vpop.f32.mrb[138].mxu1  ;;  %v6168_v1 = vpop.f32.mrb[154].mxu0 }
0x1178   : > { %v6105_v11 = vpop.f32.mrb[139].mxu1  ;;  %v6169_v4 = vpop.f32.mrb[155].mxu0 }
0x1179   : > { %v5433_v40 = vadd.f32 %v6103_v61, %v9408_v37  ;;  %v6106_v7 = vadd.f32 %v6105_v11, %v6104_v33  ;;  %v6170_v42 = vadd.f32 %v6169_v4, %v6168_v1 }
0x117b   : > { %v5530_v38 = vadd.f32 %v6167_v44, %v5433_v40  ;;  %v5436_v63 = vadd.f32 %v6106_v7, %v9408_v37 }
0x117d   : > { %v5568_v52 = vadd.f32 %v5530_v38, %v9134_v22  ;;  %v5533_v35 = vadd.f32 %v6170_v42, %v5436_v63  ;;  %v6107_v43 = vpop.f32.mrb[140].mxu1  ;;  %v6171_v15 = vpop.f32.mrb[156].mxu0 }
0x117e   : > { %v6108_v36 = vpop.f32.mrb[141].mxu1  ;;  %v6172_v56 = vpop.f32.mrb[157].mxu0 }
0x117f   : > { %5584 = vst [vmem:[%s9415_s22 + $0x40] sm:$0xff] %v5568_v52  ;;  %v5569_v21 = vadd.f32 %v5533_v35, %v9139_v59  ;;  %v6109_v18 = vadd.f32 %v6108_v36, %v6107_v43  ;;  %v6173_v62 = vadd.f32 %v6172_v56, %v6171_v15  ;;  %v6110_v12 = vpop.f32.mrb[142].mxu1  ;;  %v6174_v5 = vpop.f32.mrb[158].mxu0 }
0x1180   : > { %v6111_v28 = vpop.f32.mrb[143].mxu1  ;;  %v6175_v20 = vpop.f32.mrb[159].mxu0 }
0x1181   : > { %5585 = vst [vmem:[%s9415_s22 + $0x48] sm:$0xff] %v5569_v21  ;;  %v5441_v2 = vadd.f32 %v6109_v18, %v9408_v37  ;;  %v6112_v57 = vadd.f32 %v6111_v28, %v6110_v12  ;;  %v6176_v22 = vadd.f32 %v6175_v20, %v6174_v5 }
0x1183   : > { %v5538_v8 = vadd.f32 %v6173_v62, %v5441_v2  ;;  %v5444_v13 = vadd.f32 %v6112_v57, %v9408_v37 }
0x1185   : > { %v5570_v10 = vadd.f32 %v5538_v8, %v9143_v17  ;;  %v5541_v46 = vadd.f32 %v6176_v22, %v5444_v13  ;;  %v6113_v59 = vpop.f32.mrb[144].mxu1  ;;  %v6177_v32 = vpop.f32.mrb[160].mxu0 }
0x1186   : > { %v6114_v9 = vpop.f32.mrb[145].mxu1  ;;  %v6178_v25 = vpop.f32.mrb[161].mxu0 }
0x1187   : > { %5586 = vst [vmem:[%s9415_s22 + $0x50] sm:$0xff] %v5570_v10  ;;  %v5571_v55 = vadd.f32 %v5541_v46, %v9147_v54  ;;  %v6115_v24 = vadd.f32 %v6114_v9, %v6113_v59  ;;  %v6179_v26 = vadd.f32 %v6178_v25, %v6177_v32  ;;  %v6116_v3 = vpop.f32.mrb[146].mxu1  ;;  %v6180_v50 = vpop.f32.mrb[162].mxu0 }
0x1188   : > { %v6117_v58 = vpop.f32.mrb[147].mxu1  ;;  %v6181_v51 = vpop.f32.mrb[163].mxu0 }
0x1189   : > { %5587 = vst [vmem:[%s9415_s22 + $0x58] sm:$0xff] %v5571_v55  ;;  %v5449_v34 = vadd.f32 %v6115_v24, %v9408_v37  ;;  %v6118_v39 = vadd.f32 %v6117_v58, %v6116_v3  ;;  %v6182_v17 = vadd.f32 %v6181_v51, %v6180_v50 }
0x118b   : > { %v5546_v41 = vadd.f32 %v6179_v26, %v5449_v34  ;;  %v5452_v30 = vadd.f32 %v6118_v39, %v9408_v37 }
0x118d   : > { %v5572_v27 = vadd.f32 %v5546_v41, %v9154_v60  ;;  %v5549_v0 = vadd.f32 %v6182_v17, %v5452_v30  ;;  %v6119_v54 = vpop.f32.mrb[148].mxu1  ;;  %v6183_v45 = vpop.f32.mrb[164].mxu0 }
0x118e   : > { %v6120_v47 = vpop.f32.mrb[149].mxu1  ;;  %v6184_v31 = vpop.f32.mrb[165].mxu0 }
0x118f   : > { %5588 = vst [vmem:[%s9415_s22 + $0x60] sm:$0xff] %v5572_v27  ;;  %v5573_v6 = vadd.f32 %v5549_v0, %v9159_v53  ;;  %v6121_v14 = vadd.f32 %v6120_v47, %v6119_v54  ;;  %v6185_v48 = vadd.f32 %v6184_v31, %v6183_v45  ;;  %v6122_v49 = vpop.f32.mrb[150].mxu1  ;;  %v6186_v23 = vpop.f32.mrb[166].mxu0 }
0x1190   : > { %v6123_v29 = vpop.f32.mrb[151].mxu1  ;;  %v6187_v61 = vpop.f32.mrb[167].mxu0 }
0x1191   : > { %5589 = vst [vmem:[%s9415_s22 + $0x68] sm:$0xff] %v5573_v6  ;;  %v5457_v60 = vadd.f32 %v6121_v14, %v9408_v37  ;;  %v6124_v44 = vadd.f32 %v6123_v29, %v6122_v49  ;;  %v6188_v33 = vadd.f32 %v6187_v61, %v6186_v23 }
0x1193   : > { %v5554_v1 = vadd.f32 %v6185_v48, %v5457_v60  ;;  %v5460_v11 = vadd.f32 %v6124_v44, %v9408_v37 }
0x1195   : > { %v5574_v53 = vadd.f32 %v5554_v1, %v9163_v19  ;;  %v5557_v4 = vadd.f32 %v6188_v33, %v5460_v11 }
0x1197   : > { %5590 = vst [vmem:[%s9415_s22 + $0x70] sm:$0xff] %v5574_v53  ;;  %v5575_v40 = vadd.f32 %v5557_v4, %v9167_v16 }
0x1199   : > { %5591 = vst [vmem:[%s9415_s22 + $0x78] sm:$0xff] %v5575_v40 }
0x119a   : > { %7215 = shalt.err (!%p7212_p4)
}
0x119b   : > { %s7216_s16 = scalar_lea.hbm %s9464_s15, 2048  ;;  %s7220_s22 = scalar_lea.hbm %s9603_s3, 4096 }
0x119c   : > { %p7217_p9 = scmp.ne.s32.totalorder %s9464_s15, %s7216_s16  ;;  %p7221_p8 = scmp.lt.u32.totalorder %s9464_s15, %s9603_s3 }
0x119d   : > { %p7222_p13 = scmp.lt.u32.totalorder %s7220_s22, %s7216_s16  ;;  %p7224_p10 = scmp.lt.u32.totalorder %s7216_s16, %s9464_s15 }
0x119e   : > { %p7218_p0 = pnand %p7217_p9, %p7509_p5 }
0x119f   : > { %p7223_p6 = por %p7222_p13, %p7221_p8 }
0x11a0   : > { %p7219_p11 = pneg %p7218_p0 }
0x11a1   : > { %p7225_p3 = por %p7224_p10, %p7223_p6 }
0x11a3   : > { %p7226_p7 = pnand %p7225_p3, %p7219_p11 }
0x11a5   : > { %7229 = shalt.err (!%p7226_p7)
}
0x11a6   : > { %s7295_s13 = smov 128   ;;  %s7296_s29 = smov 8  }
0x11a7   : > { %6555 = dma.vmem_to_hbm [thread:$0]  (%p7509_p5), %s9466_s21, 2048, %s9464_s15, %s5593_s8, %s7295_s13, %s7295_s13, %s7296_s29  }
0x11a8 PF: > { %s9604_s23 = sld [smem:[#allocation16_spill]]  ;;  %s9605_s20 = sld [smem:[#allocation17_spill]] }
0x11a9   : > { %p9607_p2 = scmp.ge.s32.totalorder %s7276_s28, 2 }
0x11ae   : > { %s5622_s14 = sand.u32 1, %s9604_s23   ;;  %p9606_p12 = scmp.ne.s32.totalorder %s9605_s20, 0 }
0x11af   : > { %s5623_s16 = scalar_lea.sflag [#allocation5], %s5622_s14 }
0x11b0   : > { %p6572_p1 = pnand %p9607_p2, %p9606_p12 }
0x11b2   : > { %7259 = dma.done.wait (!%p6572_p1), %s5623_s16, 2048  }
0x11b3   : > { %7261 = vsyncadd (!%p6572_p1), %s5623_s16, 4294965248  ;;  %p28_p4 = scmp.ge.s32.totalorder %s7495_s12, 4   ;;  %s9608_s25 = smov %s7268_s26 }
0x11b4   : > { %s9609_s26 = smov %s7272_s27  ;;  %s9610_s27 = smov %s7505_s24 }
0x11b5   : > { %s9611_s28 = smov %s7495_s12  ;;  %30 = sbr.rel (!%p28_p4) target bundleno = 13 (0xd), region = 129 }
0x11bc   :  { %5628 = vsyncpa [#allocation4], 1 }
0x11bd   :  { %5630 = vsyncpa [#allocation4 + $0x1], 1 }
0x11be   :  { %5631 = vsyncpa [#allocation7], 1 }
0x11bf   :  { %5632 = vsyncpa [#allocation10], 1 }
0x11c0   :  { %5633 = vsyncpa [#allocation5], 1 }
0x11c1   :  { %5635 = vsyncpa [#allocation5 + $0x1], 1 }

</bundles_post_ra>
